<compile_context>
chip_gen: v7x
topology: tpu7x:2x2x1
jax: 0.10.0
libtpu: 0.0.40
codegen_flags: <defaults>
</compile_context>

<pallas_src>
import jax
import jax.numpy as jnp
from jax.experimental import pallas as pl
from jax.experimental.pallas import tpu as pltpu

GN_GROUPS = 32
GN_EPS = 1e-5


# ----------------------------------------------------------------------------
# GroupNorm(32) + ReLU on one sample, f32, single-pass (E[x^2]-E[x]^2) stats.
#   y : (1, M, C) f32, g/b : (1, C) f32  ->  (1, M, C) f32
# ----------------------------------------------------------------------------
def _gn_relu_f32(y, g, b):
    _, M, C = y.shape
    G = GN_GROUPS
    cg = C // G
    cnt = jnp.float32(M * cg)

    s1 = jnp.sum(y, axis=1)                                   # (1, C)
    s2 = jnp.sum(y * y, axis=1)                               # (1, C)
    gs1 = jnp.sum(s1.reshape(1, G, cg), axis=2)               # (1, G)
    gs2 = jnp.sum(s2.reshape(1, G, cg), axis=2)               # (1, G)
    mean_g = gs1 / cnt
    var_g = jnp.maximum(gs2 / cnt - mean_g * mean_g, 0.0)
    inv_g = jax.lax.rsqrt(var_g + GN_EPS)

    mean_c = jnp.broadcast_to(mean_g[:, :, None], (1, G, cg)).reshape(1, 1, C)
    inv_c = jnp.broadcast_to(inv_g[:, :, None], (1, G, cg)).reshape(1, 1, C)
    scale = inv_c * g.reshape(1, 1, C)
    shift = b.reshape(1, 1, C) - mean_c * scale
    return jnp.maximum(y * scale + shift, 0.0)


# ----------------------------------------------------------------------------
# Zero only the 1-wide halo of a (H+2, W+2, K) padded VMEM scratch.
# (The interior is fully rewritten every step, so the full zero-fill of the
# previous version was redundant store traffic.)
# ----------------------------------------------------------------------------
def _zero_border(pad_ref, H, W):
    K = pad_ref.shape[2]
    dt = pad_ref.dtype
    pad_ref[0:1, :, :] = jnp.zeros((1, W + 2, K), dt)
    pad_ref[H + 1:H + 2, :, :] = jnp.zeros((1, W + 2, K), dt)
    pad_ref[:, 0:1, :] = jnp.zeros((H + 2, 1, K), dt)
    pad_ref[:, W + 1:W + 2, :] = jnp.zeros((H + 2, 1, K), dt)


# ----------------------------------------------------------------------------
# 3x3 "same" conv from a zero-haloed scratch: 9 bf16 MXU matmuls, f32 acc.
# The 3 width-shifted views are materialized once; the height shift is then a
# free leading-dim slice of those values (W should be a multiple of 16 for
# the (H, W, Cin) -> (H*W, Cin) reshape to be a layout no-op in bf16).
# ----------------------------------------------------------------------------
def _conv3x3(pad_ref, w_ref, H, W):
    Cin = pad_ref.shape[2]
    Cout = w_ref.shape[3]
    shifted = [pad_ref[:, kw:kw + W, :] for kw in range(3)]   # (H+2, W, Cin)
    acc = jnp.zeros((H * W, Cout), jnp.float32)
    for kh in range(3):
        for kw in range(3):
            patch = shifted[kw][kh:kh + H].reshape(H * W, Cin)
            acc = acc + jnp.dot(patch, w_ref[kh, kw],
                                preferred_element_type=jnp.float32)
    return acc


# ----------------------------------------------------------------------------
# Fused kernel: one sample per grid step.
#   pre_ref, x_ref : (1, H, W, C)   bf16   (pre already resized to x's HxW)
#   w1_ref         : (3, 3, 2C, C)  bf16   (HWIO; PyTorch OIHW must be transposed)
#   g1/b1, g2/b2   : (1, C)         f32
#   w2_ref         : (3, 3, C, C)   bf16
#   wu_ref         : (C, Co)        bf16   (PyTorch (Co,C,1,1) -> (C,Co))
#   bu_ref         : (1, Co)        f32
#   o_ref          : (1, Co, H*W)   f32    (channel-major, lane-dense)
#   pad1_ref       : (H+2, W+2, 2C) bf16   VMEM scratch (conv1, fused concat)
#   pad2_ref       : (H+2, W+2, C)  bf16   VMEM scratch (conv2)
# ----------------------------------------------------------------------------
def up_conv_kernel(pre_ref, x_ref, w1_ref, g1_ref, b1_ref,
                   w2_ref, g2_ref, b2_ref, wu_ref, bu_ref,
                   o_ref, pad1_ref, pad2_ref):
    _, H, W, C = x_ref.shape
    Co = wu_ref.shape[1]

    # Zero only the halo, every step.  Do NOT gate on program_id == 0: with
    # dimension_semantics=("parallel",) the second TensorCore never executes
    # step 0, and its scratch halo would stay uninitialized.
    _zero_border(pad1_ref, H, W)
    _zero_border(pad2_ref, H, W)

    # Fused channel concat: the 2C-channel tensor never touches HBM.
    pad1_ref[1:H + 1, 1:W + 1, 0:C] = pre_ref[0]
    pad1_ref[1:H + 1, 1:W + 1, C:2 * C] = x_ref[0]

    # Conv3x3(2C -> C) -> GN(32) -> ReLU.
    acc1 = _conv3x3(pad1_ref, w1_ref, H, W)
    y = _gn_relu_f32(acc1.reshape(1, H * W, C), g1_ref[...], b1_ref[...])

    # Conv3x3(C -> C) -> GN(32) -> ReLU (intermediate stays in VMEM as bf16).
    pad2_ref[1:H + 1, 1:W + 1, :] = y.reshape(H, W, C).astype(pad2_ref.dtype)
    acc2 = _conv3x3(pad2_ref, w2_ref, H, W)
    z = _gn_relu_f32(acc2.reshape(1, H * W, C), g2_ref[...], b2_ref[...])

    # Fused UpSampling 1x1 conv (C -> Co, +bias), applied BEFORE the nearest
    # 2x upsample (pointwise conv commutes exactly with nearest replication).
    proj = jnp.dot(z.reshape(H * W, C).astype(jnp.bfloat16), wu_ref[...],
                   preferred_element_type=jnp.float32) + bu_ref[...]

    # Channel-major, lane-dense output (1, Co, H*W): the wrapper's reshape to
    # NCHW is free, removing the post-kernel HBM transpose pass.
    o_ref[...] = jnp.transpose(proj).reshape(1, Co, H * W).astype(o_ref.dtype)


# ----------------------------------------------------------------------------
# pallas_call wrapper: grid over batch, blocks pipelined HBM<->VMEM.
# ----------------------------------------------------------------------------
def _vmem_limit_bytes():
    try:
        cap = int(pltpu.get_tpu_info().vmem_capacity_bytes)
    except Exception:
        cap = 64 * 1024 * 1024
    # ~109 MiB on v5e/v6e (128 MiB physical), ~54 MiB on v7x (64 MiB physical).
    return max(32 * 1024 * 1024, min(int(cap * 0.85), 110 * 1024 * 1024))


def _compiler_params():
    return pltpu.CompilerParams(
        dimension_semantics=("parallel",),        # v7x: shard batch over 2 TCs
        vmem_limit_bytes=_vmem_limit_bytes(),
    )


def up_conv_fused(pre_b, x_b, w1, g1, b1, w2, g2, b2, wu, bu):
    N, H, W, C = x_b.shape
    Co = wu.shape[-1]
    # NOTE: weight/scale/bias blocks use a constant index_map; Pallas keeps
    # them resident (no per-step DMA).
    grid_spec = pltpu.PrefetchScalarGridSpec(
        num_scalar_prefetch=0,
        grid=(N,),
        in_specs=[
            pl.BlockSpec((1, H, W, C), lambda n: (n, 0, 0, 0)),
            pl.BlockSpec((1, H, W, C), lambda n: (n, 0, 0, 0)),
            pl.BlockSpec((3, 3, 2 * C, C), lambda n: (0, 0, 0, 0)),
            pl.BlockSpec((1, C), lambda n: (0, 0)),
            pl.BlockSpec((1, C), lambda n: (0, 0)),
            pl.BlockSpec((3, 3, C, C), lambda n: (0, 0, 0, 0)),
            pl.BlockSpec((1, C), lambda n: (0, 0)),
            pl.BlockSpec((1, C), lambda n: (0, 0)),
            pl.BlockSpec((C, Co), lambda n: (0, 0)),
            pl.BlockSpec((1, Co), lambda n: (0, 0)),
        ],
        out_specs=pl.BlockSpec((1, Co, H * W), lambda n: (n, 0, 0)),
        scratch_shapes=[
            pltpu.VMEM((H + 2, W + 2, 2 * C), jnp.bfloat16),
            pltpu.VMEM((H + 2, W + 2, C), jnp.bfloat16),
        ],
    )
    return pl.pallas_call(
        up_conv_kernel,
        out_shape=jax.ShapeDtypeStruct((N, Co, H * W), jnp.float32),
        grid_spec=grid_spec,
        compiler_params=_compiler_params(),
    )(pre_b, x_b, w1, g1, b1, w2, g2, b2, wu, bu)


# ----------------------------------------------------------------------------
# Plain-JAX glue.
# ----------------------------------------------------------------------------
def nearest_resize_nhwc(x, out_h, out_w):
    # PyTorch mode='nearest': src_idx = floor(dst_idx * in / out). One gather.
    n, h, w, c = x.shape
    if h == out_h and w == out_w:
        return x
    rows = (jnp.arange(out_h) * h) // out_h
    cols = (jnp.arange(out_w) * w) // out_w
    flat = (rows[:, None] * w + cols[None, :]).reshape(-1)
    out = jnp.take(x.reshape(n, h * w, c), flat, axis=1)
    return out.reshape(n, out_h, out_w, c)


def init_params(in_channels, key):
    C = in_channels
    k1, k2, k3, k4 = jax.random.split(key, 4)
    # NOTE: conv weights are stored HWIO; real PyTorch OIHW weights must be
    # transposed to (3,3,Cin,Cout), and the 1x1 weight (Co,C,1,1) to (C,Co).
    return {
        "w1": jax.random.normal(k1, (3, 3, 2 * C, C), jnp.float32) * 0.05,
        "g1": jnp.ones((1, C), jnp.float32),
        "b1": jnp.zeros((1, C), jnp.float32),
        "w2": jax.random.normal(k2, (3, 3, C, C), jnp.float32) * 0.05,
        "g2": jnp.ones((1, C), jnp.float32),
        "b2": jnp.zeros((1, C), jnp.float32),
        "wu": jax.random.normal(k3, (C, C // 2), jnp.float32) * 0.05,
        "bu": jax.random.normal(k4, (1, C // 2), jnp.float32) * 0.05,
    }


@jax.jit
def up_conv_forward(pre_nchw, x_nchw, params):
    """Up_Conv.forward with have_pre=True, need_up=True, use_deform=False."""
    N, C, H, W = x_nchw.shape
    Co = C // 2

    # NCHW -> NHWC, bf16 MXU operands (GroupNorm math stays f32 in-kernel).
    x_b = jnp.transpose(x_nchw, (0, 2, 3, 1)).astype(jnp.bfloat16)
    pre_b = jnp.transpose(pre_nchw, (0, 2, 3, 1)).astype(jnp.bfloat16)

    # pre = F.interpolate(pre, size=x.shape[-2:], mode='nearest')
    # TODO(synk): fuse this nearest resize into the kernel's scratch fill
    # (integer-ratio replication) to drop the extra HBM pass over `pre`.
    pre_b = nearest_resize_nhwc(pre_b, H, W)

    w1 = params["w1"].astype(jnp.bfloat16)
    w2 = params["w2"].astype(jnp.bfloat16)
    wu = params["wu"].astype(jnp.bfloat16)

    y = up_conv_fused(pre_b, x_b, w1, params["g1"], params["b1"],
                      w2, params["g2"], params["b2"], wu, params["bu"])

    # Kernel output is already channel-major -> NCHW reshape is free.  The 1x1
    # conv was applied before the 2x nearest upsample (exact commutation), so
    # the only remaining XLA op is the upsample broadcast itself.
    y = y.reshape(N, Co, H, W)
    y = jnp.broadcast_to(y[:, :, :, None, :, None], (N, Co, H, 2, W, 2))
    return y.reshape(N, Co, 2 * H, 2 * W)


# ----------------------------------------------------------------------------
# Pure-JAX f32 reference (for tolerance checking only).
# ----------------------------------------------------------------------------
@jax.jit
def _ref_forward(pre_nchw, x_nchw, params):
    N, C, H, W = x_nchw.shape
    _, _, Hp, Wp = pre_nchw.shape
    rows = (jnp.arange(H) * Hp) // H
    cols = (jnp.arange(W) * Wp) // W
    pre = pre_nchw[:, :, rows[:, None], cols[None, :]]
    cat = jnp.concatenate([pre, x_nchw], axis=1)

    def conv3(v, w_hwio):
        return jax.lax.conv_general_dilated(
            v, w_hwio, window_strides=(1, 1), padding=((1, 1), (1, 1)),
            dimension_numbers=("NCHW", "HWIO", "NCHW"))

    def gn(v, g, b):
        n, c, h, w = v.shape
        vg = v.reshape(n, GN_GROUPS, c // GN_GROUPS, h, w)
        mu = vg.mean(axis=(2, 3, 4), keepdims=True)
        var = vg.var(axis=(2, 3, 4), keepdims=True)
        vg = (vg - mu) / jnp.sqrt(var + GN_EPS)
        v = vg.reshape(n, c, h, w)
        return v * g.reshape(1, c, 1, 1) + b.reshape(1, c, 1, 1)

    y = jax.nn.relu(gn(conv3(cat, params["w1"]), params["g1"], params["b1"]))
    y = jax.nn.relu(gn(conv3(y, params["w2"]), params["g2"], params["b2"]))
    # UpSampling: nearest 2x then 1x1 conv with bias (reference order).
    y = jnp.repeat(jnp.repeat(y, 2, axis=2), 2, axis=3)
    y = jnp.einsum("nchw,co->nohw", y, params["wu"]) \
        + params["bu"].reshape(1, -1, 1, 1)
    return y


if __name__ == "__main__":
    # GroupNorm(32, ...) forces channel counts divisible by 32, so the smallest
    # sensible config is in_channels=64 (DoubleConv output = 64).  W=16 keeps
    # the im2col reshape a bf16 layout no-op and H*W=256 fills the MXU M dim.
    N = 2
    C = 64            # Up_Conv in_channels; x and pre each have C channels
    Hx, Wx = 16, 16   # x spatial
    Hp, Wp = 8, 8     # pre spatial (coarser, interpolated up to x size)

    key = jax.random.PRNGKey(0)
    kp, kx, kw = jax.random.split(key, 3)
    pre_in = jax.random.normal(kp, (N, C, Hp, Wp), jnp.float32)
    x_in = jax.random.normal(kx, (N, C, Hx, Wx), jnp.float32)
    params = init_params(C, kw)

    out = up_conv_forward(pre_in, x_in, params)
    out = jax.block_until_ready(out)

    assert out.shape == (N, C // 2, 2 * Hx, 2 * Wx), out.shape
    assert bool(jnp.all(jnp.isfinite(out)))

    # bf16 MXU operands / bf16 inter-stage activation -> tolerance, not bitmatch.
    ref = _ref_forward(pre_in, x_in, params)
    max_abs = float(jnp.max(jnp.abs(out - ref)))
    assert max_abs < 8e-2, f"max |kernel - ref| = {max_abs}"

    print("KERNEL_OK")
</pallas_src>

<mosaic_0001>
module attributes {stable_mosaic.version = 11 : i64} {
  func.func @up_conv_kernel(%arg0: i32, %arg1: memref<1x16x16x64xbf16, #tpu.memory_space<vmem>>, %arg2: memref<1x16x16x64xbf16, #tpu.memory_space<vmem>>, %arg3: memref<3x3x128x64xbf16, #tpu.memory_space<vmem>>, %arg4: memref<1x64xf32, #tpu.memory_space<vmem>>, %arg5: memref<1x64xf32, #tpu.memory_space<vmem>>, %arg6: memref<3x3x64x64xbf16, #tpu.memory_space<vmem>>, %arg7: memref<1x64xf32, #tpu.memory_space<vmem>>, %arg8: memref<1x64xf32, #tpu.memory_space<vmem>>, %arg9: memref<64x32xbf16, #tpu.memory_space<vmem>>, %arg10: memref<1x32xf32, #tpu.memory_space<vmem>>, %arg11: memref<1x32x256xf32, #tpu.memory_space<vmem>>, %arg12: memref<18x18x128xbf16, #tpu.memory_space<vmem>>, %arg13: memref<18x18x64xbf16, #tpu.memory_space<vmem>>) attributes {dimension_semantics = [#tpu.dimension_semantics<parallel>], iteration_bounds = array<i64: 2>, scalar_prefetch = 0 : i64, scratch_operands = 2 : i64, tpu.core_type = #tpu.core_type<tc>, window_params = [{transform_indices = @transform_0, window_bounds = array<i64: 1, 16, 16, 64>}, {transform_indices = @transform_1, window_bounds = array<i64: 1, 16, 16, 64>}, {pipeline_mode = #tpu.pipeline_mode<synchronous>, transform_indices = @transform_2, window_bounds = array<i64: 3, 3, 128, 64>}, {pipeline_mode = #tpu.pipeline_mode<synchronous>, transform_indices = @transform_3, window_bounds = array<i64: 1, 64>}, {pipeline_mode = #tpu.pipeline_mode<synchronous>, transform_indices = @transform_4, window_bounds = array<i64: 1, 64>}, {pipeline_mode = #tpu.pipeline_mode<synchronous>, transform_indices = @transform_5, window_bounds = array<i64: 3, 3, 64, 64>}, {pipeline_mode = #tpu.pipeline_mode<synchronous>, transform_indices = @transform_6, window_bounds = array<i64: 1, 64>}, {pipeline_mode = #tpu.pipeline_mode<synchronous>, transform_indices = @transform_7, window_bounds = array<i64: 1, 64>}, {pipeline_mode = #tpu.pipeline_mode<synchronous>, transform_indices = @transform_8, window_bounds = array<i64: 64, 32>}, {pipeline_mode = #tpu.pipeline_mode<synchronous>, transform_indices = @transform_9, window_bounds = array<i64: 1, 32>}, {transform_indices = @transform_10, window_bounds = array<i64: 1, 32, 256>}]} {
    %cst = arith.constant 0.000000e+00 : bf16
    %0 = vector.broadcast %cst : bf16 to vector<1x18x128xbf16>
    %c0 = arith.constant 0 : index
    %c0_0 = arith.constant 0 : index
    %c0_1 = arith.constant 0 : index
    %1 = vector.load %arg12[%c0, %c0_0, %c0_1] : memref<18x18x128xbf16, #tpu.memory_space<vmem>>, vector<1x18x128xbf16>
    tpu.vector_store %arg12[%c0, %c0_0, %c0_1], %0 {strides = array<i32>} : memref<18x18x128xbf16, #tpu.memory_space<vmem>>, vector<1x18x128xbf16>,
    %cst_2 = arith.constant 0.000000e+00 : bf16
    %2 = vector.broadcast %cst_2 : bf16 to vector<1x18x128xbf16>
    %c17 = arith.constant 17 : index
    %c0_3 = arith.constant 0 : index
    %c0_4 = arith.constant 0 : index
    %3 = vector.load %arg12[%c17, %c0_3, %c0_4] : memref<18x18x128xbf16, #tpu.memory_space<vmem>>, vector<1x18x128xbf16>
    tpu.vector_store %arg12[%c17, %c0_3, %c0_4], %2 {strides = array<i32>} : memref<18x18x128xbf16, #tpu.memory_space<vmem>>, vector<1x18x128xbf16>,
    %cst_5 = arith.constant 0.000000e+00 : bf16
    %4 = vector.broadcast %cst_5 : bf16 to vector<18x1x128xbf16>
    %c0_6 = arith.constant 0 : index
    %c0_7 = arith.constant 0 : index
    %c0_8 = arith.constant 0 : index
    %5 = vector.load %arg12[%c0_6, %c0_7, %c0_8] : memref<18x18x128xbf16, #tpu.memory_space<vmem>>, vector<18x1x128xbf16>
    tpu.vector_store %arg12[%c0_6, %c0_7, %c0_8], %4 {strides = array<i32>} : memref<18x18x128xbf16, #tpu.memory_space<vmem>>, vector<18x1x128xbf16>,
    %cst_9 = arith.constant 0.000000e+00 : bf16
    %6 = vector.broadcast %cst_9 : bf16 to vector<18x1x128xbf16>
    %c0_10 = arith.constant 0 : index
    %c17_11 = arith.constant 17 : index
    %c0_12 = arith.constant 0 : index
    %7 = vector.load %arg12[%c0_10, %c17_11, %c0_12] : memref<18x18x128xbf16, #tpu.memory_space<vmem>>, vector<18x1x128xbf16>
    tpu.vector_store %arg12[%c0_10, %c17_11, %c0_12], %6 {strides = array<i32>} : memref<18x18x128xbf16, #tpu.memory_space<vmem>>, vector<18x1x128xbf16>,
    %cst_13 = arith.constant 0.000000e+00 : bf16
    %8 = vector.broadcast %cst_13 : bf16 to vector<1x18x64xbf16>
    %c0_14 = arith.constant 0 : index
    %c0_15 = arith.constant 0 : index
    %c0_16 = arith.constant 0 : index
    %9 = vector.load %arg13[%c0_14, %c0_15, %c0_16] : memref<18x18x64xbf16, #tpu.memory_space<vmem>>, vector<1x18x64xbf16>
    tpu.vector_store %arg13[%c0_14, %c0_15, %c0_16], %8 {strides = array<i32>} : memref<18x18x64xbf16, #tpu.memory_space<vmem>>, vector<1x18x64xbf16>,
    %cst_17 = arith.constant 0.000000e+00 : bf16
    %10 = vector.broadcast %cst_17 : bf16 to vector<1x18x64xbf16>
    %c17_18 = arith.constant 17 : index
    %c0_19 = arith.constant 0 : index
    %c0_20 = arith.constant 0 : index
    %11 = vector.load %arg13[%c17_18, %c0_19, %c0_20] : memref<18x18x64xbf16, #tpu.memory_space<vmem>>, vector<1x18x64xbf16>
    tpu.vector_store %arg13[%c17_18, %c0_19, %c0_20], %10 {strides = array<i32>} : memref<18x18x64xbf16, #tpu.memory_space<vmem>>, vector<1x18x64xbf16>,
    %cst_21 = arith.constant 0.000000e+00 : bf16
    %12 = vector.broadcast %cst_21 : bf16 to vector<18x1x64xbf16>
    %c0_22 = arith.constant 0 : index
    %c0_23 = arith.constant 0 : index
    %c0_24 = arith.constant 0 : index
    %13 = vector.load %arg13[%c0_22, %c0_23, %c0_24] : memref<18x18x64xbf16, #tpu.memory_space<vmem>>, vector<18x1x64xbf16>
    tpu.vector_store %arg13[%c0_22, %c0_23, %c0_24], %12 {strides = array<i32>} : memref<18x18x64xbf16, #tpu.memory_space<vmem>>, vector<18x1x64xbf16>,
    %cst_25 = arith.constant 0.000000e+00 : bf16
    %14 = vector.broadcast %cst_25 : bf16 to vector<18x1x64xbf16>
    %c0_26 = arith.constant 0 : index
    %c17_27 = arith.constant 17 : index
    %c0_28 = arith.constant 0 : index
    %15 = vector.load %arg13[%c0_26, %c17_27, %c0_28] : memref<18x18x64xbf16, #tpu.memory_space<vmem>>, vector<18x1x64xbf16>
    tpu.vector_store %arg13[%c0_26, %c17_27, %c0_28], %14 {strides = array<i32>} : memref<18x18x64xbf16, #tpu.memory_space<vmem>>, vector<18x1x64xbf16>,
    %c0_29 = arith.constant 0 : index
    %c0_30 = arith.constant 0 : index
    %c0_31 = arith.constant 0 : index
    %c0_32 = arith.constant 0 : index
    %16 = vector.load %arg1[%c0_29, %c0_30, %c0_31, %c0_32] : memref<1x16x16x64xbf16, #tpu.memory_space<vmem>>, vector<1x16x16x64xbf16>
    %17 = vector.shape_cast %16 : vector<1x16x16x64xbf16> to vector<16x16x64xbf16>
    %c1 = arith.constant 1 : index
    %c1_33 = arith.constant 1 : index
    %c0_34 = arith.constant 0 : index
    %18 = vector.load %arg12[%c1, %c1_33, %c0_34] : memref<18x18x128xbf16, #tpu.memory_space<vmem>>, vector<16x16x64xbf16>
    tpu.vector_store %arg12[%c1, %c1_33, %c0_34], %17 {strides = array<i32>} : memref<18x18x128xbf16, #tpu.memory_space<vmem>>, vector<16x16x64xbf16>,
    %c0_35 = arith.constant 0 : index
    %c0_36 = arith.constant 0 : index
    %c0_37 = arith.constant 0 : index
    %c0_38 = arith.constant 0 : index
    %19 = vector.load %arg2[%c0_35, %c0_36, %c0_37, %c0_38] : memref<1x16x16x64xbf16, #tpu.memory_space<vmem>>, vector<1x16x16x64xbf16>
    %20 = vector.shape_cast %19 : vector<1x16x16x64xbf16> to vector<16x16x64xbf16>
    %c1_39 = arith.constant 1 : index
    %c1_40 = arith.constant 1 : index
    %c64 = arith.constant 64 : index
    %21 = vector.load %arg12[%c1_39, %c1_40, %c64] : memref<18x18x128xbf16, #tpu.memory_space<vmem>>, vector<16x16x64xbf16>
    tpu.vector_store %arg12[%c1_39, %c1_40, %c64], %20 {strides = array<i32>} : memref<18x18x128xbf16, #tpu.memory_space<vmem>>, vector<16x16x64xbf16>,
    %c0_41 = arith.constant 0 : index
    %c0_42 = arith.constant 0 : index
    %c0_43 = arith.constant 0 : index
    %22 = vector.load %arg12[%c0_41, %c0_42, %c0_43] : memref<18x18x128xbf16, #tpu.memory_space<vmem>>, vector<18x16x128xbf16>
    %c0_44 = arith.constant 0 : index
    %c1_45 = arith.constant 1 : index
    %c0_46 = arith.constant 0 : index
    %23 = vector.load %arg12[%c0_44, %c1_45, %c0_46] : memref<18x18x128xbf16, #tpu.memory_space<vmem>>, vector<18x16x128xbf16>
    %c0_47 = arith.constant 0 : index
    %c2 = arith.constant 2 : index
    %c0_48 = arith.constant 0 : index
    %24 = vector.load %arg12[%c0_47, %c2, %c0_48] : memref<18x18x128xbf16, #tpu.memory_space<vmem>>, vector<18x16x128xbf16>
    %cst_49 = arith.constant 0.000000e+00 : f32
    %25 = vector.broadcast %cst_49 : f32 to vector<256x64xf32>
    %26 = vector.extract_strided_slice %22 {offsets = [0, 0, 0], sizes = [16, 16, 128], strides = [1, 1, 1]} : vector<18x16x128xbf16> to vector<16x16x128xbf16>
    %27 = vector.shape_cast %26 : vector<16x16x128xbf16> to vector<256x128xbf16>
    %c0_50 = arith.constant 0 : index
    %c0_51 = arith.constant 0 : index
    %c0_52 = arith.constant 0 : index
    %c0_53 = arith.constant 0 : index
    %28 = vector.load %arg3[%c0_50, %c0_51, %c0_52, %c0_53] : memref<3x3x128x64xbf16, #tpu.memory_space<vmem>>, vector<1x1x128x64xbf16>
    %29 = vector.shape_cast %28 : vector<1x1x128x64xbf16> to vector<128x64xbf16>
    %cst_54 = arith.constant dense<0.000000e+00> : vector<256x64xf32>
    %30 = tpu.matmul %27, %29, %cst_54 {dimension_numbers = #tpu.dot_dimension_numbers<[1], [0], [0], [1], [0, 0, 1, 1], [], []>} : vector<256x128xbf16>, vector<128x64xbf16>, vector<256x64xf32> -> vector<256x64xf32>
    %31 = arith.addf %25, %30 : vector<256x64xf32>
    %32 = vector.extract_strided_slice %23 {offsets = [0, 0, 0], sizes = [16, 16, 128], strides = [1, 1, 1]} : vector<18x16x128xbf16> to vector<16x16x128xbf16>
    %33 = vector.shape_cast %32 : vector<16x16x128xbf16> to vector<256x128xbf16>
    %c0_55 = arith.constant 0 : index
    %c1_56 = arith.constant 1 : index
    %c0_57 = arith.constant 0 : index
    %c0_58 = arith.constant 0 : index
    %34 = vector.load %arg3[%c0_55, %c1_56, %c0_57, %c0_58] : memref<3x3x128x64xbf16, #tpu.memory_space<vmem>>, vector<1x1x128x64xbf16>
    %35 = vector.shape_cast %34 : vector<1x1x128x64xbf16> to vector<128x64xbf16>
    %cst_59 = arith.constant dense<0.000000e+00> : vector<256x64xf32>
    %36 = tpu.matmul %33, %35, %cst_59 {dimension_numbers = #tpu.dot_dimension_numbers<[1], [0], [0], [1], [0, 0, 1, 1], [], []>} : vector<256x128xbf16>, vector<128x64xbf16>, vector<256x64xf32> -> vector<256x64xf32>
    %37 = arith.addf %31, %36 : vector<256x64xf32>
    %38 = vector.extract_strided_slice %24 {offsets = [0, 0, 0], sizes = [16, 16, 128], strides = [1, 1, 1]} : vector<18x16x128xbf16> to vector<16x16x128xbf16>
    %39 = vector.shape_cast %38 : vector<16x16x128xbf16> to vector<256x128xbf16>
    %c0_60 = arith.constant 0 : index
    %c2_61 = arith.constant 2 : index
    %c0_62 = arith.constant 0 : index
    %c0_63 = arith.constant 0 : index
    %40 = vector.load %arg3[%c0_60, %c2_61, %c0_62, %c0_63] : memref<3x3x128x64xbf16, #tpu.memory_space<vmem>>, vector<1x1x128x64xbf16>
    %41 = vector.shape_cast %40 : vector<1x1x128x64xbf16> to vector<128x64xbf16>
    %cst_64 = arith.constant dense<0.000000e+00> : vector<256x64xf32>
    %42 = tpu.matmul %39, %41, %cst_64 {dimension_numbers = #tpu.dot_dimension_numbers<[1], [0], [0], [1], [0, 0, 1, 1], [], []>} : vector<256x128xbf16>, vector<128x64xbf16>, vector<256x64xf32> -> vector<256x64xf32>
    %43 = arith.addf %37, %42 : vector<256x64xf32>
    %44 = vector.extract_strided_slice %22 {offsets = [1, 0, 0], sizes = [16, 16, 128], strides = [1, 1, 1]} : vector<18x16x128xbf16> to vector<16x16x128xbf16>
    %45 = vector.shape_cast %44 : vector<16x16x128xbf16> to vector<256x128xbf16>
    %c1_65 = arith.constant 1 : index
    %c0_66 = arith.constant 0 : index
    %c0_67 = arith.constant 0 : index
    %c0_68 = arith.constant 0 : index
    %46 = vector.load %arg3[%c1_65, %c0_66, %c0_67, %c0_68] : memref<3x3x128x64xbf16, #tpu.memory_space<vmem>>, vector<1x1x128x64xbf16>
    %47 = vector.shape_cast %46 : vector<1x1x128x64xbf16> to vector<128x64xbf16>
    %cst_69 = arith.constant dense<0.000000e+00> : vector<256x64xf32>
    %48 = tpu.matmul %45, %47, %cst_69 {dimension_numbers = #tpu.dot_dimension_numbers<[1], [0], [0], [1], [0, 0, 1, 1], [], []>} : vector<256x128xbf16>, vector<128x64xbf16>, vector<256x64xf32> -> vector<256x64xf32>
    %49 = arith.addf %43, %48 : vector<256x64xf32>
    %50 = vector.extract_strided_slice %23 {offsets = [1, 0, 0], sizes = [16, 16, 128], strides = [1, 1, 1]} : vector<18x16x128xbf16> to vector<16x16x128xbf16>
    %51 = vector.shape_cast %50 : vector<16x16x128xbf16> to vector<256x128xbf16>
    %c1_70 = arith.constant 1 : index
    %c1_71 = arith.constant 1 : index
    %c0_72 = arith.constant 0 : index
    %c0_73 = arith.constant 0 : index
    %52 = vector.load %arg3[%c1_70, %c1_71, %c0_72, %c0_73] : memref<3x3x128x64xbf16, #tpu.memory_space<vmem>>, vector<1x1x128x64xbf16>
    %53 = vector.shape_cast %52 : vector<1x1x128x64xbf16> to vector<128x64xbf16>
    %cst_74 = arith.constant dense<0.000000e+00> : vector<256x64xf32>
    %54 = tpu.matmul %51, %53, %cst_74 {dimension_numbers = #tpu.dot_dimension_numbers<[1], [0], [0], [1], [0, 0, 1, 1], [], []>} : vector<256x128xbf16>, vector<128x64xbf16>, vector<256x64xf32> -> vector<256x64xf32>
    %55 = arith.addf %49, %54 : vector<256x64xf32>
    %56 = vector.extract_strided_slice %24 {offsets = [1, 0, 0], sizes = [16, 16, 128], strides = [1, 1, 1]} : vector<18x16x128xbf16> to vector<16x16x128xbf16>
    %57 = vector.shape_cast %56 : vector<16x16x128xbf16> to vector<256x128xbf16>
    %c1_75 = arith.constant 1 : index
    %c2_76 = arith.constant 2 : index
    %c0_77 = arith.constant 0 : index
    %c0_78 = arith.constant 0 : index
    %58 = vector.load %arg3[%c1_75, %c2_76, %c0_77, %c0_78] : memref<3x3x128x64xbf16, #tpu.memory_space<vmem>>, vector<1x1x128x64xbf16>
    %59 = vector.shape_cast %58 : vector<1x1x128x64xbf16> to vector<128x64xbf16>
    %cst_79 = arith.constant dense<0.000000e+00> : vector<256x64xf32>
    %60 = tpu.matmul %57, %59, %cst_79 {dimension_numbers = #tpu.dot_dimension_numbers<[1], [0], [0], [1], [0, 0, 1, 1], [], []>} : vector<256x128xbf16>, vector<128x64xbf16>, vector<256x64xf32> -> vector<256x64xf32>
    %61 = arith.addf %55, %60 : vector<256x64xf32>
    %62 = vector.extract_strided_slice %22 {offsets = [2, 0, 0], sizes = [16, 16, 128], strides = [1, 1, 1]} : vector<18x16x128xbf16> to vector<16x16x128xbf16>
    %63 = vector.shape_cast %62 : vector<16x16x128xbf16> to vector<256x128xbf16>
    %c2_80 = arith.constant 2 : index
    %c0_81 = arith.constant 0 : index
    %c0_82 = arith.constant 0 : index
    %c0_83 = arith.constant 0 : index
    %64 = vector.load %arg3[%c2_80, %c0_81, %c0_82, %c0_83] : memref<3x3x128x64xbf16, #tpu.memory_space<vmem>>, vector<1x1x128x64xbf16>
    %65 = vector.shape_cast %64 : vector<1x1x128x64xbf16> to vector<128x64xbf16>
    %cst_84 = arith.constant dense<0.000000e+00> : vector<256x64xf32>
    %66 = tpu.matmul %63, %65, %cst_84 {dimension_numbers = #tpu.dot_dimension_numbers<[1], [0], [0], [1], [0, 0, 1, 1], [], []>} : vector<256x128xbf16>, vector<128x64xbf16>, vector<256x64xf32> -> vector<256x64xf32>
    %67 = arith.addf %61, %66 : vector<256x64xf32>
    %68 = vector.extract_strided_slice %23 {offsets = [2, 0, 0], sizes = [16, 16, 128], strides = [1, 1, 1]} : vector<18x16x128xbf16> to vector<16x16x128xbf16>
    %69 = vector.shape_cast %68 : vector<16x16x128xbf16> to vector<256x128xbf16>
    %c2_85 = arith.constant 2 : index
    %c1_86 = arith.constant 1 : index
    %c0_87 = arith.constant 0 : index
    %c0_88 = arith.constant 0 : index
    %70 = vector.load %arg3[%c2_85, %c1_86, %c0_87, %c0_88] : memref<3x3x128x64xbf16, #tpu.memory_space<vmem>>, vector<1x1x128x64xbf16>
    %71 = vector.shape_cast %70 : vector<1x1x128x64xbf16> to vector<128x64xbf16>
    %cst_89 = arith.constant dense<0.000000e+00> : vector<256x64xf32>
    %72 = tpu.matmul %69, %71, %cst_89 {dimension_numbers = #tpu.dot_dimension_numbers<[1], [0], [0], [1], [0, 0, 1, 1], [], []>} : vector<256x128xbf16>, vector<128x64xbf16>, vector<256x64xf32> -> vector<256x64xf32>
    %73 = arith.addf %67, %72 : vector<256x64xf32>
    %74 = vector.extract_strided_slice %24 {offsets = [2, 0, 0], sizes = [16, 16, 128], strides = [1, 1, 1]} : vector<18x16x128xbf16> to vector<16x16x128xbf16>
    %75 = vector.shape_cast %74 : vector<16x16x128xbf16> to vector<256x128xbf16>
    %c2_90 = arith.constant 2 : index
    %c2_91 = arith.constant 2 : index
    %c0_92 = arith.constant 0 : index
    %c0_93 = arith.constant 0 : index
    %76 = vector.load %arg3[%c2_90, %c2_91, %c0_92, %c0_93] : memref<3x3x128x64xbf16, #tpu.memory_space<vmem>>, vector<1x1x128x64xbf16>
    %77 = vector.shape_cast %76 : vector<1x1x128x64xbf16> to vector<128x64xbf16>
    %cst_94 = arith.constant dense<0.000000e+00> : vector<256x64xf32>
    %78 = tpu.matmul %75, %77, %cst_94 {dimension_numbers = #tpu.dot_dimension_numbers<[1], [0], [0], [1], [0, 0, 1, 1], [], []>} : vector<256x128xbf16>, vector<128x64xbf16>, vector<256x64xf32> -> vector<256x64xf32>
    %79 = arith.addf %73, %78 : vector<256x64xf32>
    %80 = vector.shape_cast %79 : vector<256x64xf32> to vector<1x256x64xf32>
    %c0_95 = arith.constant 0 : index
    %c0_96 = arith.constant 0 : index
    %81 = vector.load %arg4[%c0_95, %c0_96] : memref<1x64xf32, #tpu.memory_space<vmem>>, vector<1x64xf32>
    %c0_97 = arith.constant 0 : index
    %c0_98 = arith.constant 0 : index
    %82 = vector.load %arg5[%c0_97, %c0_98] : memref<1x64xf32, #tpu.memory_space<vmem>>, vector<1x64xf32>
    %cst_99 = arith.constant dense<0.000000e+00> : vector<1x64xf32>
    %83 = vector.multi_reduction <add>, %80, %cst_99 [1] : vector<1x256x64xf32> to vector<1x64xf32>
    %84 = arith.mulf %80, %80 : vector<1x256x64xf32>
    %cst_100 = arith.constant dense<0.000000e+00> : vector<1x64xf32>
    %85 = vector.multi_reduction <add>, %84, %cst_100 [1] : vector<1x256x64xf32> to vector<1x64xf32>
    %86 = vector.shape_cast %83 : vector<1x64xf32> to vector<1x32x2xf32>
    %cst_101 = arith.constant dense<0.000000e+00> : vector<1x32xf32>
    %87 = vector.multi_reduction <add>, %86, %cst_101 [2] : vector<1x32x2xf32> to vector<1x32xf32>
    %88 = vector.shape_cast %85 : vector<1x64xf32> to vector<1x32x2xf32>
    %cst_102 = arith.constant dense<0.000000e+00> : vector<1x32xf32>
    %89 = vector.multi_reduction <add>, %88, %cst_102 [2] : vector<1x32x2xf32> to vector<1x32xf32>
    %cst_103 = arith.constant 5.120000e+02 : f32
    %90 = vector.broadcast %cst_103 : f32 to vector<1x32xf32>
    %91 = arith.divf %87, %90 : vector<1x32xf32>
    %cst_104 = arith.constant 5.120000e+02 : f32
    %92 = vector.broadcast %cst_104 : f32 to vector<1x32xf32>
    %93 = arith.divf %89, %92 : vector<1x32xf32>
    %94 = arith.mulf %91, %91 : vector<1x32xf32>
    %95 = arith.subf %93, %94 : vector<1x32xf32>
    %cst_105 = arith.constant 0.000000e+00 : f32
    %96 = vector.broadcast %cst_105 : f32 to vector<1x32xf32>
    %97 = arith.maximumf %95, %96 : vector<1x32xf32>
    %cst_106 = arith.constant 9.99999974E-6 : f32
    %98 = vector.broadcast %cst_106 : f32 to vector<1x32xf32>
    %99 = arith.addf %97, %98 : vector<1x32xf32>
    %100 = math.rsqrt %99 : vector<1x32xf32>
    %101 = vector.shape_cast %91 : vector<1x32xf32> to vector<1x32x1xf32>
    %102 = vector.shape_cast %101 : vector<1x32x1xf32> to vector<1x32x1xf32>
    %103 = vector.broadcast %102 : vector<1x32x1xf32> to vector<1x32x2xf32>
    %104 = vector.shape_cast %103 : vector<1x32x2xf32> to vector<1x1x64xf32>
    %105 = vector.shape_cast %100 : vector<1x32xf32> to vector<1x32x1xf32>
    %106 = vector.shape_cast %105 : vector<1x32x1xf32> to vector<1x32x1xf32>
    %107 = vector.broadcast %106 : vector<1x32x1xf32> to vector<1x32x2xf32>
    %108 = vector.shape_cast %107 : vector<1x32x2xf32> to vector<1x1x64xf32>
    %109 = vector.shape_cast %81 : vector<1x64xf32> to vector<1x1x64xf32>
    %110 = arith.mulf %108, %109 : vector<1x1x64xf32>
    %111 = vector.shape_cast %82 : vector<1x64xf32> to vector<1x1x64xf32>
    %112 = arith.mulf %104, %110 : vector<1x1x64xf32>
    %113 = arith.subf %111, %112 : vector<1x1x64xf32>
    %114 = vector.broadcast %110 : vector<1x1x64xf32> to vector<1x256x64xf32>
    %115 = arith.mulf %80, %114 : vector<1x256x64xf32>
    %116 = vector.broadcast %113 : vector<1x1x64xf32> to vector<1x256x64xf32>
    %117 = arith.addf %115, %116 : vector<1x256x64xf32>
    %cst_107 = arith.constant 0.000000e+00 : f32
    %118 = vector.broadcast %cst_107 : f32 to vector<1x256x64xf32>
    %119 = arith.maximumf %117, %118 : vector<1x256x64xf32>
    %120 = vector.shape_cast %119 : vector<1x256x64xf32> to vector<16x16x64xf32>
    %121 = arith.truncf %120 : vector<16x16x64xf32> to vector<16x16x64xbf16>
    %c1_108 = arith.constant 1 : index
    %c1_109 = arith.constant 1 : index
    %c0_110 = arith.constant 0 : index
    %122 = vector.load %arg13[%c1_108, %c1_109, %c0_110] : memref<18x18x64xbf16, #tpu.memory_space<vmem>>, vector<16x16x64xbf16>
    tpu.vector_store %arg13[%c1_108, %c1_109, %c0_110], %121 {strides = array<i32>} : memref<18x18x64xbf16, #tpu.memory_space<vmem>>, vector<16x16x64xbf16>,
    %c0_111 = arith.constant 0 : index
    %c0_112 = arith.constant 0 : index
    %c0_113 = arith.constant 0 : index
    %123 = vector.load %arg13[%c0_111, %c0_112, %c0_113] : memref<18x18x64xbf16, #tpu.memory_space<vmem>>, vector<18x16x64xbf16>
    %c0_114 = arith.constant 0 : index
    %c1_115 = arith.constant 1 : index
    %c0_116 = arith.constant 0 : index
    %124 = vector.load %arg13[%c0_114, %c1_115, %c0_116] : memref<18x18x64xbf16, #tpu.memory_space<vmem>>, vector<18x16x64xbf16>
    %c0_117 = arith.constant 0 : index
    %c2_118 = arith.constant 2 : index
    %c0_119 = arith.constant 0 : index
    %125 = vector.load %arg13[%c0_117, %c2_118, %c0_119] : memref<18x18x64xbf16, #tpu.memory_space<vmem>>, vector<18x16x64xbf16>
    %cst_120 = arith.constant 0.000000e+00 : f32
    %126 = vector.broadcast %cst_120 : f32 to vector<256x64xf32>
    %127 = vector.extract_strided_slice %123 {offsets = [0, 0, 0], sizes = [16, 16, 64], strides = [1, 1, 1]} : vector<18x16x64xbf16> to vector<16x16x64xbf16>
    %128 = vector.shape_cast %127 : vector<16x16x64xbf16> to vector<256x64xbf16>
    %c0_121 = arith.constant 0 : index
    %c0_122 = arith.constant 0 : index
    %c0_123 = arith.constant 0 : index
    %c0_124 = arith.constant 0 : index
    %129 = vector.load %arg6[%c0_121, %c0_122, %c0_123, %c0_124] : memref<3x3x64x64xbf16, #tpu.memory_space<vmem>>, vector<1x1x64x64xbf16>
    %130 = vector.shape_cast %129 : vector<1x1x64x64xbf16> to vector<64x64xbf16>
    %cst_125 = arith.constant dense<0.000000e+00> : vector<256x64xf32>
    %131 = tpu.matmul %128, %130, %cst_125 {dimension_numbers = #tpu.dot_dimension_numbers<[1], [0], [0], [1], [0, 0, 1, 1], [], []>} : vector<256x64xbf16>, vector<64x64xbf16>, vector<256x64xf32> -> vector<256x64xf32>
    %132 = arith.addf %126, %131 : vector<256x64xf32>
    %133 = vector.extract_strided_slice %124 {offsets = [0, 0, 0], sizes = [16, 16, 64], strides = [1, 1, 1]} : vector<18x16x64xbf16> to vector<16x16x64xbf16>
    %134 = vector.shape_cast %133 : vector<16x16x64xbf16> to vector<256x64xbf16>
    %c0_126 = arith.constant 0 : index
    %c1_127 = arith.constant 1 : index
    %c0_128 = arith.constant 0 : index
    %c0_129 = arith.constant 0 : index
    %135 = vector.load %arg6[%c0_126, %c1_127, %c0_128, %c0_129] : memref<3x3x64x64xbf16, #tpu.memory_space<vmem>>, vector<1x1x64x64xbf16>
    %136 = vector.shape_cast %135 : vector<1x1x64x64xbf16> to vector<64x64xbf16>
    %cst_130 = arith.constant dense<0.000000e+00> : vector<256x64xf32>
    %137 = tpu.matmul %134, %136, %cst_130 {dimension_numbers = #tpu.dot_dimension_numbers<[1], [0], [0], [1], [0, 0, 1, 1], [], []>} : vector<256x64xbf16>, vector<64x64xbf16>, vector<256x64xf32> -> vector<256x64xf32>
    %138 = arith.addf %132, %137 : vector<256x64xf32>
    %139 = vector.extract_strided_slice %125 {offsets = [0, 0, 0], sizes = [16, 16, 64], strides = [1, 1, 1]} : vector<18x16x64xbf16> to vector<16x16x64xbf16>
    %140 = vector.shape_cast %139 : vector<16x16x64xbf16> to vector<256x64xbf16>
    %c0_131 = arith.constant 0 : index
    %c2_132 = arith.constant 2 : index
    %c0_133 = arith.constant 0 : index
    %c0_134 = arith.constant 0 : index
    %141 = vector.load %arg6[%c0_131, %c2_132, %c0_133, %c0_134] : memref<3x3x64x64xbf16, #tpu.memory_space<vmem>>, vector<1x1x64x64xbf16>
    %142 = vector.shape_cast %141 : vector<1x1x64x64xbf16> to vector<64x64xbf16>
    %cst_135 = arith.constant dense<0.000000e+00> : vector<256x64xf32>
    %143 = tpu.matmul %140, %142, %cst_135 {dimension_numbers = #tpu.dot_dimension_numbers<[1], [0], [0], [1], [0, 0, 1, 1], [], []>} : vector<256x64xbf16>, vector<64x64xbf16>, vector<256x64xf32> -> vector<256x64xf32>
    %144 = arith.addf %138, %143 : vector<256x64xf32>
    %145 = vector.extract_strided_slice %123 {offsets = [1, 0, 0], sizes = [16, 16, 64], strides = [1, 1, 1]} : vector<18x16x64xbf16> to vector<16x16x64xbf16>
    %146 = vector.shape_cast %145 : vector<16x16x64xbf16> to vector<256x64xbf16>
    %c1_136 = arith.constant 1 : index
    %c0_137 = arith.constant 0 : index
    %c0_138 = arith.constant 0 : index
    %c0_139 = arith.constant 0 : index
    %147 = vector.load %arg6[%c1_136, %c0_137, %c0_138, %c0_139] : memref<3x3x64x64xbf16, #tpu.memory_space<vmem>>, vector<1x1x64x64xbf16>
    %148 = vector.shape_cast %147 : vector<1x1x64x64xbf16> to vector<64x64xbf16>
    %cst_140 = arith.constant dense<0.000000e+00> : vector<256x64xf32>
    %149 = tpu.matmul %146, %148, %cst_140 {dimension_numbers = #tpu.dot_dimension_numbers<[1], [0], [0], [1], [0, 0, 1, 1], [], []>} : vector<256x64xbf16>, vector<64x64xbf16>, vector<256x64xf32> -> vector<256x64xf32>
    %150 = arith.addf %144, %149 : vector<256x64xf32>
    %151 = vector.extract_strided_slice %124 {offsets = [1, 0, 0], sizes = [16, 16, 64], strides = [1, 1, 1]} : vector<18x16x64xbf16> to vector<16x16x64xbf16>
    %152 = vector.shape_cast %151 : vector<16x16x64xbf16> to vector<256x64xbf16>
    %c1_141 = arith.constant 1 : index
    %c1_142 = arith.constant 1 : index
    %c0_143 = arith.constant 0 : index
    %c0_144 = arith.constant 0 : index
    %153 = vector.load %arg6[%c1_141, %c1_142, %c0_143, %c0_144] : memref<3x3x64x64xbf16, #tpu.memory_space<vmem>>, vector<1x1x64x64xbf16>
    %154 = vector.shape_cast %153 : vector<1x1x64x64xbf16> to vector<64x64xbf16>
    %cst_145 = arith.constant dense<0.000000e+00> : vector<256x64xf32>
    %155 = tpu.matmul %152, %154, %cst_145 {dimension_numbers = #tpu.dot_dimension_numbers<[1], [0], [0], [1], [0, 0, 1, 1], [], []>} : vector<256x64xbf16>, vector<64x64xbf16>, vector<256x64xf32> -> vector<256x64xf32>
    %156 = arith.addf %150, %155 : vector<256x64xf32>
    %157 = vector.extract_strided_slice %125 {offsets = [1, 0, 0], sizes = [16, 16, 64], strides = [1, 1, 1]} : vector<18x16x64xbf16> to vector<16x16x64xbf16>
    %158 = vector.shape_cast %157 : vector<16x16x64xbf16> to vector<256x64xbf16>
    %c1_146 = arith.constant 1 : index
    %c2_147 = arith.constant 2 : index
    %c0_148 = arith.constant 0 : index
    %c0_149 = arith.constant 0 : index
    %159 = vector.load %arg6[%c1_146, %c2_147, %c0_148, %c0_149] : memref<3x3x64x64xbf16, #tpu.memory_space<vmem>>, vector<1x1x64x64xbf16>
    %160 = vector.shape_cast %159 : vector<1x1x64x64xbf16> to vector<64x64xbf16>
    %cst_150 = arith.constant dense<0.000000e+00> : vector<256x64xf32>
    %161 = tpu.matmul %158, %160, %cst_150 {dimension_numbers = #tpu.dot_dimension_numbers<[1], [0], [0], [1], [0, 0, 1, 1], [], []>} : vector<256x64xbf16>, vector<64x64xbf16>, vector<256x64xf32> -> vector<256x64xf32>
    %162 = arith.addf %156, %161 : vector<256x64xf32>
    %163 = vector.extract_strided_slice %123 {offsets = [2, 0, 0], sizes = [16, 16, 64], strides = [1, 1, 1]} : vector<18x16x64xbf16> to vector<16x16x64xbf16>
    %164 = vector.shape_cast %163 : vector<16x16x64xbf16> to vector<256x64xbf16>
    %c2_151 = arith.constant 2 : index
    %c0_152 = arith.constant 0 : index
    %c0_153 = arith.constant 0 : index
    %c0_154 = arith.constant 0 : index
    %165 = vector.load %arg6[%c2_151, %c0_152, %c0_153, %c0_154] : memref<3x3x64x64xbf16, #tpu.memory_space<vmem>>, vector<1x1x64x64xbf16>
    %166 = vector.shape_cast %165 : vector<1x1x64x64xbf16> to vector<64x64xbf16>
    %cst_155 = arith.constant dense<0.000000e+00> : vector<256x64xf32>
    %167 = tpu.matmul %164, %166, %cst_155 {dimension_numbers = #tpu.dot_dimension_numbers<[1], [0], [0], [1], [0, 0, 1, 1], [], []>} : vector<256x64xbf16>, vector<64x64xbf16>, vector<256x64xf32> -> vector<256x64xf32>
    %168 = arith.addf %162, %167 : vector<256x64xf32>
    %169 = vector.extract_strided_slice %124 {offsets = [2, 0, 0], sizes = [16, 16, 64], strides = [1, 1, 1]} : vector<18x16x64xbf16> to vector<16x16x64xbf16>
    %170 = vector.shape_cast %169 : vector<16x16x64xbf16> to vector<256x64xbf16>
    %c2_156 = arith.constant 2 : index
    %c1_157 = arith.constant 1 : index
    %c0_158 = arith.constant 0 : index
    %c0_159 = arith.constant 0 : index
    %171 = vector.load %arg6[%c2_156, %c1_157, %c0_158, %c0_159] : memref<3x3x64x64xbf16, #tpu.memory_space<vmem>>, vector<1x1x64x64xbf16>
    %172 = vector.shape_cast %171 : vector<1x1x64x64xbf16> to vector<64x64xbf16>
    %cst_160 = arith.constant dense<0.000000e+00> : vector<256x64xf32>
    %173 = tpu.matmul %170, %172, %cst_160 {dimension_numbers = #tpu.dot_dimension_numbers<[1], [0], [0], [1], [0, 0, 1, 1], [], []>} : vector<256x64xbf16>, vector<64x64xbf16>, vector<256x64xf32> -> vector<256x64xf32>
    %174 = arith.addf %168, %173 : vector<256x64xf32>
    %175 = vector.extract_strided_slice %125 {offsets = [2, 0, 0], sizes = [16, 16, 64], strides = [1, 1, 1]} : vector<18x16x64xbf16> to vector<16x16x64xbf16>
    %176 = vector.shape_cast %175 : vector<16x16x64xbf16> to vector<256x64xbf16>
    %c2_161 = arith.constant 2 : index
    %c2_162 = arith.constant 2 : index
    %c0_163 = arith.constant 0 : index
    %c0_164 = arith.constant 0 : index
    %177 = vector.load %arg6[%c2_161, %c2_162, %c0_163, %c0_164] : memref<3x3x64x64xbf16, #tpu.memory_space<vmem>>, vector<1x1x64x64xbf16>
    %178 = vector.shape_cast %177 : vector<1x1x64x64xbf16> to vector<64x64xbf16>
    %cst_165 = arith.constant dense<0.000000e+00> : vector<256x64xf32>
    %179 = tpu.matmul %176, %178, %cst_165 {dimension_numbers = #tpu.dot_dimension_numbers<[1], [0], [0], [1], [0, 0, 1, 1], [], []>} : vector<256x64xbf16>, vector<64x64xbf16>, vector<256x64xf32> -> vector<256x64xf32>
    %180 = arith.addf %174, %179 : vector<256x64xf32>
    %181 = vector.shape_cast %180 : vector<256x64xf32> to vector<1x256x64xf32>
    %c0_166 = arith.constant 0 : index
    %c0_167 = arith.constant 0 : index
    %182 = vector.load %arg7[%c0_166, %c0_167] : memref<1x64xf32, #tpu.memory_space<vmem>>, vector<1x64xf32>
    %c0_168 = arith.constant 0 : index
    %c0_169 = arith.constant 0 : index
    %183 = vector.load %arg8[%c0_168, %c0_169] : memref<1x64xf32, #tpu.memory_space<vmem>>, vector<1x64xf32>
    %cst_170 = arith.constant dense<0.000000e+00> : vector<1x64xf32>
    %184 = vector.multi_reduction <add>, %181, %cst_170 [1] : vector<1x256x64xf32> to vector<1x64xf32>
    %185 = arith.mulf %181, %181 : vector<1x256x64xf32>
    %cst_171 = arith.constant dense<0.000000e+00> : vector<1x64xf32>
    %186 = vector.multi_reduction <add>, %185, %cst_171 [1] : vector<1x256x64xf32> to vector<1x64xf32>
    %187 = vector.shape_cast %184 : vector<1x64xf32> to vector<1x32x2xf32>
    %cst_172 = arith.constant dense<0.000000e+00> : vector<1x32xf32>
    %188 = vector.multi_reduction <add>, %187, %cst_172 [2] : vector<1x32x2xf32> to vector<1x32xf32>
    %189 = vector.shape_cast %186 : vector<1x64xf32> to vector<1x32x2xf32>
    %cst_173 = arith.constant dense<0.000000e+00> : vector<1x32xf32>
    %190 = vector.multi_reduction <add>, %189, %cst_173 [2] : vector<1x32x2xf32> to vector<1x32xf32>
    %cst_174 = arith.constant 5.120000e+02 : f32
    %191 = vector.broadcast %cst_174 : f32 to vector<1x32xf32>
    %192 = arith.divf %188, %191 : vector<1x32xf32>
    %cst_175 = arith.constant 5.120000e+02 : f32
    %193 = vector.broadcast %cst_175 : f32 to vector<1x32xf32>
    %194 = arith.divf %190, %193 : vector<1x32xf32>
    %195 = arith.mulf %192, %192 : vector<1x32xf32>
    %196 = arith.subf %194, %195 : vector<1x32xf32>
    %cst_176 = arith.constant 0.000000e+00 : f32
    %197 = vector.broadcast %cst_176 : f32 to vector<1x32xf32>
    %198 = arith.maximumf %196, %197 : vector<1x32xf32>
    %cst_177 = arith.constant 9.99999974E-6 : f32
    %199 = vector.broadcast %cst_177 : f32 to vector<1x32xf32>
    %200 = arith.addf %198, %199 : vector<1x32xf32>
    %201 = math.rsqrt %200 : vector<1x32xf32>
    %202 = vector.shape_cast %192 : vector<1x32xf32> to vector<1x32x1xf32>
    %203 = vector.shape_cast %202 : vector<1x32x1xf32> to vector<1x32x1xf32>
    %204 = vector.broadcast %203 : vector<1x32x1xf32> to vector<1x32x2xf32>
    %205 = vector.shape_cast %204 : vector<1x32x2xf32> to vector<1x1x64xf32>
    %206 = vector.shape_cast %201 : vector<1x32xf32> to vector<1x32x1xf32>
    %207 = vector.shape_cast %206 : vector<1x32x1xf32> to vector<1x32x1xf32>
    %208 = vector.broadcast %207 : vector<1x32x1xf32> to vector<1x32x2xf32>
    %209 = vector.shape_cast %208 : vector<1x32x2xf32> to vector<1x1x64xf32>
    %210 = vector.shape_cast %182 : vector<1x64xf32> to vector<1x1x64xf32>
    %211 = arith.mulf %209, %210 : vector<1x1x64xf32>
    %212 = vector.shape_cast %183 : vector<1x64xf32> to vector<1x1x64xf32>
    %213 = arith.mulf %205, %211 : vector<1x1x64xf32>
    %214 = arith.subf %212, %213 : vector<1x1x64xf32>
    %215 = vector.broadcast %211 : vector<1x1x64xf32> to vector<1x256x64xf32>
    %216 = arith.mulf %181, %215 : vector<1x256x64xf32>
    %217 = vector.broadcast %214 : vector<1x1x64xf32> to vector<1x256x64xf32>
    %218 = arith.addf %216, %217 : vector<1x256x64xf32>
    %cst_178 = arith.constant 0.000000e+00 : f32
    %219 = vector.broadcast %cst_178 : f32 to vector<1x256x64xf32>
    %220 = arith.maximumf %218, %219 : vector<1x256x64xf32>
    %221 = vector.shape_cast %220 : vector<1x256x64xf32> to vector<256x64xf32>
    %222 = arith.truncf %221 : vector<256x64xf32> to vector<256x64xbf16>
    %c0_179 = arith.constant 0 : index
    %c0_180 = arith.constant 0 : index
    %223 = vector.load %arg9[%c0_179, %c0_180] : memref<64x32xbf16, #tpu.memory_space<vmem>>, vector<64x32xbf16>
    %cst_181 = arith.constant dense<0.000000e+00> : vector<256x32xf32>
    %224 = tpu.matmul %222, %223, %cst_181 {dimension_numbers = #tpu.dot_dimension_numbers<[1], [0], [0], [1], [0, 0, 1, 1], [], []>} : vector<256x64xbf16>, vector<64x32xbf16>, vector<256x32xf32> -> vector<256x32xf32>
    %c0_182 = arith.constant 0 : index
    %c0_183 = arith.constant 0 : index
    %225 = vector.load %arg10[%c0_182, %c0_183] : memref<1x32xf32, #tpu.memory_space<vmem>>, vector<1x32xf32>
    %226 = vector.broadcast %225 : vector<1x32xf32> to vector<256x32xf32>
    %227 = arith.addf %224, %226 : vector<256x32xf32>
    %228 = tpu.transpose %227, [1, 0] : vector<256x32xf32> -> vector<32x256xf32>
    %229 = vector.shape_cast %228 : vector<32x256xf32> to vector<1x32x256xf32>
    %c0_184 = arith.constant 0 : index
    %c0_185 = arith.constant 0 : index
    %c0_186 = arith.constant 0 : index
    %230 = vector.load %arg11[%c0_184, %c0_185, %c0_186] : memref<1x32x256xf32, #tpu.memory_space<vmem>>, vector<1x32x256xf32>
    tpu.vector_store %arg11[%c0_184, %c0_185, %c0_186], %229 {strides = array<i32>} : memref<1x32x256xf32, #tpu.memory_space<vmem>>, vector<1x32x256xf32>,
    return
  }
  func.func @transform_0(%arg0: i32) -> (i32, i32, i32, i32) {
    %c0_i32 = arith.constant 0 : i32
    %c0_i32_0 = arith.constant 0 : i32
    %c0_i32_1 = arith.constant 0 : i32
    %c0_i32_2 = arith.constant 0 : i32
    return %arg0, %c0_i32, %c0_i32_0, %c0_i32_1 : i32, i32, i32, i32
  }
  func.func @transform_1(%arg0: i32) -> (i32, i32, i32, i32) {
    %c0_i32 = arith.constant 0 : i32
    %c0_i32_0 = arith.constant 0 : i32
    %c0_i32_1 = arith.constant 0 : i32
    %c0_i32_2 = arith.constant 0 : i32
    return %arg0, %c0_i32, %c0_i32_0, %c0_i32_1 : i32, i32, i32, i32
  }
  func.func @transform_2(%arg0: i32) -> (i32, i32, i32, i32) {
    %c0_i32 = arith.constant 0 : i32
    %c0_i32_0 = arith.constant 0 : i32
    %c0_i32_1 = arith.constant 0 : i32
    %c0_i32_2 = arith.constant 0 : i32
    %c0_i32_3 = arith.constant 0 : i32
    return %c0_i32, %c0_i32_0, %c0_i32_1, %c0_i32_2 : i32, i32, i32, i32
  }
  func.func @transform_3(%arg0: i32) -> (i32, i32) {
    %c0_i32 = arith.constant 0 : i32
    %c0_i32_0 = arith.constant 0 : i32
    %c0_i32_1 = arith.constant 0 : i32
    return %c0_i32, %c0_i32_0 : i32, i32
  }
  func.func @transform_4(%arg0: i32) -> (i32, i32) {
    %c0_i32 = arith.constant 0 : i32
    %c0_i32_0 = arith.constant 0 : i32
    %c0_i32_1 = arith.constant 0 : i32
    return %c0_i32, %c0_i32_0 : i32, i32
  }
  func.func @transform_5(%arg0: i32) -> (i32, i32, i32, i32) {
    %c0_i32 = arith.constant 0 : i32
    %c0_i32_0 = arith.constant 0 : i32
    %c0_i32_1 = arith.constant 0 : i32
    %c0_i32_2 = arith.constant 0 : i32
    %c0_i32_3 = arith.constant 0 : i32
    return %c0_i32, %c0_i32_0, %c0_i32_1, %c0_i32_2 : i32, i32, i32, i32
  }
  func.func @transform_6(%arg0: i32) -> (i32, i32) {
    %c0_i32 = arith.constant 0 : i32
    %c0_i32_0 = arith.constant 0 : i32
    %c0_i32_1 = arith.constant 0 : i32
    return %c0_i32, %c0_i32_0 : i32, i32
  }
  func.func @transform_7(%arg0: i32) -> (i32, i32) {
    %c0_i32 = arith.constant 0 : i32
    %c0_i32_0 = arith.constant 0 : i32
    %c0_i32_1 = arith.constant 0 : i32
    return %c0_i32, %c0_i32_0 : i32, i32
  }
  func.func @transform_8(%arg0: i32) -> (i32, i32) {
    %c0_i32 = arith.constant 0 : i32
    %c0_i32_0 = arith.constant 0 : i32
    %c0_i32_1 = arith.constant 0 : i32
    return %c0_i32, %c0_i32_0 : i32, i32
  }
  func.func @transform_9(%arg0: i32) -> (i32, i32) {
    %c0_i32 = arith.constant 0 : i32
    %c0_i32_0 = arith.constant 0 : i32
    %c0_i32_1 = arith.constant 0 : i32
    return %c0_i32, %c0_i32_0 : i32, i32
  }
  func.func @transform_10(%arg0: i32) -> (i32, i32, i32) {
    %c0_i32 = arith.constant 0 : i32
    %c0_i32_0 = arith.constant 0 : i32
    %c0_i32_1 = arith.constant 0 : i32
    return %arg0, %c0_i32, %c0_i32_0 : i32, i32, i32
  }
}

</mosaic_0001>

<bundles_post_ra>
// kernel: up_conv_forward.1
= control target key start
LH: loop header
LB: loop body
LE: loop exit
PB: predicated region body
PF: predicated region fallthrough
CT: control target
= control target key end

     0   :  { %s14848_s13 = smov 0   ;;  %s19544_s0 = inlined_call_operand.vmem [shape: bf16[2,16,16,64], index: 0, kind: input, shape index: {}]   ;;  %s19545_s1 = inlined_call_operand.vmem [shape: bf16[2,16,16,64], index: 1, kind: input, shape index: {}]   ;;  %s19546_s2 = inlined_call_operand.vmem [shape: bf16[3,3,128,64], index: 2, kind: input, shape index: {}]   ;;  %s19547_s3 = inlined_call_operand.vmem [shape: f32[1,64], index: 3, kind: input, shape index: {}]   ;;  %s19548_s4 = inlined_call_operand.vmem [shape: f32[1,64], index: 4, kind: input, shape index: {}]   ;;  %s19549_s5 = inlined_call_operand.vmem [shape: bf16[3,3,64,64], index: 5, kind: input, shape index: {}]   ;;  %s19550_s6 = inlined_call_operand.vmem [shape: f32[1,64], index: 6, kind: input, shape index: {}]   ;;  %s19551_s7 = inlined_call_operand.vmem [shape: f32[1,64], index: 7, kind: input, shape index: {}]   ;;  %s19552_s8 = inlined_call_operand.vmem [shape: bf16[64,32], index: 8, kind: input, shape index: {}]   ;;  %s19553_s9 = inlined_call_operand.vmem [shape: f32[1,32], index: 9, kind: input, shape index: {}]   ;;  %s19554_s10 = inlined_call_operand.vmem [shape: f32[2,32,256], index: 10, kind: output, shape index: {}]  }
   0x1   :  { %19820 = sst [smem:[#allocation33_spill]] %s19544_s0 }
   0x2   :  { %19821 = sst [smem:[#allocation34_spill]] %s19545_s1 }
   0x3   :  { %19822 = sst [smem:[#allocation35_spill]] %s19546_s2 }
   0x4   :  { %19823 = sst [smem:[#allocation36_spill]] %s19547_s3 }
   0x5   :  { %19824 = sst [smem:[#allocation37_spill]] %s19548_s4 }
   0x6   :  { %19825 = sst [smem:[#allocation38_spill]] %s19549_s5 }
   0x7   :  { %19826 = sst [smem:[#allocation39_spill]] %s19550_s6 }
   0x8   :  { %19827 = sst [smem:[#allocation40_spill]] %s19551_s7 }
   0x9   :  { %19828 = sst [smem:[#allocation41_spill]] %s19552_s8 }
   0xa   :  { %19829 = sst [smem:[#allocation42_spill]] %s19553_s9 }
   0xb   :  { %19830 = sst [smem:[#allocation43_spill]] %s19554_s10 }
   0xc LB: > { %19831 = sst [smem:[#allocation4_spill]] %s14724_s13  ;;  %s12026_s14 = sadd.s32 4294967295, %s14724_s13   ;;  %s14724_s13 = sphi %s14848_s13, %s20_s13  }
   0xd   : > { %p12030_p0 = scmp.ge.s32.totalorder %s14724_s13, 1  ;;  %p322_p1 = scmp.lt.s32.totalorder %s14724_s13, 3 }
   0xf   : > { %p323_p2 = pnand %p12030_p0, %p322_p1 }
  0x11   : > { %326 = sbr.rel (%p323_p2) target bundleno = 3624 (0xe28), region = 60 }
  0x18   : > { %p365_p3 = scmp.lt.s32.totalorder %s12026_s14, 1  ;;  %s19832_s2 = sld [smem:[#allocation35_spill]]  ;;  %vm389_vm0 = vsmask.f32 256  ;;  %vm504_vm1 = vcmask 516096   ;;  %v19835_v14 = vmov 0 }
  0x19   : > { %s19834_s1 = sld [smem:[#allocation34_spill]]  ;;  %vm445_vm2 = vsmask.f32 7938  ;;  %vm653_vm3 = vsmask.f32 4368  ;;  %v19838_v27 = vmov 0  ;;  %vm15169_vm10 = vmand %vm504_vm1, %vm389_vm0 }
  0x1a   : > { %s20426_s14 = smov (!%p365_p3, %s12026_s14), 1  ;;  %vm14882_vm4 = vmand %vm504_vm1, %vm445_vm2  ;;  %s14726_s25 = smov 64   ;;  %vm388_vm6 = vcmask 1040384   ;;  %vm19748_vm7 = vcmask 519168   ;;  %vm1743_vm12 = vsmask.f32 3328 }
  0x1b   : > { %19833 = sst [smem:[#allocation5_spill]] %s20426_s14  ;;  %s12680_s19 = sshll.u32 %s20426_s14, 7  ;;  %v19836_v14 = vsel %vm14882_vm4, 4294967295, %v19835_v14  ;;  %vm14889_vm5 = vmor %vm389_vm0, %vm653_vm3  ;;  %vm1744_vm13 = vsmask.f32 7440  ;;  %vm1545_vm15 = vcmask 1040896  }
  0x1c   : > { %19837 = vst [vmem:[#allocation6_spill] sm:$0xff] %v19836_v14  ;;  %v19839_v27 = vsel %vm14889_vm5, 4294967295, %v19838_v27  ;;  %s19841_s0 = sld [smem:[#allocation33_spill]]  ;;  %vm15098_vm8 = vmand %vm388_vm6, %vm445_vm2  ;;  %s19647_s28 = smov 124  }
  0x1d   : > { %19840 = vst [vmem:[#allocation7_spill] sm:$0xff] %v19839_v27  ;;  %vm15114_vm9 = vmand %vm388_vm6, %vm389_vm0  ;;  %vm2758_vm6 = vcmask 1046532   ;;  %s19645_s29 = smov 126   ;;  %s19643_s30 = smov 120  }
  0x1e   : > { %v14558_v0 = vld [vmem:[%s19832_s2 + $0x40] sm:$0xff]   ;;  %v14559_v1 = vld [vmem:[%s19832_s2 + $0x48] sm:$0xff]   ;;  %v14560_v2 = vld [vmem:[%s19832_s2 + $0x50] sm:$0xff]   ;;  %s19641_s11 = smov 122   ;;  %s19629_s12 = smov 116  }
  0x1f   : > { %13131 = vmatprep.subr.bf16.mxu0 %v14558_v0  ;;  %s14873_s24 = scalar_lea.vmem %s19834_s1, %s12680_s19  ;;  %v14561_v37 = vld [vmem:[%s19832_s2 + $0x58] sm:$0xff]   ;;  %v14562_v43 = vld [vmem:[%s19832_s2 + $0x60] sm:$0xff]   ;;  %v14563_v56 = vld [vmem:[%s19832_s2 + $0x68] sm:$0xff]   ;;  %s19625_s15 = smov 118  }
  0x20   : > { %13132 = vmatpush3.bf16.msra.mxu0 %v14558_v0  ;;  %v1091_v3 = vld [vmem:[%s14873_s24 + $0x4] sm:$0xf]  ;;  %v1090_v4 = vld [vmem:[%s14873_s24] sm:$0xf]  ;;  %v1092_v5 = vld [vmem:[%s14873_s24 + $0x8] sm:$0xf] }
  0x21   : > { %13133 = vmatprep.subr.bf16.mxu0 %v14559_v1  ;;  %v1131_v6 = vshrl.u32 %v1091_v3, 16  ;;  %v1134_v7 = vshll.u32 %v1091_v3, 16  ;;  %v1123_v8 = vshrl.u32 %v1090_v4, 16  ;;  %v1126_v9 = vshll.u32 %v1090_v4, 16  ;;  %v1094_v10 = vld [vmem:[%s14873_s24 + $0x10] sm:$0xf]  ;;  %vm15180_vm11 = vmand %vm19748_vm7, %vm445_vm2 }
  0x22   : > { %v1140_v11 = vshrl.u32 %v1092_v5, 16  ;;  %v1143_v12 = vshll.u32 %v1092_v5, 16  ;;  %v1093_v13 = vld [vmem:[%s14873_s24 + $0xc] sm:$0xf]  ;;  %v1157_v17 = vshrl.u32 %v1094_v10, 16  ;;  %v1160_v29 = vshll.u32 %v1094_v10, 16  ;;  %s15057_s21 = scalar_lea.vmem %s19841_s0, %s12680_s19  ;;  %vm15385_vm14 = vmor %vm1743_vm12, %vm1744_vm13 }
  0x23   : > { %v1133_v15 = vrot.slane %v1131_v6, 7  ;;  %v1125_v16 = vrot.slane %v1123_v8, 7  ;;  %v1148_v18 = vshrl.u32 %v1093_v13, 16  ;;  %v1095_v19 = vld [vmem:[%s14873_s24 + $0x14] sm:$0xf]  ;;  %v1151_v21 = vshll.u32 %v1093_v13, 16  ;;  %vm15525_vm3 = vmand %vm1545_vm15, %vm389_vm0 }
  0x24   : > { %13134 = vmatpush3.bf16.msra.mxu0 %v14559_v1  ;;  %v1142_v20 = vrot.slane %v1140_v11, 7  ;;  %v1165_v22 = vshrl.u32 %v1095_v19, 16  ;;  %v1096_v28 = vld [vmem:[%s14873_s24 + $0x18] sm:$0xf]  ;;  %v1098_v31 = vld [vmem:[%s14873_s24 + $0x20] sm:$0xf] }
  0x25   : > { %13135 = vmatprep.subr.bf16.mxu0 %v14560_v2  ;;  %v1138_v23 = vrot.slane %v1133_v15, 4  ;;  %v1136_v24 = vor.u32 %v1134_v7, %v1133_v15  ;;  %v1128_v25 = vor.u32 %v1126_v9, %v1125_v16  ;;  %v1129_v26 = vrot.slane %v1125_v16, 4  ;;  %v1097_v36 = vld [vmem:[%s14873_s24 + $0x1c] sm:$0xf]  ;;  %v1099_v42 = vld [vmem:[%s14873_s24 + $0x24] sm:$0xf] }
  0x26   : > { %v14894_v30 = vrot.slane %v1148_v18, 7  ;;  %v1145_v32 = vor.u32 %v1143_v12, %v1142_v20  ;;  %v1159_v33 = vrot.slane %v1157_v17, 7  ;;  %v1146_v34 = vrot.slane %v1142_v20, 4  ;;  %v14915_v49 = vld [vmem:[%s14873_s24 + $0x28] sm:$0xf]  ;;  %v14564_v9 = vld [vmem:[%s19832_s2 + $0x70] sm:$0xff]  }
  0x27   : > { %1398 = vrot.lane.b32.xlu1 %v1138_v23, %s14726_s25  ;;  %1394 = vrot.lane.b32.xlu0 %v1128_v25, %s14726_s25  ;;  %v1168_v35 = vshll.u32 %v1095_v19, 16  ;;  %v1137_v38 = vsel %vm14889_vm5, %v1129_v26, %v1136_v24  ;;  %v14906_v40 = vrot.slane %v1165_v22, 7  ;;  %v1174_v41 = vshrl.u32 %v1096_v28, 16  ;;  %v1101_v50 = vld [vmem:[%s14873_s24 + $0x2c] sm:$0xf]  ;;  %s19631_s16 = smov 110  }
  0x28   : > { %13136 = vmatpush3.bf16.msra.mxu0 %v14560_v2  ;;  %v1153_v39 = vor.u32 %v1151_v21, %v14894_v30  ;;  %v1191_v44 = vshrl.u32 %v1098_v31, 16  ;;  %v1182_v45 = vshrl.u32 %v1097_v36, 16  ;;  %v1162_v46 = vor.u32 %v1160_v29, %v1159_v33  ;;  %v14922_v55 = vld [vmem:[%s14873_s24 + $0x30] sm:$0xf]  ;;  %v1103_v60 = vld [vmem:[%s14873_s24 + $0x34] sm:$0xf] }
  0x29   : > { %13137 = vmatprep.subr.bf16.mxu0 %v14561_v37  ;;  %v1163_v47 = vrot.slane %v1159_v33, 4  ;;  %v1199_v48 = vshrl.u32 %v1099_v42, 16  ;;  %v1170_v52 = vor.u32 %v1168_v35, %v14906_v40  ;;  %v1176_v53 = vrot.slane %v1174_v41, 7  ;;  %v14941_v8 = vld [vmem:[%s14873_s24 + $0x38] sm:$0xf]  ;;  %s19635_s17 = smov 106  }
  0x2a   : > { %v1154_v51 = vsel %vm14889_vm5, %v1146_v34, %v1153_v39  ;;  %v1177_v54 = vshll.u32 %v1096_v28, 16  ;;  %v1194_v57 = vshll.u32 %v1098_v31, 16  ;;  %v14927_v58 = vrot.slane %v1182_v45, 7  ;;  %v14950_v15 = vld [vmem:[%s14873_s24 + $0x3c] sm:$0xf]  ;;  %s19633_s18 = smov 112  }
  0x2b   : > { %1400 = vrot.lane.b32.xlu1 %v1145_v32, %s14726_s25  ;;  %1396 = vrot.lane.b32.xlu0 %v1137_v38, %s14726_s25  ;;  %v1185_v59 = vshll.u32 %v1097_v36, 16  ;;  %v1193_v61 = vrot.slane %v1191_v44, 7  ;;  %v14930_v62 = vrot.slane %v1199_v48, 7  ;;  %v1202_v63 = vshll.u32 %v1099_v42, 16  ;;  %v14956_v20 = vld [vmem:[%s14873_s24 + $0x40] sm:$0xf] }
  0x2c   : > { %13138 = vmatpush3.bf16.msra.mxu0 %v14561_v37  ;;  %v1216_v0 = vshrl.u32 %v1101_v50, 16  ;;  %v1155_v1 = vrot.slane %v14894_v30, 4  ;;  %v1172_v2 = vrot.slane %v14906_v40, 4  ;;  %v1208_v3 = vshrl.u32 %v14915_v49, 16  ;;  %v14963_v25 = vld [vmem:[%s14873_s24 + $0x44] sm:$0xf] }
  0x2d   : > { %13139 = vmatprep.subr.bf16.mxu0 %v14562_v43  ;;  %v1171_v4 = vsel %vm14889_vm5, %v1163_v47, %v1170_v52  ;;  %v1179_v5 = vor.u32 %v1177_v54, %v1176_v53  ;;  %v1225_v6 = vshrl.u32 %v14922_v55, 16  ;;  %v1233_v7 = vshrl.u32 %v1103_v60, 16  ;;  %v14565_v31 = vld [vmem:[%s19832_s2 + $0x78] sm:$0xff]   ;;  %v14976_v36 = vld [vmem:[%s14873_s24 + $0x48] sm:$0xf]  ;;  %s19639_s20 = smov 102  }
  0x2e   : > { %v1180_v10 = vrot.slane %v1176_v53, 4  ;;  %v1187_v11 = vor.u32 %v1185_v59, %v14927_v58  ;;  %v14947_v12 = vrot.slane %v1216_v0, 7  ;;  %v1219_v13 = vshll.u32 %v1101_v50, 16  ;;  %v14983_v41 = vld [vmem:[%s14873_s24 + $0x50] sm:$0xf]  ;;  %s19637_s19 = smov 108  }
  0x2f   : > { %1406 = vrot.lane.b32.xlu1 %v1162_v46, %s14726_s25  ;;  %1402 = vrot.lane.b32.xlu0 %v1154_v51, %s14726_s25  ;;  %v1196_v16 = vor.u32 %v1194_v57, %v1193_v61  ;;  %v1197_v17 = vrot.slane %v1193_v61, 4  ;;  %v1204_v18 = vor.u32 %v1202_v63, %v14930_v62  ;;  %v14953_v19 = vrot.slane %v1233_v7, 7  ;;  %v1109_v42 = vld [vmem:[%s14873_s24 + $0x4c] sm:$0xf]  ;;  %v1111_v47 = vld [vmem:[%s14873_s24 + $0x54] sm:$0xf] }
  0x30   : > { %13140 = vmatpush3.bf16.msra.mxu0 %v14562_v43  ;;  %v1210_v21 = vrot.slane %v1208_v3, 7  ;;  %v1211_v22 = vshll.u32 %v14915_v49, 16  ;;  %v1236_v23 = vshll.u32 %v1103_v60, 16  ;;  %v1242_v24 = vshrl.u32 %v14941_v8, 16  ;;  %v14998_v52 = vld [vmem:[%s14873_s24 + $0x58] sm:$0xf] }
  0x31   : > { %13141 = vmatprep.subr.bf16.mxu0 %v14563_v56  ;;  %v1189_v26 = vrot.slane %v14927_v58, 4  ;;  %v1227_v28 = vrot.slane %v1225_v6, 7  ;;  %v1228_v29 = vshll.u32 %v14922_v55, 16  ;;  %v1250_v30 = vshrl.u32 %v14950_v15, 16  ;;  %v15008_v57 = vld [vmem:[%s14873_s24 + $0x60] sm:$0xf] }
  0x32   : > { %v1188_v32 = vsel %vm14889_vm5, %v1180_v10, %v1187_v11  ;;  %v1206_v33 = vrot.slane %v14930_v62, 4  ;;  %v1214_v34 = vrot.slane %v1210_v21, 4  ;;  %v1221_v35 = vor.u32 %v1219_v13, %v14947_v12  ;;  %v1113_v63 = vld [vmem:[%s14873_s24 + $0x5c] sm:$0xf]  ;;  %s19599_s22 = smov 98   ;;  %s19601_s23 = smov 104  }
  0x33   : > { %1404 = vrot.lane.b32.xlu1 %v1155_v1, %s14726_s25  ;;  %1408 = vrot.lane.b32.xlu0 %v1171_v4, %s14726_s25  ;;  %v1205_v37 = vsel %vm14889_vm5, %v1197_v17, %v1204_v18  ;;  %v1231_v38 = vrot.slane %v1227_v28, 4  ;;  %v1238_v39 = vor.u32 %v1236_v23, %v14953_v19  ;;  %v1259_v40 = vshrl.u32 %v14956_v20, 16  ;;  %v15037_v23 = vld [vmem:[%s14873_s24 + $0x64] sm:$0xf]  ;;  %s19605_s26 = smov 100   ;;  %s19609_s27 = smov 96  }
  0x34   : > { %13142 = vmatpush3.bf16.msra.mxu0 %v14563_v56  ;;  %v1213_v43 = vor.u32 %v1211_v22, %v1210_v21  ;;  %v1244_v44 = vrot.slane %v1242_v24, 7  ;;  %v1245_v45 = vshll.u32 %v14941_v8, 16  ;;  %v1267_v46 = vshrl.u32 %v14963_v25, 16  ;;  %s19706_s0 = smov 46   ;;  %s19712_s1 = smov 52  }
  0x35   : > { %13143 = vmatprep.subr.bf16.mxu0 %v14564_v9  ;;  %v14991_v48 = vor.u32 %v1228_v29, %v1227_v28  ;;  %v1223_v49 = vrot.slane %v14947_v12, 4  ;;  %v14994_v50 = vrot.slane %v1250_v30, 7  ;;  %v1253_v51 = vshll.u32 %v14950_v15, 16  ;;  %s19957_s13 = smov 18   ;;  %s19958_s10 = smov 20  }
  0x36   : > { %v15002_v53 = vsel %vm14889_vm5, %v1214_v34, %v1221_v35  ;;  %v1240_v54 = vrot.slane %v14953_v19, 4  ;;  %v1262_v55 = vshll.u32 %v14956_v20, 16  ;;  %v1276_v56 = vshrl.u32 %v14976_v36, 16  ;;  %v15050_v34 = vld [vmem:[%s14873_s24 + $0x68] sm:$0xf]  ;;  %s19959_s14 = smov 24  }
  0x37   : > { %1412 = vrot.lane.b32.xlu1 %v1179_v5, %s14726_s25  ;;  %1410 = vrot.lane.b32.xlu0 %v1172_v2, %s14726_s25  ;;  %v15012_v58 = vsel %vm14889_vm5, %v1231_v38, %v1238_v39  ;;  %v1261_v59 = vrot.slane %v1259_v40, 7  ;;  %v1270_v60 = vshll.u32 %v14963_v25, 16  ;;  %v1284_v61 = vshrl.u32 %v1109_v42, 16  ;;  %s19961_s9 = smov 36   ;;  %s19963_s7 = smov 50  }
  0x38   : > { %13144 = vmatpush3.bf16.msra.mxu0 %v14564_v9  ;;  %v15018_v0 = vor.u32 %v1245_v45, %v1244_v44  ;;  %v1248_v1 = vrot.slane %v1244_v44, 4  ;;  %v15020_v2 = vrot.slane %v1267_v46, 7  ;;  %v1293_v3 = vshrl.u32 %v14983_v41, 16  ;;  %v15076_v44 = vld [vmem:[%s14873_s24 + $0x70] sm:$0xf]  ;;  %s19964_s6 = smov 52  }
  0x39   : > { %13145 = vmatprep.subr.bf16.mxu0 %v14565_v31  ;;  %v1255_v4 = vor.u32 %v1253_v51, %v14994_v50  ;;  %v1257_v5 = vrot.slane %v14994_v50, 4  ;;  %v1265_v6 = vrot.slane %v1261_v59, 4  ;;  %v1301_v7 = vshrl.u32 %v1111_v47, 16  ;;  %v15086_v51 = vld [vmem:[%s15057_s21 + $0x4] sm:$0xf]  ;;  %s19965_s8 = smov 6  }
  0x3a   : > { %v1278_v8 = vrot.slane %v1276_v56, 7  ;;  %v15025_v9 = vrot.slane %v1284_v61, 7  ;;  %v1287_v10 = vshll.u32 %v1109_v42, 16  ;;  %v1310_v11 = vshrl.u32 %v14998_v52, 16  ;;  %v621_v61 = vld [vmem:[%s15057_s21] sm:$0xf] }
  0x3b   : > { %1418 = vrot.lane.b32.xlu1 %v1196_v16, %s14726_s25  ;;  %1414 = vrot.lane.b32.xlu0 %v1188_v32, %s14726_s25  ;;  %v1279_v13 = vshll.u32 %v14976_v36, 16  ;;  %v15029_v15 = vrot.slane %v1301_v7, 7  ;;  %v1304_v16 = vshll.u32 %v1111_v47, 16  ;;  %v1327_v17 = vshrl.u32 %v15008_v57, 16  ;;  %v450_v47 = vld [vmem:[#allocation2 + $0x14] sm:$0x1] }
  0x3c   : > { %13146 = vmatpush3.bf16.msra.mxu0 %v14565_v31  ;;  %v1272_v18 = vor.u32 %v1270_v60, %v15020_v2  ;;  %v1295_v20 = vrot.slane %v1293_v3, 7  ;;  %v1296_v21 = vshll.u32 %v14983_v41, 16  ;;  %v1318_v22 = vshrl.u32 %v1113_v63, 16  ;;  %v406_v56 = vld [vmem:[#allocation2 + $0x3c] sm:$0x1]  ;;  %v14613_v7 = vld [vmem:[%s19832_s2 + $0x190] sm:$0xff]  }
  0x3d   : > { %v15039_v24 = vor.u32 %v1262_v55, %v1261_v59  ;;  %v15043_v25 = vsel %vm14889_vm5, %v1248_v1, %v1255_v4  ;;  %v1282_v28 = vrot.slane %v1278_v8, 4  ;;  %v1321_v29 = vshll.u32 %v1113_v63, 16  ;;  %v397_v63 = vld [vmem:[#allocation2 + $0x18] sm:$0x1]  ;;  %v14621_v60 = vld [vmem:[%s19832_s2 + $0x1d0] sm:$0xff]   ;;  %s19981_s5 = sld [smem:[#allocation38_spill]] }
  0x3e   : > { %v1312_v30 = vrot.slane %v1310_v11, 7  ;;  %v1313_v31 = vshll.u32 %v14998_v52, 16  ;;  %v15047_v32 = vrot.slane %v1318_v22, 7  ;;  %v1299_v35 = vrot.slane %v1295_v20, 4  ;;  %v394_v52 = vld [vmem:[#allocation2 + $0xc] sm:$0x1] }
  0x3f   : > { %1416 = vrot.lane.b32.xlu1 %v1189_v26, %s14726_s25  ;;  %1420 = vrot.lane.b32.xlu0 %v1205_v37, %s14726_s25  ;;  %v1289_v26 = vor.u32 %v1287_v10, %v15025_v9  ;;  %v1306_v36 = vor.u32 %v1304_v16, %v15029_v15  ;;  %v15060_v37 = vrot.slane %v1327_v17, 7  ;;  %v1330_v38 = vshll.u32 %v15008_v57, 16  ;;  %s19988_s3 = sld [smem:[#allocation36_spill]]  ;;  %s19990_s4 = sld [smem:[#allocation37_spill]] }
  0x40   : > { %v15069_v39 = vsel %vm14889_vm5, %v1265_v6, %v1272_v18  ;;  %v15071_v40 = vor.u32 %v1279_v13, %v1278_v8  ;;  %v1274_v41 = vrot.slane %v15020_v2, 4  ;;  %v1335_v42 = vshrl.u32 %v15037_v23, 16  ;;  %v623_v8 = vld [vmem:[%s15057_s21 + $0x8] sm:$0xf] }
  0x41   : > { %v15078_v45 = vor.u32 %v1296_v21, %v1295_v20  ;;  %v1323_v46 = vor.u32 %v1321_v29, %v15047_v32  ;;  %v1344_v62 = vshrl.u32 %v15050_v34, 16  ;;  %v15090_v55 = vsel %vm14889_vm5, %v1282_v28, %v1289_v26  ;;  %v15137_v21 = vld [vmem:[%s14873_s24 + $0x74] sm:$0xf]  ;;  %v625_v26 = vld [vmem:[%s15057_s21 + $0x10] sm:$0xf] }
  0x42   : > { %v15093_v57 = vor.u32 %v1313_v31, %v1312_v30  ;;  %v15105_v1 = vsel %vm14889_vm5, %v1299_v35, %v1306_v36  ;;  %v15108_v3 = vor.u32 %v1330_v38, %v15060_v37  ;;  %v1333_v4 = vrot.slane %v15060_v37, 4  ;;  %v14566_v38 = vld [vmem:[%s19832_s2] sm:$0xff]   ;;  %v409_v37 = vld [vmem:[#allocation2 + $0x48] sm:$0x1] }
  0x43   : > { %1424 = vrot.lane.b32.xlu1 %v1213_v43, %s14726_s25  ;;  %1422 = vrot.lane.b32.xlu0 %v1206_v33, %s14726_s25  ;;  %v1316_v43 = vrot.slane %v1312_v30, 4  ;;  %v15083_v33 = vld [vmem:[%s14873_s24 + $0x6c] sm:$0xf]  ;;  %v1361_v6 = vshrl.u32 %v15076_v44, 16  ;;  %v15124_v11 = vrot.slane %v1335_v42, 7  ;;  %v1338_v13 = vshll.u32 %v15037_v23, 16 }
  0x44   : > { %v1352_v16 = vshrl.u32 %v15083_v33, 16  ;;  %v15132_v18 = vrot.slane %v1344_v62, 7  ;;  %v1364_v20 = vshll.u32 %v15076_v44, 16  ;;  %v451_v23 = vsel %vm15098_vm8, 0, %v450_v47  ;;  %v624_v47 = vld [vmem:[%s15057_s21 + $0xc] sm:$0xf]  ;;  %13179 = vmatprep.subr.bf16.mxu0 %v14566_v38 }
  0x45   : > { %v15130_v17 = vsel %vm14889_vm5, %v1316_v43, %v1323_v46  ;;  %v664_v28 = vshrl.u32 %v15086_v51, 16  ;;  %v395_v29 = vsel %vm15114_vm9, 0, %v394_v52  ;;  %v15146_v30 = vrot.slane %v1361_v6, 7  ;;  %452 = vst [vmem:[#allocation2 + $0x14] sm:$0x1] %v451_v23 }
  0x46   : > { %396 = vst [vmem:[#allocation2 + $0xc] sm:$0x1] %v395_v29  ;;  %v656_v31 = vshrl.u32 %v621_v61, 16  ;;  %v659_v35 = vshll.u32 %v621_v61, 16  ;;  %v398_v36 = vsel %vm15114_vm9, 0, %v397_v63  ;;  %v15158_v42 = vrot.slane %v1352_v16, 7 }
  0x47   : > { %1430 = vrot.lane.b32.xlu1 %v14991_v48, %s14726_s25  ;;  %1426 = vrot.lane.b32.xlu0 %v15002_v53, %s14726_s25  ;;  %v1347_v48 = vshll.u32 %v15050_v34, 16  ;;  %v400_v53 = vld [vmem:[#allocation2 + $0x24] sm:$0x1]  ;;  %v1355_v43 = vshll.u32 %v15083_v33, 16  ;;  %v666_v46 = vrot.slane %v664_v28, 7  ;;  %v673_v62 = vshrl.u32 %v623_v8, 16 }
  0x48   : > { %399 = vst [vmem:[#allocation2 + $0x18] sm:$0x1] %v398_v36  ;;  %v658_v52 = vrot.slane %v656_v31, 7  ;;  %v676_v61 = vshll.u32 %v623_v8, 16  ;;  %v667_v63 = vshll.u32 %v15086_v51, 16  ;;  %v401_v12 = vsel %vm15114_vm9, 0, %v400_v53 }
  0x49   : > { %v671_v6 = vrot.slane %v666_v46, 4  ;;  %v675_v16 = vrot.slane %v673_v62, 7  ;;  %402 = vst [vmem:[#allocation2 + $0x24] sm:$0x1] %v401_v12  ;;  %v690_v23 = vshrl.u32 %v625_v26, 16  ;;  %v19846_v29 = vmov 0 }
  0x4a   : > { %v626_v28 = vld [vmem:[%s15057_s21 + $0x14] sm:$0xf]  ;;  %v19847_v29 = vsel %vm15169_vm10, 4294967295, %v19846_v29  ;;  %v661_v51 = vor.u32 %v659_v35, %v658_v52  ;;  %v662_v8 = vrot.slane %v658_v52, 4  ;;  %v669_v31 = vor.u32 %v667_v63, %v666_v46  ;;  %v403_v36 = vld [vmem:[#allocation2 + $0x30] sm:$0x1] }
  0x4b   : > { %1428 = vrot.lane.b32.xlu1 %v1223_v49, %s14726_s25  ;;  %1432 = vrot.lane.b32.xlu0 %v15012_v58, %s14726_s25  ;;  %v453_v49 = vld [vmem:[#allocation2 + $0x20] sm:$0x1]  ;;  %v1369_v58 = vshrl.u32 %v15137_v21, 16  ;;  %19848 = vst [vmem:[#allocation8_spill] sm:$0xff] %v19847_v29  ;;  %v693_v53 = vshll.u32 %v625_v26, 16  ;;  %v19849_v38 = vmov 0  ;;  %v678_v62 = vor.u32 %v676_v61, %v675_v16 }
  0x4c   : > { %v19850_v38 = vsel %vm15180_vm11, 4294967295, %v19849_v38  ;;  %v692_v12 = vrot.slane %v690_v23, 7  ;;  %v679_v35 = vrot.slane %v675_v16, 4  ;;  %v681_v52 = vshrl.u32 %v624_v47, 16  ;;  %v627_v46 = vld [vmem:[%s15057_s21 + $0x18] sm:$0xf] }
  0x4d   : > { %19851 = vst [vmem:[#allocation9_spill] sm:$0xff] %v19850_v38  ;;  %v670_v26 = vsel %vm14889_vm5, %v662_v8, %v669_v31  ;;  %v684_v63 = vshll.u32 %v624_v47, 16  ;;  %v698_v19 = vshrl.u32 %v626_v28, 16  ;;  %v1340_v22 = vor.u32 %v1338_v13, %v15124_v11  ;;  %v982_v10 = vld [vmem:[#allocation2 + $0x14] sm:$0x1] }
  0x4e   : > { %v978_v59 = vld [vmem:[#allocation2 + $0xc] sm:$0xf]  ;;  %981 = vst.msk [vmem:[#allocation2 + $0x10] sm:$0xf] %vm19748_vm7, %v670_v26  ;;  %v695_v61 = vor.u32 %v693_v53, %v692_v12  ;;  %v15191_v23 = vrot.slane %v681_v52, 7  ;;  %v696_v16 = vrot.slane %v692_v12, 4  ;;  %v983_v47 = vsel %vm15169_vm10, %v671_v6, %v982_v10 }
  0x4f   : > { %1436 = vrot.lane.b32.xlu1 %v15018_v0, %s14726_s25  ;;  %1434 = vrot.lane.b32.xlu0 %v1240_v54, %s14726_s25  ;;  %v454_v0 = vsel %vm15098_vm8, 0, %v453_v49  ;;  %v456_v54 = vld [vmem:[#allocation2 + $0x2c] sm:$0x1]  ;;  %v979_v49 = vsel %vm15180_vm11, %v661_v51, %v978_v59  ;;  %v985_v8 = vld [vmem:[#allocation2 + $0x18] sm:$0xf]  ;;  %v15197_v31 = vrot.slane %v698_v19, 7 }
  0x50   : > { %455 = vst [vmem:[#allocation2 + $0x20] sm:$0x1] %v454_v0  ;;  %v701_v13 = vshll.u32 %v626_v28, 16  ;;  %v1350_v53 = vrot.slane %v15132_v18, 4  ;;  %984 = vst [vmem:[#allocation2 + $0x14] sm:$0x1] %v983_v47  ;;  %v986_v10 = vsel %vm15180_vm11, %v678_v62, %v985_v8  ;;  %v686_v59 = vor.u32 %v684_v63, %v15191_v23 }
  0x51   : > { %980 = vst [vmem:[#allocation2 + $0xc] sm:$0xf] %v979_v49  ;;  %v404_v6 = vsel %vm15114_vm9, 0, %v403_v36  ;;  %v629_v28 = vld [vmem:[%s15057_s21 + $0x20] sm:$0xf]  ;;  %v688_v12 = vrot.slane %v15191_v23, 4 }
  0x52   : > { %v15211_v51 = vld [vmem:[%s15057_s21 + $0x1c] sm:$0xf]  ;;  %987 = vst [vmem:[#allocation2 + $0x18] sm:$0xf] %v986_v10  ;;  %405 = vst [vmem:[#allocation2 + $0x30] sm:$0x1] %v404_v6  ;;  %v687_v63 = vsel %vm14889_vm5, %v679_v35, %v686_v59 }
  0x53   : > { %1442 = vrot.lane.b32.xlu1 %v15039_v24, %s14726_s25  ;;  %1438 = vrot.lane.b32.xlu0 %v15043_v25, %s14726_s25  ;;  %v992_v24 = vld [vmem:[#allocation2 + $0x24] sm:$0xf]  ;;  %v703_v25 = vor.u32 %v701_v13, %v15197_v31  ;;  %v707_v52 = vshrl.u32 %v627_v46, 16  ;;  %v710_v26 = vshll.u32 %v627_v46, 16  ;;  %v457_v36 = vsel %vm15098_vm8, 0, %v456_v54 }
  0x54   : > { %v993_v62 = vsel %vm15180_vm11, %v695_v61, %v992_v24  ;;  %v407_v0 = vsel %vm15114_vm9, 0, %v406_v56  ;;  %v459_v19 = vld [vmem:[#allocation2 + $0x38] sm:$0x1]  ;;  %988 = vst.msk [vmem:[#allocation2 + $0x1c] sm:$0xf] %vm19748_vm7, %v687_v63  ;;  %v724_v61 = vshrl.u32 %v629_v28, 16  ;;  %v15273_v63 = vor.u32 %v1347_v48, %v15132_v18 }
  0x55   : > { %994 = vst [vmem:[#allocation2 + $0x24] sm:$0xf] %v993_v62  ;;  %v704_v23 = vsel %vm14889_vm5, %v696_v16, %v703_v25  ;;  %v709_v46 = vrot.slane %v707_v52, 7  ;;  %458 = vst [vmem:[#allocation2 + $0x2c] sm:$0x1] %v457_v36  ;;  %v727_v47 = vshll.u32 %v629_v28, 16  ;;  %v15240_v16 = vsel %vm14889_vm5, %v1333_v4, %v1340_v22 }
  0x56   : > { %408 = vst [vmem:[#allocation2 + $0x3c] sm:$0x1] %v407_v0  ;;  %v630_v49 = vld [vmem:[%s15057_s21 + $0x24] sm:$0xf]  ;;  %v1372_v56 = vshll.u32 %v15137_v21, 16  ;;  %v715_v35 = vshrl.u32 %v15211_v51, 16 }
  0x57   : > { %1440 = vrot.lane.b32.xlu1 %v1257_v5, %s14726_s25  ;;  %1444 = vrot.lane.b32.xlu0 %v15069_v39, %s14726_s25  ;;  %995 = vst.msk [vmem:[#allocation2 + $0x28] sm:$0xf] %vm19748_vm7, %v704_v23  ;;  %v718_v54 = vshll.u32 %v15211_v51, 16  ;;  %v989_v8 = vld [vmem:[#allocation2 + $0x20] sm:$0x1]  ;;  %v712_v50 = vor.u32 %v710_v26, %v709_v46  ;;  %v15242_v5 = vrot.slane %v724_v61, 7 }
  0x58   : > { %v713_v13 = vrot.slane %v709_v46, 4  ;;  %v14727_v39 = vmov 0   ;;  %v990_v4 = vsel %vm15169_vm10, %v688_v12, %v989_v8  ;;  %v15252_v22 = vrot.slane %v715_v35, 7  ;;  %v631_v6 = vld [vmem:[%s15057_s21 + $0x28] sm:$0xf] }
  0x59   : > { %381 = vst [vmem:[#allocation2] sm:$0xf] %v14727_v39  ;;  %382 = vst [vmem:[#allocation2 + $0x4] sm:$0xf] %v14727_v39  ;;  %v460_v10 = vsel %vm15098_vm8, 0, %v459_v19  ;;  %v732_v59 = vshrl.u32 %v630_v49, 16  ;;  %v729_v24 = vor.u32 %v727_v47, %v15242_v5 }
  0x5a   : > { %383 = vst [vmem:[#allocation2 + $0x8] sm:$0x1] %v14727_v39  ;;  %385 = vst [vmem:[#allocation2 + $0xcc] sm:$0xf] %v14727_v39  ;;  %v1359_v28 = vrot.slane %v15158_v42, 4  ;;  %v705_v51 = vrot.slane %v15197_v31, 4  ;;  %v720_v26 = vor.u32 %v718_v54, %v15252_v22 }
  0x5b   : > { %386 = vst [vmem:[#allocation2 + $0xd0] sm:$0xf] %v14727_v39  ;;  %387 = vst [vmem:[#allocation2 + $0xd4] sm:$0x1] %v14727_v39  ;;  %v735_v25 = vshll.u32 %v630_v49, 16  ;;  %1448 = vrot.lane.b32.xlu1 %v15071_v40, %s14726_s25  ;;  %1446 = vrot.lane.b32.xlu0 %v1274_v41, %s14726_s25  ;;  %v1367_v12 = vrot.slane %v15146_v30, 4 }
  0x5c   : > { %502 = vst.msk [vmem:[#allocation3] sm:$0xf] %vm19748_vm7, %v14727_v39  ;;  %503 = vst.msk [vmem:[#allocation3 + $0x4] sm:$0xf] %vm19748_vm7, %v14727_v39  ;;  %v999_v52 = vld [vmem:[#allocation2 + $0x30] sm:$0xf]  ;;  %v721_v34 = vsel %vm14889_vm5, %v713_v13, %v720_v26 }
  0x5d   : > { %505 = vst.msk [vmem:[#allocation3 + $0x8] sm:$0x1] %vm504_vm1, %v14727_v39  ;;  %509 = vst.msk [vmem:[#allocation3 + $0xd4] sm:$0x1] %vm504_vm1, %v14727_v39  ;;  %v730_v62 = vrot.slane %v15242_v5, 4  ;;  %v15268_v31 = vrot.slane %v732_v59, 7  ;;  %v1000_v40 = vsel %vm15180_vm11, %v712_v50, %v999_v52  ;;  %v15303_v50 = vor.u32 %v1364_v20, %v15146_v30 }
  0x5e   : > { %507 = vst.msk [vmem:[#allocation3 + $0xcc] sm:$0xf] %vm19748_vm7, %v14727_v39  ;;  %508 = vst.msk [vmem:[#allocation3 + $0xd0] sm:$0xf] %vm19748_vm7, %v14727_v39  ;;  %v410_v2 = vsel %vm15114_vm9, 0, %v409_v37  ;;  %v741_v41 = vshrl.u32 %v631_v6, 16  ;;  %v1357_v5 = vor.u32 %v1355_v43, %v15158_v42 }
  0x5f   : > { %991 = vst [vmem:[#allocation2 + $0x20] sm:$0x1] %v990_v4  ;;  %461 = vst [vmem:[#allocation2 + $0x38] sm:$0x1] %v460_v10  ;;  %v462_v36 = vld [vmem:[#allocation2 + $0x44] sm:$0x1]  ;;  %v737_v48 = vor.u32 %v735_v25, %v15268_v31  ;;  %1454 = vrot.lane.b32.xlu1 %v15078_v45, %s14726_s25  ;;  %1450 = vrot.lane.b32.xlu0 %v15090_v55, %s14726_s25 }
  0x60   : > { %v412_v0 = vld [vmem:[#allocation2 + $0x54] sm:$0x1]  ;;  %v15281_v19 = vrot.slane %v1369_v58, 7  ;;  %1001 = vst [vmem:[#allocation2 + $0x30] sm:$0xf] %v1000_v40  ;;  %v744_v61 = vshll.u32 %v631_v6, 16 }
  0x61   : > { %v996_v23 = vld [vmem:[#allocation2 + $0x2c] sm:$0x1]  ;;  %v1006_v46 = vld [vmem:[#allocation2 + $0x3c] sm:$0xf]  ;;  %411 = vst [vmem:[#allocation2 + $0x48] sm:$0x1] %v410_v2  ;;  %v738_v45 = vsel %vm14889_vm5, %v730_v62, %v737_v48 }
  0x62   : > { %v633_v47 = vld [vmem:[%s15057_s21 + $0x30] sm:$0xf]  ;;  %v997_v49 = vsel %vm15169_vm10, %v705_v51, %v996_v23  ;;  %v1007_v35 = vsel %vm15180_vm11, %v729_v24, %v1006_v46  ;;  %v722_v58 = vrot.slane %v15252_v22, 4  ;;  %1002 = vst.msk [vmem:[#allocation2 + $0x34] sm:$0xf] %vm19748_vm7, %v721_v34  ;;  %v15293_v54 = vrot.slane %v741_v41, 7 }
  0x63   : > { %v632_v8 = vld [vmem:[%s15057_s21 + $0x2c] sm:$0xf]  ;;  %998 = vst [vmem:[#allocation2 + $0x2c] sm:$0x1] %v997_v49  ;;  %1008 = vst [vmem:[#allocation2 + $0x3c] sm:$0xf] %v1007_v35  ;;  %v1374_v43 = vor.u32 %v1372_v56, %v15281_v19  ;;  %1456 = vrot.lane.b32.xlu0 %v15105_v1, %s14726_s25 }
  0x64   : > { %v391_v13 = vld [vmem:[#allocation2] sm:$0x1]  ;;  %v447_v39 = vld [vmem:[#allocation2 + $0x8] sm:$0x1]  ;;  %v1656_v37 = vld [vmem:[#allocation2 + $0x4] sm:$0xf]  ;;  %v746_v10 = vor.u32 %v744_v61, %v15293_v54 }
  0x65   : > { %v392_v55 = vsel %vm15114_vm9, 0, %v391_v13  ;;  %v448_v44 = vsel %vm15098_vm8, 0, %v447_v39  ;;  %v1756_v20 = vshll.u32 %v1656_v37, 16  ;;  %v1760_v4 = vshrl.u32 %v1656_v37, 16  ;;  %1009 = vst.msk [vmem:[#allocation2 + $0x40] sm:$0xf] %vm19748_vm7, %v738_v45 }
  0x66   : > { %v465_v33 = vld [vmem:[#allocation2 + $0x50] sm:$0x1]  ;;  %393 = vst [vmem:[#allocation2] sm:$0x1] %v392_v55  ;;  %449 = vst [vmem:[#allocation2 + $0x8] sm:$0x1] %v448_v44 }
  0x67   : > { %v1003_v22 = vld [vmem:[#allocation2 + $0x38] sm:$0x1]  ;;  %v463_v59 = vsel %vm15098_vm8, 0, %v462_v36  ;;  %v413_v6 = vsel %vm15114_vm9, 0, %v412_v0  ;;  %v634_v51 = vld [vmem:[%s15057_s21 + $0x34] sm:$0xf] }
  0x68   : > { %v15324_v24 = vrot.slane %v1756_v20, 5  ;;  %v1762_v25 = vrot.slane %v1760_v4, 4  ;;  %v1004_v52 = vsel %vm15169_vm10, %v722_v58, %v1003_v22  ;;  %464 = vst [vmem:[#allocation2 + $0x44] sm:$0x1] %v463_v59  ;;  %414 = vst [vmem:[#allocation2 + $0x54] sm:$0x1] %v413_v6 }
  0x69   : > { %v758_v21 = vshrl.u32 %v633_v47, 16  ;;  %v415_v56 = vld [vmem:[#allocation2 + $0x60] sm:$0x1]  ;;  %v19852_v26 = vrot.slane %v15025_v9, 4  ;;  %1005 = vst [vmem:[#allocation2 + $0x38] sm:$0x1] %v1004_v52 }
  0x6a   : > { %v761_v62 = vshll.u32 %v633_v47, 16  ;;  %v749_v40 = vshrl.u32 %v632_v8, 16  ;;  %v752_v2 = vshll.u32 %v632_v8, 16  ;;  %v1763_v41 = vor.u32 %v1762_v25, %v15324_v24  ;;  %v1013_v36 = vld [vmem:[#allocation2 + $0x48] sm:$0xf] }
  0x6b   : > { %1452 = vrot.lane.b32.xlu1 %v19852_v26, %s14726_s25  ;;  %v760_v0 = vrot.slane %v758_v21, 7  ;;  %v466_v23 = vsel %vm15098_vm8, 0, %v465_v33  ;;  %v739_v9 = vrot.slane %v15268_v31, 4  ;;  %v1014_v46 = vsel %vm15180_vm11, %v746_v10, %v1013_v36  ;;  %v635_v48 = vld [vmem:[%s15057_s21 + $0x38] sm:$0xf] }
  0x6c   : > { %v751_v1 = vrot.slane %v749_v40, 7  ;;  %467 = vst [vmem:[#allocation2 + $0x50] sm:$0x1] %v466_v23  ;;  %v766_v34 = vshrl.u32 %v634_v51, 16  ;;  %v15340_v61 = vrot.slane %v1763_v41, 4  ;;  %v747_v49 = vrot.slane %v15293_v54, 4 }
  0x6d   : > { %1015 = vst [vmem:[#allocation2 + $0x48] sm:$0xf] %v1014_v46  ;;  %v763_v47 = vor.u32 %v761_v62, %v760_v0  ;;  %v769_v35 = vshll.u32 %v634_v51, 16  ;;  %v19853_v31 = vrot.slane %v15029_v15, 4  ;;  %v764_v8 = vrot.slane %v760_v0, 4 }
  0x6e   : > { %v754_v58 = vor.u32 %v752_v2, %v751_v1  ;;  %v15348_v13 = vrot.slane %v766_v34, 7  ;;  %v416_v39 = vsel %vm15114_vm9, 0, %v415_v56  ;;  %v468_v37 = vld [vmem:[#allocation2 + $0x5c] sm:$0x1]  ;;  %v418_v45 = vld [vmem:[#allocation2 + $0x6c] sm:$0x1]  ;;  %v15356_v54 = vsel %vm14889_vm5, %v1350_v53, %v1357_v5 }
  0x6f   : > { %1460 = vrot.lane.b32.xlu1 %v15093_v57, %s14726_s25  ;;  %1458 = vrot.lane.b32.xlu0 %v19853_v31, %s14726_s25  ;;  %v15362_v15 = vsel %vm14889_vm5, %v1367_v12, %v1374_v43  ;;  %v15364_v57 = vld [vmem:[#allocation2] sm:$0xf]  ;;  %v1691_v55 = vld [vmem:[#allocation2 + $0x8] sm:$0x1]  ;;  %v756_v44 = vrot.slane %v751_v1, 4  ;;  %v775_v20 = vshrl.u32 %v635_v48, 16 }
  0x70   : > { %417 = vst [vmem:[#allocation2 + $0x60] sm:$0x1] %v416_v39  ;;  %v637_v4 = vld [vmem:[%s15057_s21 + $0x40] sm:$0xf]  ;;  %v1747_v18 = vshrl.u32 %v15364_v57, 16  ;;  %v1750_v33 = vshll.u32 %v15364_v57, 16  ;;  %v755_v43 = vsel %vm14889_vm5, %v747_v49, %v754_v58  ;;  %v771_v10 = vor.u32 %v769_v35, %v15348_v13 }
  0x71   : > { %v1766_v53 = vshll.u32 %v1691_v55, 16  ;;  %v1010_v5 = vld [vmem:[#allocation2 + $0x44] sm:$0x1]  ;;  %v778_v22 = vshll.u32 %v635_v48, 16  ;;  %v1020_v12 = vld [vmem:[#allocation2 + $0x54] sm:$0xf] }
  0x72   : > { %v1011_v30 = vsel %vm15169_vm10, %v739_v9, %v1010_v5  ;;  %v773_v59 = vrot.slane %v15348_v13, 4  ;;  %v636_v6 = vld [vmem:[%s15057_s21 + $0x3c] sm:$0xf]  ;;  %v1749_v51 = vrot.slane %v1747_v18, 4  ;;  %v1752_v25 = vrot.slane %v1750_v33, 5 }
  0x73   : > { %1466 = vrot.lane.b32.xlu1 %v15108_v3, %s14726_s25  ;;  %1462 = vrot.lane.b32.xlu0 %v15130_v17, %s14726_s25  ;;  %v1768_v52 = vrot.slane %v1766_v53, 5  ;;  %1012 = vst [vmem:[#allocation2 + $0x44] sm:$0x1] %v1011_v30  ;;  %v1021_v21 = vsel %vm15180_vm11, %v763_v47, %v1020_v12  ;;  %1016 = vst.msk [vmem:[#allocation2 + $0x4c] sm:$0xf] %vm19748_vm7, %v755_v43  ;;  %v772_v17 = vsel %vm14889_vm5, %v764_v8, %v771_v10  ;;  %vm1538_vm1 = vcmask 1043968  }
  0x74   : > { %v471_v56 = vld [vmem:[#allocation2 + $0x68] sm:$0x1]  ;;  %1022 = vst [vmem:[#allocation2 + $0x54] sm:$0xf] %v1021_v21  ;;  %v1017_v3 = vld [vmem:[#allocation2 + $0x50] sm:$0x1]  ;;  %v1753_v41 = vor.u32 %v1752_v25, %v1749_v51  ;;  %vm15537_vm0 = vmand %vm1538_vm1, %vm445_vm2 }
  0x75   : > { %v777_v62 = vrot.slane %v775_v20, 7  ;;  %v469_v40 = vsel %vm15098_vm8, 0, %v468_v37  ;;  %v419_v2 = vsel %vm15114_vm9, 0, %v418_v45  ;;  %v1769_v36 = vsel %vm15385_vm14, %v15340_v61, %v1768_v52  ;;  %1023 = vst.msk [vmem:[#allocation2 + $0x58] sm:$0xf] %vm19748_vm7, %v772_v17 }
  0x76   : > { %v1018_v0 = vsel %vm15169_vm10, %v756_v44, %v1017_v3  ;;  %470 = vst [vmem:[#allocation2 + $0x5c] sm:$0x1] %v469_v40  ;;  %420 = vst [vmem:[#allocation2 + $0x6c] sm:$0x1] %v419_v2  ;;  %v792_v23 = vshrl.u32 %v637_v4, 16  ;;  %v795_v34 = vshll.u32 %v637_v4, 16 }
  0x77   : > { %v638_v9 = vld [vmem:[%s15057_s21 + $0x44] sm:$0xf]  ;;  %v421_v46 = vld [vmem:[#allocation2 + $0x78] sm:$0x1]  ;;  %1019 = vst [vmem:[#allocation2 + $0x50] sm:$0x1] %v1018_v0  ;;  %v780_v1 = vor.u32 %v778_v22, %v777_v62  ;;  %1468 = vrot.lane.b32.xlu0 %v15240_v16, %s14726_s25 }
  0x78   : > { %v781_v48 = vrot.slane %v777_v62, 4  ;;  %v783_v47 = vshrl.u32 %v636_v6, 16  ;;  %v639_v49 = vld [vmem:[%s15057_s21 + $0x48] sm:$0xf]  ;;  %v474_v35 = vld [vmem:[#allocation2 + $0x74] sm:$0x1] }
  0x79   : > { %v424_v31 = vld [vmem:[#allocation2 + $0x84] sm:$0x1]  ;;  %v19856_v61 = vrot.slane %v15047_v32, 4  ;;  %v1754_v58 = vrot.slane %v1753_v41, 4  ;;  %v1027_v8 = vld [vmem:[#allocation2 + $0x60] sm:$0xf] }
  0x7a   : > { %v794_v39 = vrot.slane %v792_v23, 7  ;;  %v786_v37 = vshll.u32 %v636_v6, 16  ;;  %v472_v45 = vsel %vm15098_vm8, 0, %v471_v56  ;;  %v1028_v55 = vsel %vm15180_vm11, %v780_v1, %v1027_v8  ;;  %v641_v53 = vld [vmem:[%s15057_s21 + $0x50] sm:$0xf] }
  0x7b   : > { %1464 = vrot.lane.b32.xlu1 %v19856_v61, %s14726_s25  ;;  %v785_v44 = vrot.slane %v783_v47, 7  ;;  %473 = vst [vmem:[#allocation2 + $0x68] sm:$0x1] %v472_v45  ;;  %v800_v20 = vshrl.u32 %v638_v9, 16  ;;  %v803_v32 = vshll.u32 %v638_v9, 16  ;;  %v1759_v16 = vsel %vm15385_vm14, %v1754_v58, %v15324_v24 }
  0x7c   : > { %1029 = vst [vmem:[#allocation2 + $0x60] sm:$0xf] %v1028_v55  ;;  %v797_v4 = vor.u32 %v795_v34, %v794_v39  ;;  %v798_v18 = vrot.slane %v794_v39, 4  ;;  %v422_v33 = vsel %vm15114_vm9, 0, %v421_v46  ;;  %v12053_v5 = vcombine.low %v1759_v16, %v1769_v36  ;;  %v640_v43 = vld [vmem:[%s15057_s21 + $0x4c] sm:$0xf] }
  0x7d   : > { %v788_v22 = vor.u32 %v786_v37, %v785_v44  ;;  %v790_v30 = vrot.slane %v785_v44, 4  ;;  %v15418_v12 = vrot.slane %v800_v20, 7  ;;  %423 = vst [vmem:[#allocation2 + $0x78] sm:$0x1] %v422_v33  ;;  %v477_v10 = vld [vmem:[#allocation2 + $0x80] sm:$0x1] }
  0x7e   : > { %v19857_v24 = vrot.slane %v15124_v11, 4  ;;  %v809_v6 = vshrl.u32 %v639_v49, 16  ;;  %v812_v51 = vshll.u32 %v639_v49, 16  ;;  %v475_v25 = vsel %vm15098_vm8, 0, %v474_v35  ;;  %v642_v21 = vld [vmem:[%s15057_s21 + $0x54] sm:$0xf]  ;;  %13147 = vmatprep.mubr.bf16.mxu0 %v12053_v5 }
  0x7f   : > { %1472 = vrot.lane.b32.xlu1 %v15273_v63, %s14726_s25  ;;  %v425_v52 = vsel %vm15114_vm9, 0, %v424_v31  ;;  %v1024_v56 = vld [vmem:[#allocation2 + $0x5c] sm:$0x1]  ;;  %v1034_v3 = vld [vmem:[#allocation2 + $0x6c] sm:$0xf]  ;;  %v789_v17 = vsel %vm14889_vm5, %v781_v48, %v788_v22  ;;  %v805_v63 = vor.u32 %v803_v32, %v15418_v12  ;;  %v807_v11 = vrot.slane %v15418_v12, 4 }
  0x80   : > { %1470 = vrot.lane.b32.xlu0 %v19857_v24, %s14726_s25  ;;  %476 = vst [vmem:[#allocation2 + $0x74] sm:$0x1] %v475_v25  ;;  %426 = vst [vmem:[#allocation2 + $0x84] sm:$0x1] %v425_v52  ;;  %v826_v62 = vshrl.u32 %v641_v53, 16  ;;  %v1025_v40 = vsel %vm15169_vm10, %v773_v59, %v1024_v56  ;;  %v1035_v2 = vsel %vm15180_vm11, %v797_v4, %v1034_v3  ;;  %v811_v41 = vrot.slane %v809_v6, 7 }
  0x81   : > { %1030 = vst.msk [vmem:[#allocation2 + $0x64] sm:$0xf] %vm19748_vm7, %v789_v17  ;;  %v829_v36 = vshll.u32 %v641_v53, 16  ;;  %v427_v0 = vld [vmem:[#allocation2 + $0x90] sm:$0x1]  ;;  %v806_v23 = vsel %vm14889_vm5, %v798_v18, %v805_v63  ;;  %v817_v46 = vshrl.u32 %v640_v43, 16 }
  0x82   : > { %1026 = vst [vmem:[#allocation2 + $0x5c] sm:$0x1] %v1025_v40  ;;  %1036 = vst [vmem:[#allocation2 + $0x6c] sm:$0xf] %v1035_v2  ;;  %v828_v9 = vrot.slane %v826_v62, 7  ;;  %v820_v1 = vshll.u32 %v640_v43, 16  ;;  %v814_v34 = vor.u32 %v812_v51, %v811_v41 }
  0x83   : > { %v643_v13 = vld [vmem:[%s15057_s21 + $0x58] sm:$0xf]  ;;  %1478 = vrot.lane.b32.xlu1 %v15303_v50, %s14726_s25  ;;  %v1031_v59 = vld [vmem:[#allocation2 + $0x68] sm:$0x1]  ;;  %1037 = vst.msk [vmem:[#allocation2 + $0x70] sm:$0xf] %vm19748_vm7, %v806_v23 }
  0x84   : > { %1474 = vrot.lane.b32.xlu0 %v15356_v54, %s14726_s25  ;;  %v815_v48 = vrot.slane %v811_v41, 4  ;;  %v478_v47 = vsel %vm15098_vm8, 0, %v477_v10  ;;  %v834_v49 = vshrl.u32 %v642_v21, 16  ;;  %v1032_v35 = vsel %vm15169_vm10, %v790_v30, %v1031_v59  ;;  %v480_v50 = vld [vmem:[#allocation2 + $0x8c] sm:$0x1] }
  0x85   : > { %v831_v31 = vor.u32 %v829_v36, %v828_v9  ;;  %v819_v61 = vrot.slane %v817_v46, 7  ;;  %479 = vst [vmem:[#allocation2 + $0x80] sm:$0x1] %v478_v47  ;;  %v832_v58 = vrot.slane %v828_v9, 4  ;;  %1033 = vst [vmem:[#allocation2 + $0x68] sm:$0x1] %v1032_v35 }
  0x86   : > { %v1041_v8 = vld [vmem:[#allocation2 + $0x78] sm:$0xf]  ;;  %v15454_v54 = vrot.slane %v834_v49, 7  ;;  %v837_v39 = vshll.u32 %v642_v21, 16  ;;  %v428_v37 = vsel %vm15114_vm9, 0, %v427_v0  ;;  %v843_v45 = vshrl.u32 %v643_v13, 16 }
  0x87   : > { %v1376_v55 = vrot.slane %v15281_v19, 4  ;;  %v1042_v44 = vsel %vm15180_vm11, %v814_v34, %v1041_v8  ;;  %v822_v20 = vor.u32 %v820_v1, %v819_v61  ;;  %429 = vst [vmem:[#allocation2 + $0x90] sm:$0x1] %v428_v37  ;;  %v846_v32 = vshll.u32 %v643_v13, 16  ;;  %v430_v16 = vld [vmem:[#allocation2 + $0x9c] sm:$0x1]  ;;  %1476 = vrot.lane.b32.xlu1 %v1359_v28, %s14726_s25 }
  0x88   : > { %1480 = vrot.lane.b32.xlu0 %v15362_v15, %s14726_s25  ;;  %1043 = vst [vmem:[#allocation2 + $0x78] sm:$0xf] %v1042_v44  ;;  %v1038_v4 = vld [vmem:[#allocation2 + $0x74] sm:$0x1]  ;;  %v1048_v18 = vld [vmem:[#allocation2 + $0x84] sm:$0xf]  ;;  %v839_v33 = vor.u32 %v837_v39, %v15454_v54 }
  0x89   : > { %v824_v19 = vrot.slane %v819_v61, 4  ;;  %v845_v53 = vrot.slane %v843_v45, 7  ;;  %v1039_v5 = vsel %vm15169_vm10, %v807_v11, %v1038_v4  ;;  %v1049_v22 = vsel %vm15180_vm11, %v831_v31, %v1048_v18  ;;  %v645_v15 = vld [vmem:[%s15057_s21 + $0x60] sm:$0xf]  ;;  %v644_v30 = vld [vmem:[%s15057_s21 + $0x5c] sm:$0xf] }
  0x8a   : > { %v823_v42 = vsel %vm14889_vm5, %v815_v48, %v822_v20  ;;  %v481_v28 = vsel %vm15098_vm8, 0, %v480_v50  ;;  %1040 = vst [vmem:[#allocation2 + $0x74] sm:$0x1] %v1039_v5  ;;  %1050 = vst [vmem:[#allocation2 + $0x84] sm:$0xf] %v1049_v22  ;;  %v840_v12 = vsel %vm14889_vm5, %v832_v58, %v839_v33  ;;  %v431_v10 = vsel %vm15114_vm9, 0, %v430_v16 }
  0x8b   : > { %1044 = vst.msk [vmem:[#allocation2 + $0x7c] sm:$0xf] %vm19748_vm7, %v823_v42  ;;  %v848_v43 = vor.u32 %v846_v32, %v845_v53  ;;  %482 = vst [vmem:[#allocation2 + $0x8c] sm:$0x1] %v481_v28  ;;  %v860_v24 = vshrl.u32 %v645_v15, 16  ;;  %v863_v6 = vshll.u32 %v645_v15, 16 }
  0x8c   : > { %1051 = vst.msk [vmem:[#allocation2 + $0x88] sm:$0xf] %vm19748_vm7, %v840_v12  ;;  %432 = vst [vmem:[#allocation2 + $0x9c] sm:$0x1] %v431_v10  ;;  %v849_v51 = vrot.slane %v845_v53, 4  ;;  %v851_v25 = vshrl.u32 %v644_v30, 16  ;;  %1482 = vrot.lane.b32.xlu0 %v1376_v55, %s14726_s25 }
  0x8d   : > { %v854_v52 = vshll.u32 %v644_v30, 16  ;;  %v483_v21 = vld [vmem:[#allocation2 + $0x98] sm:$0x1]  ;;  %v1045_v56 = vld [vmem:[#allocation2 + $0x80] sm:$0x1]  ;;  %v862_v3 = vrot.slane %v860_v24, 7 }
  0x8e   : > { %v484_v17 = vsel %vm15098_vm8, 0, %v483_v21  ;;  %v646_v63 = vld [vmem:[%s15057_s21 + $0x64] sm:$0xf]  ;;  %v1046_v11 = vsel %vm15169_vm10, %v824_v19, %v1045_v56  ;;  %v853_v62 = vrot.slane %v851_v25, 7  ;;  %v841_v41 = vrot.slane %v15454_v54, 4 }
  0x8f   : > { %485 = vst [vmem:[#allocation2 + $0x98] sm:$0x1] %v484_v17  ;;  %v868_v40 = vshrl.u32 %v646_v63, 16  ;;  %v871_v2 = vshll.u32 %v646_v63, 16  ;;  %1047 = vst [vmem:[#allocation2 + $0x80] sm:$0x1] %v1046_v11  ;;  %v865_v0 = vor.u32 %v863_v6, %v862_v3 }
  0x90   : > { %v1055_v36 = vld [vmem:[#allocation2 + $0x90] sm:$0xf]  ;;  %v856_v9 = vor.u32 %v854_v52, %v853_v62  ;;  %v866_v46 = vrot.slane %v862_v3, 4  ;;  %v433_v13 = vld [vmem:[#allocation2 + $0xa8] sm:$0x1]  ;;  %v858_v49 = vrot.slane %v853_v62, 4 }
  0x91   : > { %v1056_v23 = vsel %vm15180_vm11, %v848_v43, %v1055_v36  ;;  %v870_v1 = vrot.slane %v868_v40, 7  ;;  %v647_v59 = vld [vmem:[%s15057_s21 + $0x68] sm:$0xf]  ;;  %v486_v34 = vld [vmem:[#allocation2 + $0xa4] sm:$0x1]  ;;  %v434_v58 = vsel %vm15114_vm9, 0, %v433_v13 }
  0x92   : > { %1057 = vst [vmem:[#allocation2 + $0x90] sm:$0xf] %v1056_v23  ;;  %v1052_v48 = vld [vmem:[#allocation2 + $0x8c] sm:$0x1]  ;;  %v857_v47 = vsel %vm14889_vm5, %v849_v51, %v856_v9  ;;  %v877_v50 = vshrl.u32 %v647_v59, 16  ;;  %v880_v39 = vshll.u32 %v647_v59, 16 }
  0x93   : > { %v873_v35 = vor.u32 %v871_v2, %v870_v1  ;;  %v1053_v31 = vsel %vm15169_vm10, %v841_v41, %v1052_v48  ;;  %v1062_v61 = vld [vmem:[#allocation2 + $0x9c] sm:$0xf]  ;;  %1058 = vst.msk [vmem:[#allocation2 + $0x94] sm:$0xf] %vm19748_vm7, %v857_v47  ;;  %435 = vst [vmem:[#allocation2 + $0xa8] sm:$0x1] %v434_v58 }
  0x94   : > { %1054 = vst [vmem:[#allocation2 + $0x8c] sm:$0x1] %v1053_v31  ;;  %v1063_v8 = vsel %vm15180_vm11, %v865_v0, %v1062_v61  ;;  %v487_v37 = vsel %vm15098_vm8, 0, %v486_v34  ;;  %v436_v45 = vld [vmem:[#allocation2 + $0xb4] sm:$0x1]  ;;  %v879_v20 = vrot.slane %v877_v50, 7 }
  0x95   : > { %v874_v54 = vsel %vm14889_vm5, %v866_v46, %v873_v35  ;;  %v649_v55 = vld [vmem:[%s15057_s21 + $0x70] sm:$0xf]  ;;  %1064 = vst [vmem:[#allocation2 + $0x9c] sm:$0xf] %v1063_v8  ;;  %488 = vst [vmem:[#allocation2 + $0xa4] sm:$0x1] %v487_v37 }
  0x96   : > { %v1059_v44 = vld [vmem:[#allocation2 + $0x98] sm:$0x1]  ;;  %1065 = vst.msk [vmem:[#allocation2 + $0xa0] sm:$0xf] %vm19748_vm7, %v874_v54  ;;  %v437_v32 = vsel %vm15114_vm9, 0, %v436_v45  ;;  %v894_v16 = vshrl.u32 %v649_v55, 16  ;;  %v882_v5 = vor.u32 %v880_v39, %v879_v20 }
  0x97   : > { %v1060_v4 = vsel %vm15169_vm10, %v858_v49, %v1059_v44  ;;  %438 = vst [vmem:[#allocation2 + $0xb4] sm:$0x1] %v437_v32  ;;  %v897_v18 = vshll.u32 %v649_v55, 16  ;;  %v648_v19 = vld [vmem:[%s15057_s21 + $0x6c] sm:$0xf]  ;;  %v875_v28 = vrot.slane %v870_v1, 4 }
  0x98   : > { %1061 = vst [vmem:[#allocation2 + $0x98] sm:$0x1] %v1060_v4  ;;  %v896_v33 = vrot.slane %v894_v16, 7  ;;  %v885_v53 = vshrl.u32 %v648_v19, 16  ;;  %v888_v22 = vshll.u32 %v648_v19, 16  ;;  %v883_v15 = vrot.slane %v879_v20, 4 }
  0x99   : > { %v489_v42 = vld [vmem:[#allocation2 + $0xb0] sm:$0x1]  ;;  %v650_v43 = vld [vmem:[%s15057_s21 + $0x74] sm:$0xf]  ;;  %v492_v51 = vld [vmem:[#allocation2 + $0xbc] sm:$0x1]  ;;  %v1399_v49 = vpop.permute.xlu1 %1398  ;;  %v1395_v35 = vpop.permute.xlu0 %1394 }
  0x9a   : > { %v887_v30 = vrot.slane %v885_v53, 7  ;;  %v490_v12 = vsel %vm15098_vm8, 0, %v489_v42  ;;  %v899_v10 = vor.u32 %v897_v18, %v896_v33  ;;  %v902_v24 = vshrl.u32 %v650_v43, 16  ;;  %v1069_v25 = vld [vmem:[#allocation2 + $0xa8] sm:$0xf] }
  0x9b   : > { %491 = vst [vmem:[#allocation2 + $0xb0] sm:$0x1] %v490_v12  ;;  %v905_v6 = vshll.u32 %v650_v43, 16  ;;  %v493_v21 = vsel %vm15098_vm8, 0, %v492_v51  ;;  %v1070_v56 = vsel %vm15180_vm11, %v882_v5, %v1069_v25  ;;  %v900_v17 = vrot.slane %v896_v33, 4 }
  0x9c   : > { %v890_v52 = vor.u32 %v888_v22, %v887_v30  ;;  %v1066_v3 = vld [vmem:[#allocation2 + $0xa4] sm:$0x1]  ;;  %v904_v63 = vrot.slane %v902_v24, 7  ;;  %494 = vst [vmem:[#allocation2 + $0xbc] sm:$0x1] %v493_v21  ;;  %v19858_v2 = vmov 0 }
  0x9d   : > { %1071 = vst [vmem:[#allocation2 + $0xa8] sm:$0xf] %v1070_v56  ;;  %v1067_v11 = vsel %vm15169_vm10, %v875_v28, %v1066_v3  ;;  %v19859_v2 = vsel %vm15525_vm3, 4294967295, %v19858_v2  ;;  %v892_v36 = vrot.slane %v887_v30, 4  ;;  %v19861_v1 = vmov 0  ;;  %v1401_v50 = vpop.permute.xlu1 %1400  ;;  %v1397_v8 = vpop.permute.xlu0 %1396 }
  0x9e   : > { %v1076_v62 = vld [vmem:[#allocation2 + $0xb4] sm:$0xf]  ;;  %v891_v40 = vsel %vm14889_vm5, %v883_v15, %v890_v52  ;;  %19860 = vst [vmem:[#allocation10_spill] sm:$0xff] %v19859_v2  ;;  %1068 = vst [vmem:[#allocation2 + $0xa4] sm:$0x1] %v1067_v11  ;;  %v907_v0 = vor.u32 %v905_v6, %v904_v63  ;;  %v909_v23 = vrot.slane %v904_v63, 4 }
  0x9f   : > { %v1077_v41 = vsel %vm15180_vm11, %v899_v10, %v1076_v62  ;;  %1072 = vst.msk [vmem:[#allocation2 + $0xac] sm:$0xf] %vm19748_vm7, %v891_v40  ;;  %v19862_v1 = vsel %vm15537_vm0, 4294967295, %v19861_v1  ;;  %v1547_v34 = vld [vmem:[#allocation2 + $0x14] sm:$0x1]  ;;  %vm2757_vm2 = vcmask 1042432  }
  0xa0   : > { %1078 = vst [vmem:[#allocation2 + $0xb4] sm:$0xf] %v1077_v41  ;;  %v908_v9 = vsel %vm14889_vm5, %v900_v17, %v907_v0  ;;  %19863 = vst [vmem:[#allocation11_spill] sm:$0xff] %v19862_v1  ;;  %v1540_v47 = vld [vmem:[#allocation2 + $0xc] sm:$0xf]  ;;  %v1548_v31 = vsel %vm15525_vm3, %v1399_v49, %v1547_v34  ;;  %vm19758_vm13 = vcmask 31744  }
  0xa1   : > { %1079 = vst.msk [vmem:[#allocation2 + $0xb8] sm:$0xf] %vm19748_vm7, %v908_v9  ;;  %v1541_v61 = vsel %vm15537_vm0, %v1395_v35, %v1540_v47  ;;  %1549 = vst [vmem:[#allocation2 + $0x14] sm:$0x1] %v1548_v31  ;;  %v1550_v58 = vld [vmem:[#allocation2 + $0x18] sm:$0xf]  ;;  %v1407_v37 = vpop.permute.xlu1 %1406  ;;  %v1403_v45 = vpop.permute.xlu0 %1402 }
  0xa2   : > { %v1073_v46 = vld [vmem:[#allocation2 + $0xb0] sm:$0x1]  ;;  %1542 = vst [vmem:[#allocation2 + $0xc] sm:$0xf] %v1541_v61  ;;  %v1551_v54 = vsel %vm15537_vm0, %v1401_v50, %v1550_v58  ;;  %1544 = vst.msk [vmem:[#allocation2 + $0x10] sm:$0xf] %vm1538_vm1, %v1397_v8 }
  0xa3   : > { %v1074_v13 = vsel %vm15169_vm10, %v892_v36, %v1073_v46  ;;  %v1080_v59 = vld [vmem:[#allocation2 + $0xbc] sm:$0x1]  ;;  %v1557_v39 = vld [vmem:[#allocation2 + $0x24] sm:$0xf]  ;;  %1552 = vst [vmem:[#allocation2 + $0x18] sm:$0xf] %v1551_v54  ;;  %vm15585_vm12 = vmor %vm2757_vm2, %vm2758_vm6 }
  0xa4   : > { %1075 = vst [vmem:[#allocation2 + $0xb0] sm:$0x1] %v1074_v13  ;;  %v1081_v48 = vsel %vm15169_vm10, %v909_v23, %v1080_v59  ;;  %v1558_v55 = vsel %vm15537_vm0, %v1407_v37, %v1557_v39  ;;  %1553 = vst.msk [vmem:[#allocation2 + $0x1c] sm:$0xf] %vm1538_vm1, %v1403_v45  ;;  %v1554_v32 = vld [vmem:[#allocation2 + $0x20] sm:$0x1] }
  0xa5   : > { %1082 = vst [vmem:[#allocation2 + $0xbc] sm:$0x1] %v1081_v48  ;;  %1559 = vst [vmem:[#allocation2 + $0x24] sm:$0xf] %v1558_v55  ;;  %v1405_v19 = vpop.permute.xlu1 %1404  ;;  %v1409_v33 = vpop.permute.xlu0 %1408  ;;  %v1564_v53 = vld [vmem:[#allocation2 + $0x30] sm:$0xf] }
  0xa6   : > { %v1555_v15 = vsel %vm15525_vm3, %v1405_v19, %v1554_v32  ;;  %1560 = vst.msk [vmem:[#allocation2 + $0x28] sm:$0xf] %vm1538_vm1, %v1409_v33  ;;  %v1561_v30 = vld [vmem:[#allocation2 + $0x2c] sm:$0x1]  ;;  %v1571_v34 = vld [vmem:[#allocation2 + $0x3c] sm:$0xf] }
  0xa7   : > { %1556 = vst [vmem:[#allocation2 + $0x20] sm:$0x1] %v1555_v15  ;;  %v19864_v8 = vmov 0  ;;  %v1568_v37 = vld [vmem:[#allocation2 + $0x38] sm:$0x1]  ;;  %vm19759_vm15 = vcmask 48128  }
  0xa8   : > { %v15555_v20 = vld [vmem:[#allocation2 + $0x14] sm:$0x1]  ;;  %v19865_v8 = vsel %vm15585_vm12, 4294967295, %v19864_v8  ;;  %vm19751_vm2 = vcmask 113664   ;;  %vm19752_vm6 = vcmask 130048  }
  0xa9   : > { %v1657_v44 = vld [vmem:[#allocation2 + $0xc] sm:$0xf]  ;;  %v1790_v18 = vshll.u32 %v15555_v20, 16  ;;  %v15558_v5 = vld [vmem:[#allocation2 + $0x10] sm:$0xf]  ;;  %v2772_v51 = vrot.slane %v15555_v20, 5  ;;  %v1413_v63 = vpop.permute.xlu1 %1412  ;;  %v1411_v11 = vpop.permute.xlu0 %1410 }
  0xaa   : > { %v1771_v16 = vshrl.u32 %v1657_v44, 16  ;;  %v1774_v4 = vshll.u32 %v1657_v44, 16  ;;  %v1710_v28 = vld [vmem:[#allocation2 + $0xc] sm:$0xe]  ;;  %v1780_v12 = vshll.u32 %v15558_v5, 16  ;;  %v1784_v43 = vshrl.u32 %v15558_v5, 16 }
  0xab   : > { %v1659_v10 = vld [vmem:[#allocation2 + $0x18] sm:$0xf]  ;;  %v15566_v24 = vcombine.low %v1657_v44, %v15558_v5  ;;  %v1792_v3 = vrot.slane %v1790_v18, 5  ;;  %v12102_v17 = vrot.slane %v1710_v28, 9  ;;  %v15569_v40 = vld [vmem:[#allocation2 + $0x1c] sm:$0xf]  ;;  %v1565_v23 = vsel %vm15537_vm0, %v1413_v63, %v1564_v53 }
  0xac   : > { %v1773_v22 = vrot.slane %v1771_v16, 4  ;;  %v1776_v42 = vrot.slane %v1774_v4, 5  ;;  %v1795_v25 = vshrl.u32 %v1659_v10, 16  ;;  %v1798_v52 = vshll.u32 %v1659_v10, 16  ;;  %v1661_v59 = vld [vmem:[#allocation2 + $0x24] sm:$0xf] }
  0xad   : > { %v1782_v21 = vrot.slane %v1780_v12, 5  ;;  %v1786_v56 = vrot.slane %v1784_v43, 4  ;;  %v2769_v0 = vrot.slane %v15558_v5, 5  ;;  %v1562_v9 = vsel %vm15525_vm3, %v1411_v11, %v1561_v30  ;;  %1566 = vst [vmem:[#allocation2 + $0x30] sm:$0xf] %v1565_v23  ;;  %19866 = vst [vmem:[#allocation12_spill] sm:$0xff] %v19865_v8  ;;  %v1419_v54 = vpop.permute.xlu1 %1418  ;;  %v1415_v39 = vpop.permute.xlu0 %1414 }
  0xae   : > { %v1777_v6 = vor.u32 %v1776_v42, %v1773_v22  ;;  %v1797_v41 = vrot.slane %v1795_v25, 4  ;;  %v1800_v36 = vrot.slane %v1798_v52, 5  ;;  %v1804_v13 = vshll.u32 %v15569_v40, 16  ;;  %1563 = vst [vmem:[#allocation2 + $0x2c] sm:$0x1] %v1562_v9  ;;  %v14567_v28 = vld [vmem:[%s19832_s2 + $0x8] sm:$0xff]  }
  0xaf   : > { %v1787_v46 = vor.u32 %v1786_v56, %v1782_v21  ;;  %v1808_v49 = vshrl.u32 %v15569_v40, 16  ;;  %v1819_v35 = vshrl.u32 %v1661_v59, 16  ;;  %v1822_v58 = vshll.u32 %v1661_v59, 16  ;;  %v15589_v44 = vld [vmem:[#allocation2 + $0x28] sm:$0xf] }
  0xb0   : > { %v1778_v62 = vrot.slane %v1777_v6, 4  ;;  %v1801_v47 = vor.u32 %v1800_v36, %v1797_v41  ;;  %v1806_v61 = vrot.slane %v1804_v13, 5  ;;  %v15581_v50 = vcombine.low %v1659_v10, %v15569_v40  ;;  %1567 = vst.msk [vmem:[#allocation2 + $0x34] sm:$0xf] %vm1538_vm1, %v1415_v39  ;;  %v15596_v19 = vld [vmem:[#allocation2 + $0x20] sm:$0x1] }
  0xb1   : > { %v1788_v31 = vrot.slane %v1787_v46, 4  ;;  %v1810_v55 = vrot.slane %v1808_v49, 4  ;;  %v1821_v32 = vrot.slane %v1819_v35, 4  ;;  %v2771_v16 = vrot.slane %v2769_v0, 4  ;;  %v1417_v6 = vpop.permute.xlu1 %1416  ;;  %v1421_v25 = vpop.permute.xlu0 %1420  ;;  %v1578_v52 = vld [vmem:[#allocation2 + $0x48] sm:$0xf] }
  0xb2   : > { %v1783_v48 = vsel %vm15385_vm14, %v1778_v62, %v1782_v21  ;;  %v1802_v45 = vrot.slane %v1801_v47, 4  ;;  %v1572_v4 = vsel %vm15537_vm0, %v1419_v54, %v1571_v34  ;;  %v1824_v33 = vrot.slane %v1822_v58, 5  ;;  %1574 = vst.msk [vmem:[#allocation2 + $0x40] sm:$0xf] %vm1538_vm1, %v1421_v25  ;;  %v1575_v20 = vld [vmem:[#allocation2 + $0x44] sm:$0x1] }
  0xb3   : > { %v1793_v18 = vsel %vm15385_vm14, %v1788_v31, %v1792_v3  ;;  %v1828_v53 = vshll.u32 %v15589_v44, 16  ;;  %1573 = vst [vmem:[#allocation2 + $0x3c] sm:$0xf] %v1572_v4  ;;  %v1811_v22 = vor.u32 %v1810_v55, %v1806_v61  ;;  %v1814_v42 = vshll.u32 %v15596_v19, 16  ;;  %v1582_v25 = vld [vmem:[#allocation2 + $0x50] sm:$0x1] }
  0xb4   : > { %v15599_v5 = vcombine.low %v1783_v48, %v1793_v18  ;;  %v2770_v15 = vsel %vm15585_vm12, %v12102_v17, %v2769_v0  ;;  %v1825_v30 = vor.u32 %v1824_v33, %v1821_v32  ;;  %v1832_v43 = vshrl.u32 %v15589_v44, 16  ;;  %v1663_v36 = vld [vmem:[#allocation2 + $0x30] sm:$0xf]  ;;  %v14710_v0 = vld [vmem:[%s19832_s2] sm:$0xff]  }
  0xb5   : > { %v1830_v12 = vrot.slane %v1828_v53, 5  ;;  %v15609_v10 = vcombine.low %v1661_v59, %v15589_v44  ;;  %v1807_v21 = vsel %vm15385_vm14, %v1802_v45, %v1806_v61  ;;  %v1812_v56 = vrot.slane %v1811_v22, 4  ;;  %v15621_v11 = vld [vmem:[#allocation2 + $0x2c] sm:$0x1]  ;;  %v14568_v59 = vld [vmem:[%s19832_s2 + $0x10] sm:$0xff]   ;;  %v1425_v47 = vpop.permute.xlu1 %1424  ;;  %v1423_v49 = vpop.permute.xlu0 %1422  ;;  %v14569_v53 = vld [vmem:[%s19832_s2 + $0x18] sm:$0xff]  }
  0xb6   : > { %19867 = vst [vmem:[#allocation13_spill] sm:$0xff] %v15599_v5  ;;  %13148 = vmatmul.mubr.bf16.vlgmr.msra.gmra.mrb[0].mxu0 %v15599_v5  ;;  %v1816_v3 = vrot.slane %v1814_v42, 5  ;;  %v2773_v17 = vsel %vm15585_vm12, %v2771_v16, %v2772_v51  ;;  %v1569_v63 = vsel %vm15525_vm3, %v1417_v6, %v1568_v37  ;;  %v1826_v62 = vrot.slane %v1825_v30, 4  ;;  %v1585_v37 = vld [vmem:[#allocation2 + $0x54] sm:$0xf] }
  0xb7   : > { %v1834_v41 = vrot.slane %v1832_v43, 4  ;;  %13180 = vmatpush3.bf16.msra.mxu0 %v14710_v0  ;;  %v15626_v23 = vcombine.low %v2770_v15, %v2773_v17  ;;  %1570 = vst [vmem:[#allocation2 + $0x38] sm:$0x1] %v1569_v63  ;;  %v1838_v9 = vshll.u32 %v15621_v11, 16  ;;  %v1843_v46 = vshrl.u32 %v1663_v36, 16 }
  0xb8   : > { %v1817_v51 = vsel %vm15385_vm14, %v1812_v56, %v1816_v3  ;;  %v1846_v13 = vshll.u32 %v1663_v36, 16  ;;  %13181 = vmatprep.subr.bf16.mxu0 %v14567_v28  ;;  %v15636_v31 = vld [vmem:[#allocation2 + $0x34] sm:$0xf]  ;;  %v1579_v54 = vsel %vm15537_vm0, %v1425_v47, %v1578_v52  ;;  %v1576_v39 = vsel %vm15525_vm3, %v1423_v49, %v1575_v20  ;;  %v14570_v20 = vld [vmem:[%s19832_s2 + $0x20] sm:$0xff]  }
  0xb9   : > { %19868 = vst [vmem:[#allocation14_spill] sm:$0xff] %v15626_v23  ;;  %v15634_v34 = vcombine.low %v1807_v21, %v1817_v51  ;;  %v1835_v48 = vor.u32 %v1834_v41, %v1830_v12  ;;  %v1840_v35 = vrot.slane %v1838_v9, 5  ;;  %v1845_v61 = vrot.slane %v1843_v46, 4  ;;  %1580 = vst [vmem:[#allocation2 + $0x48] sm:$0xf] %v1579_v54  ;;  %v1431_v30 = vpop.permute.xlu1 %1430  ;;  %v1427_v43 = vpop.permute.xlu0 %1426 }
  0xba   : > { %v1848_v58 = vrot.slane %v1846_v13, 5  ;;  %v1852_v55 = vshll.u32 %v15636_v31, 16  ;;  %v1665_v32 = vld [vmem:[#allocation2 + $0x3c] sm:$0xf]  ;;  %1577 = vst [vmem:[#allocation2 + $0x44] sm:$0x1] %v1576_v39  ;;  %v1831_v22 = vsel %vm15385_vm14, %v1826_v62, %v1830_v12  ;;  %v1586_v12 = vsel %vm15537_vm0, %v1431_v30, %v1585_v37 }
  0xbb   : > { %19869 = vst [vmem:[#allocation15_spill] sm:$0xff] %v15634_v34  ;;  %13151 = vmatprep.mubr.bf16.mxu0 %v15634_v34  ;;  %v1836_v45 = vrot.slane %v1835_v48, 4  ;;  %13182 = vmatpush3.bf16.msra.mxu0 %v14567_v28  ;;  %v1856_v4 = vshrl.u32 %v15636_v31, 16  ;;  %v1867_v18 = vshrl.u32 %v1665_v32, 16  ;;  %v1870_v33 = vshll.u32 %v1665_v32, 16 }
  0xbc   : > { %v1849_v16 = vor.u32 %v1848_v58, %v1845_v61  ;;  %13183 = vmatprep.subr.bf16.mxu0 %v14568_v59  ;;  %v1854_v15 = vrot.slane %v1852_v55, 5  ;;  %v15653_v28 = vcombine.low %v1663_v36, %v15636_v31  ;;  %v15657_v56 = vld [vmem:[#allocation2 + $0x40] sm:$0xf]  ;;  %1581 = vst.msk [vmem:[#allocation2 + $0x4c] sm:$0xf] %vm1538_vm1, %v1427_v43 }
  0xbd   : > { %v1841_v42 = vsel %vm15385_vm14, %v1836_v45, %v1840_v35  ;;  %v1858_v21 = vrot.slane %v1856_v4, 4  ;;  %v1869_v3 = vrot.slane %v1867_v18, 4  ;;  %v1872_v63 = vrot.slane %v1870_v33, 5  ;;  %1587 = vst [vmem:[#allocation2 + $0x54] sm:$0xf] %v1586_v12  ;;  %v1429_v61 = vpop.permute.xlu1 %1428  ;;  %v1433_v58 = vpop.permute.xlu0 %1432 }
  0xbe   : > { %v15655_v6 = vcombine.low %v1831_v22, %v1841_v42  ;;  %v1850_v52 = vrot.slane %v1849_v16, 4  ;;  %v15662_v17 = vld [vmem:[#allocation2 + $0x38] sm:$0x1]  ;;  %v1876_v62 = vshll.u32 %v15657_v56, 16  ;;  %v1880_v41 = vshrl.u32 %v15657_v56, 16 }
  0xbf   : > { %13184 = vmatpush3.bf16.msra.mxu0 %v14568_v59  ;;  %v1859_v36 = vor.u32 %v1858_v21, %v1854_v15  ;;  %v1862_v0 = vshll.u32 %v15662_v17, 16  ;;  %v15671_v51 = vld [vmem:[#allocation2 + $0x4] sm:$0xf]  ;;  %v15676_v46 = vcombine.low %v1665_v32, %v15657_v56  ;;  %v1120_v13 = vld [vmem:[%s14873_s24 + $0x78] sm:$0xf]  ;;  %v1873_v48 = vor.u32 %v1872_v63, %v1869_v3 }
  0xc0   : > { %19870 = vst [vmem:[#allocation16_spill] sm:$0xff] %v15655_v6  ;;  %13152 = vmatmul.mubr.bf16.gmra.mrb[4].mxu0 %v15655_v6  ;;  %13185 = vmatprep.subr.bf16.mxu0 %v14569_v53  ;;  %v15680_v59 = vld [vmem:[%s14873_s24 + $0x7c] sm:$0xf]  ;;  %v1878_v47 = vrot.slane %v1876_v62, 5  ;;  %v1882_v49 = vrot.slane %v1880_v41, 4  ;;  %v1378_v35 = vshrl.u32 %v1120_v13, 16  ;;  %v1855_v39 = vsel %vm15385_vm14, %v1850_v52, %v1854_v15 }
  0xc1   : > { %v1592_v54 = vld [vmem:[#allocation2 + $0x60] sm:$0xf]  ;;  %v1860_v37 = vrot.slane %v1859_v36, 4  ;;  %v1864_v45 = vrot.slane %v1862_v0, 5  ;;  %v1381_v55 = vshll.u32 %v1120_v13, 16  ;;  %v1583_v32 = vsel %vm15525_vm3, %v1429_v61, %v1582_v25  ;;  %v14571_v25 = vld [vmem:[%s19832_s2 + $0x28] sm:$0xff]   ;;  %v1437_v63 = vpop.permute.xlu1 %1436  ;;  %v1435_v62 = vpop.permute.xlu0 %1434 }
  0xc2   : > { %1588 = vst.msk [vmem:[#allocation2 + $0x58] sm:$0xf] %vm1538_vm1, %v1433_v58  ;;  %v15687_v16 = vld [vmem:[#allocation2 + $0x44] sm:$0x1]  ;;  %v1874_v4 = vrot.slane %v1873_v48, 4  ;;  %v1883_v18 = vor.u32 %v1882_v49, %v1878_v47  ;;  %v15689_v22 = vrot.slane %v1378_v35, 7  ;;  %v1593_v49 = vsel %vm15537_vm0, %v1437_v63, %v1592_v54 }
  0xc3   : > { %v1667_v33 = vld [vmem:[#allocation2 + $0x48] sm:$0xf]  ;;  %13186 = vmatpush3.bf16.msra.mxu0 %v14569_v53  ;;  %1584 = vst [vmem:[#allocation2 + $0x50] sm:$0x1] %v1583_v32  ;;  %v1589_v42 = vld [vmem:[#allocation2 + $0x5c] sm:$0x1]  ;;  %v1865_v15 = vsel %vm15385_vm14, %v1860_v37, %v1864_v45 }
  0xc4   : > { %v1886_v30 = vshll.u32 %v15687_v16, 16  ;;  %v1891_v43 = vshrl.u32 %v1667_v33, 16  ;;  %v1894_v52 = vshll.u32 %v1667_v33, 16  ;;  %13187 = vmatprep.subr.bf16.mxu0 %v14570_v20  ;;  %v15697_v21 = vcombine.low %v1855_v39, %v1865_v15  ;;  %v15703_v0 = vld [vmem:[#allocation2 + $0x4c] sm:$0xf]  ;;  %v14572_v32 = vld [vmem:[%s19832_s2 + $0x30] sm:$0xff]  }
  0xc5   : > { %v1884_v3 = vrot.slane %v1883_v18, 4  ;;  %v1383_v53 = vor.u32 %v1381_v55, %v15689_v22  ;;  %v1386_v12 = vshrl.u32 %v15680_v59, 16  ;;  %v1879_v41 = vsel %vm15385_vm14, %v1874_v4, %v1878_v47  ;;  %v1669_v39 = vld [vmem:[#allocation2 + $0x54] sm:$0xf]  ;;  %1594 = vst [vmem:[#allocation2 + $0x60] sm:$0xf] %v1593_v49  ;;  %v1443_v15 = vpop.permute.xlu1 %1442 }
  0xc6   : > { %19871 = vst [vmem:[#allocation17_spill] sm:$0xff] %v15697_v21  ;;  %v1888_v36 = vrot.slane %v1886_v30, 5  ;;  %v1893_v13 = vrot.slane %v1891_v43, 4  ;;  %v1896_v48 = vrot.slane %v1894_v52, 5  ;;  %v1590_v35 = vsel %vm15525_vm3, %v1435_v62, %v1589_v42  ;;  %13155 = vmatprep.mubr.bf16.mxu0 %v15697_v21  ;;  %v1599_v47 = vld [vmem:[#allocation2 + $0x6c] sm:$0xf]  ;;  %v1439_v30 = vpop.permute.xlu0 %1438 }
  0xc7   : > { %v1900_v61 = vshll.u32 %v15703_v0, 16  ;;  %v1904_v58 = vshrl.u32 %v15703_v0, 16  ;;  %13188 = vmatpush3.bf16.msra.mxu0 %v14570_v20  ;;  %1591 = vst [vmem:[#allocation2 + $0x5c] sm:$0x1] %v1590_v35  ;;  %v1915_v55 = vshrl.u32 %v1669_v39, 16  ;;  %v1918_v54 = vshll.u32 %v1669_v39, 16  ;;  %1484 = vrot.lane.b32.xlu1 %v1383_v53, %s14726_s25 }
  0xc8   : > { %v1889_v37 = vsel %vm15385_vm14, %v1884_v3, %v1888_v36  ;;  %v1897_v45 = vor.u32 %v1896_v48, %v1893_v13  ;;  %13189 = vmatprep.subr.bf16.mxu0 %v14571_v25  ;;  %v15721_v42 = vcombine.low %v1667_v33, %v15703_v0  ;;  %v1596_v43 = vld [vmem:[#allocation2 + $0x68] sm:$0x1]  ;;  %v1384_v62 = vrot.slane %v15689_v22, 4  ;;  %v15726_v13 = vld [vmem:[#allocation2 + $0x18] sm:$0xe]  ;;  %s19627_s24 = smov 114  }
  0xc9   : > { %v15718_v4 = vcombine.low %v1879_v41, %v1889_v37  ;;  %v1902_v18 = vrot.slane %v1900_v61, 5  ;;  %v1906_v20 = vrot.slane %v1904_v58, 4  ;;  %v15723_v52 = vld [vmem:[#allocation2 + $0x58] sm:$0xf]  ;;  %v1917_v3 = vrot.slane %v1915_v55, 4 }
  0xca   : > { %v1920_v63 = vrot.slane %v1918_v54, 5  ;;  %v1388_v36 = vrot.slane %v1386_v12, 7  ;;  %v1600_v53 = vsel %vm15537_vm0, %v1443_v15, %v1599_v47  ;;  %1595 = vst.msk [vmem:[#allocation2 + $0x64] sm:$0xf] %vm1538_vm1, %v1439_v30  ;;  %v15732_v33 = vld [vmem:[#allocation2 + $0x50] sm:$0x1]  ;;  %v15741_v58 = vcombine.low %v1669_v39, %v15723_v52  ;;  %v1445_v15 = vpop.permute.xlu0 %1444 }
  0xcb   : > { %19872 = vst [vmem:[#allocation18_spill] sm:$0xff] %v15718_v4  ;;  %13156 = vmatmul.mubr.bf16.gmra.mrb[8].mxu0 %v15718_v4  ;;  %v1907_v41 = vor.u32 %v1906_v20, %v1902_v18  ;;  %v1924_v48 = vshll.u32 %v15723_v52, 16  ;;  %v1928_v49 = vshrl.u32 %v15723_v52, 16  ;;  %v14573_v22 = vld [vmem:[%s19832_s2 + $0x38] sm:$0xff]   ;;  %1601 = vst [vmem:[#allocation2 + $0x6c] sm:$0xf] %v1600_v53  ;;  %v1441_v20 = vpop.permute.xlu1 %1440 }
  0xcc   : > { %v1898_v12 = vrot.slane %v1897_v45, 4  ;;  %v1910_v35 = vshll.u32 %v15732_v33, 16  ;;  %v1921_v61 = vor.u32 %v1920_v63, %v1917_v3  ;;  %13190 = vmatpush3.bf16.msra.mxu0 %v14571_v25  ;;  %v1389_v54 = vshll.u32 %v15680_v59, 16  ;;  %v1606_v30 = vld [vmem:[#allocation2 + $0x78] sm:$0xf] }
  0xcd   : > { %v1908_v47 = vrot.slane %v1907_v41, 4  ;;  %v1926_v37 = vrot.slane %v1924_v48, 5  ;;  %v1930_v55 = vrot.slane %v1928_v49, 4  ;;  %13191 = vmatprep.subr.bf16.mxu0 %v14572_v32  ;;  %v1393_v53 = vrot.slane %v1388_v36, 4  ;;  %1602 = vst.msk [vmem:[#allocation2 + $0x70] sm:$0xf] %vm1538_vm1, %v1445_v15 }
  0xce   : > { %v1912_v9 = vrot.slane %v1910_v35, 5  ;;  %v1922_v14 = vrot.slane %v1921_v61, 4  ;;  %v19557_v45 = vrot.slane %v15569_v40, 5  ;;  %v1597_v25 = vsel %vm15525_vm3, %v1441_v20, %v1596_v43  ;;  %v15748_v39 = vld [vmem:[#allocation2 + $0x5c] sm:$0x1] }
  0xcf   : > { %v1931_v3 = vor.u32 %v1930_v55, %v1926_v37  ;;  %v1671_v63 = vld [vmem:[#allocation2 + $0x60] sm:$0xf]  ;;  %v1391_v41 = vor.u32 %v1389_v54, %v1388_v36  ;;  %1598 = vst [vmem:[#allocation2 + $0x68] sm:$0x1] %v1597_v25  ;;  %v1603_v48 = vld [vmem:[#allocation2 + $0x74] sm:$0x1]  ;;  %v1903_v49 = vsel %vm15385_vm14, %v1898_v12, %v1902_v18  ;;  %1488 = vrot.lane.b32.xlu1 %v1393_v53, %s14726_s25  ;;  %v1447_v12 = vpop.permute.xlu0 %1446 }
  0xd0   : > { %v1913_v35 = vsel %vm15385_vm14, %v1908_v47, %v1912_v9  ;;  %v1934_v61 = vshll.u32 %v15748_v39, 16  ;;  %v1939_v43 = vshrl.u32 %v1671_v63, 16  ;;  %13192 = vmatpush3.bf16.msra.mxu0 %v14572_v32  ;;  %v15759_v55 = vld [vmem:[%s19832_s2 + $0x80] sm:$0xff]   ;;  %v1942_v20 = vshll.u32 %v1671_v63, 16  ;;  %v1449_v9 = vpop.permute.xlu1 %1448  ;;  %v1624_v6 = vld [vmem:[#allocation2 + $0x98] sm:$0x1] }
  0xd1   : > { %v15762_v36 = vcombine.low %v1903_v49, %v1913_v35  ;;  %v1932_v54 = vrot.slane %v1931_v3, 4  ;;  %13193 = vmatprep.subr.bf16.mxu0 %v14573_v22  ;;  %v1392_v18 = vsel %vm14889_vm5, %v1384_v62, %v1391_v41  ;;  %v1927_v32 = vsel %vm15385_vm14, %v1922_v14, %v1926_v37  ;;  %v15768_v15 = vld [vmem:[#allocation2 + $0x64] sm:$0xf] }
  0xd2   : > { %v1936_v47 = vrot.slane %v1934_v61, 5  ;;  %v1941_v25 = vrot.slane %v1939_v43, 4  ;;  %1486 = vrot.lane.b32.xlu0 %v1392_v18, %s14726_s25  ;;  %v2778_v53 = vrot.slane %v19557_v45, 4  ;;  %v1607_v3 = vsel %vm15537_vm0, %v1449_v9, %v1606_v30  ;;  %v1613_v41 = vld [vmem:[#allocation2 + $0x84] sm:$0xf]  ;;  %s19607_s25 = smov 90  }
  0xd3   : > { %19873 = vst [vmem:[#allocation19_spill] sm:$0xff] %v15762_v36  ;;  %v1604_v62 = vsel %vm15525_vm3, %v1447_v12, %v1603_v48  ;;  %13159 = vmatprep.mubr.bf16.mxu0 %v15762_v36  ;;  %v1944_v49 = vrot.slane %v1942_v20, 5  ;;  %v1948_v14 = vshll.u32 %v15768_v15, 16  ;;  %v1673_v37 = vld [vmem:[#allocation2 + $0x6c] sm:$0xf]  ;;  %v1952_v61 = vshrl.u32 %v15768_v15, 16 }
  0xd4   : > { %1608 = vst [vmem:[#allocation2 + $0x78] sm:$0xf] %v1607_v3  ;;  %1605 = vst [vmem:[#allocation2 + $0x74] sm:$0x1] %v1604_v62  ;;  %v1937_v35 = vsel %vm15385_vm14, %v1932_v54, %v1936_v47  ;;  %v1963_v43 = vshrl.u32 %v1673_v37, 16  ;;  %v1966_v18 = vshll.u32 %v1673_v37, 16  ;;  %13194 = vmatpush3.bf16.msra.mxu0 %v14573_v22  ;;  %v15786_v20 = vcombine.low %v1671_v63, %v15768_v15  ;;  %v1455_v12 = vpop.permute.xlu1 %1454  ;;  %v1451_v3 = vpop.permute.xlu0 %1450 }
  0xd5   : > { %v15782_v30 = vcombine.low %v1927_v32, %v1937_v35  ;;  %v1945_v48 = vor.u32 %v1944_v49, %v1941_v25  ;;  %v1950_v9 = vrot.slane %v1948_v14, 5  ;;  %13227 = vmatprep.subr.bf16.mxu0 %v15759_v55  ;;  %v1610_v62 = vld [vmem:[#allocation2 + $0x80] sm:$0x1]  ;;  %v1954_v59 = vrot.slane %v1952_v61, 4  ;;  %v15788_v45 = vld [vmem:[#allocation2 + $0x70] sm:$0xf] }
  0xd6   : > { %v1965_v54 = vrot.slane %v1963_v43, 4  ;;  %v1968_v47 = vrot.slane %v1966_v18, 5  ;;  %v2779_v36 = vrot.slane %v15596_v19, 5  ;;  %v15791_v22 = vld [vmem:[#allocation2 + $0x24] sm:$0xe]  ;;  %v1614_v32 = vsel %vm15537_vm0, %v1455_v12, %v1613_v41 }
  0xd7   : > { %19874 = vst [vmem:[#allocation20_spill] sm:$0xff] %v15782_v30  ;;  %1609 = vst.msk [vmem:[#allocation2 + $0x7c] sm:$0xf] %vm1538_vm1, %v1451_v3  ;;  %13160 = vmatmul.mubr.bf16.gmra.mrb[12].mxu0 %v15782_v30  ;;  %v15797_v63 = vld [vmem:[#allocation2 + $0x68] sm:$0x1]  ;;  %v1946_v25 = vrot.slane %v1945_v48, 4  ;;  %v1955_v35 = vor.u32 %v1954_v59, %v1950_v9  ;;  %v15803_v43 = vcombine.low %v1673_v37, %v15788_v45 }
  0xd8   : > { %v1972_v49 = vshll.u32 %v15788_v45, 16  ;;  %v1976_v14 = vshrl.u32 %v15788_v45, 16  ;;  %1615 = vst [vmem:[#allocation2 + $0x84] sm:$0xf] %v1614_v32  ;;  %v1958_v19 = vshll.u32 %v15797_v63, 16  ;;  %v1969_v61 = vor.u32 %v1968_v47, %v1965_v54  ;;  %v1457_v4 = vpop.permute.xlu0 %1456 }
  0xd9   : > { %v1951_v41 = vsel %vm15385_vm14, %v1946_v25, %v1950_v9  ;;  %v19875_v3 = vrot.slane %v15569_v40, 5  ;;  %v19876_v48 = vrot.slane %v15726_v13, 9  ;;  %v15813_v32 = vld [vmem:[#allocation2 + $0x30] sm:$0xe]  ;;  %v1956_v47 = vrot.slane %v1955_v35, 4 }
  0xda   : > { %v1974_v18 = vrot.slane %v1972_v49, 5  ;;  %v1978_v12 = vrot.slane %v1976_v14, 4  ;;  %v1620_v54 = vld [vmem:[#allocation2 + $0x90] sm:$0xf]  ;;  %v1960_v37 = vrot.slane %v1958_v19, 5  ;;  %v1970_v21 = vrot.slane %v1969_v61, 4 }
  0xdb   : > { %v2777_v30 = vsel %vm15585_vm12, %v19876_v48, %v19875_v3  ;;  %v2780_v9 = vsel %vm15585_vm12, %v2778_v53, %v2779_v36  ;;  %1616 = vst.msk [vmem:[#allocation2 + $0x88] sm:$0xf] %vm1538_vm1, %v1457_v4  ;;  %v15820_v40 = vld [vmem:[#allocation2 + $0x74] sm:$0x1]  ;;  %v1675_v49 = vld [vmem:[#allocation2 + $0x78] sm:$0xf] }
  0xdc   : > { %v1979_v13 = vor.u32 %v1978_v12, %v1974_v18  ;;  %v15822_v14 = vcombine.low %v2777_v30, %v2780_v9  ;;  %v12104_v3 = vrot.slane %v15791_v22, 9  ;;  %v1617_v35 = vld [vmem:[#allocation2 + $0x8c] sm:$0x1]  ;;  %v1961_v19 = vsel %vm15385_vm14, %v1956_v47, %v1960_v37  ;;  %v1718_v38 = vld [vmem:[#allocation2 + $0x6c] sm:$0xe] }
  0xdd   : > { %v1453_v59 = vpop.permute.xlu1 %1452  ;;  %v1975_v36 = vsel %vm15385_vm14, %v1970_v21, %v1974_v18  ;;  %v1982_v53 = vshll.u32 %v15820_v40, 16  ;;  %v15830_v4 = vcombine.low %v1951_v41, %v1961_v19  ;;  %v1990_v12 = vshll.u32 %v1675_v49, 16  ;;  %v1627_v18 = vld [vmem:[#allocation2 + $0x9c] sm:$0xf] }
  0xde   : > { %v1611_v25 = vsel %vm15525_vm3, %v1453_v59, %v1610_v62  ;;  %19877 = vst [vmem:[#allocation21_spill] sm:$0xff] %v15822_v14  ;;  %v1987_v62 = vshrl.u32 %v1675_v49, 16  ;;  %v1980_v61 = vrot.slane %v1979_v13, 4  ;;  %v2783_v30 = vrot.slane %v15589_v44, 5  ;;  %v15833_v9 = vld [vmem:[#allocation2 + $0x7c] sm:$0xf] }
  0xdf   : > { %1612 = vst [vmem:[#allocation2 + $0x80] sm:$0x1] %v1611_v25  ;;  %19878 = vst [vmem:[#allocation22_spill] sm:$0xff] %v15830_v4  ;;  %v1984_v22 = vrot.slane %v1982_v53, 5  ;;  %v2786_v47 = vrot.slane %v15621_v11, 5  ;;  %13163 = vmatprep.mubr.bf16.mxu0 %v15830_v4  ;;  %v1992_v44 = vrot.slane %v1990_v12, 5 }
  0xe0   : > { %v1989_v25 = vrot.slane %v1987_v62, 4  ;;  %v1996_v13 = vshll.u32 %v15833_v9, 16  ;;  %v1677_v19 = vld [vmem:[#allocation2 + $0x84] sm:$0xf]  ;;  %v2000_v53 = vshrl.u32 %v15833_v9, 16  ;;  %v2804_v2 = vrot.slane %v15703_v0, 5 }
  0xe1   : > { %v1461_v48 = vpop.permute.xlu1 %1460  ;;  %v1459_v59 = vpop.permute.xlu0 %1458  ;;  %v1985_v11 = vsel %vm15385_vm14, %v1980_v61, %v1984_v22  ;;  %v2011_v62 = vshrl.u32 %v1677_v19, 16  ;;  %v2014_v37 = vshll.u32 %v1677_v19, 16  ;;  %v2784_v61 = vsel %vm15585_vm12, %v12104_v3, %v2783_v30 }
  0xe2   : > { %v1621_v21 = vsel %vm15537_vm0, %v1461_v48, %v1620_v54  ;;  %v1618_v41 = vsel %vm15525_vm3, %v1459_v59, %v1617_v35  ;;  %v15846_v54 = vcombine.low %v1975_v36, %v1985_v11  ;;  %v1993_v48 = vor.u32 %v1992_v44, %v1989_v25 }
  0xe3   : > { %1622 = vst [vmem:[#allocation2 + $0x90] sm:$0xf] %v1621_v21  ;;  %1619 = vst [vmem:[#allocation2 + $0x8c] sm:$0x1] %v1618_v41  ;;  %v1998_v35 = vrot.slane %v1996_v13, 5  ;;  %v15849_v59 = vcombine.low %v1675_v49, %v15833_v9  ;;  %v2002_v34 = vrot.slane %v2000_v53, 4 }
  0xe4   : > { %19879 = vst [vmem:[#allocation23_spill] sm:$0xff] %v15846_v54  ;;  %v15851_v21 = vld [vmem:[#allocation2 + $0x88] sm:$0xf]  ;;  %v2013_v41 = vrot.slane %v2011_v62, 4  ;;  %v2016_v5 = vrot.slane %v2014_v37, 5  ;;  %13164 = vmatmul.mubr.bf16.gmra.mrb[16].mxu0 %v15846_v54  ;;  %v1994_v22 = vrot.slane %v1993_v48, 4 }
  0xe5   : > { %v1467_v12 = vpop.permute.xlu1 %1466  ;;  %v1463_v4 = vpop.permute.xlu0 %1462  ;;  %v2020_v25 = vshll.u32 %v15851_v21, 16  ;;  %v2024_v44 = vshrl.u32 %v15851_v21, 16  ;;  %v2003_v13 = vor.u32 %v2002_v34, %v1998_v35  ;;  %v15865_v3 = vcombine.low %v1677_v19, %v15851_v21 }
  0xe6   : > { %v1628_v36 = vsel %vm15537_vm0, %v1467_v12, %v1627_v18  ;;  %1623 = vst.msk [vmem:[#allocation2 + $0x94] sm:$0xf] %vm1538_vm1, %v1463_v4  ;;  %v15859_v49 = vld [vmem:[#allocation2 + $0x80] sm:$0x1]  ;;  %v2017_v11 = vor.u32 %v2016_v5, %v2013_v41  ;;  %v1999_v4 = vsel %vm15385_vm14, %v1994_v22, %v1998_v35  ;;  %v2785_v62 = vrot.slane %v2783_v30, 4 }
  0xe7   : > { %1629 = vst [vmem:[#allocation2 + $0x9c] sm:$0xf] %v1628_v36  ;;  %v2006_v37 = vshll.u32 %v15859_v49, 16  ;;  %v2022_v18 = vrot.slane %v2020_v25, 5  ;;  %v2026_v53 = vrot.slane %v2024_v44, 4  ;;  %v2004_v54 = vrot.slane %v2003_v13, 4 }
  0xe8   : > { %v2018_v23 = vrot.slane %v2017_v11, 4  ;;  %v2790_v36 = vrot.slane %v15636_v31, 5  ;;  %v2787_v35 = vsel %vm15585_vm12, %v2785_v62, %v2786_v47  ;;  %v2793_v30 = vrot.slane %v15662_v17, 5  ;;  %v1634_v22 = vld [vmem:[#allocation2 + $0xa8] sm:$0xf] }
  0xe9   : > { %v1469_v48 = vpop.permute.xlu0 %1468  ;;  %v2008_v14 = vrot.slane %v2006_v37, 5  ;;  %v2027_v19 = vor.u32 %v2026_v53, %v2022_v18  ;;  %v1631_v25 = vld [vmem:[#allocation2 + $0xa4] sm:$0x1] }
  0xea   : > { %1630 = vst.msk [vmem:[#allocation2 + $0xa0] sm:$0xf] %vm1538_vm1, %v1469_v48  ;;  %v15873_v5 = vld [vmem:[#allocation2 + $0x8c] sm:$0x1]  ;;  %v1679_v41 = vld [vmem:[#allocation2 + $0x90] sm:$0xf] }
  0xeb   : > { %v2009_v31 = vsel %vm15385_vm14, %v2004_v54, %v2008_v14  ;;  %v2030_v44 = vshll.u32 %v15873_v5, 16  ;;  %v2035_v13 = vshrl.u32 %v1679_v41, 16  ;;  %v2028_v11 = vrot.slane %v2027_v19, 4 }
  0xec   : > { %v15883_v37 = vcombine.low %v1999_v4, %v2009_v31  ;;  %v2038_v53 = vshll.u32 %v1679_v41, 16  ;;  %v19882_v14 = vrot.slane %v15813_v32, 9  ;;  %v2792_v54 = vrot.slane %v2790_v36, 4 }
  0xed   : > { %v1465_v12 = vpop.permute.xlu1 %1464  ;;  %v2032_v62 = vrot.slane %v2030_v44, 5  ;;  %v15887_v48 = vld [vmem:[#allocation2 + $0x94] sm:$0xf] }
  0xee   : > { %v1625_v34 = vsel %vm15525_vm3, %v1465_v12, %v1624_v6  ;;  %v2023_v6 = vsel %vm15385_vm14, %v2018_v23, %v2022_v18  ;;  %19880 = vst [vmem:[#allocation24_spill] sm:$0xff] %v15883_v37  ;;  %v15885_v12 = vcombine.low %v2784_v61, %v2787_v35  ;;  %v2791_v23 = vsel %vm15585_vm12, %v19882_v14, %v2790_v36  ;;  %v1641_v61 = vld [vmem:[#allocation2 + $0xb4] sm:$0xf]  ;;  %v1681_v31 = vld [vmem:[#allocation2 + $0x9c] sm:$0xf] }
  0xef   : > { %1626 = vst [vmem:[#allocation2 + $0x98] sm:$0x1] %v1625_v34  ;;  %v2037_v34 = vrot.slane %v2035_v13, 4  ;;  %13167 = vmatprep.mubr.bf16.mxu0 %v15883_v37  ;;  %v2040_v19 = vrot.slane %v2038_v53, 5  ;;  %v2044_v35 = vshll.u32 %v15887_v48, 16  ;;  %v2033_v32 = vsel %vm15385_vm14, %v2028_v11, %v2032_v62 }
  0xf0   : > { %19881 = vst [vmem:[#allocation25_spill] sm:$0xff] %v15885_v12  ;;  %v2048_v36 = vshrl.u32 %v15887_v48, 16  ;;  %v2059_v44 = vshrl.u32 %v1681_v31, 16  ;;  %v2062_v13 = vshll.u32 %v1681_v31, 16  ;;  %v1714_v53 = vld [vmem:[#allocation2 + $0x3c] sm:$0xe]  ;;  %v2794_v62 = vsel %vm15585_vm12, %v2792_v54, %v2793_v30 }
  0xf1   : > { %v1473_v47 = vpop.permute.xlu1 %1472  ;;  %v1638_v12 = vld [vmem:[#allocation2 + $0xb0] sm:$0x1]  ;;  %v12106_v27 = vrot.slane %v1714_v53, 9 }
  0xf2   : > { %v1471_v17 = vpop.permute.xlu0 %1470  ;;  %v1635_v4 = vsel %vm15537_vm0, %v1473_v47, %v1634_v22  ;;  %v15902_v22 = vcombine.low %v2023_v6, %v2033_v32  ;;  %v2041_v47 = vor.u32 %v2040_v19, %v2037_v34  ;;  %v2061_v29 = vrot.slane %v2059_v44, 4 }
  0xf3   : > { %v1632_v18 = vsel %vm15525_vm3, %v1471_v17, %v1631_v25  ;;  %1636 = vst [vmem:[#allocation2 + $0xa8] sm:$0xf] %v1635_v4  ;;  %v2046_v25 = vrot.slane %v2044_v35, 5  ;;  %v15905_v17 = vcombine.low %v1679_v41, %v15887_v48  ;;  %v2050_v4 = vrot.slane %v2048_v36, 4 }
  0xf4   : > { %1633 = vst [vmem:[#allocation2 + $0xa4] sm:$0x1] %v1632_v18  ;;  %19883 = vst [vmem:[#allocation26_spill] sm:$0xff] %v15902_v22  ;;  %v15907_v18 = vld [vmem:[#allocation2 + $0xa0] sm:$0xf]  ;;  %v2064_v11 = vrot.slane %v2062_v13, 5  ;;  %13168 = vmatmul.mubr.bf16.gmra.mrb[20].mxu0 %v15902_v22  ;;  %v15925_v13 = vcombine.low %v2791_v23, %v2794_v62 }
  0xf5   : > { %v1479_v14 = vpop.permute.xlu1 %1478  ;;  %v2042_v34 = vrot.slane %v2041_v47, 4  ;;  %v2068_v19 = vshll.u32 %v15907_v18, 16  ;;  %v2072_v35 = vshrl.u32 %v15907_v18, 16  ;;  %v2051_v32 = vor.u32 %v2050_v4, %v2046_v25  ;;  %v15927_v47 = vld [vmem:[#allocation2 + $0x48] sm:$0xe] }
  0xf6   : > { %v1475_v37 = vpop.permute.xlu0 %1474  ;;  %v1642_v6 = vsel %vm15537_vm0, %v1479_v14, %v1641_v61  ;;  %v15915_v41 = vld [vmem:[#allocation2 + $0x98] sm:$0x1]  ;;  %v2065_v44 = vor.u32 %v2064_v11, %v2061_v29  ;;  %v15921_v30 = vcombine.low %v1681_v31, %v15907_v18  ;;  %19885 = vst [vmem:[#allocation28_spill] sm:$0xff] %v15925_v13  ;;  %v2797_v23 = vrot.slane %v15657_v56, 5 }
  0xf7   : > { %1637 = vst.msk [vmem:[#allocation2 + $0xac] sm:$0xf] %vm1538_vm1, %v1475_v37  ;;  %1643 = vst [vmem:[#allocation2 + $0xb4] sm:$0xf] %v1642_v6  ;;  %v2054_v36 = vshll.u32 %v15915_v41, 16  ;;  %v2047_v37 = vsel %vm15385_vm14, %v2042_v34, %v2046_v25  ;;  %v2070_v54 = vrot.slane %v2068_v19, 5 }
  0xf8   : > { %19884 = vst [vmem:[#allocation27_spill] sm:$0xff] %v15921_v30  ;;  %v2074_v61 = vrot.slane %v2072_v35, 4  ;;  %v2052_v1 = vrot.slane %v2051_v32, 4  ;;  %v2066_v4 = vrot.slane %v2065_v44, 4  ;;  %v2800_v62 = vrot.slane %v15687_v16, 5 }
  0xf9   : > { %v1477_v14 = vpop.permute.xlu1 %1476  ;;  %v2056_v6 = vrot.slane %v2054_v36, 5  ;;  %v1645_v34 = vld [vmem:[#allocation2 + $0xbc] sm:$0x1]  ;;  %v2798_v56 = vsel %vm15585_vm12, %v12106_v27, %v2797_v23  ;;  %v2806_v30 = vrot.slane %v2804_v2, 4 }
  0xfa   : > { %v1481_v22 = vpop.permute.xlu0 %1480  ;;  %v1639_v29 = vsel %vm15525_vm3, %v1477_v14, %v1638_v12  ;;  %v2075_v25 = vor.u32 %v2074_v61, %v2070_v54  ;;  %v1683_v11 = vld [vmem:[#allocation2 + $0xa8] sm:$0xf]  ;;  %v2071_v53 = vsel %vm15385_vm14, %v2066_v4, %v2070_v54 }
  0xfb   : > { %1644 = vst.msk [vmem:[#allocation2 + $0xb8] sm:$0xf] %vm1538_vm1, %v1481_v22  ;;  %v15932_v31 = vld [vmem:[#allocation2 + $0xa4] sm:$0x1]  ;;  %1640 = vst [vmem:[#allocation2 + $0xb0] sm:$0x1] %v1639_v29  ;;  %v2057_v19 = vsel %vm15385_vm14, %v2052_v1, %v2056_v6 }
  0xfc   : > { %v2078_v12 = vshll.u32 %v15932_v31, 16  ;;  %v2083_v35 = vshrl.u32 %v1683_v11, 16  ;;  %v15941_v22 = vcombine.low %v2047_v37, %v2057_v19  ;;  %v2076_v32 = vrot.slane %v2075_v25, 4 }
  0xfd   : > { %v2086_v36 = vshll.u32 %v1683_v11, 16  ;;  %v2799_v29 = vrot.slane %v2797_v23, 4  ;;  %v12107_v1 = vrot.slane %v15927_v47, 9 }
  0xfe   : > { %19886 = vst [vmem:[#allocation29_spill] sm:$0xff] %v15941_v22  ;;  %v1483_v44 = vpop.permute.xlu0 %1482  ;;  %v2080_v16 = vrot.slane %v2078_v12, 5  ;;  %v15945_v61 = vld [vmem:[#allocation2 + $0xac] sm:$0xf]  ;;  %v2085_v14 = vrot.slane %v2083_v35, 4  ;;  %13171 = vmatprep.mubr.bf16.mxu0 %v15941_v22 }
  0xff   : > { %v1646_v54 = vsel %vm15525_vm3, %v1483_v44, %v1645_v34  ;;  %v2088_v37 = vrot.slane %v2086_v36, 5  ;;  %v2092_v6 = vshll.u32 %v15945_v61, 16  ;;  %v2096_v4 = vshrl.u32 %v15945_v61, 16  ;;  %v1685_v25 = vld [vmem:[#allocation2 + $0xb4] sm:$0xf] }
 0x100   : > { %1647 = vst [vmem:[#allocation2 + $0xbc] sm:$0x1] %v1646_v54  ;;  %v2081_v27 = vsel %vm15385_vm14, %v2076_v32, %v2080_v16  ;;  %v2107_v19 = vshrl.u32 %v1685_v25, 16  ;;  %v2110_v12 = vshll.u32 %v1685_v25, 16  ;;  %v15956_v23 = vcombine.low %v1683_v11, %v15945_v61  ;;  %v1716_v32 = vld [vmem:[#allocation2 + $0x54] sm:$0xe] }
 0x101   : > { %v15958_v47 = vcombine.low %v2071_v53, %v2081_v27  ;;  %v2089_v34 = vor.u32 %v2088_v37, %v2085_v14  ;;  %v2094_v35 = vrot.slane %v2092_v6, 5  ;;  %v2098_v44 = vrot.slane %v2096_v4, 4 }
 0x102   : > { %19887 = vst [vmem:[#allocation30_spill] sm:$0xff] %v15956_v23  ;;  %v15960_v36 = vld [vmem:[#allocation2 + $0xb8] sm:$0xf]  ;;  %v2109_v22 = vrot.slane %v2107_v19, 4  ;;  %v2112_v13 = vrot.slane %v2110_v12, 5  ;;  %v2801_v54 = vsel %vm15585_vm12, %v2799_v29, %v2800_v62  ;;  %v2805_v23 = vsel %vm15585_vm12, %v12107_v1, %v2804_v2 }
 0x103   : > { %19888 = vst [vmem:[#allocation31_spill] sm:$0xff] %v15958_v47  ;;  %13172 = vmatmul.mubr.bf16.gmra.mrb[24].mxu0 %v15958_v47  ;;  %v15966_v16 = vld [vmem:[#allocation2 + $0xb0] sm:$0x1]  ;;  %v2090_v11 = vrot.slane %v2089_v34, 4  ;;  %v2099_v53 = vor.u32 %v2098_v44, %v2094_v35  ;;  %v2116_v14 = vshll.u32 %v15960_v36, 16  ;;  %v2120_v37 = vshrl.u32 %v15960_v36, 16 }
 0x104   : > { %v2102_v6 = vshll.u32 %v15966_v16, 16  ;;  %v2113_v4 = vor.u32 %v2112_v13, %v2109_v22  ;;  %v15972_v27 = vcombine.low %v1685_v25, %v15960_v36  ;;  %v15974_v62 = vcombine.low %v2798_v56, %v2801_v54  ;;  %v1717_v34 = vld [vmem:[#allocation2 + $0x60] sm:$0xe]  ;;  %v1719_v2 = vld [vmem:[#allocation2 + $0x78] sm:$0xe] }
 0x105   : > { %v2095_v0 = vsel %vm15385_vm14, %v2090_v11, %v2094_v35  ;;  %v2100_v29 = vrot.slane %v2099_v53, 4  ;;  %v2118_v19 = vrot.slane %v2116_v14, 5  ;;  %v2122_v12 = vrot.slane %v2120_v37, 4 }
 0x106   : > { %v2104_v44 = vrot.slane %v2102_v6, 5  ;;  %v2114_v47 = vrot.slane %v2113_v4, 4  ;;  %v2807_v56 = vrot.slane %v15732_v33, 5  ;;  %v12108_v25 = vrot.slane %v1716_v32, 9 }
 0x107   : > { %v15980_v13 = vld [vmem:[#allocation2 + $0xbc] sm:$0x1]  ;;  %v2123_v22 = vor.u32 %v2122_v12, %v2118_v19  ;;  %v2811_v54 = vrot.slane %v15723_v52, 5  ;;  %v2814_v1 = vrot.slane %v15748_v39, 5  ;;  %v2818_v39 = vrot.slane %v15768_v15, 5 }
 0x108   : > { %v2105_v35 = vsel %vm15385_vm14, %v2100_v29, %v2104_v44  ;;  %v2119_v11 = vsel %vm15385_vm14, %v2114_v47, %v2118_v19  ;;  %v2126_v53 = vshll.u32 %v15980_v13, 16  ;;  %v2808_v33 = vsel %vm15585_vm12, %v2806_v30, %v2807_v56  ;;  %v1720_v47 = vld [vmem:[#allocation2 + $0x84] sm:$0xe] }
 0x109   : > { %v15990_v14 = vcombine.low %v2095_v0, %v2105_v35  ;;  %v2124_v37 = vrot.slane %v2123_v22, 4  ;;  %v2812_v52 = vsel %vm15585_vm12, %v12108_v25, %v2811_v54  ;;  %v15996_v6 = vcombine.low %v2805_v23, %v2808_v33 }
 0x10a   : > { %v2128_v32 = vrot.slane %v2126_v53, 5  ;;  %v2813_v4 = vrot.slane %v2811_v54, 4  ;;  %v12109_v29 = vrot.slane %v1717_v34, 9  ;;  %v2821_v0 = vrot.slane %v15797_v63, 5  ;;  %v1721_v34 = vld [vmem:[#allocation2 + $0x90] sm:$0xe] }
 0x10b   : > { %13175 = vmatprep.mubr.bf16.mxu0 %v15990_v14  ;;  %v12110_v19 = vrot.slane %v1718_v38, 9  ;;  %v2825_v12 = vrot.slane %v15788_v45, 5  ;;  %v2828_v23 = vrot.slane %v15820_v40, 5  ;;  %v12111_v22 = vrot.slane %v1719_v2, 9  ;;  %v1722_v63 = vld [vmem:[#allocation2 + $0x9c] sm:$0xe] }
 0x10c   : > { %v2129_v30 = vsel %vm15385_vm14, %v2124_v37, %v2128_v32  ;;  %v2815_v44 = vsel %vm15585_vm12, %v2813_v4, %v2814_v1  ;;  %v2819_v15 = vsel %vm15585_vm12, %v12109_v29, %v2818_v39  ;;  %v2820_v38 = vrot.slane %v2818_v39, 4  ;;  %v1723_v32 = vld [vmem:[#allocation2 + $0xa8] sm:$0xe] }
 0x10d   : > { %v16007_v56 = vcombine.low %v2119_v11, %v2129_v30  ;;  %v16009_v25 = vcombine.low %v2812_v52, %v2815_v44  ;;  %v2826_v45 = vsel %vm15585_vm12, %v12110_v19, %v2825_v12  ;;  %v2827_v54 = vrot.slane %v2825_v12, 4 }
 0x10e   : > { %v2832_v35 = vrot.slane %v15833_v9, 5  ;;  %v2835_v53 = vrot.slane %v15859_v49, 5  ;;  %v2822_v40 = vsel %vm15585_vm12, %v2820_v38, %v2821_v0  ;;  %v12112_v11 = vrot.slane %v1720_v47, 9  ;;  %v1724_v47 = vld [vmem:[#allocation2 + $0xb4] sm:$0xe] }
 0x10f   : > { %13176 = vmatmul.mubr.bf16.gmra.mrb[28].mxu0 %v16007_v56  ;;  %v2839_v1 = vrot.slane %v15851_v21, 5  ;;  %v2842_v2 = vrot.slane %v15873_v5, 5  ;;  %v19889_v37 = vcombine.low %v15364_v57, %v15671_v51  ;;  %v16025_v33 = vcombine.low %v2819_v15, %v2822_v40 }
 0x110   : > { %v2829_v9 = vsel %vm15585_vm12, %v2827_v54, %v2828_v23  ;;  %v2833_v49 = vsel %vm15585_vm12, %v12111_v22, %v2832_v35  ;;  %v2834_v52 = vrot.slane %v2832_v35, 4  ;;  %v12113_v29 = vrot.slane %v1721_v34, 9  ;;  %v14575_v23 = vld [vmem:[%s19832_s2 + $0x88] sm:$0xff]  }
 0x111   : > { %13195 = vmatprep.mubr.bf16.mxu0 %v19889_v37  ;;  %v16031_v4 = vcombine.low %v2826_v45, %v2829_v9  ;;  %v2840_v21 = vsel %vm15585_vm12, %v12112_v11, %v2839_v1  ;;  %v2841_v5 = vrot.slane %v2839_v1, 4  ;;  %v2846_v51 = vrot.slane %v15887_v48, 5  ;;  %v14577_v9 = vld [vmem:[%s19832_s2 + $0x98] sm:$0xff]  }
 0x112   : > { %v2836_v57 = vsel %vm15585_vm12, %v2834_v52, %v2835_v53  ;;  %v2849_v39 = vrot.slane %v15915_v41, 5  ;;  %v12114_v0 = vrot.slane %v1722_v63, 9  ;;  %v2853_v30 = vrot.slane %v15907_v18, 5  ;;  %v14578_v52 = vld [vmem:[%s19832_s2 + $0xa0] sm:$0xff]  }
 0x113   : > { %v16039_v19 = vcombine.low %v2833_v49, %v2836_v57  ;;  %v2843_v12 = vsel %vm15585_vm12, %v2841_v5, %v2842_v2  ;;  %v2856_v44 = vrot.slane %v15932_v31, 5  ;;  %v2847_v48 = vsel %vm15585_vm12, %v12113_v29, %v2846_v51  ;;  %v14584_v5 = vld [vmem:[%s19832_s2 + $0xb8] sm:$0xff]   ;;  %v14586_v29 = vld [vmem:[%s19832_s2 + $0xc0] sm:$0xff]  }
 0x114   : > { %v16048_v22 = vcombine.low %v2840_v21, %v2843_v12  ;;  %v2848_v41 = vrot.slane %v2846_v51, 4  ;;  %v2855_v34 = vrot.slane %v2853_v30, 4  ;;  %v12115_v15 = vrot.slane %v1723_v32, 9  ;;  %v14579_v32 = vld [vmem:[%s19832_s2 + $0xa8] sm:$0xff]   ;;  %v14581_v21 = vld [vmem:[%s19832_s2 + $0xb0] sm:$0xff]  }
 0x115   : > { %v2860_v38 = vrot.slane %v15945_v61, 5  ;;  %v2863_v63 = vrot.slane %v15966_v16, 5  ;;  %v12116_v31 = vrot.slane %v1724_v47, 9  ;;  %v2867_v45 = vrot.slane %v15960_v36, 5  ;;  %v14576_v36 = vld [vmem:[%s19832_s2 + $0x90] sm:$0xff]  }
 0x116   : > { %v2850_v18 = vsel %vm15585_vm12, %v2848_v41, %v2849_v39  ;;  %v2870_v54 = vrot.slane %v15980_v13, 5  ;;  %v2854_v53 = vsel %vm15585_vm12, %v12114_v0, %v2853_v30  ;;  %v2857_v61 = vsel %vm15585_vm12, %v2855_v34, %v2856_v44  ;;  %v439_v47 = vld [vmem:[#allocation2 + $0xc0] sm:$0x1]  ;;  %v651_v57 = vld [vmem:[%s15057_s21 + $0x78] sm:$0xf] }
 0x117   : > { %13196 = vmatmul.mubr.bf16.vlgmr.msra.gmra.mrb[0].mxu0 %v15566_v24  ;;  %v16059_v35 = vcombine.low %v2847_v48, %v2850_v18  ;;  %v2862_v40 = vrot.slane %v2860_v38, 4  ;;  %v16070_v16 = vcombine.low %v2854_v53, %v2857_v61  ;;  %v2869_v13 = vrot.slane %v2867_v45, 4  ;;  %v652_v44 = vld [vmem:[%s15057_s21 + $0x7c] sm:$0xf]  ;;  %v495_v41 = vld [vmem:[#allocation2 + $0xc8] sm:$0x1] }
 0x118   : > { %13228 = vmatpush3.bf16.msra.mxu0 %v15759_v55  ;;  %13199 = vmatprep.mubr.bf16.mxu0 %v15581_v50  ;;  %v2861_v11 = vsel %vm15585_vm12, %v12115_v15, %v2860_v38  ;;  %v2868_v55 = vsel %vm15585_vm12, %v12116_v31, %v2867_v45  ;;  %v440_v51 = vsel %vm15114_vm9, 0, %v439_v47  ;;  %v911_v39 = vshrl.u32 %v651_v57, 16  ;;  %v14712_v34 = vld [vmem:[#allocation2 + $0x4] sm:$0xf]  ;;  %v1709_v18 = vld [vmem:[#allocation2] sm:$0xe] }
 0x119   : > { %13229 = vmatprep.subr.bf16.mxu0 %v14575_v23  ;;  %v2864_v1 = vsel %vm15585_vm12, %v2862_v40, %v2863_v63  ;;  %v2871_v37 = vsel %vm15585_vm12, %v2869_v13, %v2870_v54  ;;  %441 = vst [vmem:[#allocation2 + $0xc0] sm:$0x1] %v440_v51  ;;  %v914_v0 = vshll.u32 %v651_v57, 16  ;;  %v922_v48 = vshll.u32 %v652_v44, 16  ;;  %v14713_v40 = vld [vmem:[#allocation2 + $0x8] sm:$0x1] }
 0x11a   : > { %v16076_v2 = vcombine.low %v2861_v11, %v2864_v1  ;;  %v16085_v49 = vcombine.low %v2868_v55, %v2871_v37  ;;  %v913_v12 = vrot.slane %v911_v39, 7  ;;  %v2762_v15 = vrot.slane %v14712_v34, 5  ;;  %v19913_v31 = vld [vmem:[#allocation31_spill] sm:$0xff]  ;;  %s19603_s21 = smov 94  }
 0x11b   : > { %v496_v63 = vsel %vm15098_vm8, 0, %v495_v41  ;;  %v12101_v13 = vrot.slane %v1709_v18, 9  ;;  %v14588_v18 = vld [vmem:[%s19832_s2 + $0xd0] sm:$0xff]   ;;  %v14601_v41 = vld [vmem:[%s19832_s2 + $0x138] sm:$0xff]  }
 0x11c   : > { %13230 = vmatpush3.bf16.msra.mxu0 %v14575_v23  ;;  %v916_v30 = vor.u32 %v914_v0, %v913_v12  ;;  %v919_v23 = vshrl.u32 %v652_v44, 16  ;;  %v917_v54 = vrot.slane %v913_v12, 4  ;;  %497 = vst [vmem:[#allocation2 + $0xc8] sm:$0x1] %v496_v63  ;;  %v2764_v11 = vrot.slane %v2762_v15, 4  ;;  %v19898_v63 = vld [vmem:[#allocation21_spill] sm:$0xff] }
 0x11d   : > { %13231 = vmatprep.subr.bf16.mxu0 %v14576_v36 }
 0x11e   : > { %v921_v53 = vrot.slane %v919_v23, 7 }
 0x11f   : > { %13200 = vmatmul.mubr.bf16.gmra.mrb[4].mxu0 %v15609_v10 }
 0x120   : > { %13203 = vmatprep.mubr.bf16.mxu0 %v15653_v28  ;;  %13232 = vmatpush3.bf16.msra.mxu0 %v14576_v36  ;;  %v1083_v38 = vld [vmem:[#allocation2 + $0xc0] sm:$0xf]  ;;  %v924_v61 = vor.u32 %v922_v48, %v921_v53  ;;  %v2765_v36 = vrot.slane %v14713_v40, 5  ;;  %v926_v37 = vrot.slane %v921_v53, 4  ;;  %v14592_v40 = vld [vmem:[%s19832_s2 + $0xf0] sm:$0xff]  }
 0x121   : > { %13233 = vmatprep.subr.bf16.mxu0 %v14577_v9  ;;  %v1084_v45 = vsel %vm15180_vm11, %v916_v30, %v1083_v38  ;;  %v19897_v38 = vld [vmem:[#allocation14_spill] sm:$0xff]  ;;  %v19900_v53 = vld [vmem:[#allocation28_spill] sm:$0xff] }
 0x122   : > { %1085 = vst [vmem:[#allocation2 + $0xc0] sm:$0xf] %v1084_v45  ;;  %v925_v55 = vsel %vm14889_vm5, %v917_v54, %v924_v61  ;;  %v14589_v45 = vld [vmem:[%s19832_s2 + $0xd8] sm:$0xff]   ;;  %v19899_v54 = vld [vmem:[#allocation25_spill] sm:$0xff] }
 0x123   : > { %1086 = vst.msk [vmem:[#allocation2 + $0xc4] sm:$0xf] %vm19748_vm7, %v925_v55  ;;  %v1087_v47 = vld [vmem:[#allocation2 + $0xc8] sm:$0x1]  ;;  %vm19774_vm7 = vcmask 146432  }
 0x124   : > { %13234 = vmatpush3.bf16.msra.mxu0 %v14577_v9  ;;  %v19892_v9 = vld [vmem:[#allocation27_spill] sm:$0xff]  ;;  %v1088_v39 = vsel %vm15169_vm10, %v926_v37, %v1087_v47  ;;  %v14591_v61 = vld [vmem:[%s19832_s2 + $0xe8] sm:$0xff]  }
 0x125   : > { %13235 = vmatprep.subr.bf16.mxu0 %v14578_v52  ;;  %1089 = vst [vmem:[#allocation2 + $0xc8] sm:$0x1] %v1088_v39 }
 0x127   : > { %13204 = vmatmul.mubr.bf16.gmra.mrb[8].mxu0 %v15676_v46 }
 0x128   : > { %13207 = vmatprep.mubr.bf16.mxu0 %v15721_v42  ;;  %13236 = vmatpush3.bf16.msra.mxu0 %v14578_v52  ;;  %v19893_v52 = vld [vmem:[#allocation30_spill] sm:$0xff] }
 0x129   : > { %13237 = vmatprep.subr.bf16.mxu0 %v14579_v32  ;;  %v1648_v57 = vld [vmem:[#allocation2 + $0xc0] sm:$0xf] }
 0x12c   : > { %13238 = vmatpush3.bf16.msra.mxu0 %v14579_v32  ;;  %v1652_v48 = vld [vmem:[#allocation2 + $0xc8] sm:$0x1] }
 0x12d   : > { %13239 = vmatprep.subr.bf16.mxu0 %v14581_v21 }
 0x12f   : > { %13208 = vmatmul.mubr.bf16.gmra.mrb[12].mxu0 %v15741_v58 }
 0x130   : > { %13211 = vmatprep.mubr.bf16.mxu0 %v15786_v20  ;;  %13240 = vmatpush3.bf16.msra.mxu0 %v14581_v21  ;;  %v2763_v21 = vsel %vm15585_vm12, %v12101_v13, %v2762_v15  ;;  %v14587_v15 = vld [vmem:[%s19832_s2 + $0xc8] sm:$0xff]   ;;  %v14594_v13 = vld [vmem:[%s19832_s2 + $0x100] sm:$0xff]  }
 0x131   : > { %13241 = vmatprep.subr.bf16.mxu0 %v14584_v5 }
 0x134   : > { %13242 = vmatpush3.bf16.msra.mxu0 %v14584_v5  ;;  %v2766_v5 = vsel %vm15585_vm12, %v2764_v11, %v2765_v36  ;;  %v14593_v36 = vld [vmem:[%s19832_s2 + $0xf8] sm:$0xff]  }
 0x135   : > { %13275 = vmatprep.subr.bf16.mxu0 %v14586_v29  ;;  %v12133_v30 = vcombine.low %v2763_v21, %v2766_v5 }
 0x137   : > { %13212 = vmatmul.mubr.bf16.gmra.mrb[16].mxu0 %v15803_v43 }
 0x138   : > { %13215 = vmatprep.mubr.bf16.mxu0 %v15849_v59 }
 0x139   : > { %v1485_v32 = vpop.permute.xlu1 %1484 }
 0x13a   : > { %v1649_v12 = vsel %vm15537_vm0, %v1485_v32, %v1648_v57  ;;  %vm19750_vm0 = vcmask 97280  }
 0x13b   : > { %1650 = vst [vmem:[#allocation2 + $0xc0] sm:$0xf] %v1649_v12  ;;  %v14595_v12 = vld [vmem:[%s19832_s2 + $0x108] sm:$0xff]  }
 0x13f   : > { %13216 = vmatmul.mubr.bf16.gmra.mrb[20].mxu0 %v15865_v3 }
 0x140   : > { %13219 = vmatprep.mubr.bf16.mxu0 %v15905_v17 }
 0x141   : > { %v1489_v23 = vpop.permute.xlu1 %1488 }
 0x142   : > { %v1653_v34 = vsel %vm15525_vm3, %v1489_v23, %v1652_v48  ;;  %v1725_v32 = vld [vmem:[#allocation2 + $0xc0] sm:$0xe]  ;;  %v14599_v23 = vld [vmem:[%s19832_s2 + $0x128] sm:$0xff]   ;;  %v14600_v48 = vld [vmem:[%s19832_s2 + $0x130] sm:$0xff]   ;;  %vm19762_vm3 = vcmask 80896  }
 0x143   : > { %1654 = vst [vmem:[#allocation2 + $0xc8] sm:$0x1] %v1653_v34  ;;  %v12207_v21 = vrot.slane %v1725_v32, 9  ;;  %v14603_v34 = vld [vmem:[%s19832_s2 + $0x140] sm:$0xff]   ;;  %v19905_v32 = vld [vmem:[#allocation18_spill] sm:$0xff] }
 0x144   : > { %v1487_v44 = vpop.permute.xlu0 %1486 }
 0x145   : > { %1651 = vst.msk [vmem:[#allocation2 + $0xc4] sm:$0xf] %vm1538_vm1, %v1487_v44  ;;  %v14598_v44 = vld [vmem:[%s19832_s2 + $0x120] sm:$0xff]   ;;  %vm19761_vm1 = vcmask 64512  }
 0x147   : > { %13220 = vmatmul.mubr.bf16.gmra.mrb[24].mxu0 %v19892_v9 }
 0x148   : > { %13223 = vmatprep.mubr.bf16.mxu0 %v19893_v52 }
 0x14a   : > { %v16176_v37 = vld [vmem:[#allocation2 + $0xc8] sm:$0x1] }
 0x14b   : > { %v3751_v47 = vrot.slane %v16176_v37, 5  ;;  %v3478_v8 = vshll.u32 %v16176_v37, 16  ;;  %v14616_v37 = vld [vmem:[%s19832_s2 + $0x1a8] sm:$0xff]  }
 0x14c   : > { %v16172_v11 = vld [vmem:[#allocation2 + $0xc4] sm:$0xf] }
 0x14d   : > { %v3748_v55 = vrot.slane %v16172_v11, 5 }
 0x14f   : > { %13224 = vmatmul.mubr.bf16.gmra.mrb[28].mxu0 %v15972_v27  ;;  %v3750_v5 = vrot.slane %v3748_v55, 4  ;;  %v3749_v57 = vsel %vm15585_vm12, %v12207_v21, %v3748_v55  ;;  %v19904_v55 = vld [vmem:[#allocation17_spill] sm:$0xff]  ;;  %v14607_v21 = vld [vmem:[%s19832_s2 + $0x160] sm:$0xff]  }
 0x150   : > { %13243 = vmatprep.mubr.bf16.mxu0 %v12133_v30  ;;  %v14596_v30 = vld [vmem:[%s19832_s2 + $0x110] sm:$0xff]  }
 0x151   : > { %v3752_v39 = vsel %vm15585_vm12, %v3750_v5, %v3751_v47  ;;  %v14608_v5 = vld [vmem:[%s19832_s2 + $0x168] sm:$0xff]   ;;  %v19906_v47 = vld [vmem:[#allocation19_spill] sm:$0xff] }
 0x152   : > { %v16183_v0 = vcombine.low %v3749_v57, %v3752_v39  ;;  %v19907_v57 = vld [vmem:[#allocation20_spill] sm:$0xff]  ;;  %v14609_v39 = vld [vmem:[%s19832_s2 + $0x170] sm:$0xff]  }
 0x157   : > { %13244 = vmatmul.mubr.bf16.vlgmr.msra.gmra.mrb[0].mxu0 %v19897_v38 }
 0x158   : > { %13276 = vmatpush3.bf16.msra.mxu0 %v14586_v29  ;;  %13247 = vmatprep.mubr.bf16.mxu0 %v19898_v63  ;;  %v14590_v29 = vld [vmem:[%s19832_s2 + $0xe0] sm:$0xff]  }
 0x159   : > { %13277 = vmatprep.subr.bf16.mxu0 %v14587_v15 }
 0x15c   : > { %13278 = vmatpush3.bf16.msra.mxu0 %v14587_v15  ;;  %v1687_v15 = vld [vmem:[#allocation2 + $0xc0] sm:$0xf] }
 0x15d   : > { %13279 = vmatprep.subr.bf16.mxu0 %v14588_v18 }
 0x15f   : > { %13248 = vmatmul.mubr.bf16.gmra.mrb[4].mxu0 %v19899_v54 }
 0x160   : > { %13251 = vmatprep.mubr.bf16.mxu0 %v19900_v53  ;;  %13280 = vmatpush3.bf16.msra.mxu0 %v14588_v18  ;;  %v16228_v18 = vcombine.low %v1687_v15, %v16172_v11 }
 0x161   : > { %13281 = vmatprep.subr.bf16.mxu0 %v14589_v45 }
 0x164   : > { %13282 = vmatpush3.bf16.msra.mxu0 %v14589_v45  ;;  %v19901_v45 = vld [vmem:[#allocation13_spill] sm:$0xff] }
 0x165   : > { %13283 = vmatprep.subr.bf16.mxu0 %v14590_v29 }
 0x167   : > { %13252 = vmatmul.mubr.bf16.gmra.mrb[8].mxu0 %v15974_v62 }
 0x168   : > { %13255 = vmatprep.mubr.bf16.mxu0 %v15996_v6  ;;  %13284 = vmatpush3.bf16.msra.mxu0 %v14590_v29  ;;  %v14604_v29 = vld [vmem:[%s19832_s2 + $0x148] sm:$0xff]  }
 0x169   : > { %13285 = vmatprep.subr.bf16.mxu0 %v14591_v61 }
 0x16c   : > { %13286 = vmatpush3.bf16.msra.mxu0 %v14591_v61  ;;  %v19902_v61 = vld [vmem:[#allocation15_spill] sm:$0xff] }
 0x16d   : > { %13287 = vmatprep.subr.bf16.mxu0 %v14592_v40 }
 0x16f   : > { %13256 = vmatmul.mubr.bf16.gmra.mrb[12].mxu0 %v16009_v25 }
 0x170   : > { %13259 = vmatprep.mubr.bf16.mxu0 %v16025_v33  ;;  %13288 = vmatpush3.bf16.msra.mxu0 %v14592_v40  ;;  %v19903_v40 = vld [vmem:[#allocation16_spill] sm:$0xff] }
 0x171   : > { %13289 = vmatprep.subr.bf16.mxu0 %v14593_v36 }
 0x174   : > { %13290 = vmatpush3.bf16.msra.mxu0 %v14593_v36  ;;  %v14605_v36 = vld [vmem:[%s19832_s2 + $0x150] sm:$0xff]  }
 0x175   : > { %13323 = vmatprep.subr.bf16.mxu0 %v14594_v13 }
 0x177   : > { %13260 = vmatmul.mubr.bf16.gmra.mrb[16].mxu0 %v16031_v4 }
 0x178   : > { %13263 = vmatprep.mubr.bf16.mxu0 %v16039_v19 }
 0x17f   : > { %13264 = vmatmul.mubr.bf16.gmra.mrb[20].mxu0 %v16048_v22 }
 0x180   : > { %13267 = vmatprep.mubr.bf16.mxu0 %v16059_v35 }
 0x187   : > { %13268 = vmatmul.mubr.bf16.gmra.mrb[24].mxu0 %v16070_v16 }
 0x188   : > { %13271 = vmatprep.mubr.bf16.mxu0 %v16076_v2 }
 0x18f   : > { %13272 = vmatmul.mubr.bf16.gmra.mrb[28].mxu0 %v16085_v49 }
 0x190   : > { %13291 = vmatprep.mubr.bf16.mxu0 %v15566_v24  ;;  %v14597_v24 = vld [vmem:[%s19832_s2 + $0x118] sm:$0xff]  }
 0x197   : > { %13292 = vmatmul.mubr.bf16.vlgmr.msra.gmra.mrb[0].mxu0 %v15581_v50 }
 0x198   : > { %13324 = vmatpush3.bf16.msra.mxu0 %v14594_v13  ;;  %13295 = vmatprep.mubr.bf16.mxu0 %v15609_v10  ;;  %v14606_v13 = vld [vmem:[%s19832_s2 + $0x158] sm:$0xff]  }
 0x199   : > { %13325 = vmatprep.subr.bf16.mxu0 %v14595_v12 }
 0x19c   : > { %13326 = vmatpush3.bf16.msra.mxu0 %v14595_v12  ;;  %v14610_v12 = vld [vmem:[%s19832_s2 + $0x178] sm:$0xff]  }
 0x19d   : > { %13327 = vmatprep.subr.bf16.mxu0 %v14596_v30 }
 0x19f   : > { %13296 = vmatmul.mubr.bf16.gmra.mrb[4].mxu0 %v15653_v28 }
 0x1a0   : > { %13299 = vmatprep.mubr.bf16.mxu0 %v15676_v46  ;;  %13328 = vmatpush3.bf16.msra.mxu0 %v14596_v30  ;;  %v19908_v30 = vld [vmem:[#allocation22_spill] sm:$0xff] }
 0x1a1   : > { %13329 = vmatprep.subr.bf16.mxu0 %v14597_v24 }
 0x1a4   : > { %13330 = vmatpush3.bf16.msra.mxu0 %v14597_v24  ;;  %v19909_v24 = vld [vmem:[#allocation23_spill] sm:$0xff] }
 0x1a5   : > { %13331 = vmatprep.subr.bf16.mxu0 %v14598_v44 }
 0x1a7   : > { %13300 = vmatmul.mubr.bf16.gmra.mrb[8].mxu0 %v15721_v42 }
 0x1a8   : > { %13303 = vmatprep.mubr.bf16.mxu0 %v15741_v58  ;;  %13332 = vmatpush3.bf16.msra.mxu0 %v14598_v44  ;;  %v14611_v44 = vld [vmem:[%s19832_s2 + $0x180] sm:$0xff]  }
 0x1a9   : > { %13333 = vmatprep.subr.bf16.mxu0 %v14599_v23 }
 0x1ac   : > { %13334 = vmatpush3.bf16.msra.mxu0 %v14599_v23  ;;  %v19910_v23 = vld [vmem:[#allocation24_spill] sm:$0xff] }
 0x1ad   : > { %13335 = vmatprep.subr.bf16.mxu0 %v14600_v48 }
 0x1af   : > { %13304 = vmatmul.mubr.bf16.gmra.mrb[12].mxu0 %v15786_v20 }
 0x1b0   : > { %13307 = vmatprep.mubr.bf16.mxu0 %v15803_v43  ;;  %13336 = vmatpush3.bf16.msra.mxu0 %v14600_v48  ;;  %v19911_v48 = vld [vmem:[#allocation26_spill] sm:$0xff] }
 0x1b1   : > { %13337 = vmatprep.subr.bf16.mxu0 %v14601_v41 }
 0x1b4   : > { %13338 = vmatpush3.bf16.msra.mxu0 %v14601_v41  ;;  %v3459_v41 = vshrl.u32 %v1687_v15, 16 }
 0x1b5   : > { %13371 = vmatprep.subr.bf16.mxu0 %v14603_v34 }
 0x1b7   : > { %13308 = vmatmul.mubr.bf16.gmra.mrb[16].mxu0 %v15849_v59 }
 0x1b8   : > { %13311 = vmatprep.mubr.bf16.mxu0 %v15865_v3 }
 0x1bf   : > { %13312 = vmatmul.mubr.bf16.gmra.mrb[20].mxu0 %v15905_v17 }
 0x1c0   : > { %13315 = vmatprep.mubr.bf16.mxu0 %v19892_v9 }
 0x1c7   : > { %13316 = vmatmul.mubr.bf16.gmra.mrb[24].mxu0 %v19893_v52 }
 0x1c8   : > { %13319 = vmatprep.mubr.bf16.mxu0 %v15972_v27 }
 0x1cf   : > { %13320 = vmatmul.mubr.bf16.gmra.mrb[28].mxu0 %v16228_v18 }
 0x1d0   : > { %13339 = vmatprep.mubr.bf16.mxu0 %v19901_v45  ;;  %v3472_v45 = vshrl.u32 %v16172_v11, 16 }
 0x1d7   : > { %13340 = vmatmul.mubr.bf16.vlgmr.msra.gmra.mrb[0].mxu0 %v19902_v61 }
 0x1d8   : > { %13372 = vmatpush3.bf16.msra.mxu0 %v14603_v34  ;;  %13343 = vmatprep.mubr.bf16.mxu0 %v19903_v40  ;;  %v3462_v34 = vshll.u32 %v1687_v15, 16 }
 0x1d9   : > { %13373 = vmatprep.subr.bf16.mxu0 %v14604_v29 }
 0x1dc   : > { %13374 = vmatpush3.bf16.msra.mxu0 %v14604_v29  ;;  %v3468_v29 = vshll.u32 %v16172_v11, 16  ;;  %v442_v11 = vld [vmem:[#allocation2 + $0xcc] sm:$0x1] }
 0x1dd   : > { %13375 = vmatprep.subr.bf16.mxu0 %v14605_v36  ;;  %v443_v15 = vsel %vm15114_vm9, 0, %v442_v11  ;;  %vm19756_vm9 = vcmask 15360  }
 0x1de   : > { %444 = vst [vmem:[#allocation2 + $0xcc] sm:$0x1] %v443_v15 }
 0x1df   : > { %13344 = vmatmul.mubr.bf16.gmra.mrb[4].mxu0 %v19904_v55 }
 0x1e0   : > { %13347 = vmatprep.mubr.bf16.mxu0 %v19905_v32  ;;  %13376 = vmatpush3.bf16.msra.mxu0 %v14605_v36  ;;  %v3461_v36 = vrot.slane %v3459_v41, 4 }
 0x1e1   : > { %13377 = vmatprep.subr.bf16.mxu0 %v14606_v13 }
 0x1e4   : > { %13378 = vmatpush3.bf16.msra.mxu0 %v14606_v13  ;;  %v3464_v13 = vrot.slane %v3462_v34, 5 }
 0x1e5   : > { %13379 = vmatprep.subr.bf16.mxu0 %v14607_v21 }
 0x1e7   : > { %13348 = vmatmul.mubr.bf16.gmra.mrb[8].mxu0 %v19906_v47 }
 0x1e8   : > { %13351 = vmatprep.mubr.bf16.mxu0 %v19907_v57  ;;  %13380 = vmatpush3.bf16.msra.mxu0 %v14607_v21  ;;  %v3470_v21 = vrot.slane %v3468_v29, 5 }
 0x1e9   : > { %13381 = vmatprep.subr.bf16.mxu0 %v14608_v5 }
 0x1ec   : > { %13382 = vmatpush3.bf16.msra.mxu0 %v14608_v5  ;;  %v3474_v5 = vrot.slane %v3472_v45, 4 }
 0x1ed   : > { %13383 = vmatprep.subr.bf16.mxu0 %v14609_v39 }
 0x1ee   : > { %v3475_v1 = vor.u32 %v3474_v5, %v3470_v21 }
 0x1ef   : > { %13352 = vmatmul.mubr.bf16.gmra.mrb[12].mxu0 %v19908_v30 }
 0x1f0   : > { %13355 = vmatprep.mubr.bf16.mxu0 %v19909_v24  ;;  %13384 = vmatpush3.bf16.msra.mxu0 %v14609_v39  ;;  %v19912_v39 = vld [vmem:[#allocation29_spill] sm:$0xff]  ;;  %v3480_v24 = vrot.slane %v3478_v8, 5 }
 0x1f1   : > { %13385 = vmatprep.subr.bf16.mxu0 %v14610_v12  ;;  %v14612_v8 = vld [vmem:[%s19832_s2 + $0x188] sm:$0xff]  }
 0x1f4   : > { %13386 = vmatpush3.bf16.msra.mxu0 %v14610_v12  ;;  %v3465_v12 = vor.u32 %v3464_v13, %v3461_v36  ;;  %v14620_v36 = vld [vmem:[%s19832_s2 + $0x1c8] sm:$0xff]   ;;  %v518_v13 = vld [vmem:[#allocation3 + $0x18] sm:$0x1] }
 0x1f5   : > { %13419 = vmatprep.subr.bf16.mxu0 %v14611_v44 }
 0x1f7   : > { %13356 = vmatmul.mubr.bf16.gmra.mrb[16].mxu0 %v19910_v23  ;;  %v3466_v23 = vrot.slane %v3465_v12, 4 }
 0x1f8   : > { %13359 = vmatprep.mubr.bf16.mxu0 %v19911_v48  ;;  %v3476_v48 = vrot.slane %v3475_v1, 4  ;;  %v14614_v1 = vld [vmem:[%s19832_s2 + $0x198] sm:$0xff]  }
 0x1f9   : > { %v3471_v41 = vsel %vm15385_vm14, %v3466_v23, %v3470_v21  ;;  %v14619_v23 = vld [vmem:[%s19832_s2 + $0x1c0] sm:$0xff]  }
 0x1fa   : > { %v3481_v34 = vsel %vm15385_vm14, %v3476_v48, %v3480_v24  ;;  %v14617_v24 = vld [vmem:[%s19832_s2 + $0x1b0] sm:$0xff]  }
 0x1fb   : > { %v16279_v45 = vcombine.low %v3471_v41, %v3481_v34  ;;  %v498_v48 = vld [vmem:[#allocation2 + $0xd4] sm:$0x1] }
 0x1fc   : > { %v499_v29 = vsel %vm15098_vm8, 0, %v498_v48  ;;  %vm19749_vm8 = vcmask 523264  }
 0x1fd   : > { %500 = vst [vmem:[#allocation2 + $0xd4] sm:$0x1] %v499_v29  ;;  %v579_v29 = vld [vmem:[#allocation3 + $0x38] sm:$0x1] }
 0x1ff   : > { %13360 = vmatmul.mubr.bf16.gmra.mrb[20].mxu0 %v19912_v39 }
 0x200   : > { %13363 = vmatprep.mubr.bf16.mxu0 %v19913_v31 }
 0x204   : > { %v1708_v34 = vld [vmem:[#allocation2 + $0xd4] sm:$0x1] }
 0x207   : > { %13364 = vmatmul.mubr.bf16.gmra.mrb[24].mxu0 %v15990_v14 }
 0x208   : > { %13367 = vmatprep.mubr.bf16.mxu0 %v16007_v56 }
 0x20f   : > { %13368 = vmatmul.mubr.bf16.gmra.mrb[28].mxu0 %v16279_v45 }
 0x210   : > { %13387 = vmatprep.mubr.bf16.mxu0 %v19897_v38  ;;  %v14615_v38 = vld [vmem:[%s19832_s2 + $0x1a0] sm:$0xff]  }
 0x217   : > { %13388 = vmatmul.mubr.bf16.vlgmr.msra.gmra.mrb[0].mxu0 %v19898_v63 }
 0x218   : > { %13420 = vmatpush3.bf16.msra.mxu0 %v14611_v44  ;;  %13391 = vmatprep.mubr.bf16.mxu0 %v19899_v54  ;;  %v14618_v44 = vld [vmem:[%s19832_s2 + $0x1b8] sm:$0xff]  }
 0x219   : > { %13421 = vmatprep.subr.bf16.mxu0 %v14612_v8 }
 0x21c   : > { %13422 = vmatpush3.bf16.msra.mxu0 %v14612_v8 }
 0x21d   : > { %13423 = vmatprep.subr.bf16.mxu0 %v14613_v7 }
 0x21f   : > { %13392 = vmatmul.mubr.bf16.gmra.mrb[4].mxu0 %v19900_v53 }
 0x220   : > { %13395 = vmatprep.mubr.bf16.mxu0 %v15974_v62  ;;  %13424 = vmatpush3.bf16.msra.mxu0 %v14613_v7 }
 0x221   : > { %13425 = vmatprep.subr.bf16.mxu0 %v14614_v1 }
 0x224   : > { %13426 = vmatpush3.bf16.msra.mxu0 %v14614_v1  ;;  %v4299_v1 = vshll.u32 %v1708_v34, 16 }
 0x225   : > { %13427 = vmatprep.subr.bf16.mxu0 %v14615_v38 }
 0x227   : > { %13396 = vmatmul.mubr.bf16.gmra.mrb[8].mxu0 %v15996_v6 }
 0x228   : > { %13399 = vmatprep.mubr.bf16.mxu0 %v16009_v25  ;;  %13428 = vmatpush3.bf16.msra.mxu0 %v14615_v38 }
 0x229   : > { %13429 = vmatprep.subr.bf16.mxu0 %v14616_v37 }
 0x22c   : > { %13430 = vmatpush3.bf16.msra.mxu0 %v14616_v37 }
 0x22d   : > { %13431 = vmatprep.subr.bf16.mxu0 %v14617_v24 }
 0x22f   : > { %13400 = vmatmul.mubr.bf16.gmra.mrb[12].mxu0 %v16025_v33 }
 0x230   : > { %13403 = vmatprep.mubr.bf16.mxu0 %v16031_v4  ;;  %13432 = vmatpush3.bf16.msra.mxu0 %v14617_v24  ;;  %v4301_v24 = vrot.slane %v4299_v1, 5 }
 0x231   : > { %13433 = vmatprep.subr.bf16.mxu0 %v14618_v44 }
 0x234   : > { %13434 = vmatpush3.bf16.msra.mxu0 %v14618_v44 }
 0x235   : > { %13467 = vmatprep.subr.bf16.mxu0 %v14619_v23 }
 0x237   : > { %13404 = vmatmul.mubr.bf16.gmra.mrb[16].mxu0 %v16039_v19 }
 0x238   : > { %13407 = vmatprep.mubr.bf16.mxu0 %v16048_v22 }
 0x23f   : > { %13408 = vmatmul.mubr.bf16.gmra.mrb[20].mxu0 %v16059_v35 }
 0x240   : > { %13411 = vmatprep.mubr.bf16.mxu0 %v16070_v16 }
 0x247   : > { %13412 = vmatmul.mubr.bf16.gmra.mrb[24].mxu0 %v16076_v2 }
 0x248   : > { %13415 = vmatprep.mubr.bf16.mxu0 %v16085_v49 }
 0x24f   : > { %13416 = vmatmul.mubr.bf16.gmra.mrb[28].mxu0 %v16183_v0 }
 0x250   : > { %13435 = vmatprep.mubr.bf16.mxu0 %v15581_v50  ;;  %v14622_v50 = vld [vmem:[%s19832_s2 + $0x1d8] sm:$0xff]  }
 0x257   : > { %13436 = vmatmul.mubr.bf16.vlgmr.msra.gmra.mrb[0].mxu0 %v15609_v10  ;;  %v14623_v10 = vld [vmem:[%s19832_s2 + $0x1e0] sm:$0xff]  }
 0x258   : > { %13468 = vmatpush3.bf16.msra.mxu0 %v14619_v23  ;;  %13439 = vmatprep.mubr.bf16.mxu0 %v15653_v28  ;;  %v14624_v28 = vld [vmem:[%s19832_s2 + $0x1e8] sm:$0xff]  }
 0x259   : > { %13469 = vmatprep.subr.bf16.mxu0 %v14620_v36 }
 0x25c   : > { %13470 = vmatpush3.bf16.msra.mxu0 %v14620_v36  ;;  %v580_v36 = vsel %vm14882_vm4, 0, %v579_v29 }
 0x25d   : > { %13471 = vmatprep.subr.bf16.mxu0 %v14621_v60  ;;  %581 = vst [vmem:[#allocation3 + $0x38] sm:$0x1] %v580_v36 }
 0x25f   : > { %13440 = vmatmul.mubr.bf16.gmra.mrb[4].mxu0 %v15676_v46  ;;  %v14625_v46 = vld [vmem:[%s19832_s2 + $0x1f0] sm:$0xff]  }
 0x260   : > { %13443 = vmatprep.mubr.bf16.mxu0 %v15721_v42  ;;  %13472 = vmatpush3.bf16.msra.mxu0 %v14621_v60  ;;  %v14626_v42 = vld [vmem:[%s19832_s2 + $0x1f8] sm:$0xff]   ;;  %v576_v60 = vld [vmem:[#allocation3 + $0x2c] sm:$0x1] }
 0x261   : > { %13473 = vmatprep.subr.bf16.mxu0 %v14622_v50 }
 0x264   : > { %13474 = vmatpush3.bf16.msra.mxu0 %v14622_v50  ;;  %v577_v50 = vsel %vm14882_vm4, 0, %v576_v60 }
 0x265   : > { %13475 = vmatprep.subr.bf16.mxu0 %v14623_v10  ;;  %578 = vst [vmem:[#allocation3 + $0x2c] sm:$0x1] %v577_v50 }
 0x267   : > { %13444 = vmatmul.mubr.bf16.gmra.mrb[8].mxu0 %v15741_v58  ;;  %v14628_v58 = vld [vmem:[%s19832_s2 + $0x200] sm:$0xff]  }
 0x268   : > { %13447 = vmatprep.mubr.bf16.mxu0 %v15786_v20  ;;  %13476 = vmatpush3.bf16.msra.mxu0 %v14623_v10  ;;  %v1689_v20 = vld [vmem:[#allocation2 + $0xcc] sm:$0xf]  ;;  %v530_v10 = vld [vmem:[#allocation3 + $0x48] sm:$0x1] }
 0x269   : > { %13477 = vmatprep.subr.bf16.mxu0 %v14624_v28 }
 0x26c   : > { %13478 = vmatpush3.bf16.msra.mxu0 %v14624_v28  ;;  %v531_v28 = vsel %vm15169_vm10, 0, %v530_v10 }
 0x26d   : > { %13479 = vmatprep.subr.bf16.mxu0 %v14625_v46  ;;  %532 = vst [vmem:[#allocation3 + $0x48] sm:$0x1] %v531_v28 }
 0x26f   : > { %13448 = vmatmul.mubr.bf16.gmra.mrb[12].mxu0 %v15803_v43  ;;  %v16363_v43 = vld [vmem:[#allocation2 + $0xd0] sm:$0xf] }
 0x270   : > { %13451 = vmatprep.mubr.bf16.mxu0 %v15849_v59  ;;  %13480 = vmatpush3.bf16.msra.mxu0 %v14625_v46  ;;  %v12249_v59 = vcombine.low %v1689_v20, %v16363_v43  ;;  %v4293_v21 = vshrl.u32 %v16363_v43, 16  ;;  %v4289_v5 = vshll.u32 %v16363_v43, 16  ;;  %v527_v46 = vld [vmem:[#allocation3 + $0x3c] sm:$0x1] }
 0x271   : > { %13481 = vmatprep.subr.bf16.mxu0 %v14626_v42 }
 0x272   : > { %v4291_v15 = vrot.slane %v4289_v5, 5  ;;  %v4295_v41 = vrot.slane %v4293_v21, 4  ;;  %v594_v21 = vld [vmem:[#allocation3 + $0x74] sm:$0x1] }
 0x273   : > { %v595_v5 = vsel %vm14882_vm4, 0, %v594_v21 }
 0x274   : > { %13482 = vmatpush3.bf16.msra.mxu0 %v14626_v42  ;;  %v4296_v7 = vor.u32 %v4295_v41, %v4291_v15  ;;  %v528_v42 = vsel %vm15169_vm10, 0, %v527_v46  ;;  %596 = vst [vmem:[#allocation3 + $0x74] sm:$0x1] %v595_v5 }
 0x275   : > { %13515 = vmatprep.subr.bf16.mxu0 %v14628_v58  ;;  %529 = vst [vmem:[#allocation3 + $0x3c] sm:$0x1] %v528_v42 }
 0x276   : > { %v4297_v37 = vrot.slane %v4296_v7, 4  ;;  %v600_v7 = vld [vmem:[#allocation3 + $0x8c] sm:$0x1] }
 0x277   : > { %13452 = vmatmul.mubr.bf16.gmra.mrb[16].mxu0 %v15865_v3  ;;  %v519_v3 = vsel %vm15169_vm10, 0, %v518_v13  ;;  %v536_v13 = vld [vmem:[#allocation3 + $0x60] sm:$0x1]  ;;  %v601_v1 = vsel %vm14882_vm4, 0, %v600_v7 }
 0x278   : > { %13455 = vmatprep.mubr.bf16.mxu0 %v15905_v17  ;;  %520 = vst [vmem:[#allocation3 + $0x18] sm:$0x1] %v519_v3  ;;  %v14629_v17 = vld [vmem:[%s19832_s2 + $0x208] sm:$0xff]   ;;  %v4302_v44 = vsel %vm15385_vm14, %v4297_v37, %v4301_v24  ;;  %v537_v3 = vsel %vm15169_vm10, 0, %v536_v13  ;;  %602 = vst [vmem:[#allocation3 + $0x8c] sm:$0x1] %v601_v1 }
 0x279   : > { %538 = vst [vmem:[#allocation3 + $0x60] sm:$0x1] %v537_v3  ;;  %v551_v24 = vld [vmem:[#allocation3 + $0x9c] sm:$0x1] }
 0x27f   : > { %13456 = vmatmul.mubr.bf16.gmra.mrb[20].mxu0 %v19892_v9  ;;  %v14631_v9 = vld [vmem:[%s19832_s2 + $0x218] sm:$0xff]  }
 0x280   : > { %13459 = vmatprep.mubr.bf16.mxu0 %v19893_v52  ;;  %v14632_v52 = vld [vmem:[%s19832_s2 + $0x220] sm:$0xff]  }
 0x287   : > { %13460 = vmatmul.mubr.bf16.gmra.mrb[24].mxu0 %v15972_v27  ;;  %v14630_v27 = vld [vmem:[%s19832_s2 + $0x210] sm:$0xff]  }
 0x288   : > { %13463 = vmatprep.mubr.bf16.mxu0 %v16228_v18  ;;  %v14633_v18 = vld [vmem:[%s19832_s2 + $0x228] sm:$0xff]  }
 0x28f   : > { %13464 = vmatmul.mubr.bf16.gmra.mrb[28].mxu0 %v12249_v59 }
 0x290   : > { %13483 = vmatprep.mubr.bf16.mxu0 %v19902_v61  ;;  %v14634_v61 = vld [vmem:[%s19832_s2 + $0x230] sm:$0xff]  }
 0x297   : > { %13484 = vmatmul.mubr.bf16.vlgmr.msra.gmra.mrb[0].mxu0 %v19903_v40  ;;  %v14635_v40 = vld [vmem:[%s19832_s2 + $0x238] sm:$0xff]   ;;  %s19955_s2 = smov 2  }
 0x298   : > { %13516 = vmatpush3.bf16.msra.mxu0 %v14628_v58  ;;  %13487 = vmatprep.mubr.bf16.mxu0 %v19904_v55  ;;  %v19914_v55 = vld [vmem:[#allocation23_spill] sm:$0xff]  ;;  %v585_v58 = vld [vmem:[#allocation3 + $0x50] sm:$0x1] }
 0x299   : > { %13517 = vmatprep.subr.bf16.mxu0 %v14629_v17 }
 0x29c   : > { %13518 = vmatpush3.bf16.msra.mxu0 %v14629_v17  ;;  %v533_v17 = vld [vmem:[#allocation3 + $0x54] sm:$0x1] }
 0x29d   : > { %13519 = vmatprep.subr.bf16.mxu0 %v14630_v27 }
 0x29f   : > { %13488 = vmatmul.mubr.bf16.gmra.mrb[4].mxu0 %v19905_v32  ;;  %v19915_v32 = vld [vmem:[#allocation24_spill] sm:$0xff] }
 0x2a0   : > { %13491 = vmatprep.mubr.bf16.mxu0 %v19906_v47  ;;  %13520 = vmatpush3.bf16.msra.mxu0 %v14630_v27  ;;  %v19916_v47 = vld [vmem:[#allocation26_spill] sm:$0xff]  ;;  %v534_v27 = vsel %vm15169_vm10, 0, %v533_v17 }
 0x2a1   : > { %13521 = vmatprep.subr.bf16.mxu0 %v14631_v9  ;;  %535 = vst [vmem:[#allocation3 + $0x54] sm:$0x1] %v534_v27 }
 0x2a4   : > { %13522 = vmatpush3.bf16.msra.mxu0 %v14631_v9  ;;  %v591_v9 = vld [vmem:[#allocation3 + $0x68] sm:$0x1] }
 0x2a5   : > { %13523 = vmatprep.subr.bf16.mxu0 %v14632_v52 }
 0x2a7   : > { %13492 = vmatmul.mubr.bf16.gmra.mrb[8].mxu0 %v19907_v57  ;;  %v4280_v57 = vshrl.u32 %v1689_v20, 16 }
 0x2a8   : > { %13495 = vmatprep.mubr.bf16.mxu0 %v19908_v30  ;;  %13524 = vmatpush3.bf16.msra.mxu0 %v14632_v52  ;;  %v4283_v30 = vshll.u32 %v1689_v20, 16  ;;  %v586_v20 = vsel %vm14882_vm4, 0, %v585_v58  ;;  %v592_v52 = vsel %vm14882_vm4, 0, %v591_v9 }
 0x2a9   : > { %13525 = vmatprep.subr.bf16.mxu0 %v14633_v18  ;;  %v4282_v12 = vrot.slane %v4280_v57, 4  ;;  %587 = vst [vmem:[#allocation3 + $0x50] sm:$0x1] %v586_v20  ;;  %593 = vst [vmem:[#allocation3 + $0x68] sm:$0x1] %v592_v52 }
 0x2aa   : > { %v4285_v11 = vrot.slane %v4283_v30, 5  ;;  %v597_v57 = vld [vmem:[#allocation3 + $0x80] sm:$0x1] }
 0x2ab   : > { %v598_v30 = vsel %vm14882_vm4, 0, %v597_v57 }
 0x2ac   : > { %13526 = vmatpush3.bf16.msra.mxu0 %v14633_v18  ;;  %v4286_v8 = vor.u32 %v4285_v11, %v4282_v12  ;;  %v588_v18 = vld [vmem:[#allocation3 + $0x5c] sm:$0x1]  ;;  %599 = vst [vmem:[#allocation3 + $0x80] sm:$0x1] %v598_v30  ;;  %v548_v12 = vld [vmem:[#allocation3 + $0x90] sm:$0x1] }
 0x2ad   : > { %13527 = vmatprep.subr.bf16.mxu0 %v14634_v61  ;;  %v549_v11 = vsel %vm15169_vm10, 0, %v548_v12 }
 0x2ae   : > { %v4287_v38 = vrot.slane %v4286_v8, 4  ;;  %550 = vst [vmem:[#allocation3 + $0x90] sm:$0x1] %v549_v11 }
 0x2af   : > { %13496 = vmatmul.mubr.bf16.gmra.mrb[12].mxu0 %v19914_v55 }
 0x2b0   : > { %13499 = vmatprep.mubr.bf16.mxu0 %v19915_v32  ;;  %13528 = vmatpush3.bf16.msra.mxu0 %v14634_v61  ;;  %v589_v61 = vsel %vm14882_vm4, 0, %v588_v18  ;;  %v539_v32 = vld [vmem:[#allocation3 + $0x6c] sm:$0x1] }
 0x2b1   : > { %13529 = vmatprep.subr.bf16.mxu0 %v14635_v40  ;;  %590 = vst [vmem:[#allocation3 + $0x5c] sm:$0x1] %v589_v61 }
 0x2b4   : > { %13530 = vmatpush3.bf16.msra.mxu0 %v14635_v40  ;;  %v542_v40 = vld [vmem:[#allocation3 + $0x78] sm:$0x1] }
 0x2b5   : > { %v543_v55 = vsel %vm15169_vm10, 0, %v542_v40 }
 0x2b6   : > { %544 = vst [vmem:[#allocation3 + $0x78] sm:$0x1] %v543_v55 }
 0x2b7   : > { %13500 = vmatmul.mubr.bf16.gmra.mrb[16].mxu0 %v19916_v47  ;;  %v540_v47 = vsel %vm15169_vm10, 0, %v539_v32 }
 0x2b8   : > { %13503 = vmatprep.mubr.bf16.mxu0 %v19912_v39  ;;  %v4292_v39 = vsel %vm15385_vm14, %v4287_v38, %v4291_v15  ;;  %541 = vst [vmem:[#allocation3 + $0x6c] sm:$0x1] %v540_v47  ;;  %v545_v15 = vld [vmem:[#allocation3 + $0x84] sm:$0x1]  ;;  %v554_v38 = vld [vmem:[#allocation3 + $0xa8] sm:$0x1] }
 0x2b9   : > { %v12274_v23 = vcombine.low %v4292_v39, %v4302_v44  ;;  %v546_v41 = vsel %vm15169_vm10, 0, %v545_v15  ;;  %v555_v37 = vsel %vm15169_vm10, 0, %v554_v38  ;;  %v552_v39 = vsel %vm15169_vm10, 0, %v551_v24  ;;  %v609_v44 = vld [vmem:[#allocation3 + $0xb0] sm:$0x1] }
 0x2ba   : > { %547 = vst [vmem:[#allocation3 + $0x84] sm:$0x1] %v546_v41  ;;  %556 = vst [vmem:[#allocation3 + $0xa8] sm:$0x1] %v555_v37 }
 0x2bb   : > { %553 = vst [vmem:[#allocation3 + $0x9c] sm:$0x1] %v552_v39 }
 0x2bf   : > { %13504 = vmatmul.mubr.bf16.gmra.mrb[20].mxu0 %v19913_v31 }
 0x2c0   : > { %13507 = vmatprep.mubr.bf16.mxu0 %v15990_v14  ;;  %v1726_v14 = vld [vmem:[#allocation2 + $0xcc] sm:$0xe] }
 0x2c7   : > { %13508 = vmatmul.mubr.bf16.gmra.mrb[24].mxu0 %v16007_v56 }
 0x2c8   : > { %13511 = vmatprep.mubr.bf16.mxu0 %v16279_v45  ;;  %v521_v45 = vld [vmem:[#allocation3 + $0x24] sm:$0x1] }
 0x2c9   : > { %v522_v48 = vsel %vm15169_vm10, 0, %v521_v45 }
 0x2ca   : > { %523 = vst [vmem:[#allocation3 + $0x24] sm:$0x1] %v522_v48 }
 0x2cf   : > { %13512 = vmatmul.mubr.bf16.gmra.mrb[28].mxu0 %v12274_v23  ;;  %v610_v23 = vsel %vm14882_vm4, 0, %v609_v44 }
 0x2d0   : > { %13531 = vmatprep.mubr.bf16.mxu0 %v19898_v63  ;;  %611 = vst [vmem:[#allocation3 + $0xb0] sm:$0x1] %v610_v23 }
 0x2d7   : > { %13532 = vmatmul.mubr.bf16.vlgmr.msra.gmra.mrb[0].mxu0 %v19899_v54 }
 0x2d8   : > { %13535 = vmatprep.mubr.bf16.mxu0 %v19900_v53  ;;  %v524_v53 = vld [vmem:[#allocation3 + $0x30] sm:$0x1] }
 0x2df   : > { %13536 = vmatmul.mubr.bf16.gmra.mrb[4].mxu0 %v15974_v62  ;;  %v4569_v62 = vrot.slane %v16363_v43, 5  ;;  %v582_v43 = vld [vmem:[#allocation3 + $0x44] sm:$0x1] }
 0x2e0   : > { %13539 = vmatprep.mubr.bf16.mxu0 %v15996_v6  ;;  %v12283_v6 = vrot.slane %v1726_v14, 9  ;;  %v583_v59 = vsel %vm14882_vm4, 0, %v582_v43 }
 0x2e1   : > { %v4571_v56 = vrot.slane %v4569_v62, 4  ;;  %584 = vst [vmem:[#allocation3 + $0x44] sm:$0x1] %v583_v59 }
 0x2e7   : > { %13540 = vmatmul.mubr.bf16.gmra.mrb[8].mxu0 %v16009_v25  ;;  %v4572_v25 = vrot.slane %v1708_v34, 5  ;;  %v603_v34 = vld [vmem:[#allocation3 + $0x98] sm:$0x1] }
 0x2e8   : > { %13543 = vmatprep.mubr.bf16.mxu0 %v16025_v33  ;;  %v604_v8 = vsel %vm14882_vm4, 0, %v603_v34 }
 0x2e9   : > { %605 = vst [vmem:[#allocation3 + $0x98] sm:$0x1] %v604_v8 }
 0x2ef   : > { %13544 = vmatmul.mubr.bf16.gmra.mrb[12].mxu0 %v16031_v4  ;;  %v4570_v4 = vsel %vm15585_vm12, %v12283_v6, %v4569_v62  ;;  %v606_v62 = vld [vmem:[#allocation3 + $0xa4] sm:$0x1]  ;;  %v560_v6 = vld [vmem:[#allocation3 + $0xc0] sm:$0x1] }
 0x2f0   : > { %13547 = vmatprep.mubr.bf16.mxu0 %v16039_v19  ;;  %v4573_v19 = vsel %vm15585_vm12, %v4571_v56, %v4572_v25  ;;  %v607_v14 = vsel %vm14882_vm4, 0, %v606_v62  ;;  %v561_v56 = vsel %vm15169_vm10, 0, %v560_v6  ;;  %v557_v25 = vld [vmem:[#allocation3 + $0xb4] sm:$0x1] }
 0x2f1   : > { %608 = vst [vmem:[#allocation3 + $0xa4] sm:$0x1] %v607_v14  ;;  %562 = vst [vmem:[#allocation3 + $0xc0] sm:$0x1] %v561_v56 }
 0x2f7   : > { %13548 = vmatmul.mubr.bf16.gmra.mrb[16].mxu0 %v16048_v22  ;;  %v12300_v22 = vcombine.low %v4570_v4, %v4573_v19  ;;  %v558_v4 = vsel %vm15169_vm10, 0, %v557_v25  ;;  %v615_v19 = vld [vmem:[#allocation3 + $0xc8] sm:$0x1] }
 0x2f8   : > { %13551 = vmatprep.mubr.bf16.mxu0 %v16059_v35  ;;  %v515_v35 = vld [vmem:[#allocation3 + $0xc] sm:$0x1]  ;;  %559 = vst [vmem:[#allocation3 + $0xb4] sm:$0x1] %v558_v4 }
 0x2ff   : > { %13552 = vmatmul.mubr.bf16.gmra.mrb[20].mxu0 %v16070_v16  ;;  %v516_v16 = vsel %vm15169_vm10, 0, %v515_v35  ;;  %v612_v35 = vld [vmem:[#allocation3 + $0xbc] sm:$0x1] }
 0x300   : > { %13555 = vmatprep.mubr.bf16.mxu0 %v16076_v2  ;;  %v573_v2 = vld [vmem:[#allocation3 + $0x20] sm:$0x1]  ;;  %517 = vst [vmem:[#allocation3 + $0xc] sm:$0x1] %v516_v16  ;;  %v613_v16 = vsel %vm14882_vm4, 0, %v612_v35 }
 0x301   : > { %v574_v63 = vsel %vm14882_vm4, 0, %v573_v2  ;;  %614 = vst [vmem:[#allocation3 + $0xbc] sm:$0x1] %v613_v16 }
 0x302   : > { %575 = vst [vmem:[#allocation3 + $0x20] sm:$0x1] %v574_v63 }
 0x307   : > { %13556 = vmatmul.mubr.bf16.gmra.mrb[24].mxu0 %v16085_v49  ;;  %v570_v49 = vld [vmem:[#allocation3 + $0x14] sm:$0x1] }
 0x308   : > { %13559 = vmatprep.mubr.bf16.mxu0 %v16183_v0  ;;  %v571_v54 = vsel %vm14882_vm4, 0, %v570_v49  ;;  %v525_v0 = vsel %vm15169_vm10, 0, %v524_v53 }
 0x309   : > { %572 = vst [vmem:[#allocation3 + $0x14] sm:$0x1] %v571_v54  ;;  %526 = vst [vmem:[#allocation3 + $0x30] sm:$0x1] %v525_v0 }
 0x30f   : > { %13560 = vmatmul.mubr.bf16.gmra.mrb[28].mxu0 %v12300_v22  ;;  %v616_v22 = vsel %vm14882_vm4, 0, %v615_v19 }
 0x310   : > { %617 = vst [vmem:[#allocation3 + $0xc8] sm:$0x1] %v616_v22 }
 0x3aa   : > { %v16492_v2 = vpop.f32.mrb[0].mxu0 }
 0x3ab   : > { %v16494_v63 = vpop.f32.mrb[1].mxu0  ;;  %v4910_v0 = vmul.f32 %v16492_v2, %v16492_v2  ;;  %v4842_v60 = vsel %vm19749_vm8, %v16492_v2, 0.0 }
 0x3ac   : > { %v4908_v49 = vmul.f32 %v16494_v63, %v16494_v63  ;;  %v16498_v54 = vpop.f32.mrb[2].mxu0  ;;  %v4839_v45 = vsel %vm19749_vm8, %v16494_v63, 0.0 }
 0x3ad   : > { %v16500_v53 = vpop.f32.mrb[3].mxu0  ;;  %v4911_v10 = vmul.f32 %v16498_v54, %v16498_v54  ;;  %v4943_v58 = vsel %vm19749_vm8, %v4910_v0, 0.0  ;;  %v4844_v20 = vsel %vm19749_vm8, %v16498_v54, 0.0 }
 0x3ae   : > { %v4840_v48 = vsel %vm19749_vm8, %v16500_v53, 0.0  ;;  %v4909_v29 = vmul.f32 %v16500_v53, %v16500_v53  ;;  %v4940_v50 = vsel %vm19749_vm8, %v4908_v49, 0.0 }
 0x3af   : > { %v4841_v36 = vadd.f32 %v4840_v48, %v4839_v45  ;;  %v4945_v17 = vsel %vm19749_vm8, %v4911_v10, 0.0 }
 0x3b0   : > { %v4941_v28 = vsel %vm19749_vm8, %v4909_v29, 0.0 }
 0x3b1   : > { %v4843_v46 = vadd.f32 %v4842_v60, %v4841_v36  ;;  %v4942_v42 = vadd.f32 %v4941_v28, %v4940_v50 }
 0x3b2   : > { %v16519_v43 = vpop.f32.mrb[4].mxu0 }
 0x3b3   : > { %v4944_v59 = vadd.f32 %v4943_v58, %v4942_v42  ;;  %v16521_v13 = vpop.f32.mrb[5].mxu0  ;;  %v4845_v3 = vadd.f32 %v4844_v20, %v4843_v46  ;;  %v4914_v55 = vmul.f32 %v16519_v43, %v16519_v43  ;;  %v4850_v5 = vsel %vm19749_vm8, %v16519_v43, 0.0 }
 0x3b4   : > { %v4846_v27 = vsel %vm19749_vm8, %v16521_v13, 0.0  ;;  %v4912_v9 = vmul.f32 %v16521_v13, %v16521_v13  ;;  %v16528_v52 = vpop.f32.mrb[6].mxu0 }
 0x3b5   : > { %v4847_v18 = vadd.f32 %v4846_v27, %v4845_v3  ;;  %v4946_v61 = vadd.f32 %v4945_v17, %v4944_v59  ;;  %v16530_v40 = vpop.f32.mrb[7].mxu0  ;;  %v4915_v12 = vmul.f32 %v16528_v52, %v16528_v52  ;;  %v4951_v34 = vsel %vm19749_vm8, %v4914_v55, 0.0 }
 0x3b6   : > { %v4947_v32 = vsel %vm19749_vm8, %v4912_v9, 0.0  ;;  %v4848_v47 = vsel %vm19749_vm8, %v16530_v40, 0.0  ;;  %v4913_v57 = vmul.f32 %v16530_v40, %v16530_v40  ;;  %v4852_v8 = vsel %vm19749_vm8, %v16528_v52, 0.0 }
 0x3b7   : > { %v4948_v30 = vadd.f32 %v4947_v32, %v4946_v61  ;;  %v4849_v21 = vadd.f32 %v4848_v47, %v4847_v18  ;;  %v4953_v24 = vsel %vm19749_vm8, %v4915_v12, 0.0 }
 0x3b8   : > { %v4949_v11 = vsel %vm19749_vm8, %v4913_v57, 0.0 }
 0x3b9   : > { %v4851_v15 = vadd.f32 %v4850_v5, %v4849_v21  ;;  %v4950_v41 = vadd.f32 %v4949_v11, %v4948_v30 }
 0x3ba   : > { %v16547_v7 = vpop.f32.mrb[8].mxu0 }
 0x3bb   : > { %v4952_v1 = vadd.f32 %v4951_v34, %v4950_v41  ;;  %v16549_v38 = vpop.f32.mrb[9].mxu0  ;;  %v4853_v37 = vadd.f32 %v4852_v8, %v4851_v15  ;;  %v4918_v56 = vmul.f32 %v16547_v7, %v16547_v7  ;;  %v4858_v16 = vsel %vm19749_vm8, %v16547_v7, 0.0 }
 0x3bc   : > { %v4854_v39 = vsel %vm19749_vm8, %v16549_v38, 0.0  ;;  %v4916_v44 = vmul.f32 %v16549_v38, %v16549_v38  ;;  %v16556_v23 = vpop.f32.mrb[10].mxu0 }
 0x3bd   : > { %v4855_v62 = vadd.f32 %v4854_v39, %v4853_v37  ;;  %v4954_v14 = vadd.f32 %v4953_v24, %v4952_v1  ;;  %v16558_v6 = vpop.f32.mrb[11].mxu0  ;;  %v4919_v49 = vmul.f32 %v16556_v23, %v16556_v23  ;;  %v4959_v29 = vsel %vm19749_vm8, %v4918_v56, 0.0 }
 0x3be   : > { %v4955_v25 = vsel %vm19749_vm8, %v4916_v44, 0.0  ;;  %v4856_v4 = vsel %vm19749_vm8, %v16558_v6, 0.0  ;;  %v4917_v19 = vmul.f32 %v16558_v6, %v16558_v6  ;;  %v4860_v36 = vsel %vm19749_vm8, %v16556_v23, 0.0 }
 0x3bf   : > { %v4956_v22 = vadd.f32 %v4955_v25, %v4954_v14  ;;  %v4857_v35 = vadd.f32 %v4856_v4, %v4855_v62  ;;  %v4961_v46 = vsel %vm19749_vm8, %v4919_v49, 0.0 }
 0x3c0   : > { %v4957_v0 = vsel %vm19749_vm8, %v4917_v19, 0.0 }
 0x3c1   : > { %v4859_v45 = vadd.f32 %v4858_v16, %v4857_v35  ;;  %v4958_v48 = vadd.f32 %v4957_v0, %v4956_v22 }
 0x3c2   : > { %v16575_v60 = vpop.f32.mrb[12].mxu0 }
 0x3c3   : > { %v4960_v50 = vadd.f32 %v4959_v29, %v4958_v48  ;;  %v16577_v10 = vpop.f32.mrb[13].mxu0  ;;  %v4861_v28 = vadd.f32 %v4860_v36, %v4859_v45  ;;  %v4922_v27 = vmul.f32 %v16575_v60, %v16575_v60  ;;  %v4866_v47 = vsel %vm19749_vm8, %v16575_v60, 0.0 }
 0x3c4   : > { %v4862_v42 = vsel %vm19749_vm8, %v16577_v10, 0.0  ;;  %v4920_v58 = vmul.f32 %v16577_v10, %v16577_v10  ;;  %v16584_v20 = vpop.f32.mrb[14].mxu0 }
 0x3c5   : > { %19919 = vst [vmem:[#allocation27_spill] sm:$0xff] %v16584_v20  ;;  %v4863_v59 = vadd.f32 %v4862_v42, %v4861_v28  ;;  %v4962_v3 = vadd.f32 %v4961_v46, %v4960_v50  ;;  %v16586_v17 = vpop.f32.mrb[15].mxu0  ;;  %v4923_v57 = vmul.f32 %v16584_v20, %v16584_v20  ;;  %v4967_v12 = vsel %vm19749_vm8, %v4922_v27, 0.0 }
 0x3c6   : > { %v4963_v9 = vsel %vm19749_vm8, %v4920_v58, 0.0  ;;  %v4864_v18 = vsel %vm19749_vm8, %v16586_v17, 0.0  ;;  %v4921_v61 = vmul.f32 %v16586_v17, %v16586_v17  ;;  %v4868_v11 = vsel %vm19749_vm8, %v16584_v20, 0.0 }
 0x3c7   : > { %v4964_v55 = vadd.f32 %v4963_v9, %v4962_v3  ;;  %v4865_v32 = vadd.f32 %v4864_v18, %v4863_v59  ;;  %v4969_v1 = vsel %vm19749_vm8, %v4923_v57, 0.0 }
 0x3c8   : > { %v4965_v30 = vsel %vm19749_vm8, %v4921_v61, 0.0 }
 0x3c9   : > { %v4867_v21 = vadd.f32 %v4866_v47, %v4865_v32  ;;  %v4966_v5 = vadd.f32 %v4965_v30, %v4964_v55 }
 0x3ca   : > { %v16603_v15 = vpop.f32.mrb[16].mxu0 }
 0x3cb   : > { %19920 = vst [vmem:[#allocation30_spill] sm:$0xff] %v16603_v15  ;;  %v4968_v41 = vadd.f32 %v4967_v12, %v4966_v5  ;;  %v16605_v34 = vpop.f32.mrb[17].mxu0  ;;  %v4869_v8 = vadd.f32 %v4868_v11, %v4867_v21  ;;  %v4926_v56 = vmul.f32 %v16603_v15, %v16603_v15  ;;  %v4874_v16 = vsel %vm19749_vm8, %v16603_v15, 0.0 }
 0x3cc   : > { %19921 = vst [vmem:[#allocation11_spill] sm:$0xff] %v16605_v34  ;;  %v4870_v37 = vsel %vm19749_vm8, %v16605_v34, 0.0  ;;  %v4924_v24 = vmul.f32 %v16605_v34, %v16605_v34  ;;  %v16612_v39 = vpop.f32.mrb[18].mxu0 }
 0x3cd   : > { %19922 = vst [vmem:[#allocation10_spill] sm:$0xff] %v16612_v39  ;;  %v4871_v44 = vadd.f32 %v4870_v37, %v4869_v8  ;;  %v4970_v62 = vadd.f32 %v4969_v1, %v4968_v41  ;;  %v16614_v14 = vpop.f32.mrb[19].mxu0  ;;  %v4927_v49 = vmul.f32 %v16612_v39, %v16612_v39  ;;  %v4975_v29 = vsel %vm19749_vm8, %v4926_v56, 0.0 }
 0x3ce   : > { %19923 = vst [vmem:[#allocation14_spill] sm:$0xff] %v16614_v14  ;;  %v4971_v25 = vsel %vm19749_vm8, %v4924_v24, 0.0  ;;  %v4872_v4 = vsel %vm19749_vm8, %v16614_v14, 0.0  ;;  %v4925_v19 = vmul.f32 %v16614_v14, %v16614_v14  ;;  %v4876_v36 = vsel %vm19749_vm8, %v16612_v39, 0.0 }
 0x3cf   : > { %v4972_v22 = vadd.f32 %v4971_v25, %v4970_v62  ;;  %v4873_v35 = vadd.f32 %v4872_v4, %v4871_v44  ;;  %v4977_v58 = vsel %vm19749_vm8, %v4927_v49, 0.0 }
 0x3d0   : > { %v4973_v0 = vsel %vm19749_vm8, %v4925_v19, 0.0 }
 0x3d1   : > { %v4875_v45 = vadd.f32 %v4874_v16, %v4873_v35  ;;  %v4974_v48 = vadd.f32 %v4973_v0, %v4972_v22 }
 0x3d2   : > { %v16631_v50 = vpop.f32.mrb[20].mxu0 }
 0x3d3   : > { %19924 = vst [vmem:[#allocation21_spill] sm:$0xff] %v16631_v50  ;;  %v4976_v28 = vadd.f32 %v4975_v29, %v4974_v48  ;;  %v16633_v46 = vpop.f32.mrb[21].mxu0  ;;  %v4877_v42 = vadd.f32 %v4876_v36, %v4875_v45  ;;  %v4930_v55 = vmul.f32 %v16631_v50, %v16631_v50  ;;  %v4882_v5 = vsel %vm19749_vm8, %v16631_v50, 0.0 }
 0x3d4   : > { %19925 = vst [vmem:[#allocation25_spill] sm:$0xff] %v16633_v46  ;;  %v4878_v59 = vsel %vm19749_vm8, %v16633_v46, 0.0  ;;  %v4928_v3 = vmul.f32 %v16633_v46, %v16633_v46  ;;  %v16640_v27 = vpop.f32.mrb[22].mxu0 }
 0x3d5   : > { %19926 = vst [vmem:[#allocation28_spill] sm:$0xff] %v16640_v27  ;;  %v4879_v9 = vadd.f32 %v4878_v59, %v4877_v42  ;;  %v4978_v18 = vadd.f32 %v4977_v58, %v4976_v28  ;;  %v16642_v61 = vpop.f32.mrb[23].mxu0  ;;  %v4931_v12 = vmul.f32 %v16640_v27, %v16640_v27  ;;  %v4983_v1 = vsel %vm19749_vm8, %v4930_v55, 0.0 }
 0x3d6   : > { %19927 = vst [vmem:[#allocation13_spill] sm:$0xff] %v16642_v61  ;;  %v4979_v32 = vsel %vm19749_vm8, %v4928_v3, 0.0  ;;  %v4880_v47 = vsel %vm19749_vm8, %v16642_v61, 0.0  ;;  %v4929_v57 = vmul.f32 %v16642_v61, %v16642_v61  ;;  %v4884_v37 = vsel %vm19749_vm8, %v16640_v27, 0.0 }
 0x3d7   : > { %v4980_v30 = vadd.f32 %v4979_v32, %v4978_v18  ;;  %v4881_v21 = vadd.f32 %v4880_v47, %v4879_v9  ;;  %v4985_v25 = vsel %vm19749_vm8, %v4931_v12, 0.0 }
 0x3d8   : > { %v4981_v11 = vsel %vm19749_vm8, %v4929_v57, 0.0 }
 0x3d9   : > { %v4883_v41 = vadd.f32 %v4882_v5, %v4881_v21  ;;  %v4982_v8 = vadd.f32 %v4981_v11, %v4980_v30 }
 0x3da   : > { %v16659_v24 = vpop.f32.mrb[24].mxu0 }
 0x3db   : > { %19928 = vst [vmem:[#allocation15_spill] sm:$0xff] %v16659_v24  ;;  %v4984_v44 = vadd.f32 %v4983_v1, %v4982_v8  ;;  %v16661_v62 = vpop.f32.mrb[25].mxu0  ;;  %v4885_v56 = vadd.f32 %v4884_v37, %v4883_v41  ;;  %v4934_v0 = vmul.f32 %v16659_v24, %v16659_v24  ;;  %v4890_v42 = vsel %vm19749_vm8, %v16659_v24, 0.0 }
 0x3dc   : > { %19929 = vst [vmem:[#allocation16_spill] sm:$0xff] %v16661_v62  ;;  %v4886_v4 = vsel %vm19749_vm8, %v16661_v62, 0.0  ;;  %v4932_v19 = vmul.f32 %v16661_v62, %v16661_v62  ;;  %v16668_v22 = vpop.f32.mrb[26].mxu0 }
 0x3dd   : > { %19930 = vst [vmem:[#allocation17_spill] sm:$0xff] %v16668_v22  ;;  %v4887_v35 = vadd.f32 %v4886_v4, %v4885_v56  ;;  %v4986_v16 = vadd.f32 %v4985_v25, %v4984_v44  ;;  %v16670_v49 = vpop.f32.mrb[27].mxu0  ;;  %v4935_v58 = vmul.f32 %v16668_v22, %v16668_v22  ;;  %v4991_v18 = vsel %vm19749_vm8, %v4934_v0, 0.0 }
 0x3de   : > { %19931 = vst [vmem:[#allocation18_spill] sm:$0xff] %v16670_v49  ;;  %v4987_v45 = vsel %vm19749_vm8, %v4932_v19, 0.0  ;;  %v4888_v48 = vsel %vm19749_vm8, %v16670_v49, 0.0  ;;  %v4933_v29 = vmul.f32 %v16670_v49, %v16670_v49  ;;  %v4892_v55 = vsel %vm19749_vm8, %v16668_v22, 0.0 }
 0x3df   : > { %v4988_v36 = vadd.f32 %v4987_v45, %v4986_v16  ;;  %v4889_v28 = vadd.f32 %v4888_v48, %v4887_v35  ;;  %v4993_v21 = vsel %vm19749_vm8, %v4935_v58, 0.0 }
 0x3e0   : > { %v4989_v59 = vsel %vm19749_vm8, %v4933_v29, 0.0 }
 0x3e1   : > { %v4891_v3 = vadd.f32 %v4890_v42, %v4889_v28  ;;  %v4990_v9 = vadd.f32 %v4989_v59, %v4988_v36 }
 0x3e2   : > { %v16687_v32 = vpop.f32.mrb[28].mxu0 }
 0x3e3   : > { %19932 = vst [vmem:[#allocation19_spill] sm:$0xff] %v16687_v32  ;;  %v4992_v47 = vadd.f32 %v4991_v18, %v4990_v9  ;;  %v16689_v57 = vpop.f32.mrb[29].mxu0  ;;  %v4893_v30 = vadd.f32 %v4892_v55, %v4891_v3  ;;  %v4938_v37 = vmul.f32 %v16687_v32, %v16687_v32  ;;  %v4898_v35 = vsel %vm19749_vm8, %v16687_v32, 0.0 }
 0x3e4   : > { %19933 = vst [vmem:[#allocation20_spill] sm:$0xff] %v16689_v57  ;;  %v4894_v5 = vsel %vm19749_vm8, %v16689_v57, 0.0  ;;  %v4936_v12 = vmul.f32 %v16689_v57, %v16689_v57  ;;  %v16696_v11 = vpop.f32.mrb[30].mxu0 }
 0x3e5   : > { %19934 = vst [vmem:[#allocation22_spill] sm:$0xff] %v16696_v11  ;;  %v4895_v41 = vadd.f32 %v4894_v5, %v4893_v30  ;;  %v4994_v8 = vadd.f32 %v4993_v21, %v4992_v47  ;;  %v16698_v1 = vpop.f32.mrb[31].mxu0  ;;  %v4939_v16 = vmul.f32 %v16696_v11, %v16696_v11  ;;  %v4999_v29 = vsel %vm19749_vm8, %v4938_v37, 0.0 }
 0x3e6   : > { %19935 = vst [vmem:[#allocation29_spill] sm:$0xff] %v16698_v1  ;;  %v4995_v44 = vsel %vm19749_vm8, %v4936_v12, 0.0  ;;  %v4896_v56 = vsel %vm19749_vm8, %v16698_v1, 0.0  ;;  %v4937_v25 = vmul.f32 %v16698_v1, %v16698_v1  ;;  %v4900_v36 = vsel %vm19749_vm8, %v16696_v11, 0.0 }
 0x3e7   : > { %v4996_v4 = vadd.f32 %v4995_v44, %v4994_v8  ;;  %v4897_v19 = vadd.f32 %v4896_v56, %v4895_v41  ;;  %v5001_v58 = vsel %vm19749_vm8, %v4939_v16, 0.0  ;;  %v14759_v16 = vmov 1983009808  }
 0x3e8   : > { %v4997_v0 = vsel %vm19749_vm8, %v4937_v25, 0.0  ;;  %vm19772_vm8 = vcmask 162816  }
 0x3e9   : > { %v4899_v45 = vadd.f32 %v4898_v35, %v4897_v19  ;;  %v4998_v48 = vadd.f32 %v4997_v0, %v4996_v4  ;;  %v5105_v0 = vunpack.c.l.s4 %v14759_v16 }
 0x3eb   : > { %v4901_v28 = vadd.f32 %v4900_v36, %v4899_v45  ;;  %v5000_v42 = vadd.f32 %v4999_v29, %v4998_v48  ;;  %v5107_v45 = vlaneseq  ;;  %v5106_v36 = vunpack.c.0.s8 %v5105_v0 }
 0x3ed   : > { %v4902_v59 = vrot.slane %v4901_v28, 4  ;;  %v5002_v3 = vadd.f32 %v5001_v58, %v5000_v42 }
 0x3ef   : > { %v4903_v9 = vadd.f32 %v4902_v59, %v4901_v28  ;;  %v5003_v21 = vrot.slane %v5002_v3, 4  ;;  %v16844_v28 = vshrl.u32 %v5107_v45, 7 }
 0x3f1   : > { %v4904_v18 = vrot.slane %v4903_v9, 2  ;;  %v5004_v5 = vadd.f32 %v5003_v21, %v5002_v3  ;;  %v16847_v3 = vsub.s32 %v5106_v36, %v16844_v28 }
 0x3f3   : > { %v4905_v55 = vadd.f32 %v4904_v18, %v4903_v9  ;;  %v5005_v12 = vrot.slane %v5004_v5, 2  ;;  %19950 = vst [vmem:[#allocation31_spill] sm:$0xff] %v16847_v3 }
 0x3f5   : > { %v4906_v47 = vrot.slane %v4905_v55, 1  ;;  %v5006_v41 = vadd.f32 %v5005_v12, %v5004_v5 }
 0x3f7   : > { %v16716_v30 = vadd.f32 %v4906_v47, %v4905_v55  ;;  %v5007_v8 = vrot.slane %v5006_v41, 1  ;;  %v14760_v55 = vmov 1934713408  }
 0x3f8   : > { %v5137_v47 = vunpack.c.l.s4 %v14760_v55 }
 0x3f9   : > { %5013 = vrot.lane.b32.xlu1 %v16716_v30, %s19647_s28  ;;  %5010 = vrot.lane.b32.xlu0 %v16716_v30, %s19645_s29  ;;  %v16778_v37 = vadd.f32 %v5007_v8, %v5006_v41 }
 0x3fd   : > { %5019 = vrot.lane.b32.xlu1 %v16716_v30, %s19643_s30  ;;  %5016 = vrot.lane.b32.xlu0 %v16716_v30, %s19641_s11 }
 0x401   : > { %5025 = vrot.lane.b32.xlu1 %v16716_v30, %s19629_s12  ;;  %5022 = vrot.lane.b32.xlu0 %v16716_v30, %s19625_s15 }
 0x405   : > { %5034 = vrot.lane.b32.xlu1 %v16716_v30, %s19631_s16  ;;  %5028 = vrot.lane.b32.xlu0 %v16716_v30, %s19627_s24 }
 0x409   : > { %5040 = vrot.lane.b32.xlu1 %v16716_v30, %s19635_s17  ;;  %5031 = vrot.lane.b32.xlu0 %v16716_v30, %s19633_s18 }
 0x40d   : > { %5046 = vrot.lane.b32.xlu1 %v16716_v30, %s19639_s20  ;;  %5037 = vrot.lane.b32.xlu0 %v16716_v30, %s19637_s19 }
 0x411   : > { %5052 = vrot.lane.b32.xlu1 %v16716_v30, %s19599_s22  ;;  %5043 = vrot.lane.b32.xlu0 %v16716_v30, %s19601_s23  ;;  %s19611_s22 = smov 86   ;;  %s19613_s23 = smov 92  }
 0x415   : > { %5058 = vrot.lane.b32.xlu1 %v16716_v30, %s19603_s21  ;;  %5049 = vrot.lane.b32.xlu0 %v16716_v30, %s19605_s26  ;;  %s19615_s21 = smov 82   ;;  %s19617_s26 = smov 88  }
 0x419   : > { %5064 = vrot.lane.b32.xlu1 %v16716_v30, %s19607_s25  ;;  %5055 = vrot.lane.b32.xlu0 %v16716_v30, %s19609_s27  ;;  %s19619_s25 = smov 78   ;;  %s19621_s27 = smov 84  }
 0x41d   : > { %5070 = vrot.lane.b32.xlu1 %v16716_v30, %s19611_s22  ;;  %5061 = vrot.lane.b32.xlu0 %v16716_v30, %s19613_s23  ;;  %s19623_s22 = smov 74   ;;  %s19651_s23 = smov 80  }
 0x421   : > { %5076 = vrot.lane.b32.xlu1 %v16716_v30, %s19615_s21  ;;  %5067 = vrot.lane.b32.xlu0 %v16716_v30, %s19617_s26  ;;  %s19659_s21 = smov 70   ;;  %s19657_s26 = smov 76  }
 0x425   : > { %5082 = vrot.lane.b32.xlu1 %v16716_v30, %s19619_s25  ;;  %5073 = vrot.lane.b32.xlu0 %v16716_v30, %s19621_s27  ;;  %s19655_s25 = smov 66   ;;  %s19653_s27 = smov 72  }
 0x429   : > { %5088 = vrot.lane.b32.xlu1 %v16716_v30, %s19623_s22  ;;  %5079 = vrot.lane.b32.xlu0 %v16716_v30, %s19651_s23  ;;  %s19649_s22 = smov 68  }
 0x42d   : > { %5094 = vrot.lane.b32.xlu1 %v16716_v30, %s19659_s21  ;;  %5085 = vrot.lane.b32.xlu0 %v16716_v30, %s19657_s26 }
 0x431   : > { %5100 = vrot.lane.b32.xlu1 %v16716_v30, %s19655_s25  ;;  %5091 = vrot.lane.b32.xlu0 %v16716_v30, %s19653_s27 }
 0x435   : > { %5313 = vrot.lane.b32.xlu1 %v16778_v37, %s19645_s29  ;;  %5097 = vrot.lane.b32.xlu0 %v16716_v30, %s19649_s22  ;;  %s19946_s29 = smov 84   ;;  %s19948_s22 = smov 74  }
 0x439   : > { %5319 = vrot.lane.b32.xlu1 %v16778_v37, %s19641_s11  ;;  %5316 = vrot.lane.b32.xlu0 %v16778_v37, %s19647_s28  ;;  %s19944_s11 = smov 88   ;;  %s19947_s28 = smov 78  }
 0x43d   : > { %5325 = vrot.lane.b32.xlu1 %v16778_v37, %s19625_s15  ;;  %5322 = vrot.lane.b32.xlu0 %v16778_v37, %s19643_s30  ;;  %s19936_s15 = smov 104   ;;  %s19945_s30 = smov 82  }
 0x441   : > { %5331 = vrot.lane.b32.xlu1 %v16778_v37, %s19627_s24  ;;  %5328 = vrot.lane.b32.xlu0 %v16778_v37, %s19629_s12  ;;  %s19937_s24 = smov 98   ;;  %s19938_s12 = smov 100  }
 0x445   : > { %5337 = vrot.lane.b32.xlu1 %v16778_v37, %s19631_s16  ;;  %5334 = vrot.lane.b32.xlu0 %v16778_v37, %s19633_s18  ;;  %s19939_s16 = smov 94   ;;  %s19940_s18 = smov 96  }
 0x449   : > { %5343 = vrot.lane.b32.xlu1 %v16778_v37, %s19635_s17  ;;  %5340 = vrot.lane.b32.xlu0 %v16778_v37, %s19637_s19  ;;  %s19941_s17 = smov 90   ;;  %s19942_s19 = smov 92  }
 0x44d   : > { %5349 = vrot.lane.b32.xlu1 %v16778_v37, %s19639_s20  ;;  %5346 = vrot.lane.b32.xlu0 %v16778_v37, %s19936_s15  ;;  %s19943_s20 = smov 86  }
 0x451   : > { %5355 = vrot.lane.b32.xlu1 %v16778_v37, %s19937_s24  ;;  %5352 = vrot.lane.b32.xlu0 %v16778_v37, %s19938_s12 }
 0x455   : > { %5361 = vrot.lane.b32.xlu1 %v16778_v37, %s19939_s16  ;;  %5358 = vrot.lane.b32.xlu0 %v16778_v37, %s19940_s18 }
 0x459   : > { %5367 = vrot.lane.b32.xlu1 %v16778_v37, %s19941_s17  ;;  %5364 = vrot.lane.b32.xlu0 %v16778_v37, %s19942_s19 }
 0x45d   : > { %5373 = vrot.lane.b32.xlu1 %v16778_v37, %s19943_s20  ;;  %5370 = vrot.lane.b32.xlu0 %v16778_v37, %s19944_s11 }
 0x461   : > { %5379 = vrot.lane.b32.xlu1 %v16778_v37, %s19945_s30  ;;  %5376 = vrot.lane.b32.xlu0 %v16778_v37, %s19946_s29 }
 0x465   : > { %5385 = vrot.lane.b32.xlu1 %v16778_v37, %s19947_s28  ;;  %5382 = vrot.lane.b32.xlu0 %v16778_v37, %s19651_s23  ;;  %s19949_s23 = smov 68  }
 0x469   : > { %5391 = vrot.lane.b32.xlu1 %v16778_v37, %s19948_s22  ;;  %5388 = vrot.lane.b32.xlu0 %v16778_v37, %s19657_s26  ;;  %s19665_s26 = smov 32  }
 0x46b   : > { %v5014_v44 = vpop.permute.xlu1 %5013  ;;  %v5011_v56 = vpop.permute.xlu0 %5010 }
 0x46c   : > { %v5103_v21 = vcombine.low %v16716_v30, %v5014_v44 }
 0x46d   : > { %5397 = vrot.lane.b32.xlu1 %v16778_v37, %s19659_s21  ;;  %5394 = vrot.lane.b32.xlu0 %v16778_v37, %s19653_s27  ;;  %s19661_s27 = smov 2   ;;  %s19667_s21 = smov 4  }
 0x46e   : > { %v5110_v45 = vrot.slane %v5103_v21, %v16847_v3 }
 0x46f   : > { %v5020_v25 = vpop.permute.xlu1 %5019  ;;  %v5017_v4 = vpop.permute.xlu0 %5016 }
 0x470   : > { %v5111_v9 = vcombine.low %v5011_v56, %v5017_v4 }
 0x471   : > { %5403 = vrot.lane.b32.xlu1 %v16778_v37, %s19655_s25  ;;  %5400 = vrot.lane.b32.xlu0 %v16778_v37, %s19949_s23  ;;  %s19663_s25 = smov 16  }
 0x472   : > { %v5118_v8 = vrot.slane %v5111_v9, %v16847_v3 }
 0x473   : > { %v5026_v19 = vpop.permute.xlu1 %5025  ;;  %v5023_v35 = vpop.permute.xlu0 %5022 }
 0x474   : > { %v5119_v18 = vcombine.low %v5020_v25, %v5026_v19  ;;  %v5135_v4 = vcombine.low %v5110_v45, %v5118_v8 }
 0x476   : > { %v5126_v16 = vrot.slane %v5119_v18, %v16847_v3 }
 0x477   : > { %v5035_v48 = vpop.permute.xlu1 %5034  ;;  %v5029_v29 = vpop.permute.xlu0 %5028 }
 0x478   : > { %v5127_v42 = vcombine.low %v5023_v35, %v5029_v29  ;;  %v5138_v35 = vunpack.c.0.s8 %v5137_v47 }
 0x47a   : > { %v5134_v5 = vrot.slane %v5127_v42, %v16847_v3  ;;  %v16855_v19 = vsub.s32 %v5138_v35, %v16844_v28 }
 0x47b   : > { %v5041_v58 = vpop.permute.xlu1 %5040  ;;  %v5032_v59 = vpop.permute.xlu0 %5031 }
 0x47c   : > { %v5143_v29 = vcombine.low %v5126_v16, %v5134_v5  ;;  %v5160_v25 = vcombine.low %v5035_v48, %v5041_v58  ;;  %19951 = vst [vmem:[#allocation23_spill] sm:$0xff] %v16855_v19  ;;  %v5142_v47 = vrot.slane %v5135_v4, %v16855_v19 }
 0x47e   : > { %v5150_v9 = vrot.slane %v5143_v29, %v16855_v19  ;;  %v5167_v18 = vrot.slane %v5160_v25, %v16847_v3 }
 0x47f   : > { %v5047_v12 = vpop.permute.xlu1 %5046  ;;  %v5038_v41 = vpop.permute.xlu0 %5037 }
 0x480   : > { %v5152_v0 = vcombine.low %v5032_v59, %v5038_v41  ;;  %v5151_v8 = vcombine.low %v5142_v47, %v5150_v9 }
 0x482   : > { %v5159_v30 = vrot.slane %v5152_v0, %v16847_v3  ;;  %v5300_v29 = vsel %vm19756_vm9, %v5151_v8, 0.0 }
 0x483   : > { %v5053_v36 = vpop.permute.xlu1 %5052  ;;  %v5044_v56 = vpop.permute.xlu0 %5043 }
 0x484   : > { %v5176_v44 = vcombine.low %v5047_v12, %v5053_v36  ;;  %v5184_v21 = vcombine.low %v5159_v30, %v5167_v18 }
 0x486   : > { %v5183_v5 = vrot.slane %v5176_v44, %v16847_v3  ;;  %v5191_v12 = vrot.slane %v5184_v21, %v16855_v19 }
 0x487   : > { %v5059_v42 = vpop.permute.xlu1 %5058  ;;  %v5050_v55 = vpop.permute.xlu0 %5049 }
 0x488   : > { %v5168_v59 = vcombine.low %v5044_v56, %v5050_v55 }
 0x48a   : > { %v5175_v48 = vrot.slane %v5168_v59, %v16847_v3 }
 0x48b   : > { %v5065_v58 = vpop.permute.xlu1 %5064  ;;  %v5056_v41 = vpop.permute.xlu0 %5055 }
 0x48c   : > { %v5192_v16 = vcombine.low %v5175_v48, %v5183_v5  ;;  %v5209_v44 = vcombine.low %v5059_v42, %v5065_v58 }
 0x48e   : > { %v5199_v35 = vrot.slane %v5192_v16, %v16855_v19  ;;  %v5216_v47 = vrot.slane %v5209_v44, %v16847_v3 }
 0x48f   : > { %v5071_v0 = vpop.permute.xlu1 %5070  ;;  %v5062_v45 = vpop.permute.xlu0 %5061 }
 0x490   : > { %5301 = vadd.xlane.f32.xlu0 %v5300_v29  ;;  %v5200_v36 = vcombine.low %v5191_v12, %v5199_v35  ;;  %v5201_v56 = vcombine.low %v5056_v41, %v5062_v45 }
 0x492   : > { %v5303_v25 = vsel %vm19756_vm9, %v5200_v36, 0.0  ;;  %v5208_v55 = vrot.slane %v5201_v56, %v16847_v3 }
 0x493   : > { %v5077_v4 = vpop.permute.xlu1 %5076  ;;  %v5068_v30 = vpop.permute.xlu0 %5067 }
 0x494   : > { %5304 = vadd.xlane.f32.xlu0 %v5303_v25  ;;  %v5225_v9 = vcombine.low %v5071_v0, %v5077_v4  ;;  %v5233_v5 = vcombine.low %v5208_v55, %v5216_v47 }
 0x496   : > { %v5232_v48 = vrot.slane %v5225_v9, %v16847_v3  ;;  %v5240_v35 = vrot.slane %v5233_v5, %v16855_v19 }
 0x497   : > { %v5083_v18 = vpop.permute.xlu1 %5082  ;;  %v5074_v59 = vpop.permute.xlu0 %5073 }
 0x498   : > { %v5217_v21 = vcombine.low %v5068_v30, %v5074_v59 }
 0x49a   : > { %v5224_v8 = vrot.slane %v5217_v21, %v16847_v3 }
 0x49b   : > { %v5089_v41 = vpop.permute.xlu1 %5088  ;;  %v5080_v16 = vpop.permute.xlu0 %5079 }
 0x49c   : > { %v5241_v12 = vcombine.low %v5224_v8, %v5232_v48  ;;  %v5258_v4 = vcombine.low %v5083_v18, %v5089_v41 }
 0x49e   : > { %v5248_v42 = vrot.slane %v5241_v12, %v16855_v19  ;;  %v5265_v59 = vrot.slane %v5258_v4, %v16847_v3 }
 0x49f   : > { %v5095_v58 = vpop.permute.xlu1 %5094  ;;  %v5086_v45 = vpop.permute.xlu0 %5085 }
 0x4a0   : > { %v5249_v0 = vcombine.low %v5240_v35, %v5248_v42  ;;  %v5250_v29 = vcombine.low %v5080_v16, %v5086_v45 }
 0x4a2   : > { %v5306_v36 = vsel %vm19756_vm9, %v5249_v0, 0.0  ;;  %v5257_v30 = vrot.slane %v5250_v29, %v16847_v3 }
 0x4a3   : > { %v5101_v56 = vpop.permute.xlu1 %5100  ;;  %5307 = vadd.xlane.f32.xlu1 %v5306_v36  ;;  %v5092_v25 = vpop.permute.xlu0 %5091 }
 0x4a4   : > { %v5274_v44 = vcombine.low %v5095_v58, %v5101_v56  ;;  %v5282_v21 = vcombine.low %v5257_v30, %v5265_v59 }
 0x4a6   : > { %v5281_v5 = vrot.slane %v5274_v44, %v16847_v3  ;;  %v5289_v18 = vrot.slane %v5282_v21, %v16855_v19 }
 0x4a7   : > { %v5314_v55 = vpop.permute.xlu1 %5313  ;;  %v5098_v9 = vpop.permute.xlu0 %5097 }
 0x4a8   : > { %v5266_v47 = vcombine.low %v5092_v25, %v5098_v9 }
 0x4aa   : > { %v5273_v48 = vrot.slane %v5266_v47, %v16847_v3 }
 0x4ab   : > { %v5320_v8 = vpop.permute.xlu1 %5319  ;;  %v5317_v16 = vpop.permute.xlu0 %5316 }
 0x4ac   : > { %v5290_v12 = vcombine.low %v5273_v48, %v5281_v5  ;;  %v5414_v35 = vcombine.low %v5314_v55, %v5320_v8  ;;  %v5406_v42 = vcombine.low %v16778_v37, %v5317_v16 }
 0x4ae   : > { %v5297_v41 = vrot.slane %v5290_v12, %v16855_v19  ;;  %v5421_v29 = vrot.slane %v5414_v35, %v16847_v3  ;;  %v5413_v36 = vrot.slane %v5406_v42, %v16847_v3 }
 0x4af   : > { %v5326_v58 = vpop.permute.xlu1 %5325  ;;  %v5323_v45 = vpop.permute.xlu0 %5322 }
 0x4b0   : > { %v5298_v0 = vcombine.low %v5289_v18, %v5297_v41  ;;  %v5438_v55 = vcombine.low %v5413_v36, %v5421_v29 }
 0x4b2   : > { %v5309_v56 = vsel %vm19756_vm9, %v5298_v0, 0.0  ;;  %v5445_v5 = vrot.slane %v5438_v55, %v16855_v19 }
 0x4b3   : > { %v5332_v25 = vpop.permute.xlu1 %5331  ;;  %5310 = vadd.xlane.f32.xlu1 %v5309_v56  ;;  %v5329_v4 = vpop.permute.xlu0 %5328 }
 0x4b4   : > { %v5430_v30 = vcombine.low %v5326_v58, %v5332_v25  ;;  %v5422_v44 = vcombine.low %v5323_v45, %v5329_v4 }
 0x4b6   : > { %v5437_v37 = vrot.slane %v5430_v30, %v16847_v3  ;;  %v5429_v9 = vrot.slane %v5422_v44, %v16847_v3 }
 0x4b7   : > { %v5338_v59 = vpop.permute.xlu1 %5337  ;;  %v5335_v47 = vpop.permute.xlu0 %5334 }
 0x4b8   : > { %v5446_v21 = vcombine.low %v5429_v9, %v5437_v37 }
 0x4ba   : > { %v5453_v48 = vrot.slane %v5446_v21, %v16855_v19 }
 0x4bb   : > { %v5344_v8 = vpop.permute.xlu1 %5343  ;;  %v5341_v16 = vpop.permute.xlu0 %5340 }
 0x4bc   : > { %v5454_v12 = vcombine.low %v5445_v5, %v5453_v48  ;;  %v5463_v35 = vcombine.low %v5338_v59, %v5344_v8  ;;  %v5455_v42 = vcombine.low %v5335_v47, %v5341_v16 }
 0x4be   : > { %v5602_v18 = vsel %vm19756_vm9, %v5454_v12, 0.0  ;;  %v5470_v45 = vrot.slane %v5463_v35, %v16847_v3  ;;  %v5462_v0 = vrot.slane %v5455_v42, %v16847_v3 }
 0x4bf   : > { %v5350_v41 = vpop.permute.xlu1 %5349  ;;  %5603 = vadd.xlane.f32.xlu1 %v5602_v18  ;;  %v5347_v58 = vpop.permute.xlu0 %5346 }
 0x4c0   : > { %v5487_v4 = vcombine.low %v5462_v0, %v5470_v45 }
 0x4c2   : > { %v5494_v59 = vrot.slane %v5487_v4, %v16855_v19 }
 0x4c3   : > { %v5356_v29 = vpop.permute.xlu1 %5355  ;;  %v5353_v36 = vpop.permute.xlu0 %5352 }
 0x4c4   : > { %v5479_v56 = vcombine.low %v5350_v41, %v5356_v29  ;;  %v5471_v25 = vcombine.low %v5347_v58, %v5353_v36 }
 0x4c6   : > { %v5486_v30 = vrot.slane %v5479_v56, %v16847_v3  ;;  %v5478_v44 = vrot.slane %v5471_v25, %v16847_v3 }
 0x4c7   : > { %v5362_v55 = vpop.permute.xlu1 %5361  ;;  %v5359_v37 = vpop.permute.xlu0 %5358 }
 0x4c8   : > { %v5495_v9 = vcombine.low %v5478_v44, %v5486_v30 }
 0x4ca   : > { %v5502_v47 = vrot.slane %v5495_v9, %v16855_v19 }
 0x4cb   : > { %v5368_v21 = vpop.permute.xlu1 %5367  ;;  %v5365_v5 = vpop.permute.xlu0 %5364 }
 0x4cc   : > { %v5503_v48 = vcombine.low %v5494_v59, %v5502_v47  ;;  %v5512_v8 = vcombine.low %v5362_v55, %v5368_v21  ;;  %v5504_v16 = vcombine.low %v5359_v37, %v5365_v5 }
 0x4ce   : > { %v5605_v12 = vsel %vm19756_vm9, %v5503_v48, 0.0  ;;  %v5519_v18 = vrot.slane %v5512_v8, %v16847_v3  ;;  %v5511_v41 = vrot.slane %v5504_v16, %v16847_v3 }
 0x4cf   : > { %v5374_v35 = vpop.permute.xlu1 %5373  ;;  %5606 = vadd.xlane.f32.xlu0 %v5605_v12  ;;  %v5371_v42 = vpop.permute.xlu0 %5370 }
 0x4d0   : > { %v5536_v36 = vcombine.low %v5511_v41, %v5519_v18 }
 0x4d2   : > { %v5543_v55 = vrot.slane %v5536_v36, %v16855_v19 }
 0x4d3   : > { %v5380_v58 = vpop.permute.xlu1 %5379  ;;  %v5377_v45 = vpop.permute.xlu0 %5376 }
 0x4d4   : > { %v5528_v0 = vcombine.low %v5374_v35, %v5380_v58  ;;  %v5520_v29 = vcombine.low %v5371_v42, %v5377_v45 }
 0x4d6   : > { %v5535_v56 = vrot.slane %v5528_v0, %v16847_v3  ;;  %v5527_v25 = vrot.slane %v5520_v29, %v16847_v3 }
 0x4d7   : > { %v5386_v4 = vpop.permute.xlu1 %5385  ;;  %v5383_v30 = vpop.permute.xlu0 %5382 }
 0x4d8   : > { %v5544_v44 = vcombine.low %v5527_v25, %v5535_v56 }
 0x4da   : > { %v5551_v37 = vrot.slane %v5544_v44, %v16855_v19 }
 0x4db   : > { %v5392_v9 = vpop.permute.xlu1 %5391  ;;  %v5389_v59 = vpop.permute.xlu0 %5388 }
 0x4dc   : > { %v5552_v47 = vcombine.low %v5543_v55, %v5551_v37  ;;  %v5561_v21 = vcombine.low %v5386_v4, %v5392_v9  ;;  %v5553_v5 = vcombine.low %v5383_v30, %v5389_v59 }
 0x4de   : > { %v5608_v48 = vsel %vm19756_vm9, %v5552_v47, 0.0  ;;  %v5568_v12 = vrot.slane %v5561_v21, %v16847_v3  ;;  %v5560_v35 = vrot.slane %v5553_v5, %v16847_v3  ;;  %v19730_v5 = vmov 0.0  }
 0x4df   : > { %v5398_v8 = vpop.permute.xlu1 %5397  ;;  %5609 = vadd.xlane.f32.xlu0 %v5608_v48  ;;  %v5395_v16 = vpop.permute.xlu0 %5394 }
 0x4e0   : > { %v5585_v45 = vcombine.low %v5560_v35, %v5568_v12 }
 0x4e2   : > { %v5592_v56 = vrot.slane %v5585_v45, %v16855_v19 }
 0x4e3   : > { %v5404_v42 = vpop.permute.xlu1 %5403  ;;  %v5401_v18 = vpop.permute.xlu0 %5400 }
 0x4e4   : > { %v5577_v41 = vcombine.low %v5398_v8, %v5404_v42  ;;  %v5569_v58 = vcombine.low %v5395_v16, %v5401_v18 }
 0x4e6   : > { %v5584_v0 = vrot.slane %v5577_v41, %v16847_v3  ;;  %v5576_v29 = vrot.slane %v5569_v58, %v16847_v3 }
 0x4e8   : > { %v5593_v36 = vcombine.low %v5576_v29, %v5584_v0 }
 0x4ea   : > { %v5600_v25 = vrot.slane %v5593_v36, %v16855_v19 }
 0x4ec   : > { %v5601_v4 = vcombine.low %v5592_v56, %v5600_v25 }
 0x4ee   : > { %v5611_v30 = vsel %vm19756_vm9, %v5601_v4, 0.0 }
 0x4ef   : > { %5612 = vadd.xlane.f32.xlu0 %v5611_v30 }
 0x51d   : > { %v5302_v44 = vpop.xlane.xlu0 %5301 }
 0x51e   : > { %v16910_v55 = vmul.f32 0.001953125, %v5302_v44 }
 0x520   : > { %v5650_v37 = vrot.slane %v16910_v55, %v16847_v3  ;;  %v5643_v42 = vcombine.high %v16910_v55, %v19730_v5 }
 0x521   : > { %v5305_v9 = vpop.xlane.xlu0 %5304 }
 0x522   : > { %v16915_v59 = vrot.slane %v5650_v37, %v16855_v19  ;;  %v5616_v47 = vmul.f32 0.001953125, %v5305_v9  ;;  %v5658_v18 = vcombine.high %v5650_v37, %v19730_v5  ;;  %v5657_v58 = vrot.slane %v5643_v42, %v16847_v3 }
 0x524   : > { %v5699_v21 = vrot.slane %v5616_v47, %v16847_v3  ;;  %v5688_v48 = vcombine.high %v16915_v59, %v19730_v5  ;;  %v5672_v45 = vrot.slane %v5658_v18, %v16855_v19  ;;  %v5680_v0 = vrot.slane %v5657_v58, %v16855_v19 }
 0x525   : > { %v5692_v29 = vcombine.high %v5616_v47, %v19730_v5 }
 0x526   : > { %5840 = vrot.lane.b32.xlu1 %v5688_v48, %s19661_s27  ;;  %v5714_v8 = vrot.slane %v5699_v21, %v16855_v19  ;;  %s19675_s27 = smov 8   ;;  %v5707_v36 = vcombine.high %v5699_v21, %v19730_v5 }
 0x527   : > { %v5706_v25 = vrot.slane %v5692_v29, %v16847_v3 }
 0x528   : > { %5868 = vrot.lane.b32.xlu0 %v5714_v8, %s19663_s25  ;;  %v5737_v56 = vcombine.high %v5714_v8, %v19730_v5  ;;  %s19669_s25 = smov 18   ;;  %v5721_v4 = vrot.slane %v5707_v36, %v16855_v19  ;;  %v5690_v36 = vcombine.high %v5680_v0, %v19730_v5 }
 0x529   : > { %v5729_v30 = vrot.slane %v5706_v25, %v16855_v19 }
 0x530   : > { %v5308_v16 = vpop.xlane.xlu1 %5307 }
 0x531   : > { %v16923_v12 = vmul.f32 0.001953125, %v5308_v16 }
 0x533   : > { %v5748_v35 = vrot.slane %v16923_v12, %v16847_v3  ;;  %v5741_v44 = vcombine.high %v16923_v12, %v19730_v5 }
 0x535   : > { %v5763_v41 = vrot.slane %v5748_v35, %v16855_v19  ;;  %v5756_v37 = vcombine.high %v5748_v35, %v19730_v5  ;;  %v5755_v21 = vrot.slane %v5741_v44, %v16847_v3  ;;  %v5689_v35 = vcombine.high %v5672_v45, %v19730_v5 }
 0x537   : > { %5900 = vrot.lane.b32.xlu0 %v5763_v41, %s19665_s26  ;;  %s19671_s26 = smov 20   ;;  %v5786_v9 = vcombine.high %v5763_v41, %v19730_v5  ;;  %v5770_v48 = vrot.slane %v5756_v37, %v16855_v19  ;;  %v5778_v8 = vrot.slane %v5755_v21, %v16855_v19  ;;  %v5624_v41 = vmul.f32 %v5616_v47, %v5616_v47 }
 0x53b   : > { %5844 = vrot.lane.b32.xlu0 %v5672_v45, %s19667_s21  ;;  %s19673_s21 = smov 24   ;;  %v5623_v45 = vmul.f32 %v16910_v55, %v16910_v55 }
 0x53f   : > { %5852 = vrot.lane.b32.xlu0 %v5680_v0, %s19675_s27  ;;  %s19680_s27 = smov 6   ;;  %v5738_v0 = vcombine.high %v5721_v4, %v19730_v5 }
 0x540   : > { %v5311_v16 = vpop.xlane.xlu1 %5310 }
 0x543   : > { %5872 = vrot.lane.b32.xlu0 %v5737_v56, %s19669_s25  ;;  %s19694_s25 = smov 34   ;;  %v5673_v56 = vcombine.high %v5657_v58, %v19730_v5 }
 0x545   : > { %v5687_v33 = vrot.slane %v5673_v56, %v16855_v19 }
 0x547   : > { %5876 = vrot.lane.b32.xlu0 %v5721_v4, %s19671_s26  ;;  %s19677_s26 = smov 36  }
 0x54b   : > { %5884 = vrot.lane.b32.xlu0 %v5729_v30, %s19673_s21  ;;  %s19682_s21 = smov 40  }
 0x54c   : > { %v5604_v18 = vpop.xlane.xlu1 %5603 }
 0x54d   : > { %v5619_v37 = vmul.f32 0.001953125, %v5604_v18  ;;  %v5722_v18 = vcombine.high %v5706_v25, %v19730_v5 }
 0x54f   : > { %5904 = vrot.lane.b32.xlu0 %v5786_v9, %s19694_s25  ;;  %v5627_v47 = vsub.f32 %v5619_v37, %v5623_v45  ;;  %v5736_v56 = vrot.slane %v5722_v18, %v16855_v19  ;;  %v5787_v37 = vcombine.high %v5770_v48, %v19730_v5  ;;  %v5788_v45 = vcombine.high %v5778_v8, %v19730_v5  ;;  %s19698_s25 = smov 44  }
 0x551   : > { %v5631_v58 = vmax.f32 %v5627_v47, 0.0 }
 0x553   : > { %5908 = vrot.lane.b32.xlu0 %v5770_v48, %s19677_s26  ;;  %s19684_s26 = smov 10   ;;  %v5635_v55 = vadd.f32 1e-05, %v5631_v58  ;;  %v5618_v48 = vmul.f32 0.001953125, %v5311_v16 }
 0x557   : > { %5916 = vrot.lane.b32.xlu0 %v5778_v8, %s19682_s21  ;;  %s19686_s21 = smov 22  }
 0x55b   : > { %5848 = vrot.lane.b32.xlu0 %v5689_v35, %s19680_s27  ;;  %s19690_s27 = smov 12  }
 0x55c   : > { %v5607_v42 = vpop.xlane.xlu0 %5606 }
 0x55d   : > { %v5620_v29 = vmul.f32 0.001953125, %v5607_v42  ;;  %v5739_v42 = vcombine.high %v5729_v30, %v19730_v5 }
 0x55f   : > { %v5628_v44 = vsub.f32 %v5620_v29, %v5624_v41  ;;  %5856 = vrot.lane.b32.xlu0 %v5690_v36, %s19684_s26  ;;  %s19688_s26 = smov 26   ;;  %v5625_v29 = vmul.f32 %v16923_v12, %v16923_v12 }
 0x561   : > { %v5632_v9 = vmax.f32 %v5628_v44, 0.0 }
 0x563   : > { %v5636_v35 = vadd.f32 1e-05, %v5632_v9  ;;  %5860 = vrot.lane.b32.xlu0 %v5687_v33, %s19690_s27  ;;  %s19952_s27 = smov 16  }
 0x565   : > { %14694 = vrsqrt.f32 %v5636_v35  ;;  %v5771_v35 = vcombine.high %v5755_v21, %v19730_v5 }
 0x566   : > { %14696 = vrsqrt.f32 %v5635_v55  ;;  %v5691_v55 = vcombine.high %v5687_v33, %v19730_v5 }
 0x567   : > { %5880 = vrot.lane.b32.xlu0 %v5738_v0, %s19686_s21  ;;  %s19692_s21 = smov 28   ;;  %v5785_v47 = vrot.slane %v5771_v35, %v16855_v19 }
 0x56b   : > { %5888 = vrot.lane.b32.xlu0 %v5739_v42, %s19688_s26  ;;  %s19696_s26 = smov 38   ;;  %v5626_v42 = vmul.f32 %v5618_v48, %v5618_v48 }
 0x56c   : > { %v5610_v41 = vpop.xlane.xlu0 %5609 }
 0x56d   : > { %v5621_v36 = vmul.f32 0.001953125, %v5610_v41 }
 0x56f   : > { %v16973_v4 = vpop.eup %14694  ;;  %v5629_v44 = vsub.f32 %v5621_v36, %v5625_v29  ;;  %5892 = vrot.lane.b32.xlu0 %v5736_v56, %s19692_s21  ;;  %s19700_s21 = smov 42   ;;  %v5740_v36 = vcombine.high %v5736_v56, %v19730_v5  ;;  %v5789_v56 = vcombine.high %v5785_v47, %v19730_v5 }
 0x570   : > { %v16978_v25 = vrot.slane %v16973_v4, %v16847_v3  ;;  %v14697_v0 = vpop.eup %14696 }
 0x571   : > { %v5633_v30 = vmax.f32 %v5629_v44, 0.0  ;;  %v6031_v41 = vrot.slane %v14697_v0, %v16847_v3 }
 0x572   : > { %v16983_v12 = vrot.slane %v16978_v25, %v16855_v19 }
 0x573   : > { %v5637_v9 = vadd.f32 1e-05, %v5633_v30  ;;  %5912 = vrot.lane.b32.xlu0 %v5787_v37, %s19696_s26  ;;  %s19702_s26 = smov 14   ;;  %v6039_v44 = vcombine.high %v6031_v41, %v19730_v5 }
 0x574   : > { %6249 = vrot.lane.b32.xlu1 %v16983_v12, %s19952_s27  ;;  %s20298_s27 = smov 66  }
 0x575   : > { %14698 = vrsqrt.f32 %v5637_v9  ;;  %v17006_v33 = vrot.slane %v6039_v44, %v16855_v19  ;;  %v5797_v9 = vrot.slane %v5618_v48, %v16847_v3 }
 0x577   : > { %5920 = vrot.lane.b32.xlu0 %v5788_v45, %s19700_s21  ;;  %s19953_s21 = smov 32   ;;  %v5812_v45 = vrot.slane %v5797_v9, %v16855_v19 }
 0x57b   : > { %5924 = vrot.lane.b32.xlu0 %v5785_v47, %s19698_s25  ;;  %s19704_s25 = smov 30   ;;  %v17023_v47 = vrot.slane %v6031_v41, %v16855_v19 }
 0x57c   : > { %v5613_v58 = vpop.xlane.xlu0 %5612 }
 0x57d   : > { %v5622_v18 = vmul.f32 0.001953125, %v5613_v58  ;;  %v6069_v44 = vcombine.high %v17023_v47, %v19730_v5 }
 0x57f   : > { %v16995_v8 = vpop.eup %14698  ;;  %v5630_v21 = vsub.f32 %v5622_v18, %v5626_v42  ;;  %5864 = vrot.lane.b32.xlu0 %v5691_v55, %s19702_s26  ;;  %s19954_s26 = smov 4   ;;  %v5805_v42 = vcombine.high %v5797_v9, %v19730_v5  ;;  %v5835_v18 = vcombine.high %v5812_v45, %v19730_v5 }
 0x580   : > { %v6129_v16 = vrot.slane %v16995_v8, %v16847_v3 }
 0x581   : > { %v5634_v29 = vmax.f32 %v5630_v21, 0.0  ;;  %v6024_v21 = vcombine.high %v14697_v0, %v19730_v5 }
 0x582   : > { %v6144_v30 = vrot.slane %v6129_v16, %v16855_v19 }
 0x583   : > { %v5638_v37 = vadd.f32 1e-05, %v5634_v29  ;;  %5896 = vrot.lane.b32.xlu0 %v5740_v36, %s19704_s25  ;;  %s19708_s25 = smov 48   ;;  %v5790_v29 = vcombine.high %v5618_v48, %v19730_v5  ;;  %v5819_v36 = vrot.slane %v5805_v42, %v16855_v19  ;;  %v6073_v42 = vcombine.high %v16973_v4, %v19730_v5 }
 0x584   : > { %6281 = vrot.lane.b32.xlu1 %v6144_v30, %s19953_s21  ;;  %s20297_s21 = smov 76  }
 0x585   : > { %14700 = vrsqrt.f32 %v5638_v37  ;;  %v6038_v37 = vrot.slane %v6024_v21, %v16847_v3  ;;  %v5804_v0 = vrot.slane %v5790_v29, %v16847_v3  ;;  %v5836_v41 = vcombine.high %v5819_v36, %v19730_v5 }
 0x587   : > { %6225 = vrot.lane.b32.xlu0 %v17006_v33, %s19954_s26  ;;  %v6061_v9 = vrot.slane %v6038_v37, %v16855_v19  ;;  %v5827_v48 = vrot.slane %v5804_v0, %v16855_v19  ;;  %v5820_v21 = vcombine.high %v5804_v0, %v19730_v5  ;;  %v6122_v0 = vcombine.high %v16995_v8, %v19730_v5  ;;  %s20296_s26 = smov 70  }
 0x589   : > { %v17056_v4 = vrot.slane %v5820_v21, %v16855_v19 }
 0x58b   : > { %5928 = vrot.lane.b32.xlu0 %v5789_v56, %s19706_s0  ;;  %s19710_s0 = smov 50   ;;  %v6118_v56 = vcombine.high %v16983_v12, %v19730_v5  ;;  %v6167_v12 = vcombine.high %v6144_v30, %v19730_v5 }
 0x58f   : > { %v17014_v35 = vpop.eup %14700  ;;  %5932 = vrot.lane.b32.xlu0 %v5812_v45, %s19708_s25  ;;  %v6088_v45 = vcombine.high %v16978_v25, %v19730_v5 }
 0x590   : > { %v6178_v58 = vrot.slane %v17014_v35, %v16847_v3 }
 0x591   : > { %v6102_v29 = vrot.slane %v6088_v45, %v16855_v19 }
 0x592   : > { %v6193_v55 = vrot.slane %v6178_v58, %v16855_v19  ;;  %v6186_v30 = vcombine.high %v6178_v58, %v19730_v5 }
 0x593   : > { %5936 = vrot.lane.b32.xlu0 %v5835_v18, %s19710_s0  ;;  %s19956_s0 = smov 8   ;;  %v5837_v18 = vcombine.high %v5827_v48, %v19730_v5  ;;  %v6119_v58 = vcombine.high %v6102_v29, %v19730_v5 }
 0x594   : > { %6313 = vrot.lane.b32.xlu1 %v6193_v55, %s19708_s25  ;;  %s19715_s25 = smov 54   ;;  %v6216_v45 = vcombine.high %v6193_v55, %v19730_v5  ;;  %v6200_v8 = vrot.slane %v6186_v30, %v16855_v19 }
 0x596   : > { %v6217_v30 = vcombine.high %v6200_v8, %v19730_v5 }
 0x597   : > { %5940 = vrot.lane.b32.xlu0 %v5819_v36, %s19712_s1  ;;  %s19717_s1 = smov 56   ;;  %v6087_v36 = vrot.slane %v6073_v42, %v16847_v3  ;;  %v6071_v42 = vcombine.high %v6061_v9, %v19730_v5 }
 0x598   : > { %6221 = vrot.lane.b32.xlu1 %v6069_v44, %s19955_s2  ;;  %v6137_v44 = vcombine.high %v6129_v16, %v19730_v5  ;;  %v6070_v16 = vcombine.high %v17006_v33, %v19730_v5  ;;  %s20299_s2 = smov 72  }
 0x599   : > { %v6110_v25 = vrot.slane %v6087_v36, %v16855_v19 }
 0x59a   : > { %v17087_v21 = vpop.permute.xlu0 %5868 }
 0x59b   : > { %5944 = vrot.lane.b32.xlu0 %v5836_v41, %s19715_s25  ;;  %s19720_s25 = smov 58   ;;  %v6151_v41 = vrot.slane %v6137_v44, %v16855_v19  ;;  %v6120_v33 = vcombine.high %v6110_v25, %v19730_v5 }
 0x59c   : > { %6233 = vrot.lane.b32.xlu1 %v6061_v9, %s19956_s0  ;;  %s20295_s0 = smov 80  }
 0x59d   : > { %v6168_v44 = vcombine.high %v6151_v41, %v19730_v5 }
 0x59f   : > { %5948 = vrot.lane.b32.xlu0 %v5827_v48, %s19717_s1  ;;  %s19722_s1 = smov 60   ;;  %v6136_v48 = vrot.slane %v6122_v0, %v16847_v3 }
 0x5a0   : > { %6253 = vrot.lane.b32.xlu1 %v6118_v56, %s19957_s13  ;;  %s20294_s13 = smov 108  }
 0x5a1   : > { %v6159_v56 = vrot.slane %v6136_v48, %v16855_v19 }
 0x5a3   : > { %5952 = vrot.lane.b32.xlu0 %v5837_v18, %s19720_s25  ;;  %s19960_s25 = smov 34   ;;  %v6054_v18 = vcombine.high %v6038_v37, %v19730_v5 }
 0x5a4   : > { %6257 = vrot.lane.b32.xlu1 %v6102_v29, %s19958_s10  ;;  %v6169_v29 = vcombine.high %v6159_v56, %v19730_v5  ;;  %s20293_s10 = smov 102  }
 0x5a5   : > { %v6068_v55 = vrot.slane %v6054_v18, %v16855_v19 }
 0x5a7   : > { %5956 = vrot.lane.b32.xlu0 %v17056_v4, %s19722_s1  ;;  %s19962_s1 = smov 40  }
 0x5a8   : > { %6265 = vrot.lane.b32.xlu1 %v6110_v25, %s19959_s14  ;;  %v6152_v25 = vcombine.high %v6136_v48, %v19730_v5  ;;  %s20292_s14 = smov 112  }
 0x5a9   : > { %v17092_v9 = vpop.permute.xlu0 %5900 }
 0x5ac   : > { %6285 = vrot.lane.b32.xlu1 %v6167_v12, %s19960_s25  ;;  %v6103_v12 = vcombine.high %v6087_v36, %v19730_v5  ;;  %s20291_s25 = smov 106  }
 0x5ad   : > { %v17097_v0 = vpop.permute.xlu0 %5844 }
 0x5ae   : > { %v6117_v37 = vrot.slane %v6103_v12, %v16855_v19 }
 0x5b0   : > { %6289 = vrot.lane.b32.xlu1 %v6151_v41, %s19961_s9  ;;  %s19967_s9 = smov 12   ;;  %v6171_v41 = vcombine.high %v17014_v35, %v19730_v5 }
 0x5b1   : > { %v17103_v36 = vpop.permute.xlu0 %5852 }
 0x5b2   : > { %v6185_v48 = vrot.slane %v6171_v41, %v16847_v3 }
 0x5b4   : > { %6297 = vrot.lane.b32.xlu1 %v6159_v56, %s19962_s1  ;;  %s19966_s1 = smov 10   ;;  %v6072_v56 = vcombine.high %v6068_v55, %v19730_v5  ;;  %v6208_v18 = vrot.slane %v6185_v48, %v16855_v19  ;;  %v6201_v12 = vcombine.high %v6185_v48, %v19730_v5 }
 0x5b6   : > { %v6218_v35 = vcombine.high %v6208_v18, %v19730_v5 }
 0x5b8   : > { %6317 = vrot.lane.b32.xlu1 %v6216_v45, %s19963_s7  ;;  %s19968_s7 = smov 22   ;;  %v6166_v45 = vrot.slane %v6152_v25, %v16855_v19 }
 0x5bc   : > { %6321 = vrot.lane.b32.xlu1 %v6200_v8, %s19964_s6  ;;  %s19969_s6 = smov 26   ;;  %v6121_v8 = vcombine.high %v6117_v37, %v19730_v5 }
 0x5c0   : > { %6229 = vrot.lane.b32.xlu1 %v6070_v16, %s19965_s8  ;;  %v17110_v16 = vpop.permute.xlu0 %5872  ;;  %s20290_s8 = smov 114  }
 0x5c4   : > { %6237 = vrot.lane.b32.xlu1 %v6071_v42, %s19966_s1  ;;  %s19970_s1 = smov 28   ;;  %v17116_v42 = vpop.permute.xlu0 %5876 }
 0x5c8   : > { %6241 = vrot.lane.b32.xlu1 %v6068_v55, %s19967_s9  ;;  %s19971_s9 = smov 38  }
 0x5cc   : > { %6261 = vrot.lane.b32.xlu1 %v6119_v58, %s19968_s7  ;;  %s19972_s7 = smov 42   ;;  %v17121_v58 = vpop.permute.xlu0 %5884 }
 0x5d0   : > { %6269 = vrot.lane.b32.xlu1 %v6120_v33, %s19969_s6  ;;  %s19973_s6 = smov 44   ;;  %v17126_v55 = vpop.permute.xlu0 %5904  ;;  %v6170_v33 = vcombine.high %v6166_v45, %v19730_v5 }
 0x5d4   : > { %6273 = vrot.lane.b32.xlu1 %v6117_v37, %s19970_s1  ;;  %s19977_s1 = smov 30   ;;  %v17132_v37 = vpop.permute.xlu0 %5908 }
 0x5d8   : > { %6293 = vrot.lane.b32.xlu1 %v6168_v44, %s19971_s9  ;;  %s19974_s9 = smov 54   ;;  %v5841_v44 = vpop.permute.xlu1 %5840  ;;  %v17139_v41 = vpop.permute.xlu0 %5916 }
 0x5d9   : > { %v5963_v50 = vsel %vm19756_vm9, %v16915_v59, %v5841_v44 }
 0x5da   : > { %v5965_v61 = vsel %vm19758_vm13, %v5963_v50, %v17097_v0 }
 0x5dc   : > { %6301 = vrot.lane.b32.xlu1 %v6169_v29, %s19972_s7  ;;  %s19975_s7 = smov 14   ;;  %v6215_v29 = vrot.slane %v6201_v12, %v16855_v19 }
 0x5e0   : > { %6305 = vrot.lane.b32.xlu1 %v6166_v45, %s19973_s6  ;;  %s19976_s6 = smov 56  }
 0x5e4   : > { %6325 = vrot.lane.b32.xlu1 %v6217_v30, %s19974_s9  ;;  %s19978_s9 = smov 58   ;;  %v6219_v30 = vcombine.high %v6215_v29, %v19730_v5 }
 0x5e6   : > { %v17135_v25 = vpop.permute.xlu1 %6249 }
 0x5e8   : > { %6245 = vrot.lane.b32.xlu1 %v6072_v56, %s19975_s7  ;;  %s19979_s7 = smov 46   ;;  %v5838_v56 = vcombine.high %v17056_v4, %v19730_v5 }
 0x5ec   : > { %6329 = vrot.lane.b32.xlu1 %v6208_v18, %s19976_s6  ;;  %s19980_s6 = smov 60   ;;  %v5849_v18 = vpop.permute.xlu0 %5848 }
 0x5ed   : > { %v5967_v46 = vsel %vm19759_vm15, %v5965_v61, %v5849_v18 }
 0x5ee   : > { %v5969_v15 = vsel %vm19761_vm1, %v5967_v46, %v17103_v36 }
 0x5f0   : > { %6277 = vrot.lane.b32.xlu1 %v6121_v8, %s19977_s1  ;;  %s20284_s1 = smov 126  }
 0x5f4   : > { %6333 = vrot.lane.b32.xlu1 %v6218_v35, %s19978_s9  ;;  %s19754_s9 = smov 62   ;;  %v5857_v35 = vpop.permute.xlu0 %5856 }
 0x5f5   : > { %v5971_v34 = vsel %vm19762_vm3, %v5969_v15, %v5857_v35 }
 0x5f6   : > { %v17141_v45 = vpop.permute.xlu1 %6281 }
 0x5f8   : > { %6309 = vrot.lane.b32.xlu1 %v6170_v33, %s19979_s7  ;;  %s20286_s7 = smov 122  }
 0x5fc   : > { %6337 = vrot.lane.b32.xlu1 %v6215_v29, %s19980_s6  ;;  %v5861_v29 = vpop.permute.xlu0 %5860  ;;  %s20285_s6 = smov 120  }
 0x5fd   : > { %v5973_v59 = vsel %vm19750_vm0, %v5971_v34, %v5861_v29  ;;  %vm19753_vm0 = vcmask 179200  }
 0x600   : > { %6341 = vrot.lane.b32.xlu1 %v6219_v30, %s19754_s9  ;;  %v5881_v19 = vpop.permute.xlu0 %5880 }
 0x604   : > { %5960 = vrot.lane.b32.xlu1 %v5838_v56, %s19754_s9  ;;  %v5889_v4 = vpop.permute.xlu0 %5888  ;;  %s20288_s9 = smov 118  }
 0x606   : > { %v17146_v48 = vpop.permute.xlu1 %6313 }
 0x608   : > { %v5893_v56 = vpop.permute.xlu0 %5892 }
 0x60a   : > { %v6222_v8 = vpop.permute.xlu1 %6221 }
 0x60c   : > { %v17164_v57 = vpop.permute.xlu0 %5912 }
 0x60e   : > { %v17148_v33 = vpop.permute.xlu1 %6233 }
 0x610   : > { %v17168_v24 = vpop.permute.xlu0 %5920 }
 0x612   : > { %v17150_v12 = vpop.permute.xlu1 %6253 }
 0x614   : > { %v17172_v27 = vpop.permute.xlu0 %5924 }
 0x616   : > { %v17152_v30 = vpop.permute.xlu1 %6257 }
 0x618   : > { %v5865_v14 = vpop.permute.xlu0 %5864 }
 0x619   : > { %v5975_v50 = vsel %vm19751_vm2, %v5973_v59, %v5865_v14  ;;  %vm19771_vm2 = vcmask 195584  }
 0x61a   : > { %v17154_v3 = vpop.permute.xlu1 %6265  ;;  %v5977_v0 = vsel %vm19752_vm6, %v5975_v50, %v17087_v21  ;;  %vm19764_vm6 = vcmask 211968  }
 0x61b   : > { %v5979_v46 = vsel %vm19774_vm7, %v5977_v0, %v17110_v16  ;;  %v512_v16 = vld [vmem:[#allocation3] sm:$0x1]  ;;  %v14637_v0 = vld [vmem:[%s19981_s5 + $0x28] sm:$0xff]  }
 0x61c   : > { %v5897_v44 = vpop.permute.xlu0 %5896  ;;  %v5981_v15 = vsel %vm19772_vm8, %v5979_v46, %v17116_v42  ;;  %v513_v59 = vsel %vm15169_vm10, 0, %v512_v16  ;;  %v6344_v42 = vsel %vm19756_vm9, %v17023_v47, %v6222_v8  ;;  %v567_v46 = vld [vmem:[#allocation3 + $0x8] sm:$0x1]  ;;  %vm19763_vm9 = vcmask 244736  }
 0x61d   : > { %v5983_v14 = vsel %vm19753_vm0, %v5981_v15, %v5881_v19  ;;  %514 = vst [vmem:[#allocation3] sm:$0x1] %v513_v59  ;;  %vm19765_vm0 = vcmask 228352   ;;  %v7014_v15 = vld [vmem:[#allocation3 + $0x4] sm:$0xf]  ;;  %v568_v47 = vsel %vm14882_vm4, 0, %v567_v46 }
 0x61e   : > { %v17156_v11 = vpop.permute.xlu1 %6285  ;;  %v5985_v21 = vsel %vm19771_vm2, %v5983_v14, %v17121_v58  ;;  %v14636_v58 = vld [vmem:[%s19981_s5 + $0x20] sm:$0xff]   ;;  %v7103_v8 = vshll.u32 %v7014_v15, 16  ;;  %569 = vst [vmem:[#allocation3 + $0x8] sm:$0x1] %v568_v47 }
 0x61f   : > { %v5987_v50 = vsel %vm19764_vm6, %v5985_v21, %v5889_v4  ;;  %13563 = vmatprep.subr.bf16.mxu0 %v14636_v58  ;;  %13963 = vmatprep.subr.bf16.mxu1 %v14636_v58  ;;  %v7107_v4 = vshrl.u32 %v7014_v15, 16 }
 0x620   : > { %v6226_v34 = vpop.permute.xlu0 %6225  ;;  %v5989_v21 = vsel %vm19765_vm0, %v5987_v50, %v5893_v56  ;;  %13564 = vmatpush3.bf16.msra.mxu0 %v14636_v58  ;;  %13967 = vmatpush3.bf16.msra.mxu1 %v14636_v58 }
 0x621   : > { %v6345_v14 = vsel %vm19758_vm13, %v6344_v42, %v6226_v34  ;;  %13565 = vmatprep.subr.bf16.mxu0 %v14637_v0  ;;  %13964 = vmatprep.subr.bf16.mxu1 %v14637_v0  ;;  %v14638_v34 = vld [vmem:[%s19981_s5 + $0x30] sm:$0xff]   ;;  %v7105_v42 = vrot.slane %v7103_v8, 5  ;;  %v7109_v46 = vrot.slane %v7107_v4, 4  ;;  %vm19769_vm13 = vcmask 261120  }
 0x622   : > { %v17158_v5 = vpop.permute.xlu1 %6289  ;;  %v5991_v56 = vsel %vm19763_vm9, %v5989_v21, %v5897_v44  ;;  %v14639_v44 = vld [vmem:[%s19981_s5 + $0x38] sm:$0xff]   ;;  %vm19984_vm9 = vcmask 130048  }
 0x623   : > { %v7110_v47 = vor.u32 %v7109_v46, %v7105_v42 }
 0x624   : > { %v17205_v29 = vpop.permute.xlu0 %5928  ;;  %13566 = vmatpush3.bf16.msra.mxu0 %v14637_v0  ;;  %13968 = vmatpush3.bf16.msra.mxu1 %v14637_v0  ;;  %v5993_v0 = vsel %vm19769_vm13, %v5991_v56, %v17092_v9 }
 0x625   : > { %13567 = vmatprep.subr.bf16.mxu0 %v14638_v34  ;;  %13965 = vmatprep.subr.bf16.mxu1 %v14638_v34 }
 0x626   : > { %v17160_v32 = vpop.permute.xlu1 %6297 }
 0x628   : > { %v17224_v16 = vpop.permute.xlu0 %5932  ;;  %13568 = vmatpush3.bf16.msra.mxu0 %v14638_v34  ;;  %13969 = vmatpush3.bf16.msra.mxu1 %v14638_v34  ;;  %v14640_v34 = vld [vmem:[%s19981_s5] sm:$0xff]  }
 0x629   : > { %13569 = vmatprep.subr.bf16.mxu0 %v14639_v44  ;;  %13966 = vmatprep.subr.bf16.mxu1 %v14639_v44 }
 0x62a   : > { %v17162_v1 = vpop.permute.xlu1 %6317 }
 0x62c   : > { %13570 = vmatpush3.bf16.msra.mxu0 %v14639_v44  ;;  %13970 = vmatpush3.bf16.msra.mxu1 %v14639_v44 }
 0x62d   : > { %13603 = vmatprep.subr.bf16.mxu1 %v14640_v34 }
 0x62e   : > { %v17166_v22 = vpop.permute.xlu1 %6321 }
 0x632   : > { %v6230_v49 = vpop.permute.xlu1 %6229 }
 0x633   : > { %v6346_v59 = vsel %vm19759_vm15, %v6345_v14, %v6230_v49  ;;  %v7013_v49 = vld [vmem:[#allocation3] sm:$0xf]  ;;  %vm19982_vm15 = vcmask 97280  }
 0x634   : > { %v6347_v50 = vsel %vm19761_vm1, %v6346_v59, %v17148_v33  ;;  %v7094_v15 = vshrl.u32 %v7013_v49, 16  ;;  %v7097_v14 = vshll.u32 %v7013_v49, 16  ;;  %v17242_v33 = vpop.permute.xlu0 %5936  ;;  %vm19983_vm1 = vcmask 113664   ;;  %v7049_v59 = vld [vmem:[#allocation3 + $0x8] sm:$0x1] }
 0x635   : > { %v7111_v49 = vrot.slane %v7110_v47, 4 }
 0x636   : > { %v17170_v62 = vpop.permute.xlu1 %6237  ;;  %v7099_v21 = vrot.slane %v7097_v14, 5 }
 0x637   : > { %v6348_v58 = vsel %vm19762_vm3, %v6347_v50, %v17170_v62  ;;  %v7096_v62 = vrot.slane %v7094_v15, 4  ;;  %vm19767_vm3 = vcmask 277504  }
 0x638   : > { %v5995_v14 = vsel %vm19767_vm3, %v5993_v0, %v17126_v55 }
 0x639   : > { %v7100_v50 = vor.u32 %v7099_v21, %v7096_v62 }
 0x63a   : > { %v17179_v39 = vpop.permute.xlu1 %6241 }
 0x63b   : > { %v6349_v31 = vsel %vm19982_vm15, %v6348_v58, %v17179_v39  ;;  %v7113_v58 = vshll.u32 %v7049_v59, 16  ;;  %vm19985_vm15 = vcmask 179200   ;;  %v7101_v56 = vrot.slane %v7100_v50, 4 }
 0x63e   : > { %v17184_v20 = vpop.permute.xlu1 %6261 }
 0x642   : > { %v17188_v61 = vpop.permute.xlu1 %6269 }
 0x646   : > { %v17194_v36 = vpop.permute.xlu1 %6273 }
 0x64a   : > { %v17198_v18 = vpop.permute.xlu1 %6293 }
 0x64e   : > { %v17201_v35 = vpop.permute.xlu1 %6301 }
 0x652   : > { %v17212_v19 = vpop.permute.xlu1 %6305 }
 0x656   : > { %v17227_v51 = vpop.permute.xlu1 %6325 }
 0x65a   : > { %v6246_v8 = vpop.permute.xlu1 %6245 }
 0x65b   : > { %v6350_v4 = vsel %vm19983_vm1, %v6349_v31, %v6246_v8  ;;  %vm19986_vm1 = vcmask 244736  }
 0x65c   : > { %v6351_v39 = vsel %vm19984_vm9, %v6350_v4, %v17135_v25  ;;  %v7115_v25 = vrot.slane %v7113_v58, 5  ;;  %vm19766_vm9 = vcmask 293888  }
 0x65d   : > { %v6352_v46 = vsel %vm19774_vm7, %v6351_v39, %v17150_v12  ;;  %v5997_v21 = vsel %vm19766_vm9, %v5995_v14, %v17132_v37  ;;  %vm19776_vm7 = vcmask 490496  }
 0x65e   : > { %v6353_v31 = vsel %vm19772_vm8, %v6352_v46, %v17152_v30  ;;  %v6330_v15 = vpop.permute.xlu1 %6329  ;;  %v5941_v30 = vpop.permute.xlu0 %5940  ;;  %v7116_v55 = vsel %vm15385_vm14, %v7111_v49, %v7115_v25  ;;  %vm19810_vm8 = vcmask 474112  }
 0x65f   : > { %v6354_v9 = vsel %vm19985_vm15, %v6353_v31, %v17184_v20  ;;  %v7106_v20 = vsel %vm15385_vm14, %v7101_v56, %v7105_v42  ;;  %vm19768_vm15 = vcmask 310272   ;;  %v17315_v56 = vsub.s32 0, %v16844_v28 }
 0x660   : > { %v6355_v12 = vsel %vm19771_vm2, %v6354_v9, %v17154_v3  ;;  %v12349_v4 = vcombine.low %v7106_v20, %v7116_v55  ;;  %v5999_v0 = vsel %vm19768_vm15, %v5997_v21, %v17164_v57  ;;  %vm19811_vm2 = vcmask 457728  }
 0x661   : > { %v6356_v47 = vsel %vm19764_vm6, %v6355_v12, %v17188_v61  ;;  %vm19987_vm6 = vcmask 523264   ;;  %19989 = vst [vmem:[#allocation24_spill] sm:$0xff] %v17315_v56 }
 0x662   : > { %v6278_v8 = vpop.permute.xlu1 %6277  ;;  %v6357_v3 = vsel %vm19765_vm0, %v6356_v47, %v17194_v36  ;;  %13571 = vmatprep.mubr.msk.bf16.mxu0 %vm19987_vm6, %v12349_v4  ;;  %v5945_v39 = vpop.permute.xlu0 %5944  ;;  %vm19773_vm0 = vcmask 343040   ;;  %vm6004_vm6 = vcmask 359424  }
 0x663   : > { %v6358_v62 = vsel %vm19986_vm1, %v6357_v3, %v6278_v8  ;;  %vm19770_vm1 = vcmask 326656  }
 0x664   : > { %v6359_v61 = vsel %vm19769_vm13, %v6358_v62, %v17141_v45  ;;  %vm6012_vm13 = vcmask 424960  }
 0x665   : > { %v6360_v42 = vsel %vm19767_vm3, %v6359_v61, %v17156_v11  ;;  %vm6008_vm3 = vcmask 392192  }
 0x666   : > { %v6361_v44 = vsel %vm19766_vm9, %v6360_v42, %v17158_v5  ;;  %v6334_v36 = vpop.permute.xlu1 %6333  ;;  %v6001_v5 = vsel %vm19770_vm1, %v5999_v0, %v17139_v41  ;;  %vm6006_vm9 = vcmask 375808  }
 0x667   : > { %v6362_v37 = vsel %vm19768_vm15, %v6361_v44, %v17198_v18  ;;  %vm6010_vm15 = vcmask 408576  }
 0x668   : > { %v6363_v45 = vsel %vm19770_vm1, %v6362_v37, %v17160_v32  ;;  %v6003_v32 = vsel %vm19773_vm0, %v6001_v5, %v17168_v24  ;;  %vm19812_vm1 = vcmask 441344  }
 0x669   : > { %v6364_v11 = vsel %vm19773_vm0, %v6363_v45, %v17201_v35  ;;  %v5949_v35 = vpop.permute.xlu0 %5948  ;;  %vm19775_vm0 = vcmask 506880  }
 0x66a   : > { %v6310_v59 = vpop.permute.xlu1 %6309  ;;  %v6365_v57 = vsel %vm6004_vm6, %v6364_v11, %v17212_v19  ;;  %v19995_v11 = vld [vmem:[#allocation10_spill] sm:$0xff] }
 0x66b   : > { %v6366_v46 = vsel %vm6006_vm9, %v6365_v57, %v6310_v59  ;;  %v19996_v59 = vld [vmem:[#allocation25_spill] sm:$0xff] }
 0x66c   : > { %v6367_v18 = vsel %vm6008_vm3, %v6366_v46, %v17146_v48  ;;  %v6005_v48 = vsel %vm6004_vm6, %v6003_v32, %v17172_v27  ;;  %v19997_v46 = vld [vmem:[#allocation13_spill] sm:$0xff]  ;;  %v19999_v32 = vld [vmem:[#allocation28_spill] sm:$0xff] }
 0x66d   : > { %v6368_v41 = vsel %vm6010_vm15, %v6367_v18, %v17162_v1  ;;  %v5953_v9 = vpop.permute.xlu0 %5952  ;;  %v19998_v18 = vld [vmem:[#allocation21_spill] sm:$0xff] }
 0x66e   : > { %v6369_v50 = vsel %vm6012_vm13, %v6368_v41, %v17166_v22  ;;  %v6338_v19 = vpop.permute.xlu1 %6337  ;;  %v4836_v22 = vld [vmem:[%s19988_s3] sm:$0x1]  ;;  %s20287_s3 = smov 116  }
 0x66f   : > { %v6370_v49 = vsel %vm19812_vm1, %v6369_v50, %v17227_v51  ;;  %v6007_v51 = vsel %vm6006_vm9, %v6005_v48, %v17205_v29  ;;  %v20001_v50 = vld [vmem:[#allocation18_spill] sm:$0xff] }
 0x670   : > { %v6371_v24 = vsel %vm19811_vm2, %v6370_v49, %v6330_v15  ;;  %v6009_v25 = vsel %vm6008_vm3, %v6007_v51, %v17224_v16  ;;  %v20002_v49 = vld [vmem:[#allocation15_spill] sm:$0xff]  ;;  %v20005_v51 = vld [vmem:[#allocation29_spill] sm:$0xff] }
 0x671   : > { %v6372_v58 = vsel %vm19810_vm8, %v6371_v24, %v6334_v36  ;;  %v6011_v14 = vsel %vm6010_vm15, %v6009_v25, %v17242_v33  ;;  %v5957_v47 = vpop.permute.xlu0 %5956  ;;  %v20003_v24 = vld [vmem:[#allocation17_spill] sm:$0xff]  ;;  %v20007_v25 = vld [vmem:[#allocation22_spill] sm:$0xff] }
 0x672   : > { %v6373_v1 = vsel %vm19776_vm7, %v6372_v58, %v6338_v19  ;;  %v6342_v31 = vpop.permute.xlu1 %6341  ;;  %v6013_v12 = vsel %vm6012_vm13, %v6011_v14, %v5941_v30 }
 0x673   : > { %v6374_v27 = vsel %vm19775_vm0, %v6373_v1, %v6342_v31  ;;  %v6015_v34 = vsel %vm19812_vm1, %v6013_v12, %v5945_v39 }
 0x674   : > { %v6375_v15 = vmul.f32 %v6374_v27, %v4836_v22  ;;  %v6017_v20 = vsel %vm19811_vm2, %v6015_v34, %v5949_v35  ;;  %v20004_v22 = vld [vmem:[#allocation20_spill] sm:$0xff]  ;;  %v20006_v27 = vld [vmem:[#allocation19_spill] sm:$0xff] }
 0x675   : > { %v6019_v28 = vsel %vm19810_vm8, %v6017_v20, %v5953_v9 }
 0x676   : > { %v6381_v29 = vrot.slane %v6375_v15, %v17315_v56  ;;  %v5961_v55 = vpop.permute.xlu1 %5960  ;;  %v6021_v8 = vsel %vm19776_vm7, %v6019_v28, %v5957_v47 }
 0x677   : > { %v6023_v30 = vsel %vm19775_vm0, %v6021_v8, %v5961_v55  ;;  %vm20009_vm0 = vcmask 519168  }
 0x678   : > { %v6382_v3 = vmul.f32 %v6381_v29, %v16494_v63  ;;  %v6383_v16 = vmul.f32 %v6381_v29, %v16500_v53  ;;  %v6384_v33 = vmul.f32 %v16492_v2, %v6381_v29  ;;  %v6385_v4 = vmul.f32 %v16498_v54, %v6381_v29  ;;  %v4837_v2 = vld [vmem:[%s19990_s4] sm:$0x1]  ;;  %vm20010_vm7 = vmmov %vm20009_vm0  ;;  %s20283_s4 = smov 124  }
 0x679   : > { %v6386_v62 = vmul.f32 %v6381_v29, %v16521_v13  ;;  %v6387_v21 = vmul.f32 %v6381_v29, %v16530_v40  ;;  %v6388_v61 = vmul.f32 %v16519_v43, %v6381_v29  ;;  %v6389_v42 = vmul.f32 %v16528_v52, %v6381_v29  ;;  %v19991_v52 = vld [vmem:[#allocation27_spill] sm:$0xff] }
 0x67a   : > { %v6390_v44 = vmul.f32 %v6381_v29, %v16549_v38  ;;  %v6391_v63 = vmul.f32 %v6381_v29, %v16558_v6  ;;  %v6392_v53 = vmul.f32 %v16547_v7, %v6381_v29  ;;  %v6393_v54 = vmul.f32 %v16556_v23, %v6381_v29  ;;  %v19992_v38 = vld [vmem:[#allocation11_spill] sm:$0xff]  ;;  %v19993_v6 = vld [vmem:[#allocation14_spill] sm:$0xff] }
 0x67b   : > { %v6394_v13 = vmul.f32 %v6381_v29, %v16577_v10  ;;  %v6395_v40 = vmul.f32 %v6381_v29, %v16586_v17  ;;  %v6376_v36 = vmul.f32 %v6375_v15, %v6023_v30  ;;  %v6396_v43 = vmul.f32 %v16575_v60, %v6381_v29  ;;  %v19994_v7 = vld [vmem:[#allocation30_spill] sm:$0xff]  ;;  %v20000_v60 = vld [vmem:[#allocation16_spill] sm:$0xff] }
 0x67c   : > { %v6397_v0 = vmul.f32 %v19991_v52, %v6381_v29  ;;  %v6398_v39 = vmul.f32 %v6381_v29, %v19992_v38  ;;  %v6399_v37 = vmul.f32 %v6381_v29, %v19993_v6  ;;  %v6400_v45 = vmul.f32 %v19994_v7, %v6381_v29 }
 0x67d   : > { %v6401_v5 = vmul.f32 %v19995_v11, %v6381_v29  ;;  %v6402_v57 = vmul.f32 %v6381_v29, %v19996_v59  ;;  %v6377_v23 = vsub.f32 %v4837_v2, %v6376_v36  ;;  %v6403_v10 = vmul.f32 %v6381_v29, %v19997_v46 }
 0x67e   : > { %v6404_v17 = vmul.f32 %v19998_v18, %v6381_v29  ;;  %v6405_v35 = vmul.f32 %v19999_v32, %v6381_v29  ;;  %v6406_v41 = vmul.f32 %v6381_v29, %v20000_v60  ;;  %v6407_v19 = vmul.f32 %v6381_v29, %v20001_v50 }
 0x67f   : > { %v6408_v48 = vmul.f32 %v20002_v49, %v6381_v29  ;;  %v6409_v58 = vmul.f32 %v20003_v24, %v6381_v29  ;;  %v6418_v1 = vrot.slane %v6377_v23, %v17315_v56  ;;  %v6410_v31 = vmul.f32 %v6381_v29, %v20004_v22  ;;  %v6964_v56 = vld [vmem:[#allocation3 + $0x78] sm:$0xf] }
 0x680   : > { %v6411_v9 = vmul.f32 %v6381_v29, %v20005_v51  ;;  %v6412_v15 = vmul.f32 %v20006_v27, %v6381_v29  ;;  %v6413_v14 = vmul.f32 %v20007_v25, %v6381_v29 }
 0x681   : > { %v17364_v12 = vadd.f32 %v6418_v1, %v6382_v3  ;;  %v17366_v34 = vadd.f32 %v6418_v1, %v6383_v16  ;;  %v17368_v47 = vadd.f32 %v6418_v1, %v6384_v33  ;;  %v17370_v20 = vadd.f32 %v6418_v1, %v6385_v4 }
 0x682   : > { %v17372_v55 = vadd.f32 %v6418_v1, %v6386_v62  ;;  %v17374_v28 = vadd.f32 %v6418_v1, %v6387_v21  ;;  %v17376_v8 = vadd.f32 %v6418_v1, %v6388_v61  ;;  %v17378_v30 = vadd.f32 %v6418_v1, %v6389_v42 }
 0x683   : > { %v17380_v2 = vadd.f32 %v6418_v1, %v6390_v44  ;;  %v17382_v36 = vadd.f32 %v6418_v1, %v6391_v63  ;;  %v17384_v29 = vadd.f32 %v6418_v1, %v6392_v53  ;;  %v17386_v3 = vadd.f32 %v6418_v1, %v6393_v54 }
 0x684   : > { %v17388_v16 = vadd.f32 %v6418_v1, %v6394_v13  ;;  %v17390_v33 = vadd.f32 %v6418_v1, %v6395_v40  ;;  %v17392_v4 = vadd.f32 %v6418_v1, %v6396_v43  ;;  %v17394_v62 = vadd.f32 %v6418_v1, %v6397_v0 }
 0x685   : > { %v17396_v21 = vadd.f32 %v6418_v1, %v6398_v39  ;;  %v17398_v61 = vadd.f32 %v6418_v1, %v6399_v37  ;;  %v17400_v42 = vadd.f32 %v6418_v1, %v6400_v45  ;;  %v17402_v44 = vadd.f32 %v6418_v1, %v6401_v5 }
 0x686   : > { %v17404_v63 = vadd.f32 %v6418_v1, %v6402_v57  ;;  %v17406_v53 = vadd.f32 %v6418_v1, %v6403_v10  ;;  %v17408_v54 = vadd.f32 %v6418_v1, %v6404_v17  ;;  %v17410_v13 = vadd.f32 %v6418_v1, %v6405_v35 }
 0x687   : > { %v17412_v40 = vadd.f32 %v6418_v1, %v6406_v41  ;;  %v17414_v43 = vadd.f32 %v6418_v1, %v6407_v19  ;;  %v17416_v52 = vadd.f32 %v6418_v1, %v6408_v48  ;;  %v17418_v0 = vadd.f32 %v6418_v1, %v6409_v58 }
 0x688   : > { %v17420_v38 = vadd.f32 %v6418_v1, %v6410_v31  ;;  %v17422_v39 = vadd.f32 %v6418_v1, %v6411_v9  ;;  %v17424_v6 = vadd.f32 %v6418_v1, %v6412_v15  ;;  %v17426_v37 = vadd.f32 %v6418_v1, %v6413_v14 }
 0x689   : > { %v6452_v7 = vmax.f32 %v17364_v12, 0.0  ;;  %v6453_v45 = vmax.f32 %v17366_v34, 0.0  ;;  %v6454_v11 = vmax.f32 %v17368_v47, 0.0  ;;  %v6455_v5 = vmax.f32 %v17370_v20, 0.0 }
 0x68a   : > { %v6456_v59 = vmax.f32 %v17372_v55, 0.0  ;;  %v6457_v57 = vmax.f32 %v17374_v28, 0.0  ;;  %v6458_v23 = vmax.f32 %v17376_v8, 0.0  ;;  %v6459_v46 = vmax.f32 %v17378_v30, 0.0 }
 0x68b   : > { %v6460_v10 = vmax.f32 %v17380_v2, 0.0  ;;  %v6461_v18 = vmax.f32 %v17382_v36, 0.0  ;;  %v6462_v17 = vmax.f32 %v17384_v29, 0.0  ;;  %v6463_v32 = vmax.f32 %v17386_v3, 0.0 }
 0x68c   : > { %v6464_v35 = vmax.f32 %v17388_v16, 0.0  ;;  %v6465_v60 = vmax.f32 %v17390_v33, 0.0  ;;  %v6466_v41 = vmax.f32 %v17392_v4, 0.0  ;;  %v6467_v50 = vmax.f32 %v17394_v62, 0.0 }
 0x68d   : > { %v6468_v19 = vmax.f32 %v17396_v21, 0.0  ;;  %v6469_v49 = vmax.f32 %v17398_v61, 0.0  ;;  %v6470_v48 = vmax.f32 %v17400_v42, 0.0  ;;  %v6471_v24 = vmax.f32 %v17402_v44, 0.0 }
 0x68e   : > { %v6472_v58 = vmax.f32 %v17404_v63, 0.0  ;;  %v6473_v1 = vmax.f32 %v17406_v53, 0.0  ;;  %v6474_v22 = vmax.f32 %v17408_v54, 0.0  ;;  %v6475_v31 = vmax.f32 %v17410_v13, 0.0 }
 0x68f   : > { %v6476_v51 = vmax.f32 %v17412_v40, 0.0  ;;  %v6477_v9 = vmax.f32 %v17414_v43, 0.0  ;;  %v6478_v27 = vmax.f32 %v17416_v52, 0.0  ;;  %v6479_v15 = vmax.f32 %v17418_v0, 0.0 }
 0x690   : > { %v6480_v25 = vmax.f32 %v17420_v38, 0.0  ;;  %v6481_v14 = vmax.f32 %v17422_v39, 0.0  ;;  %v6482_v12 = vmax.f32 %v17424_v6, 0.0  ;;  %v6483_v34 = vmax.f32 %v17426_v37, 0.0 }
 0x691   : > { %v12683_v47 = vpack.c.bf16 %v6452_v7, %v6452_v7  ;;  %v12684_v20 = vpack.c.bf16 %v6453_v45, %v6453_v45  ;;  %v12685_v55 = vpack.c.bf16 %v6454_v11, %v6454_v11  ;;  %v12686_v28 = vpack.c.bf16 %v6455_v5, %v6455_v5 }
 0x692   : > { %v12687_v8 = vpack.c.bf16 %v6456_v59, %v6456_v59  ;;  %v17460_v30 = vpack.c.bf16 %v6457_v57, %v6457_v57  ;;  %v17462_v2 = vpack.c.bf16 %v6458_v23, %v6458_v23  ;;  %v17464_v36 = vpack.c.bf16 %v6459_v46, %v6459_v46 }
 0x693   : > { %v17466_v29 = vpack.c.bf16 %v6460_v10, %v6460_v10  ;;  %v17468_v3 = vpack.c.bf16 %v6461_v18, %v6461_v18  ;;  %v17470_v16 = vpack.c.bf16 %v6462_v17, %v6462_v17  ;;  %v17472_v33 = vpack.c.bf16 %v6463_v32, %v6463_v32 }
 0x694   : > { %v17474_v4 = vpack.c.bf16 %v6464_v35, %v6464_v35  ;;  %v17476_v62 = vpack.c.bf16 %v6465_v60, %v6465_v60  ;;  %v17478_v21 = vpack.c.bf16 %v6466_v41, %v6466_v41  ;;  %v17480_v61 = vpack.c.bf16 %v6467_v50, %v6467_v50 }
 0x695   : > { %v17482_v42 = vpack.c.bf16 %v6468_v19, %v6468_v19  ;;  %v17484_v44 = vpack.c.bf16 %v6469_v49, %v6469_v49  ;;  %v17486_v63 = vpack.c.bf16 %v6470_v48, %v6470_v48  ;;  %v17488_v53 = vpack.c.bf16 %v6471_v24, %v6471_v24 }
 0x696   : > { %v17490_v54 = vpack.c.bf16 %v6472_v58, %v6472_v58  ;;  %v17492_v13 = vpack.c.bf16 %v6473_v1, %v6473_v1  ;;  %v17494_v40 = vpack.c.bf16 %v6474_v22, %v6474_v22  ;;  %v17496_v43 = vpack.c.bf16 %v6475_v31, %v6475_v31 }
 0x697   : > { %v17498_v52 = vpack.c.bf16 %v6476_v51, %v6476_v51  ;;  %v17500_v0 = vpack.c.bf16 %v6477_v9, %v6477_v9  ;;  %v17502_v38 = vpack.c.bf16 %v6478_v27, %v6478_v27  ;;  %v17504_v39 = vpack.c.bf16 %v6479_v15, %v6479_v15  ;;  %v6996_v27 = vld [vmem:[#allocation3 + $0xb0] sm:$0x1] }
 0x698   : > { %v17506_v6 = vpack.c.bf16 %v6480_v25, %v6480_v25  ;;  %v17508_v37 = vpack.c.bf16 %v6481_v14, %v6481_v14  ;;  %v17510_v7 = vpack.c.bf16 %v6482_v12, %v6482_v12  ;;  %v17512_v45 = vpack.c.bf16 %v6483_v34, %v6483_v34 }
 0x699   : > { %v6581_v11 = vshrl.u32 %v12683_v47, 16  ;;  %v6584_v5 = vshll.u32 %v12683_v47, 16  ;;  %v6589_v59 = vshrl.u32 %v12684_v20, 16  ;;  %v6592_v57 = vshll.u32 %v12684_v20, 16 }
 0x69a   : > { %v6598_v23 = vshrl.u32 %v12685_v55, 16  ;;  %v6601_v46 = vshll.u32 %v12685_v55, 16  ;;  %v6606_v10 = vshrl.u32 %v12686_v28, 16  ;;  %v6609_v18 = vshll.u32 %v12686_v28, 16 }
 0x69b   : > { %v6583_v17 = vrot.slane %v6581_v11, 7  ;;  %v17514_v32 = vrot.slane %v6589_v59, 7  ;;  %v6615_v35 = vshrl.u32 %v12687_v8, 16  ;;  %v6618_v60 = vshll.u32 %v12687_v8, 16 }
 0x69c   : > { %v6600_v41 = vrot.slane %v6598_v23, 7  ;;  %v17516_v50 = vrot.slane %v6606_v10, 7  ;;  %v6623_v19 = vshrl.u32 %v17460_v30, 16  ;;  %v6626_v49 = vshll.u32 %v17460_v30, 16 }
 0x69d   : > { %v17520_v48 = vor.u32 %v6584_v5, %v6583_v17  ;;  %v6587_v24 = vrot.slane %v6583_v17, 4  ;;  %v6594_v58 = vor.u32 %v6592_v57, %v17514_v32  ;;  %v6596_v1 = vrot.slane %v17514_v32, 4 }
 0x69e   : > { %v17524_v22 = vor.u32 %v6601_v46, %v6600_v41  ;;  %v6604_v31 = vrot.slane %v6600_v41, 4  ;;  %v6611_v51 = vor.u32 %v6609_v18, %v17516_v50  ;;  %v6617_v25 = vrot.slane %v6615_v35, 7 }
 0x69f   : > { %v6595_v15 = vsel %vm14889_vm5, %v6587_v24, %v6594_v58  ;;  %v17530_v14 = vrot.slane %v6623_v19, 7  ;;  %v6632_v12 = vshrl.u32 %v17462_v2, 16  ;;  %v6635_v47 = vshll.u32 %v17462_v2, 16 }
 0x6a0   : > { %v6612_v34 = vsel %vm14889_vm5, %v6604_v31, %v6611_v51  ;;  %v6640_v20 = vshrl.u32 %v17464_v36, 16  ;;  %v6643_v55 = vshll.u32 %v17464_v36, 16  ;;  %6904 = vst.msk [vmem:[#allocation3 + $0x10] sm:$0xf] %vm20009_vm0, %v6595_v15  ;;  %v17539_v28 = vor.u32 %v6618_v60, %v6617_v25  ;;  %v6950_v60 = vld [vmem:[#allocation3 + $0x60] sm:$0xf] }
 0x6a1   : > { %v6621_v8 = vrot.slane %v6617_v25, 4  ;;  %v6628_v30 = vor.u32 %v6626_v49, %v17530_v14  ;;  %6911 = vst.msk [vmem:[#allocation3 + $0x1c] sm:$0xf] %vm20010_vm7, %v6612_v34  ;;  %v6634_v5 = vrot.slane %v6632_v12, 7  ;;  %v6649_v2 = vshrl.u32 %v17466_v29, 16  ;;  %vm20011_vm7 = vmmov %vm20009_vm0 }
 0x6a2   : > { %v17544_v59 = vrot.slane %v6640_v20, 7  ;;  %v6652_v57 = vshll.u32 %v17466_v29, 16  ;;  %v6657_v23 = vshrl.u32 %v17468_v3, 16  ;;  %v6660_v46 = vshll.u32 %v17468_v3, 16  ;;  %v6957_v12 = vld [vmem:[#allocation3 + $0x6c] sm:$0xf] }
 0x6a3   : > { %v6629_v36 = vsel %vm14889_vm5, %v6621_v8, %v6628_v30  ;;  %v6666_v10 = vshrl.u32 %v17470_v16, 16  ;;  %v17553_v18 = vor.u32 %v6635_v47, %v6634_v5  ;;  %v6638_v17 = vrot.slane %v6634_v5, 4 }
 0x6a4   : > { %v6645_v35 = vor.u32 %v6643_v55, %v17544_v59  ;;  %6918 = vst.msk [vmem:[#allocation3 + $0x28] sm:$0xf] %vm20011_vm7, %v6629_v36  ;;  %v6651_v41 = vrot.slane %v6649_v2, 7  ;;  %v17558_v29 = vrot.slane %v6657_v23, 7  ;;  %v6669_v49 = vshll.u32 %v17470_v16, 16  ;;  %vm20012_vm7 = vmmov %vm20009_vm0 }
 0x6a5   : > { %v6668_v19 = vrot.slane %v6666_v10, 7  ;;  %v6674_v24 = vshrl.u32 %v17472_v33, 16  ;;  %v6677_v58 = vshll.u32 %v17472_v33, 16  ;;  %v6683_v31 = vshrl.u32 %v17474_v4, 16 }
 0x6a6   : > { %v6646_v3 = vsel %vm14889_vm5, %v6638_v17, %v6645_v35  ;;  %v17566_v51 = vor.u32 %v6652_v57, %v6651_v41  ;;  %v6655_v15 = vrot.slane %v6651_v41, 4  ;;  %v6662_v25 = vor.u32 %v6660_v46, %v17558_v29 }
 0x6a7   : > { %6925 = vst.msk [vmem:[#allocation3 + $0x34] sm:$0xf] %vm20009_vm0, %v6646_v3  ;;  %v17571_v34 = vor.u32 %v6669_v49, %v6668_v19  ;;  %v6672_v16 = vrot.slane %v6668_v19, 4  ;;  %v17573_v47 = vrot.slane %v6674_v24, 7  ;;  %v6685_v20 = vrot.slane %v6683_v31, 7 }
 0x6a8   : > { %v6663_v33 = vsel %vm14889_vm5, %v6655_v15, %v6662_v25  ;;  %v6686_v55 = vshll.u32 %v17474_v4, 16  ;;  %v6691_v8 = vshrl.u32 %v17476_v62, 16  ;;  %v6694_v30 = vshll.u32 %v17476_v62, 16  ;;  %v6929_v49 = vld [vmem:[#allocation3 + $0x3c] sm:$0xf] }
 0x6a9   : > { %v6679_v5 = vor.u32 %v6677_v58, %v17573_v47  ;;  %v6689_v57 = vrot.slane %v6685_v20, 4  ;;  %v6700_v36 = vshrl.u32 %v17478_v21, 16  ;;  %6932 = vst.msk [vmem:[#allocation3 + $0x40] sm:$0xf] %vm20012_vm7, %v6663_v33  ;;  %v6703_v10 = vshll.u32 %v17478_v21, 16  ;;  %vm20013_vm7 = vmmov %vm20009_vm0 }
 0x6aa   : > { %v17584_v23 = vor.u32 %v6686_v55, %v6685_v20  ;;  %v17586_v46 = vrot.slane %v6691_v8, 7  ;;  %v6708_v4 = vshrl.u32 %v17480_v61, 16  ;;  %v6711_v35 = vshll.u32 %v17480_v61, 16 }
 0x6ab   : > { %v6680_v62 = vsel %vm14889_vm5, %v6672_v16, %v6679_v5  ;;  %v6702_v17 = vrot.slane %v6700_v36, 7  ;;  %v6717_v41 = vshrl.u32 %v17482_v42, 16  ;;  %v6720_v24 = vshll.u32 %v17482_v42, 16  ;;  %v6919_v16 = vld [vmem:[#allocation3 + $0x2c] sm:$0x1] }
 0x6ac   : > { %v6696_v19 = vor.u32 %v6694_v30, %v17586_v46  ;;  %v17596_v3 = vrot.slane %v6708_v4, 7  ;;  %6939 = vst.msk [vmem:[#allocation3 + $0x4c] sm:$0xf] %vm20009_vm0, %v6680_v62  ;;  %v6725_v15 = vshrl.u32 %v17484_v44, 16  ;;  %v6728_v20 = vshll.u32 %v17484_v44, 16 }
 0x6ad   : > { %v17600_v21 = vor.u32 %v6703_v10, %v6702_v17  ;;  %v6706_v58 = vrot.slane %v6702_v17, 4  ;;  %v6719_v31 = vrot.slane %v6717_v41, 7  ;;  %v6734_v8 = vshrl.u32 %v17486_v63, 16  ;;  %v6926_v10 = vld [vmem:[#allocation3 + $0x38] sm:$0x1] }
 0x6ae   : > { %v6697_v61 = vsel %vm14889_vm5, %v6689_v57, %v6696_v19  ;;  %v6713_v25 = vor.u32 %v6711_v35, %v17596_v3  ;;  %v17610_v55 = vrot.slane %v6725_v15, 7  ;;  %v6737_v5 = vshll.u32 %v17486_v63, 16 }
 0x6af   : > { %v17608_v33 = vor.u32 %v6720_v24, %v6719_v31  ;;  %v6723_v42 = vrot.slane %v6719_v31, 4  ;;  %6946 = vst.msk [vmem:[#allocation3 + $0x58] sm:$0xf] %vm20013_vm7, %v6697_v61  ;;  %v6742_v57 = vshrl.u32 %v17488_v53, 16  ;;  %v6745_v36 = vshll.u32 %v17488_v53, 16  ;;  %vm20014_vm7 = vmmov %vm20009_vm0 }
 0x6b0   : > { %v6714_v30 = vsel %vm14889_vm5, %v6706_v58, %v6713_v25  ;;  %v6730_v44 = vor.u32 %v6728_v20, %v17610_v55  ;;  %v6736_v4 = vrot.slane %v6734_v8, 7  ;;  %v6751_v62 = vshrl.u32 %v17490_v54, 16 }
 0x6b1   : > { %6953 = vst.msk [vmem:[#allocation3 + $0x64] sm:$0xf] %vm20009_vm0, %v6714_v30  ;;  %v17623_v17 = vrot.slane %v6742_v57, 7  ;;  %v6754_v35 = vshll.u32 %v17490_v54, 16  ;;  %v6759_v41 = vshrl.u32 %v17492_v13, 16  ;;  %v6762_v63 = vshll.u32 %v17492_v13, 16 }
 0x6b2   : > { %v6731_v53 = vsel %vm14889_vm5, %v6723_v42, %v6730_v44  ;;  %v17630_v19 = vor.u32 %v6737_v5, %v6736_v4  ;;  %v6740_v24 = vrot.slane %v6736_v4, 4  ;;  %v6753_v58 = vrot.slane %v6751_v62, 7 }
 0x6b3   : > { %v6747_v31 = vor.u32 %v6745_v36, %v17623_v17  ;;  %v17634_v61 = vrot.slane %v6759_v41, 7  ;;  %v6768_v25 = vshrl.u32 %v17494_v40, 16  ;;  %6960 = vst.msk [vmem:[#allocation3 + $0x70] sm:$0xf] %vm20014_vm7, %v6731_v53  ;;  %v6771_v20 = vshll.u32 %v17494_v40, 16  ;;  %vm20015_vm7 = vmmov %vm20009_vm0 }
 0x6b4   : > { %v17638_v54 = vor.u32 %v6754_v35, %v6753_v58  ;;  %v6757_v13 = vrot.slane %v6753_v58, 4  ;;  %v6776_v42 = vshrl.u32 %v17496_v43, 16  ;;  %v6779_v44 = vshll.u32 %v17496_v43, 16 }
 0x6b5   : > { %v6748_v8 = vsel %vm14889_vm5, %v6740_v24, %v6747_v31  ;;  %v6764_v30 = vor.u32 %v6762_v63, %v17634_v61  ;;  %v6770_v57 = vrot.slane %v6768_v25, 7  ;;  %v6785_v4 = vshrl.u32 %v17498_v52, 16 }
 0x6b6   : > { %v17646_v36 = vrot.slane %v6776_v42, 7  ;;  %v6788_v62 = vshll.u32 %v17498_v52, 16  ;;  %6967 = vst.msk [vmem:[#allocation3 + $0x7c] sm:$0xf] %vm20009_vm0, %v6748_v8  ;;  %v6793_v63 = vshrl.u32 %v17500_v0, 16  ;;  %v6796_v43 = vshll.u32 %v17500_v0, 16 }
 0x6b7   : > { %v6765_v40 = vsel %vm14889_vm5, %v6757_v13, %v6764_v30  ;;  %v17654_v35 = vor.u32 %v6771_v20, %v6770_v57  ;;  %v6774_v41 = vrot.slane %v6770_v57, 4  ;;  %v6787_v58 = vrot.slane %v6785_v4, 7  ;;  %v6915_v57 = vld [vmem:[#allocation3 + $0x24] sm:$0xf] }
 0x6b8   : > { %v6781_v53 = vor.u32 %v6779_v44, %v17646_v36  ;;  %6974 = vst.msk [vmem:[#allocation3 + $0x88] sm:$0xf] %vm20015_vm7, %v6765_v40  ;;  %v17661_v52 = vrot.slane %v6793_v63, 7  ;;  %v6802_v31 = vshrl.u32 %v17502_v38, 16  ;;  %v6805_v25 = vshll.u32 %v17502_v38, 16  ;;  %vm20016_vm7 = vmmov %vm20009_vm0 }
 0x6b9   : > { %v6810_v13 = vshrl.u32 %v17504_v39, 16  ;;  %v17668_v42 = vor.u32 %v6788_v62, %v6787_v58  ;;  %v6791_v8 = vrot.slane %v6787_v58, 4  ;;  %v6813_v30 = vshll.u32 %v17504_v39, 16  ;;  %v6901_v38 = vld [vmem:[#allocation3 + $0xc] sm:$0xf] }
 0x6ba   : > { %v6782_v20 = vsel %vm14889_vm5, %v6774_v41, %v6781_v53  ;;  %v6798_v0 = vor.u32 %v6796_v43, %v17661_v52  ;;  %v6804_v44 = vrot.slane %v6802_v31, 7  ;;  %v6819_v40 = vshrl.u32 %v17506_v6, 16  ;;  %v6908_v53 = vld [vmem:[#allocation3 + $0x18] sm:$0xf]  ;;  %v6912_v39 = vld [vmem:[#allocation3 + $0x20] sm:$0x1] }
 0x6bb   : > { %v17673_v4 = vrot.slane %v6810_v13, 7  ;;  %6981 = vst.msk [vmem:[#allocation3 + $0x94] sm:$0xf] %vm20009_vm0, %v6782_v20  ;;  %v6822_v63 = vshll.u32 %v17506_v6, 16  ;;  %v6827_v62 = vshrl.u32 %v17508_v37, 16  ;;  %v6830_v41 = vshll.u32 %v17508_v37, 16 }
 0x6bc   : > { %v6905_v58 = vld [vmem:[#allocation3 + $0x14] sm:$0x1]  ;;  %v6799_v43 = vsel %vm14889_vm5, %v6791_v8, %v6798_v0  ;;  %v17682_v31 = vor.u32 %v6805_v25, %v6804_v44  ;;  %v6808_v13 = vrot.slane %v6804_v44, 4  ;;  %v6821_v5 = vrot.slane %v6819_v40, 7  ;;  %v6922_v37 = vld [vmem:[#allocation3 + $0x30] sm:$0xf] }
 0x6bd   : > { %v6815_v20 = vor.u32 %v6813_v30, %v17673_v4  ;;  %v17686_v6 = vrot.slane %v6827_v62, 7  ;;  %v6836_v15 = vshrl.u32 %v17510_v7, 16  ;;  %6988 = vst.msk [vmem:[#allocation3 + $0xa0] sm:$0xf] %vm20016_vm7, %v6799_v43  ;;  %v6839_v8 = vshll.u32 %v17510_v7, 16  ;;  %vm20020_vm7 = vmmov %vm20009_vm0 }
 0x6be   : > { %v6844_v30 = vshrl.u32 %v17512_v45, 16  ;;  %v6847_v0 = vshll.u32 %v17512_v45, 16  ;;  %v6936_v44 = vld [vmem:[#allocation3 + $0x48] sm:$0xf]  ;;  %v6940_v40 = vld [vmem:[#allocation3 + $0x50] sm:$0x1]  ;;  %v17695_v24 = vor.u32 %v6822_v63, %v6821_v5  ;;  %v6902_v9 = vsel %vm15180_vm11, %v17520_v48, %v6901_v38 }
 0x6bf   : > { %v6816_v25 = vsel %vm14889_vm5, %v6808_v13, %v6815_v20  ;;  %v6933_v62 = vld [vmem:[#allocation3 + $0x44] sm:$0x1]  ;;  %v6825_v2 = vrot.slane %v6821_v5, 4  ;;  %v6832_v43 = vor.u32 %v6830_v41, %v17686_v6  ;;  %v6943_v13 = vld [vmem:[#allocation3 + $0x54] sm:$0xf]  ;;  %v6838_v7 = vrot.slane %v6836_v15, 7 }
 0x6c0   : > { %6995 = vst.msk [vmem:[#allocation3 + $0xac] sm:$0xf] %vm20009_vm0, %v6816_v25  ;;  %v6954_v20 = vld [vmem:[#allocation3 + $0x68] sm:$0x1]  ;;  %v17700_v11 = vrot.slane %v6844_v30, 7  ;;  %v6906_v5 = vsel %vm15169_vm10, %v6596_v1, %v6905_v58  ;;  %v6909_v15 = vsel %vm15180_vm11, %v17524_v22, %v6908_v53  ;;  %v20019_v30 = vrot.slane %v17516_v50, 4 }
 0x6c1   : > { %v6947_v41 = vld [vmem:[#allocation3 + $0x5c] sm:$0x1]  ;;  %v6833_v25 = vsel %vm14889_vm5, %v6825_v2, %v6832_v43  ;;  %6903 = vst [vmem:[#allocation3 + $0xc] sm:$0xf] %v6902_v9  ;;  %6907 = vst [vmem:[#allocation3 + $0x14] sm:$0x1] %v6906_v5  ;;  %v6916_v48 = vsel %vm15180_vm11, %v17539_v28, %v6915_v57  ;;  %v17721_v58 = vor.u32 %v6839_v8, %v6838_v7 }
 0x6c2   : > { %v6913_v32 = vsel %vm15169_vm10, %v20019_v30, %v6912_v39  ;;  %v6968_v1 = vld [vmem:[#allocation3 + $0x80] sm:$0x1]  ;;  %v6961_v38 = vld [vmem:[#allocation3 + $0x74] sm:$0x1]  ;;  %v6842_v2 = vrot.slane %v6838_v7, 4  ;;  %v6849_v9 = vor.u32 %v6847_v0, %v17700_v11  ;;  %v6851_v43 = vrot.slane %v17700_v11, 4 }
 0x6c3   : > { %6910 = vst [vmem:[#allocation3 + $0x18] sm:$0xf] %v6909_v15  ;;  %6914 = vst [vmem:[#allocation3 + $0x20] sm:$0x1] %v6913_v32  ;;  %v6978_v50 = vld [vmem:[#allocation3 + $0x90] sm:$0xf]  ;;  %v6923_v57 = vsel %vm15180_vm11, %v17553_v18, %v6922_v37  ;;  %v6930_v7 = vsel %vm15180_vm11, %v17566_v51, %v6929_v49 }
 0x6c4   : > { %6917 = vst [vmem:[#allocation3 + $0x24] sm:$0xf] %v6916_v48  ;;  %7002 = vst.msk [vmem:[#allocation3 + $0xb8] sm:$0xf] %vm20020_vm7, %v6833_v25  ;;  %v6971_v22 = vld [vmem:[#allocation3 + $0x84] sm:$0xf] }
 0x6c5   : > { %v6982_v53 = vld [vmem:[#allocation3 + $0x98] sm:$0x1]  ;;  %v20021_v39 = vrot.slane %v17530_v14, 4  ;;  %v20022_v8 = vrot.slane %v17544_v59, 4  ;;  %v6975_v5 = vld [vmem:[#allocation3 + $0x8c] sm:$0x1]  ;;  %v6850_v14 = vsel %vm14889_vm5, %v6842_v2, %v6849_v9  ;;  %vm20027_vm5 = vmmov %vm20009_vm0 }
 0x6c6   : > { %v6992_v25 = vld [vmem:[#allocation3 + $0xa8] sm:$0xf]  ;;  %v6985_v15 = vld [vmem:[#allocation3 + $0x9c] sm:$0xf]  ;;  %6924 = vst [vmem:[#allocation3 + $0x30] sm:$0xf] %v6923_v57 }
 0x6c7   : > { %v6920_v28 = vsel %vm15169_vm10, %v20021_v39, %v6919_v16  ;;  %v6927_v0 = vsel %vm15169_vm10, %v20022_v8, %v6926_v10  ;;  %6931 = vst [vmem:[#allocation3 + $0x3c] sm:$0xf] %v6930_v7  ;;  %v20023_v18 = vrot.slane %v17558_v29, 4  ;;  %v6937_v16 = vsel %vm15180_vm11, %v17571_v34, %v6936_v44  ;;  %v6989_v10 = vld [vmem:[#allocation3 + $0xa4] sm:$0x1] }
 0x6c8   : > { %6921 = vst [vmem:[#allocation3 + $0x2c] sm:$0x1] %v6920_v28  ;;  %6928 = vst [vmem:[#allocation3 + $0x38] sm:$0x1] %v6927_v0  ;;  %v20024_v51 = vrot.slane %v17573_v47, 4  ;;  %v6944_v29 = vsel %vm15180_vm11, %v17584_v23, %v6943_v13  ;;  %v6951_v47 = vsel %vm15180_vm11, %v17600_v21, %v6950_v60  ;;  %v20026_v44 = vrot.slane %v17596_v3, 4 }
 0x6c9   : > { %v6934_v59 = vsel %vm15169_vm10, %v20023_v18, %v6933_v62  ;;  %v7006_v37 = vld [vmem:[#allocation3 + $0xc0] sm:$0xf]  ;;  %6938 = vst [vmem:[#allocation3 + $0x48] sm:$0xf] %v6937_v16  ;;  %v20025_v62 = vrot.slane %v17586_v46, 4  ;;  %v6958_v23 = vsel %vm15180_vm11, %v17608_v33, %v6957_v12  ;;  %v20028_v60 = vrot.slane %v17610_v55, 4 }
 0x6ca   : > { %v6941_v49 = vsel %vm15169_vm10, %v20024_v51, %v6940_v40  ;;  %6935 = vst [vmem:[#allocation3 + $0x44] sm:$0x1] %v6934_v59  ;;  %v6955_v40 = vsel %vm15169_vm10, %v20026_v44, %v6954_v20  ;;  %7009 = vst.msk [vmem:[#allocation3 + $0xc4] sm:$0xf] %vm20027_vm5, %v6850_v14  ;;  %v6999_v30 = vld [vmem:[#allocation3 + $0xb4] sm:$0xf]  ;;  %v6965_v3 = vsel %vm15180_vm11, %v17630_v19, %v6964_v56 }
 0x6cb   : > { %6942 = vst [vmem:[#allocation3 + $0x50] sm:$0x1] %v6941_v49  ;;  %v6948_v34 = vsel %vm15169_vm10, %v20025_v62, %v6947_v41  ;;  %v7010_v32 = vld [vmem:[#allocation3 + $0xc8] sm:$0x1]  ;;  %v7003_v48 = vld [vmem:[#allocation3 + $0xbc] sm:$0x1]  ;;  %v6962_v46 = vsel %vm15169_vm10, %v20028_v60, %v6961_v38  ;;  %v6972_v12 = vsel %vm15180_vm11, %v17638_v54, %v6971_v22  ;;  %v6979_v56 = vsel %vm15180_vm11, %v17654_v35, %v6978_v50 }
 0x6cc   : > { %6945 = vst [vmem:[#allocation3 + $0x54] sm:$0xf] %v6944_v29  ;;  %6949 = vst [vmem:[#allocation3 + $0x5c] sm:$0x1] %v6948_v34  ;;  %v20029_v21 = vrot.slane %v17623_v17, 4  ;;  %v20030_v33 = vrot.slane %v17634_v61, 4  ;;  %v6986_v61 = vsel %vm15180_vm11, %v17668_v42, %v6985_v15  ;;  %v7011_v50 = vsel %vm15169_vm10, %v6851_v43, %v7010_v32 }
 0x6cd   : > { %6952 = vst [vmem:[#allocation3 + $0x60] sm:$0xf] %v6951_v47  ;;  %6956 = vst [vmem:[#allocation3 + $0x68] sm:$0x1] %v6955_v40  ;;  %v20031_v17 = vrot.slane %v17646_v36, 4  ;;  %v20032_v54 = vrot.slane %v17661_v52, 4  ;;  %v6993_v36 = vsel %vm15180_vm11, %v17682_v31, %v6992_v25  ;;  %v7000_v52 = vsel %vm15180_vm11, %v17695_v24, %v6999_v30 }
 0x6ce   : > { %v6969_v13 = vsel %vm15169_vm10, %v20029_v21, %v6968_v1  ;;  %6959 = vst [vmem:[#allocation3 + $0x6c] sm:$0xf] %v6958_v23  ;;  %6963 = vst [vmem:[#allocation3 + $0x74] sm:$0x1] %v6962_v46  ;;  %v6976_v55 = vsel %vm15169_vm10, %v20030_v33, %v6975_v5  ;;  %v17796_v20 = vld [vmem:[#allocation3 + $0x10] sm:$0xf]  ;;  %v7007_v31 = vsel %vm15180_vm11, %v17721_v58, %v7006_v37 }
 0x6cf   : > { %6966 = vst [vmem:[#allocation3 + $0x78] sm:$0xf] %v6965_v3  ;;  %6970 = vst [vmem:[#allocation3 + $0x80] sm:$0x1] %v6969_v13  ;;  %v6983_v19 = vsel %vm15169_vm10, %v20031_v17, %v6982_v53  ;;  %v6990_v35 = vsel %vm15169_vm10, %v20032_v54, %v6989_v10  ;;  %v20033_v41 = vrot.slane %v17673_v4, 4  ;;  %v20035_v42 = vrot.slane %v17686_v6, 4 }
 0x6d0   : > { %6973 = vst [vmem:[#allocation3 + $0x84] sm:$0xf] %v6972_v12  ;;  %6977 = vst [vmem:[#allocation3 + $0x8c] sm:$0x1] %v6976_v55  ;;  %v17812_v38 = vld [vmem:[#allocation3 + $0xc] sm:$0xf] }
 0x6d1   : > { %6980 = vst [vmem:[#allocation3 + $0x90] sm:$0xf] %v6979_v56  ;;  %6984 = vst [vmem:[#allocation3 + $0x98] sm:$0x1] %v6983_v19  ;;  %v6997_v1 = vsel %vm15169_vm10, %v20033_v41, %v6996_v27  ;;  %v17814_v2 = vld [vmem:[#allocation3 + $0x14] sm:$0x1]  ;;  %v7004_v4 = vsel %vm15169_vm10, %v20035_v42, %v7003_v48 }
 0x6d2   : > { %20034 = vst [vmem:[#allocation26_spill] sm:$0xff] %v17814_v2  ;;  %v17816_v9 = vld [vmem:[#allocation3 + $0x4c] sm:$0xf]  ;;  %6987 = vst [vmem:[#allocation3 + $0x9c] sm:$0xf] %v6986_v61  ;;  %v7118_v24 = vshrl.u32 %v17812_v38, 16 }
 0x6d3   : > { %6991 = vst [vmem:[#allocation3 + $0xa4] sm:$0x1] %v6990_v35  ;;  %6994 = vst [vmem:[#allocation3 + $0xa8] sm:$0xf] %v6993_v36  ;;  %v17832_v22 = vld [vmem:[#allocation3 + $0x18] sm:$0xf] }
 0x6d4   : > { %6998 = vst [vmem:[#allocation3 + $0xb0] sm:$0x1] %v6997_v1  ;;  %7001 = vst [vmem:[#allocation3 + $0xb4] sm:$0xf] %v7000_v52  ;;  %v7121_v6 = vshll.u32 %v17812_v38, 16  ;;  %v7127_v53 = vshll.u32 %v17796_v20, 16 }
 0x6d5   : > { %7005 = vst [vmem:[#allocation3 + $0xbc] sm:$0x1] %v7004_v4  ;;  %7008 = vst [vmem:[#allocation3 + $0xc0] sm:$0xf] %v7007_v31  ;;  %v7131_v45 = vshrl.u32 %v17796_v20, 16  ;;  %v7137_v58 = vshll.u32 %v17814_v2, 16 }
 0x6d6   : > { %7012 = vst [vmem:[#allocation3 + $0xc8] sm:$0x1] %v7011_v50  ;;  %v7247_v11 = vshll.u32 %v17816_v9, 16  ;;  %v7251_v43 = vshrl.u32 %v17816_v9, 16  ;;  %v7142_v39 = vshrl.u32 %v17832_v22, 16  ;;  %v7120_v28 = vrot.slane %v7118_v24, 4 }
 0x6d7   : > { %v7123_v57 = vrot.slane %v7121_v6, 5  ;;  %v7129_v8 = vrot.slane %v7127_v53, 5  ;;  %v7133_v0 = vrot.slane %v7131_v45, 4  ;;  %v17842_v7 = vld [vmem:[#allocation3 + $0x48] sm:$0xf]  ;;  %v7139_v27 = vrot.slane %v7137_v58, 5 }
 0x6d8   : > { %v17844_v5 = vld [vmem:[#allocation3 + $0x50] sm:$0x1]  ;;  %v7238_v25 = vshrl.u32 %v17842_v7, 16  ;;  %v7241_v15 = vshll.u32 %v17842_v7, 16  ;;  %v7249_v14 = vrot.slane %v7247_v11, 5  ;;  %v7253_v16 = vrot.slane %v7251_v43, 4 }
 0x6d9   : > { %20036 = vst [vmem:[#allocation27_spill] sm:$0xff] %v17844_v5  ;;  %v7124_v18 = vor.u32 %v7123_v57, %v7120_v28  ;;  %v7134_v59 = vor.u32 %v7133_v0, %v7129_v8  ;;  %v7257_v51 = vshll.u32 %v17844_v5, 16  ;;  %v17849_v49 = vld [vmem:[#allocation3 + $0x1c] sm:$0xf]  ;;  %v17851_v29 = vld [vmem:[#allocation3 + $0x20] sm:$0x1] }
 0x6da   : > { %v7240_v10 = vrot.slane %v7238_v25, 4  ;;  %v7243_v37 = vrot.slane %v7241_v15, 5  ;;  %v7144_v62 = vrot.slane %v7142_v39, 4  ;;  %v7254_v44 = vor.u32 %v7253_v16, %v7249_v14  ;;  %v17856_v60 = vld [vmem:[#allocation3 + $0x54] sm:$0xf] }
 0x6db   : > { %v7125_v34 = vrot.slane %v7124_v18, 4  ;;  %v7135_v47 = vrot.slane %v7134_v59, 4  ;;  %v7259_v40 = vrot.slane %v7257_v51, 5  ;;  %v7145_v32 = vshll.u32 %v17832_v22, 16  ;;  %v17863_v12 = vld [vmem:[#allocation3 + $0x58] sm:$0xf] }
 0x6dc   : > { %v7244_v30 = vor.u32 %v7243_v37, %v7240_v10  ;;  %v7151_v48 = vshll.u32 %v17849_v49, 16  ;;  %v7155_v23 = vshrl.u32 %v17849_v49, 16  ;;  %v7255_v21 = vrot.slane %v7254_v44, 4  ;;  %v17869_v35 = vld [vmem:[#allocation3 + $0x5c] sm:$0x1] }
 0x6dd   : > { %v7130_v46 = vsel %vm15385_vm14, %v7125_v34, %v7129_v8  ;;  %v7140_v3 = vsel %vm15385_vm14, %v7135_v47, %v7139_v27  ;;  %v7161_v13 = vshll.u32 %v17851_v29, 16  ;;  %v7147_v56 = vrot.slane %v7145_v32, 5  ;;  %20038 = vst [vmem:[#allocation14_spill] sm:$0xff] %v17869_v35  ;;  %v17878_v4 = vld [vmem:[#allocation3 + $0x60] sm:$0xf] }
 0x6de   : > { %v17865_v33 = vcombine.low %v7130_v46, %v7140_v3  ;;  %v7245_v55 = vrot.slane %v7244_v30, 4  ;;  %v7153_v17 = vrot.slane %v7151_v48, 5  ;;  %v7260_v19 = vsel %vm15385_vm14, %v7255_v21, %v7259_v40  ;;  %20040 = vst [vmem:[#allocation30_spill] sm:$0xff] %v17878_v4  ;;  %v17883_v53 = vld [vmem:[#allocation3 + $0x64] sm:$0xf] }
 0x6df   : > { %v7157_v61 = vrot.slane %v7155_v23, 4  ;;  %v7163_v54 = vrot.slane %v7161_v13, 5  ;;  %v7262_v36 = vshrl.u32 %v17856_v60, 16  ;;  %vm20039_vm11 = vcmask 523264   ;;  %20042 = vst [vmem:[#allocation25_spill] sm:$0xff] %v17883_v53 }
 0x6e0   : > { %20037 = vst [vmem:[#allocation11_spill] sm:$0xff] %v17865_v33  ;;  %13572 = vmatmul.mubr.msk.bf16.vlgmr.msra.gmra.mrb[32].mxu0 %vm20039_vm11, %v17865_v33  ;;  %v7250_v41 = vsel %vm15385_vm14, %v7245_v55, %v7249_v14  ;;  %v7148_v1 = vor.u32 %v7147_v56, %v7144_v62  ;;  %v7265_v52 = vshll.u32 %v17856_v60, 16  ;;  %v7271_v42 = vshll.u32 %v17863_v12, 16  ;;  %vm20043_vm0 = vmmov %vm20039_vm11  ;;  %v17892_v14 = vld [vmem:[#allocation3 + $0x68] sm:$0x1] }
 0x6e1   : > { %v17880_v31 = vcombine.low %v7250_v41, %v7260_v19  ;;  %v7158_v50 = vor.u32 %v7157_v61, %v7153_v17  ;;  %v7264_v24 = vrot.slane %v7262_v36, 4  ;;  %v7275_v6 = vshrl.u32 %v17863_v12, 16  ;;  %20044 = vst [vmem:[#allocation13_spill] sm:$0xff] %v17892_v14  ;;  %v17895_v59 = vld [vmem:[#allocation3 + $0x24] sm:$0xf]  ;;  %vm20046_vm7 = vmmov %vm20043_vm0 }
 0x6e2   : > { %v7149_v45 = vrot.slane %v7148_v1, 4  ;;  %v7267_v58 = vrot.slane %v7265_v52, 5  ;;  %v7273_v11 = vrot.slane %v7271_v42, 5  ;;  %v7281_v43 = vshll.u32 %v17869_v35, 16  ;;  %v17899_v37 = vld [vmem:[#allocation3 + $0x28] sm:$0xf]  ;;  %vm20048_vm5 = vmmov %vm20043_vm0 }
 0x6e3   : > { %20041 = vst [vmem:[#allocation10_spill] sm:$0xff] %v17880_v31  ;;  %13583 = vmatprep.mubr.msk.bf16.mxu1 %vm20043_vm0, %v17880_v31  ;;  %v7159_v39 = vrot.slane %v7158_v50, 4  ;;  %v7277_v28 = vrot.slane %v7275_v6, 4  ;;  %v7286_v57 = vshrl.u32 %v17878_v4, 16  ;;  %v7289_v8 = vshll.u32 %v17878_v4, 16  ;;  %v14641_v42 = vld [vmem:[%s19981_s5 + $0x8] sm:$0xff]   ;;  %vm20050_vm11 = vmmov %vm20043_vm0 }
 0x6e4   : > { %v7154_v0 = vsel %vm15385_vm14, %v7149_v45, %v7153_v17  ;;  %v7268_v25 = vor.u32 %v7267_v58, %v7264_v24  ;;  %v7283_v15 = vrot.slane %v7281_v43, 5  ;;  %v7295_v18 = vshll.u32 %v17883_v53, 16  ;;  %v17905_v48 = vld [vmem:[#allocation3 + $0x2c] sm:$0x1]  ;;  %v17914_v55 = vld [vmem:[#allocation3 + $0x30] sm:$0xf]  ;;  %vm20076_vm8 = vmmov %vm20043_vm0 }
 0x6e5   : > { %v7164_v16 = vsel %vm15385_vm14, %v7159_v39, %v7163_v54  ;;  %v7278_v51 = vor.u32 %v7277_v28, %v7273_v11  ;;  %v7288_v27 = vrot.slane %v7286_v57, 4  ;;  %v7291_v10 = vrot.slane %v7289_v8, 5  ;;  %v17918_v54 = vld [vmem:[#allocation3 + $0x34] sm:$0xf]  ;;  %v17932_v43 = vld [vmem:[#allocation3 + $0x38] sm:$0x1]  ;;  %vm20094_vm2 = vmmov %vm20043_vm0 }
 0x6e6   : > { %v17901_v62 = vcombine.low %v7154_v0, %v7164_v16  ;;  %v7269_v34 = vrot.slane %v7268_v25, 4  ;;  %v7297_v47 = vrot.slane %v7295_v18, 5  ;;  %v7299_v44 = vshrl.u32 %v17883_v53, 16  ;;  %v14714_v57 = vld [vmem:[%s19981_s5] sm:$0xff]   ;;  %vm20095_vm1 = vmmov %vm20043_vm0 }
 0x6e7   : > { %v7279_v40 = vrot.slane %v7278_v51, 4  ;;  %v7292_v30 = vor.u32 %v7291_v10, %v7288_v27  ;;  %v7305_v32 = vshll.u32 %v17892_v14, 16  ;;  %v7166_v23 = vshrl.u32 %v17895_v59, 16  ;;  %v17940_v18 = vld [vmem:[#allocation3 + $0x6c] sm:$0xf] }
 0x6e8   : > { %20045 = vst [vmem:[#allocation21_spill] sm:$0xff] %v17901_v62  ;;  %13575 = vmatprep.mubr.msk.bf16.mxu0 %vm20046_vm7, %v17901_v62  ;;  %v7274_v46 = vsel %vm15385_vm14, %v7269_v34, %v7273_v11  ;;  %v7301_v3 = vrot.slane %v7299_v44, 4  ;;  %v7169_v21 = vshll.u32 %v17895_v59, 16  ;;  %v7175_v13 = vshll.u32 %v17899_v37, 16  ;;  %v17944_v34 = vld [vmem:[#allocation3 + $0x70] sm:$0xf]  ;;  %vm20053_vm7 = vmmov %vm20043_vm0 }
 0x6e9   : > { %v7284_v56 = vsel %vm15385_vm14, %v7279_v40, %v7283_v15  ;;  %v7293_v17 = vrot.slane %v7292_v30, 4  ;;  %v7307_v19 = vrot.slane %v7305_v32, 5  ;;  %v7168_v61 = vrot.slane %v7166_v23, 4  ;;  %v18065_v31 = vld [vmem:[#allocation3 + $0xa8] sm:$0xf] }
 0x6ea   : > { %v17920_v36 = vcombine.low %v7274_v46, %v7284_v56  ;;  %v7302_v41 = vor.u32 %v7301_v3, %v7297_v47  ;;  %v7171_v1 = vrot.slane %v7169_v21, 5  ;;  %v7177_v52 = vrot.slane %v7175_v13, 5  ;;  %v17954_v3 = vld [vmem:[#allocation3 + $0x74] sm:$0x1] }
 0x6eb   : > { %v7298_v50 = vsel %vm15385_vm14, %v7293_v17, %v7297_v47  ;;  %v7179_v24 = vshrl.u32 %v17899_v37, 16  ;;  %v7185_v6 = vshll.u32 %v17905_v48, 16  ;;  %v7190_v45 = vshrl.u32 %v17914_v55, 16  ;;  %v14642_v47 = vld [vmem:[%s19981_s5 + $0x10] sm:$0xff]  }
 0x6ec   : > { %20047 = vst [vmem:[#allocation28_spill] sm:$0xff] %v17920_v36  ;;  %13584 = vmatmul.mubr.msk.bf16.vlgmr.msra.gmra.mrb[0].mxu1 %vm20048_vm5, %v17920_v36  ;;  %v7303_v58 = vrot.slane %v7302_v41, 4  ;;  %v7172_v11 = vor.u32 %v7171_v1, %v7168_v61  ;;  %v7193_v39 = vshll.u32 %v17914_v55, 16  ;;  %v7199_v28 = vshll.u32 %v17918_v54, 16  ;;  %v14643_v41 = vld [vmem:[%s19981_s5 + $0x18] sm:$0xff]   ;;  %vm20055_vm5 = vmmov %vm20043_vm0 }
 0x6ed   : > { %13604 = vmatpush3.bf16.msra.mxu1 %v14714_v57  ;;  %v7181_v8 = vrot.slane %v7179_v24, 4  ;;  %v7187_v0 = vrot.slane %v7185_v6, 5  ;;  %v7192_v25 = vrot.slane %v7190_v45, 4  ;;  %v7203_v15 = vshrl.u32 %v17918_v54, 16  ;;  %v17965_v6 = vld [vmem:[#allocation3 + $0x78] sm:$0xf] }
 0x6ee   : > { %v7308_v16 = vsel %vm15385_vm14, %v7303_v58, %v7307_v19  ;;  %v7173_v51 = vrot.slane %v7172_v11, 4  ;;  %v7195_v27 = vrot.slane %v7193_v39, 5  ;;  %v7201_v10 = vrot.slane %v7199_v28, 5  ;;  %13605 = vmatprep.subr.bf16.mxu1 %v14641_v42  ;;  %v18039_v36 = vld [vmem:[#allocation3 + $0x98] sm:$0x1] }
 0x6ef   : > { %v17949_v44 = vcombine.low %v7298_v50, %v7308_v16  ;;  %v7182_v40 = vor.u32 %v7181_v8, %v7177_v52  ;;  %v7205_v30 = vrot.slane %v7203_v15, 4  ;;  %v7209_v32 = vshll.u32 %v17932_v43, 16  ;;  %v17976_v15 = vld [vmem:[#allocation3 + $0x80] sm:$0x1] }
 0x6f0   : > { %v7178_v23 = vsel %vm15385_vm14, %v7173_v51, %v7177_v52  ;;  %v7196_v46 = vor.u32 %v7195_v27, %v7192_v25  ;;  %v7310_v21 = vshrl.u32 %v17940_v18, 16  ;;  %v7313_v13 = vshll.u32 %v17940_v18, 16 }
 0x6f1   : > { %20049 = vst [vmem:[#allocation16_spill] sm:$0xff] %v17949_v44  ;;  %13587 = vmatprep.mubr.msk.bf16.mxu1 %vm20050_vm11, %v17949_v44  ;;  %v7183_v56 = vrot.slane %v7182_v40, 4  ;;  %v7206_v17 = vor.u32 %v7205_v30, %v7201_v10  ;;  %v7211_v19 = vrot.slane %v7209_v32, 5  ;;  %v7319_v61 = vshll.u32 %v17944_v34, 16  ;;  %13606 = vmatpush3.bf16.msra.mxu1 %v14641_v42  ;;  %v17970_v42 = vld [vmem:[#allocation3 + $0x7c] sm:$0xf]  ;;  %vm20057_vm11 = vmmov %vm20043_vm0 }
 0x6f2   : > { %v7197_v1 = vrot.slane %v7196_v46, 4  ;;  %v7312_v52 = vrot.slane %v7310_v21, 4  ;;  %v7315_v50 = vrot.slane %v7313_v13, 5  ;;  %v7323_v24 = vshrl.u32 %v17944_v34, 16  ;;  %13607 = vmatprep.subr.bf16.mxu1 %v14642_v47  ;;  %v17982_v40 = vld [vmem:[#allocation3 + $0x3c] sm:$0xf] }
 0x6f3   : > { %v7188_v45 = vsel %vm15385_vm14, %v7183_v56, %v7187_v0  ;;  %v7207_v58 = vrot.slane %v7206_v17, 4  ;;  %v7321_v11 = vrot.slane %v7319_v61, 5  ;;  %v7329_v39 = vshll.u32 %v17954_v3, 16  ;;  %v17992_v46 = vld [vmem:[%s19981_s5 + $0x40] sm:$0xff]   ;;  %v17996_v17 = vld [vmem:[#allocation3 + $0x40] sm:$0xf] }
 0x6f4   : > { %v17972_v28 = vcombine.low %v7178_v23, %v7188_v45  ;;  %v7202_v57 = vsel %vm15385_vm14, %v7197_v1, %v7201_v10  ;;  %v7316_v8 = vor.u32 %v7315_v50, %v7312_v52  ;;  %v7325_v25 = vrot.slane %v7323_v24, 4  ;;  %v18002_v52 = vld [vmem:[#allocation3 + $0x44] sm:$0x1] }
 0x6f5   : > { %v7212_v16 = vsel %vm15385_vm14, %v7207_v58, %v7211_v19  ;;  %v7331_v51 = vrot.slane %v7329_v39, 5  ;;  %v7334_v0 = vshrl.u32 %v17965_v6, 16  ;;  %v7337_v27 = vshll.u32 %v17965_v6, 16  ;;  %13608 = vmatpush3.bf16.msra.mxu1 %v14642_v47 }
 0x6f6   : > { %20051 = vst [vmem:[#allocation18_spill] sm:$0xff] %v17972_v28  ;;  %13576 = vmatmul.mubr.msk.bf16.gmra.mrb[36].mxu0 %vm20043_vm0, %v17972_v28  ;;  %v17986_v30 = vcombine.low %v7202_v57, %v7212_v16  ;;  %v7317_v10 = vrot.slane %v7316_v8, 4  ;;  %v7326_v32 = vor.u32 %v7325_v25, %v7321_v11  ;;  %v7343_v23 = vshll.u32 %v17970_v42, 16  ;;  %13609 = vmatprep.subr.bf16.mxu1 %v14643_v41  ;;  %v18006_v57 = vld [vmem:[#allocation3 + $0x84] sm:$0xf] }
 0x6f7   : > { %v7336_v21 = vrot.slane %v7334_v0, 4  ;;  %v7339_v13 = vrot.slane %v7337_v27, 5  ;;  %v7347_v56 = vshrl.u32 %v17970_v42, 16  ;;  %v7353_v47 = vshll.u32 %v17976_v15, 16 }
 0x6f8   : > { %20052 = vst [vmem:[#allocation15_spill] sm:$0xff] %v17986_v30  ;;  %13579 = vmatprep.mubr.msk.bf16.mxu0 %vm20053_vm7, %v17986_v30  ;;  %v7322_v19 = vsel %vm15385_vm14, %v7317_v10, %v7321_v11  ;;  %v7327_v61 = vrot.slane %v7326_v32, 4  ;;  %v7345_v1 = vrot.slane %v7343_v23, 5  ;;  %v7214_v50 = vshrl.u32 %v17982_v40, 16  ;;  %v18015_v23 = vld [vmem:[#allocation3 + $0x88] sm:$0xf]  ;;  %vm20060_vm7 = vmmov %vm20043_vm0 }
 0x6f9   : > { %v7340_v24 = vor.u32 %v7339_v13, %v7336_v21  ;;  %v7349_v45 = vrot.slane %v7347_v56, 4  ;;  %v7355_v58 = vrot.slane %v7353_v47, 5  ;;  %v7217_v39 = vshll.u32 %v17982_v40, 16  ;;  %13610 = vmatpush3.bf16.msra.mxu1 %v14643_v41 }
 0x6fa   : > { %v7332_v8 = vsel %vm15385_vm14, %v7327_v61, %v7331_v51  ;;  %v7216_v25 = vrot.slane %v7214_v50, 4  ;;  %v7223_v11 = vshll.u32 %v17996_v17, 16  ;;  %v7227_v16 = vshrl.u32 %v17996_v17, 16  ;;  %13643 = vmatprep.subr.bf16.mxu1 %v17992_v46  ;;  %v18023_v61 = vld [vmem:[#allocation3 + $0x8c] sm:$0x1] }
 0x6fb   : > { %v18013_v0 = vcombine.low %v7322_v19, %v7332_v8  ;;  %v7341_v27 = vrot.slane %v7340_v24, 4  ;;  %v7350_v10 = vor.u32 %v7349_v45, %v7345_v1  ;;  %v7219_v32 = vrot.slane %v7217_v39, 5 }
 0x6fc   : > { %v7225_v21 = vrot.slane %v7223_v11, 5  ;;  %v7229_v13 = vrot.slane %v7227_v16, 4  ;;  %v7233_v41 = vshll.u32 %v18002_v52, 16  ;;  %v7358_v51 = vshrl.u32 %v18006_v57, 16  ;;  %v18027_v11 = vld [vmem:[#allocation3 + $0x90] sm:$0xf] }
 0x6fd   : > { %20054 = vst [vmem:[#allocation17_spill] sm:$0xff] %v18013_v0  ;;  %13588 = vmatmul.mubr.msk.bf16.gmra.mrb[4].mxu1 %vm20055_vm5, %v18013_v0  ;;  %v7346_v56 = vsel %vm15385_vm14, %v7341_v27, %v7345_v1  ;;  %v7351_v47 = vrot.slane %v7350_v10, 4  ;;  %v7220_v19 = vor.u32 %v7219_v32, %v7216_v25  ;;  %v7361_v50 = vshll.u32 %v18006_v57, 16  ;;  %v18032_v27 = vld [vmem:[#allocation3 + $0x94] sm:$0xf]  ;;  %vm20062_vm5 = vmmov %vm20043_vm0 }
 0x6fe   : > { %v7230_v24 = vor.u32 %v7229_v13, %v7225_v21  ;;  %v7235_v45 = vrot.slane %v7233_v41, 5  ;;  %v7360_v39 = vrot.slane %v7358_v51, 4  ;;  %v7367_v8 = vshll.u32 %v18015_v23, 16 }
 0x6ff   : > { %v7356_v16 = vsel %vm15385_vm14, %v7351_v47, %v7355_v58  ;;  %v7221_v63 = vrot.slane %v7220_v19, 4  ;;  %v7363_v0 = vrot.slane %v7361_v50, 5  ;;  %v7371_v1 = vshrl.u32 %v18015_v23, 16 }
 0x700   : > { %v18034_v25 = vcombine.low %v7346_v56, %v7356_v16  ;;  %v7231_v10 = vrot.slane %v7230_v24, 4  ;;  %v7369_v32 = vrot.slane %v7367_v8, 5  ;;  %v7377_v13 = vshll.u32 %v18023_v61, 16  ;;  %v18048_v24 = vld [vmem:[#allocation3 + $0x9c] sm:$0xf] }
 0x701   : > { %v7226_v41 = vsel %vm15385_vm14, %v7221_v63, %v7225_v21  ;;  %v7364_v51 = vor.u32 %v7363_v0, %v7360_v39  ;;  %v7373_v44 = vrot.slane %v7371_v1, 4  ;;  %v7382_v58 = vshrl.u32 %v18027_v11, 16  ;;  %v18052_v8 = vld [vmem:[#allocation3 + $0xa0] sm:$0xf] }
 0x702   : > { %20056 = vst [vmem:[#allocation20_spill] sm:$0xff] %v18034_v25  ;;  %13591 = vmatprep.mubr.msk.bf16.mxu1 %vm20057_vm11, %v18034_v25  ;;  %v7236_v56 = vsel %vm15385_vm14, %v7231_v10, %v7235_v45  ;;  %v7379_v47 = vrot.slane %v7377_v13, 5  ;;  %v7385_v19 = vshll.u32 %v18027_v11, 16  ;;  %v7391_v50 = vshll.u32 %v18032_v27, 16  ;;  %vm20063_vm11 = vmmov %vm20043_vm0 }
 0x703   : > { %v18050_v63 = vcombine.low %v7226_v41, %v7236_v56  ;;  %v7365_v0 = vrot.slane %v7364_v51, 4  ;;  %v7374_v21 = vor.u32 %v7373_v44, %v7369_v32  ;;  %v7384_v39 = vrot.slane %v7382_v58, 4  ;;  %v18060_v41 = vld [vmem:[#allocation3 + $0xa4] sm:$0x1] }
 0x704   : > { %v7387_v16 = vrot.slane %v7385_v19, 5  ;;  %v7393_v1 = vrot.slane %v7391_v50, 5  ;;  %v7395_v25 = vshrl.u32 %v18032_v27, 16  ;;  %v7401_v45 = vshll.u32 %v18039_v36, 16 }
 0x705   : > { %20058 = vst [vmem:[#allocation29_spill] sm:$0xff] %v18050_v63  ;;  %13580 = vmatmul.mubr.msk.bf16.gmra.mrb[40].mxu0 %vm20043_vm0, %v18050_v63  ;;  %v7370_v10 = vsel %vm15385_vm14, %v7365_v0, %v7369_v32  ;;  %v7375_v13 = vrot.slane %v7374_v21, 4  ;;  %v7406_v44 = vshrl.u32 %v18048_v24, 16  ;;  %v7409_v51 = vshll.u32 %v18048_v24, 16  ;;  %v18070_v0 = vld [vmem:[#allocation3 + $0xac] sm:$0xf] }
 0x706   : > { %v7388_v58 = vor.u32 %v7387_v16, %v7384_v39  ;;  %v7397_v56 = vrot.slane %v7395_v25, 4  ;;  %v7403_v19 = vrot.slane %v7401_v45, 5  ;;  %v7415_v50 = vshll.u32 %v18052_v8, 16 }
 0x707   : > { %v7380_v63 = vsel %vm15385_vm14, %v7375_v13, %v7379_v47  ;;  %v7408_v30 = vrot.slane %v7406_v44, 4  ;;  %v7411_v28 = vrot.slane %v7409_v51, 5  ;;  %v7419_v32 = vshrl.u32 %v18052_v8, 16  ;;  %v18080_v44 = vld [vmem:[#allocation3 + $0xb0] sm:$0x1] }
 0x708   : > { %v18072_v21 = vcombine.low %v7370_v10, %v7380_v63  ;;  %v7389_v62 = vrot.slane %v7388_v58, 4  ;;  %v7398_v33 = vor.u32 %v7397_v56, %v7393_v1  ;;  %v7417_v39 = vrot.slane %v7415_v50, 5  ;;  %v7043_v56 = vld [vmem:[#allocation3 + $0xb4] sm:$0xf] }
 0x709   : > { %v7412_v25 = vor.u32 %v7411_v28, %v7408_v30  ;;  %v7421_v16 = vrot.slane %v7419_v32, 4  ;;  %v7425_v45 = vshll.u32 %v18060_v41, 16  ;;  %v7430_v14 = vshrl.u32 %v18065_v31, 16 }
 0x70a   : > { %20059 = vst [vmem:[#allocation19_spill] sm:$0xff] %v18072_v21  ;;  %13592 = vmatmul.mubr.msk.bf16.gmra.mrb[8].mxu1 %vm20060_vm7, %v18072_v21  ;;  %v7394_v47 = vsel %vm15385_vm14, %v7389_v62, %v7393_v1  ;;  %v7399_v13 = vrot.slane %v7398_v33, 4  ;;  %v7433_v63 = vshll.u32 %v18065_v31, 16  ;;  %v7439_v10 = vshll.u32 %v18070_v0, 16  ;;  %v18087_v62 = vld [vmem:[#allocation3 + $0xb8] sm:$0xf]  ;;  %vm20064_vm7 = vmmov %vm20043_vm0 }
 0x70b   : > { %v7413_v51 = vrot.slane %v7412_v25, 4  ;;  %v7422_v28 = vor.u32 %v7421_v16, %v7417_v39  ;;  %v7427_v30 = vrot.slane %v7425_v45, 5  ;;  %v7432_v58 = vrot.slane %v7430_v14, 4  ;;  %v18094_v45 = vld [vmem:[#allocation3 + $0xbc] sm:$0x1] }
 0x70c   : > { %v7404_v50 = vsel %vm15385_vm14, %v7399_v13, %v7403_v19  ;;  %v7435_v32 = vrot.slane %v7433_v63, 5  ;;  %v7441_v21 = vrot.slane %v7439_v10, 5  ;;  %v7443_v35 = vshrl.u32 %v18070_v0, 16 }
 0x70d   : > { %v18089_v33 = vcombine.low %v7394_v47, %v7404_v50  ;;  %v7418_v1 = vsel %vm15385_vm14, %v7413_v51, %v7417_v39  ;;  %v7423_v5 = vrot.slane %v7422_v28, 4  ;;  %v7449_v25 = vshll.u32 %v18080_v44, 16 }
 0x70e   : > { %v7436_v16 = vor.u32 %v7435_v32, %v7432_v58  ;;  %v7445_v14 = vrot.slane %v7443_v35, 4  ;;  %v7454_v2 = vshrl.u32 %v7043_v56, 16  ;;  %v7457_v19 = vshll.u32 %v7043_v56, 16 }
 0x70f   : > { %20061 = vst [vmem:[#allocation22_spill] sm:$0xff] %v18089_v33  ;;  %13595 = vmatprep.mubr.msk.bf16.mxu1 %vm20062_vm5, %v18089_v33  ;;  %v7428_v13 = vsel %vm15385_vm14, %v7423_v5, %v7427_v30  ;;  %v7463_v47 = vshll.u32 %v18087_v62, 16  ;;  %v7467_v63 = vshrl.u32 %v18087_v62, 16  ;;  %v7473_v32 = vshll.u32 %v18094_v45, 16  ;;  %vm20065_vm5 = vmmov %vm20043_vm0 }
 0x710   : > { %v18102_v39 = vcombine.low %v7418_v1, %v7428_v13  ;;  %v7437_v10 = vrot.slane %v7436_v16, 4  ;;  %v7446_v51 = vor.u32 %v7445_v14, %v7441_v21  ;;  %v7456_v28 = vrot.slane %v7454_v2, 4 }
 0x711   : > { %v7459_v35 = vrot.slane %v7457_v19, 5  ;;  %v7465_v58 = vrot.slane %v7463_v47, 5  ;;  %v7469_v50 = vrot.slane %v7467_v63, 4  ;;  %v7451_v33 = vrot.slane %v7449_v25, 5  ;;  %v18117_v47 = vld [vmem:[#allocation3 + $0x4] sm:$0xf] }
 0x712   : > { %13596 = vmatmul.mubr.msk.bf16.gmra.mrb[12].mxu1 %vm20063_vm11, %v18102_v39  ;;  %v7442_v5 = vsel %vm15385_vm14, %v7437_v10, %v7441_v21  ;;  %v7447_v30 = vrot.slane %v7446_v51, 4  ;;  %v18111_v1 = vcombine.low %v17832_v22, %v17849_v49  ;;  %v7475_v13 = vrot.slane %v7473_v32, 5  ;;  %v14716_v63 = vld [vmem:[#allocation3] sm:$0xf]  ;;  %v7069_v10 = vld [vmem:[#allocation3 + $0x18] sm:$0xe]  ;;  %vm20067_vm11 = vmmov %vm20043_vm0 }
 0x713   : > { %v7460_v4 = vor.u32 %v7459_v35, %v7456_v28  ;;  %v7470_v53 = vor.u32 %v7469_v50, %v7465_v58  ;;  %v12385_v21 = vcombine.low %v14716_v63, %v18117_v47  ;;  %v18122_v25 = vcombine.low %v17940_v18, %v17944_v34  ;;  %v7071_v50 = vld [vmem:[#allocation3 + $0x30] sm:$0xe] }
 0x714   : > { %v7452_v2 = vsel %vm15385_vm14, %v7447_v30, %v7451_v33  ;;  %v18126_v22 = vcombine.low %v17965_v6, %v17970_v42  ;;  %v18136_v33 = vcombine.low %v18006_v57, %v18015_v23  ;;  %v18140_v18 = vcombine.low %v18027_v11, %v18032_v27 }
 0x715   : > { %v18115_v16 = vcombine.low %v7442_v5, %v7452_v2  ;;  %v7461_v14 = vrot.slane %v7460_v4, 4  ;;  %v7471_v19 = vrot.slane %v7470_v53, 4  ;;  %v18146_v51 = vcombine.low %v18048_v24, %v18052_v8 }
 0x716   : > { %v18150_v28 = vcombine.low %v18065_v31, %v18070_v0  ;;  %v18153_v35 = vcombine.low %v7043_v56, %v18087_v62  ;;  %v12423_v57 = vrot.slane %v7069_v10, 9  ;;  %v8128_v11 = vrot.slane %v17849_v49, 5  ;;  %v7072_v49 = vld [vmem:[#allocation3 + $0x3c] sm:$0xe] }
 0x717   : > { %13599 = vmatprep.mubr.msk.bf16.mxu1 %vm20043_vm0, %v18115_v16  ;;  %v7466_v4 = vsel %vm15385_vm14, %v7461_v14, %v7465_v58  ;;  %v7476_v53 = vsel %vm15385_vm14, %v7471_v19, %v7475_v13  ;;  %v7070_v58 = vld [vmem:[#allocation3 + $0x24] sm:$0xe]  ;;  %v8131_v24 = vrot.slane %v17851_v29, 5  ;;  %v8135_v31 = vrot.slane %v17899_v37, 5 }
 0x718   : > { %v18142_v6 = vcombine.low %v7466_v4, %v7476_v53  ;;  %v8130_v32 = vrot.slane %v8128_v11, 4  ;;  %v12424_v5 = vrot.slane %v7070_v58, 9  ;;  %v8129_v56 = vsel %vm15585_vm12, %v12423_v57, %v8128_v11  ;;  %v14650_v4 = vld [vmem:[%s19981_s5 + $0x48] sm:$0xff]  }
 0x719   : > { %v12425_v14 = vrot.slane %v7071_v50, 9  ;;  %v8142_v19 = vrot.slane %v17918_v54, 5  ;;  %v8137_v63 = vrot.slane %v8135_v31, 4  ;;  %v18171_v29 = vcombine.low %v17812_v38, %v17796_v20 }
 0x71a   : > { %13600 = vmatmul.mubr.msk.bf16.gmra.mrb[16].mxu1 %vm20064_vm7, %v18142_v6  ;;  %v8132_v2 = vsel %vm15585_vm12, %v8130_v32, %v8131_v24  ;;  %v8145_v10 = vrot.slane %v17932_v43, 5  ;;  %v8136_v57 = vsel %vm15585_vm12, %v12424_v5, %v8135_v31  ;;  %v12426_v58 = vrot.slane %v7072_v49, 9  ;;  %v14655_v31 = vld [vmem:[%s19981_s5 + $0x50] sm:$0xff]   ;;  %v7078_v49 = vld [vmem:[#allocation3 + $0x84] sm:$0xe]  ;;  %vm20068_vm7 = vmmov %vm20043_vm0 }
 0x71b   : > { %13611 = vmatprep.mubr.msk.bf16.mxu1 %vm20065_vm5, %v12385_v21  ;;  %v18166_v13 = vcombine.low %v8129_v56, %v8132_v2  ;;  %v8138_v21 = vrot.slane %v17905_v48, 5  ;;  %v8144_v53 = vrot.slane %v8142_v19, 4  ;;  %v8149_v48 = vrot.slane %v17996_v17, 5  ;;  %v7076_v56 = vld [vmem:[#allocation3 + $0x6c] sm:$0xe]  ;;  %vm20069_vm5 = vmmov %vm20043_vm0 }
 0x71c   : > { %v8143_v50 = vsel %vm15585_vm12, %v12425_v14, %v8142_v19  ;;  %v8152_v5 = vrot.slane %v18002_v52, 5  ;;  %v7077_v19 = vld [vmem:[#allocation3 + $0x78] sm:$0xe]  ;;  %v18207_v52 = vcombine.low %v17895_v59, %v17899_v37  ;;  %v8184_v59 = vrot.slane %v17970_v42, 5 }
 0x71d   : > { %v8139_v11 = vsel %vm15585_vm12, %v8137_v63, %v8138_v21  ;;  %v8146_v43 = vsel %vm15585_vm12, %v8144_v53, %v8145_v10  ;;  %v8151_v24 = vrot.slane %v8149_v48, 4  ;;  %v8150_v2 = vsel %vm15585_vm12, %v12426_v58, %v8149_v48  ;;  %v14660_v53 = vld [vmem:[%s19981_s5 + $0x58] sm:$0xff]  }
 0x71e   : > { %v18184_v38 = vcombine.low %v8136_v57, %v8139_v11  ;;  %v18193_v32 = vcombine.low %v8143_v50, %v8146_v43  ;;  %v12430_v63 = vrot.slane %v7076_v56, 9  ;;  %v18211_v21 = vcombine.low %v17914_v55, %v17918_v54  ;;  %v7079_v57 = vld [vmem:[#allocation3 + $0x90] sm:$0xe] }
 0x71f   : > { %v8177_v10 = vrot.slane %v17944_v34, 5  ;;  %v12431_v11 = vrot.slane %v7077_v19, 9  ;;  %v12432_v37 = vrot.slane %v7078_v49, 9  ;;  %v18226_v55 = vcombine.low %v17842_v7, %v17816_v9  ;;  %v18238_v7 = vld [vmem:[%s19981_s5 + $0x60] sm:$0xff]   ;;  %v7082_v49 = vld [vmem:[#allocation3 + $0xb4] sm:$0xe] }
 0x720   : > { %v8180_v58 = vrot.slane %v17954_v3, 5  ;;  %v8191_v34 = vrot.slane %v18015_v23, 5  ;;  %v12433_v48 = vrot.slane %v7079_v57, 9  ;;  %v8194_v50 = vrot.slane %v18023_v61, 5 }
 0x721   : > { %v8179_v54 = vrot.slane %v8177_v10, 4  ;;  %v8178_v42 = vsel %vm15585_vm12, %v12430_v63, %v8177_v10  ;;  %v8198_v43 = vrot.slane %v18032_v27, 5  ;;  %v8201_v27 = vrot.slane %v18039_v36, 5 }
 0x722   : > { %13612 = vmatmul.mubr.msk.bf16.vlgmr.msra.gmra.mrb[20].mxu1 %vm20067_vm11, %v18171_v29  ;;  %v8193_v23 = vrot.slane %v8191_v34, 4  ;;  %v8192_v56 = vsel %vm15585_vm12, %v12432_v37, %v8191_v34  ;;  %v8208_v37 = vrot.slane %v18060_v41, 5  ;;  %v8212_v36 = vrot.slane %v18070_v0, 5  ;;  %vm20070_vm11 = vmmov %vm20043_vm0 }
 0x723   : > { %13644 = vmatpush3.bf16.msra.mxu1 %v17992_v46  ;;  %13615 = vmatprep.mubr.msk.bf16.mxu1 %vm20043_vm0, %v18111_v1  ;;  %v8153_v46 = vsel %vm15585_vm12, %v8151_v24, %v8152_v5  ;;  %v8181_v3 = vsel %vm15585_vm12, %v8179_v54, %v8180_v58  ;;  %v7080_v24 = vld [vmem:[#allocation3 + $0x9c] sm:$0xe]  ;;  %v8200_v19 = vrot.slane %v8198_v43, 4  ;;  %v8199_v10 = vsel %vm15585_vm12, %v12433_v48, %v8198_v43 }
 0x724   : > { %13645 = vmatprep.subr.bf16.mxu1 %v14650_v4  ;;  %v18203_v14 = vcombine.low %v8150_v2, %v8153_v46  ;;  %v18244_v5 = vcombine.low %v8178_v42, %v8181_v3  ;;  %v7081_v2 = vld [vmem:[#allocation3 + $0xa8] sm:$0xe]  ;;  %v8195_v61 = vsel %vm15585_vm12, %v8193_v23, %v8194_v50  ;;  %v12434_v57 = vrot.slane %v7080_v24, 9  ;;  %v18286_v23 = vld [vmem:[#allocation3 + $0xc4] sm:$0xf] }
 0x725   : > { %v18257_v63 = vcombine.low %v8192_v56, %v8195_v61  ;;  %v12435_v54 = vrot.slane %v7081_v2, 9  ;;  %v12436_v34 = vrot.slane %v7082_v49, 9  ;;  %v8219_v42 = vrot.slane %v18087_v62, 5  ;;  %v7083_v50 = vld [vmem:[#allocation3 + $0xc0] sm:$0xe] }
 0x726   : > { %v8222_v48 = vrot.slane %v18094_v45, 5  ;;  %v12539_v56 = vrot.slane %v7083_v50, 9  ;;  %v9040_v2 = vrot.slane %v18286_v23, 5  ;;  %v18301_v61 = vcombine.low %v17856_v60, %v17863_v12 }
 0x727   : > { %13646 = vmatpush3.bf16.msra.mxu1 %v14650_v4  ;;  %v18219_v4 = vcombine.low %v17982_v40, %v17996_v17  ;;  %v8186_v40 = vrot.slane %v8184_v59, 4  ;;  %v8187_v17 = vrot.slane %v17976_v15, 5  ;;  %v8185_v15 = vsel %vm15585_vm12, %v12431_v11, %v8184_v59 }
 0x728   : > { %13647 = vmatprep.subr.bf16.mxu1 %v14655_v31  ;;  %v8205_v11 = vrot.slane %v18052_v8, 5  ;;  %v8202_v59 = vsel %vm15585_vm12, %v8200_v19, %v8201_v27  ;;  %v8214_v8 = vrot.slane %v8212_v36, 4  ;;  %v8213_v62 = vsel %vm15585_vm12, %v12435_v54, %v8212_v36  ;;  %v20071_v19 = vld [vmem:[#allocation25_spill] sm:$0xff]  ;;  %v20072_v27 = vld [vmem:[#allocation30_spill] sm:$0xff]  ;;  %v7067_v54 = vld [vmem:[#allocation3] sm:$0xe] }
 0x729   : > { %v18267_v58 = vcombine.low %v8199_v10, %v8202_v59  ;;  %v8220_v24 = vsel %vm15585_vm12, %v12436_v34, %v8219_v42  ;;  %v18305_v49 = vcombine.low %v20072_v27, %v20071_v19  ;;  %v9042_v10 = vrot.slane %v9040_v2, 4  ;;  %v14717_v34 = vld [vmem:[#allocation3 + $0x8] sm:$0x1]  ;;  %v14667_v27 = vld [vmem:[%s19981_s5 + $0x78] sm:$0xff]  }
 0x72a   : > { %13616 = vmatmul.mubr.msk.bf16.gmra.mrb[24].mxu1 %vm20068_vm7, %v18207_v52  ;;  %v8206_v41 = vsel %vm15585_vm12, %v12434_v57, %v8205_v11  ;;  %vm20073_vm7 = vmmov %vm20043_vm0  ;;  %v12421_v36 = vrot.slane %v7067_v54, 9 }
 0x72b   : > { %13619 = vmatprep.mubr.msk.bf16.mxu1 %vm20069_vm5, %v18211_v21  ;;  %13648 = vmatpush3.bf16.msra.mxu1 %v14655_v31  ;;  %v8188_v31 = vsel %vm15585_vm12, %v8186_v40, %v8187_v17  ;;  %v8215_v40 = vrot.slane %v18080_v44, 5  ;;  %v8221_v17 = vrot.slane %v8219_v42, 4  ;;  %vm20074_vm5 = vmmov %vm20043_vm0  ;;  %v8117_v42 = vrot.slane %v14717_v34, 5  ;;  %v7074_v34 = vld [vmem:[#allocation3 + $0x54] sm:$0xe] }
 0x72c   : > { %13649 = vmatprep.subr.bf16.mxu1 %v14660_v53  ;;  %v18252_v46 = vcombine.low %v8185_v15, %v8188_v31  ;;  %v18296_v31 = vld [vmem:[#allocation3 + $0xc8] sm:$0x1] }
 0x72d   : > { %v8216_v44 = vsel %vm15585_vm12, %v8214_v8, %v8215_v40  ;;  %v8223_v15 = vsel %vm15585_vm12, %v8221_v17, %v8222_v48  ;;  %v9043_v57 = vrot.slane %v18296_v31, 5 }
 0x72e   : > { %v18288_v43 = vcombine.low %v8213_v62, %v8216_v44  ;;  %v18294_v45 = vcombine.low %v8220_v24, %v8223_v15  ;;  %v20081_v62 = vld [vmem:[#allocation26_spill] sm:$0xff] }
 0x72f   : > { %13650 = vmatpush3.bf16.msra.mxu1 %v14660_v53  ;;  %v8207_v53 = vrot.slane %v8205_v11, 4  ;;  %v9041_v11 = vsel %vm15585_vm12, %v12539_v56, %v9040_v2  ;;  %v9044_v60 = vsel %vm15585_vm12, %v9042_v10, %v9043_v57  ;;  %v8124_v44 = vrot.slane %v20081_v62, 5  ;;  %v14666_v56 = vld [vmem:[%s19981_s5 + $0x70] sm:$0xff]   ;;  %v7073_v10 = vld [vmem:[#allocation3 + $0x48] sm:$0xe]  ;;  %v20086_v57 = vld [vmem:[#allocation27_spill] sm:$0xff] }
 0x730   : > { %13683 = vmatprep.subr.bf16.mxu1 %v18238_v7  ;;  %v18316_v59 = vcombine.low %v9041_v11, %v9044_v60  ;;  %v8156_v2 = vrot.slane %v17816_v9, 5  ;;  %v8159_v11 = vrot.slane %v20086_v57, 5  ;;  %v12427_v60 = vrot.slane %v7073_v10, 9  ;;  %v14668_v9 = vld [vmem:[%s19981_s5 + $0x80] sm:$0xff]  }
 0x731   : > { %v8209_v0 = vsel %vm15585_vm12, %v8207_v53, %v8208_v37  ;;  %v8114_v37 = vrot.slane %v18117_v47, 5  ;;  %v14673_v10 = vld [vmem:[%s19981_s5 + $0xa0] sm:$0xff]  }
 0x732   : > { %13620 = vmatmul.mubr.msk.bf16.gmra.mrb[28].mxu1 %vm20070_vm11, %v18219_v4  ;;  %v18280_v3 = vcombine.low %v8206_v41, %v8209_v0  ;;  %vm20075_vm11 = vmmov %vm20043_vm0  ;;  %v8121_v41 = vrot.slane %v17796_v20, 5  ;;  %v7068_v0 = vld [vmem:[#allocation3 + $0xc] sm:$0xe]  ;;  %v14665_v20 = vld [vmem:[%s19981_s5 + $0x68] sm:$0xff]  }
 0x733   : > { %13623 = vmatprep.mubr.msk.bf16.mxu1 %vm20043_vm0, %v18226_v55  ;;  %v8116_v53 = vrot.slane %v8114_v37, 4  ;;  %v8115_v8 = vsel %vm15585_vm12, %v12421_v36, %v8114_v37  ;;  %v12422_v48 = vrot.slane %v7068_v0, 9  ;;  %v8163_v37 = vrot.slane %v17863_v12, 5 }
 0x734   : > { %v8123_v17 = vrot.slane %v8121_v41, 4  ;;  %v8170_v36 = vrot.slane %v20071_v19, 5  ;;  %v12428_v12 = vrot.slane %v7074_v34, 9 }
 0x735   : > { %v8118_v40 = vsel %vm15585_vm12, %v8116_v53, %v8117_v42  ;;  %v8122_v24 = vsel %vm15585_vm12, %v12422_v48, %v8121_v41  ;;  %v8157_v53 = vsel %vm15585_vm12, %v12427_v60, %v8156_v2 }
 0x736   : > { %v12445_v47 = vcombine.low %v8115_v8, %v8118_v40  ;;  %v8125_v50 = vsel %vm15585_vm12, %v8123_v17, %v8124_v44  ;;  %v8165_v8 = vrot.slane %v8163_v37, 4  ;;  %v7075_v40 = vld [vmem:[#allocation3 + $0x60] sm:$0xe]  ;;  %v8172_v41 = vrot.slane %v8170_v36, 4  ;;  %v20089_v17 = vld [vmem:[#allocation13_spill] sm:$0xff] }
 0x737   : > { %v18344_v15 = vcombine.low %v8122_v24, %v8125_v50  ;;  %v12429_v0 = vrot.slane %v7075_v40, 9  ;;  %v8173_v48 = vrot.slane %v20089_v17, 5  ;;  %v8164_v50 = vsel %vm15585_vm12, %v12428_v12, %v8163_v37  ;;  %v20121_v12 = vld [vmem:[#allocation11_spill] sm:$0xff]  ;;  %v20126_v17 = vld [vmem:[#allocation18_spill] sm:$0xff] }
 0x739   : > { %v8174_v44 = vsel %vm15585_vm12, %v8172_v41, %v8173_v48  ;;  %v14675_v48 = vld [vmem:[%s19981_s5 + $0xb0] sm:$0xff]  }
 0x73a   : > { %13624 = vmatmul.mubr.msk.bf16.gmra.mrb[0].mxu1 %vm20073_vm7, %v18301_v61  ;;  %vm20077_vm7 = vmmov %vm20043_vm0 }
 0x73b   : > { %13627 = vmatprep.mubr.msk.bf16.mxu1 %vm20074_vm5, %v18305_v49  ;;  %vm20078_vm5 = vmmov %vm20043_vm0 }
 0x742   : > { %13628 = vmatmul.mubr.msk.bf16.gmra.mrb[4].mxu1 %vm20075_vm11, %v18122_v25  ;;  %vm20079_vm11 = vmmov %vm20043_vm0 }
 0x743   : > { %13631 = vmatprep.mubr.msk.bf16.mxu1 %vm20043_vm0, %v18126_v22 }
 0x74a   : > { %13632 = vmatmul.mubr.msk.bf16.gmra.mrb[8].mxu1 %vm20076_vm8, %v18136_v33  ;;  %vm20080_vm8 = vmmov %vm20043_vm0 }
 0x74b   : > { %13635 = vmatprep.mubr.msk.bf16.mxu1 %vm20077_vm7, %v18140_v18  ;;  %vm20082_vm7 = vmmov %vm20043_vm0 }
 0x752   : > { %13636 = vmatmul.mubr.msk.bf16.gmra.mrb[12].mxu1 %vm20078_vm5, %v18146_v51  ;;  %vm20083_vm5 = vmmov %vm20043_vm0 }
 0x753   : > { %13639 = vmatprep.mubr.msk.bf16.mxu1 %vm20079_vm11, %v18150_v28  ;;  %vm20084_vm11 = vmmov %vm20043_vm0 }
 0x75a   : > { %13640 = vmatmul.mubr.msk.bf16.gmra.mrb[16].mxu1 %vm20080_vm8, %v18153_v35  ;;  %vm20085_vm8 = vmmov %vm20043_vm0 }
 0x75b   : > { %13651 = vmatprep.mubr.msk.bf16.mxu1 %vm20043_vm0, %v12445_v47  ;;  %v20088_v47 = vld [vmem:[#allocation14_spill] sm:$0xff] }
 0x75c   : > { %v8166_v19 = vrot.slane %v20088_v47, 5 }
 0x75e   : > { %v8167_v62 = vsel %vm15585_vm12, %v8165_v8, %v8166_v19  ;;  %v14674_v19 = vld [vmem:[%s19981_s5 + $0xa8] sm:$0xff]  }
 0x75f   : > { %v18389_v24 = vcombine.low %v8164_v50, %v8167_v62  ;;  %v14676_v62 = vld [vmem:[%s19981_s5 + $0xb8] sm:$0xff]   ;;  %v20130_v50 = vld [vmem:[#allocation29_spill] sm:$0xff] }
 0x762   : > { %13652 = vmatmul.mubr.msk.bf16.vlgmr.msra.gmra.mrb[20].mxu1 %vm20082_vm7, %v18344_v15  ;;  %vm20087_vm7 = vmmov %vm20043_vm0 }
 0x763   : > { %13684 = vmatpush3.bf16.msra.mxu1 %v18238_v7  ;;  %13655 = vmatprep.mubr.msk.bf16.mxu1 %vm20083_vm5, %v18166_v13  ;;  %v8158_v7 = vrot.slane %v8156_v2, 4  ;;  %vm20090_vm5 = vmmov %vm20043_vm0  ;;  %v14669_v2 = vld [vmem:[%s19981_s5 + $0x88] sm:$0xff]  }
 0x764   : > { %13685 = vmatprep.subr.bf16.mxu1 %v14665_v20 }
 0x765   : > { %v8160_v54 = vsel %vm15585_vm12, %v8158_v7, %v8159_v11 }
 0x766   : > { %v18375_v42 = vcombine.low %v8157_v53, %v8160_v54  ;;  %v7045_v53 = vld [vmem:[#allocation3 + $0xc0] sm:$0xf] }
 0x767   : > { %13686 = vmatpush3.bf16.msra.mxu1 %v14665_v20  ;;  %v8171_v20 = vsel %vm15585_vm12, %v12429_v0, %v8170_v36  ;;  %v18472_v34 = vcombine.low %v7045_v53, %v18286_v23  ;;  %v20124_v0 = vld [vmem:[#allocation21_spill] sm:$0xff] }
 0x768   : > { %13687 = vmatprep.subr.bf16.mxu1 %v14666_v56 }
 0x76a   : > { %13656 = vmatmul.mubr.msk.bf16.gmra.mrb[24].mxu1 %vm20084_vm11, %v18184_v38  ;;  %vm20091_vm11 = vmmov %vm20043_vm0 }
 0x76b   : > { %13659 = vmatprep.mubr.msk.bf16.mxu1 %vm20085_vm8, %v18193_v32  ;;  %13688 = vmatpush3.bf16.msra.mxu1 %v14666_v56  ;;  %v18393_v56 = vcombine.low %v8171_v20, %v8174_v44  ;;  %vm20092_vm8 = vmmov %vm20043_vm0  ;;  %v20128_v44 = vld [vmem:[#allocation15_spill] sm:$0xff]  ;;  %v14677_v20 = vld [vmem:[%s19981_s5 + $0xc0] sm:$0xff]  }
 0x76c   : > { %13689 = vmatprep.subr.bf16.mxu1 %v14667_v27 }
 0x76f   : > { %13690 = vmatpush3.bf16.msra.mxu1 %v14667_v27  ;;  %v14670_v27 = vld [vmem:[%s19981_s5 + $0x90] sm:$0xff]  }
 0x770   : > { %13723 = vmatprep.subr.bf16.mxu1 %v14668_v9 }
 0x772   : > { %13660 = vmatmul.mubr.msk.bf16.gmra.mrb[28].mxu1 %vm20043_vm0, %v18203_v14 }
 0x773   : > { %13663 = vmatprep.mubr.msk.bf16.mxu1 %vm20087_vm7, %v18375_v42  ;;  %vm20093_vm7 = vmmov %vm20043_vm0 }
 0x77a   : > { %13664 = vmatmul.mubr.msk.bf16.gmra.mrb[0].mxu1 %vm20090_vm5, %v18389_v24  ;;  %vm20096_vm5 = vmmov %vm20043_vm0 }
 0x77b   : > { %13667 = vmatprep.mubr.msk.bf16.mxu1 %vm20091_vm11, %v18393_v56  ;;  %vm20097_vm11 = vmmov %vm20043_vm0 }
 0x782   : > { %13668 = vmatmul.mubr.msk.bf16.gmra.mrb[4].mxu1 %vm20092_vm8, %v18244_v5  ;;  %vm20098_vm8 = vmmov %vm20043_vm0 }
 0x783   : > { %13671 = vmatprep.mubr.msk.bf16.mxu1 %vm20043_vm0, %v18252_v46 }
 0x78a   : > { %13672 = vmatmul.mubr.msk.bf16.gmra.mrb[8].mxu1 %vm20093_vm7, %v18257_v63  ;;  %vm20101_vm7 = vmmov %vm20043_vm0 }
 0x78b   : > { %13675 = vmatprep.mubr.msk.bf16.mxu1 %vm20094_vm2, %v18267_v58  ;;  %vm20099_vm2 = vmmov %vm20043_vm0 }
 0x792   : > { %13676 = vmatmul.mubr.msk.bf16.gmra.mrb[12].mxu1 %vm20095_vm1, %v18280_v3  ;;  %vm20100_vm1 = vmmov %vm20043_vm0 }
 0x793   : > { %13679 = vmatprep.mubr.msk.bf16.mxu1 %vm20096_vm5, %v18288_v43  ;;  %vm20102_vm5 = vmmov %vm20043_vm0 }
 0x79a   : > { %13680 = vmatmul.mubr.msk.bf16.gmra.mrb[16].mxu1 %vm20097_vm11, %v18294_v45  ;;  %vm20103_vm11 = vmmov %vm20043_vm0 }
 0x79b   : > { %13691 = vmatprep.mubr.msk.bf16.mxu1 %vm20098_vm8, %v18171_v29  ;;  %v14671_v29 = vld [vmem:[%s19981_s5 + $0x98] sm:$0xff]   ;;  %vm20107_vm8 = vmmov %vm20043_vm0 }
 0x7a2   : > { %13692 = vmatmul.mubr.msk.bf16.vlgmr.msra.gmra.mrb[20].mxu1 %vm20043_vm0, %v18111_v1 }
 0x7a3   : > { %13724 = vmatpush3.bf16.msra.mxu1 %v14668_v9  ;;  %13695 = vmatprep.mubr.msk.bf16.mxu1 %vm20099_vm2, %v18207_v52  ;;  %vm20108_vm2 = vmmov %vm20043_vm0 }
 0x7a4   : > { %13725 = vmatprep.subr.bf16.mxu1 %v14669_v2 }
 0x7a7   : > { %13726 = vmatpush3.bf16.msra.mxu1 %v14669_v2  ;;  %v20132_v2 = vld [vmem:[#allocation10_spill] sm:$0xff] }
 0x7a8   : > { %13727 = vmatprep.subr.bf16.mxu1 %v14670_v27 }
 0x7aa   : > { %13696 = vmatmul.mubr.msk.bf16.gmra.mrb[24].mxu1 %vm20100_vm1, %v18211_v21  ;;  %vm20109_vm1 = vmmov %vm20043_vm0 }
 0x7ab   : > { %13699 = vmatprep.mubr.msk.bf16.mxu1 %vm20101_vm7, %v18219_v4  ;;  %13728 = vmatpush3.bf16.msra.mxu1 %v14670_v27  ;;  %vm20111_vm7 = vmmov %vm20043_vm0  ;;  %v20134_v27 = vld [vmem:[#allocation28_spill] sm:$0xff] }
 0x7ac   : > { %13729 = vmatprep.subr.bf16.mxu1 %v14671_v29 }
 0x7af   : > { %13730 = vmatpush3.bf16.msra.mxu1 %v14671_v29  ;;  %v20135_v29 = vld [vmem:[#allocation16_spill] sm:$0xff] }
 0x7b0   : > { %13763 = vmatprep.subr.bf16.mxu1 %v14673_v10 }
 0x7b2   : > { %13700 = vmatmul.mubr.msk.bf16.gmra.mrb[28].mxu1 %vm20102_vm5, %v18226_v55  ;;  %vm20113_vm5 = vmmov %vm20043_vm0 }
 0x7b3   : > { %13703 = vmatprep.mubr.msk.bf16.mxu1 %vm20103_vm11, %v18301_v61  ;;  %v18439_v7 = vpop.f32.mrb[32].mxu0  ;;  %vm20116_vm11 = vmmov %vm20043_vm0 }
 0x7b4   : > { %v18441_v57 = vpop.f32.mrb[33].mxu0 }
 0x7b5   : > { %20104 = vst [vmem:[#allocation7_spill] sm:$0xff] %v18441_v57  ;;  %v18443_v11 = vpop.f32.mrb[34].mxu0 }
 0x7b6   : > { %20105 = vst [vmem:[#allocation9_spill] sm:$0xff] %v18443_v11  ;;  %v18445_v60 = vpop.f32.mrb[35].mxu0  ;;  %v8800_v11 = vshll.u32 %v18296_v31, 16 }
 0x7b7   : > { %20106 = vst [vmem:[#allocation12_spill] sm:$0xff] %v18445_v60 }
 0x7ba   : > { %13704 = vmatmul.mubr.msk.bf16.gmra.mrb[0].mxu1 %vm20107_vm8, %v18305_v49  ;;  %vm20117_vm8 = vmmov %vm20043_vm0 }
 0x7bb   : > { %13707 = vmatprep.mubr.msk.bf16.mxu1 %vm20043_vm0, %v18122_v25 }
 0x7c2   : > { %13708 = vmatmul.mubr.msk.bf16.gmra.mrb[4].mxu1 %vm20108_vm2, %v18126_v22  ;;  %vm20122_vm2 = vmmov %vm20043_vm0 }
 0x7c3   : > { %13711 = vmatprep.mubr.msk.bf16.mxu1 %vm20109_vm1, %v18136_v33  ;;  %vm20125_vm1 = vmmov %vm20043_vm0 }
 0x7c9   : > { %v18455_v9 = vpop.f32.mrb[36].mxu0 }
 0x7ca   : > { %20110 = vst [vmem:[#allocation25_spill] sm:$0xff] %v18455_v9  ;;  %13712 = vmatmul.mubr.msk.bf16.gmra.mrb[8].mxu1 %vm20111_vm7, %v18140_v18  ;;  %v18459_v37 = vpop.f32.mrb[37].mxu0  ;;  %vm20127_vm7 = vmmov %vm20043_vm0 }
 0x7cb   : > { %20112 = vst [vmem:[#allocation30_spill] sm:$0xff] %v18459_v37  ;;  %13715 = vmatprep.mubr.msk.bf16.mxu1 %vm20113_vm5, %v18146_v51  ;;  %v18463_v54 = vpop.f32.mrb[38].mxu0  ;;  %vm20129_vm5 = vmmov %vm20043_vm0  ;;  %v20143_v37 = vld [vmem:[#allocation22_spill] sm:$0xff] }
 0x7cc   : > { %20114 = vst [vmem:[#allocation26_spill] sm:$0xff] %v18463_v54  ;;  %v18465_v36 = vpop.f32.mrb[39].mxu0 }
 0x7cd   : > { %20115 = vst [vmem:[#allocation27_spill] sm:$0xff] %v18465_v36 }
 0x7d2   : > { %13716 = vmatmul.mubr.msk.bf16.gmra.mrb[12].mxu1 %vm20116_vm11, %v18150_v28  ;;  %vm20131_vm11 = vmmov %vm20043_vm0 }
 0x7d3   : > { %13719 = vmatprep.mubr.msk.bf16.mxu1 %vm20117_vm8, %v18153_v35  ;;  %vm20133_vm8 = vmmov %vm20043_vm0 }
 0x7d8   : > { %v18474_v8 = vpop.f32.mrb[40].mxu0 }
 0x7d9   : > { %20118 = vst [vmem:[#allocation14_spill] sm:$0xff] %v18474_v8  ;;  %v18476_v40 = vpop.f32.mrb[41].mxu0 }
 0x7da   : > { %20119 = vst [vmem:[#allocation13_spill] sm:$0xff] %v18476_v40  ;;  %13720 = vmatmul.mubr.msk.bf16.gmra.mrb[16].mxu1 %vm20043_vm0, %v18472_v34  ;;  %v18480_v41 = vpop.f32.mrb[42].mxu0 }
 0x7db   : > { %20120 = vst [vmem:[#allocation32_spill] sm:$0xff] %v18480_v41  ;;  %13731 = vmatprep.mubr.msk.bf16.mxu1 %vm20122_vm2, %v20121_v12  ;;  %v18484_v47 = vpop.f32.mrb[43].mxu0  ;;  %vm20136_vm2 = vmmov %vm20043_vm0  ;;  %v20139_v12 = vld [vmem:[#allocation20_spill] sm:$0xff]  ;;  %v8790_v41 = vshll.u32 %v18286_v23, 16 }
 0x7dc   : > { %20123 = vst [vmem:[#allocation11_spill] sm:$0xff] %v18484_v47  ;;  %v8794_v47 = vshrl.u32 %v18286_v23, 16  ;;  %v8802_v23 = vrot.slane %v8800_v11, 5  ;;  %v14678_v11 = vld [vmem:[%s19981_s5 + $0xc8] sm:$0xff]  }
 0x7dd   : > { %v8792_v36 = vrot.slane %v8790_v41, 5  ;;  %v563_v41 = vld [vmem:[#allocation3 + $0xcc] sm:$0x1] }
 0x7de   : > { %v8796_v54 = vrot.slane %v8794_v47, 4 }
 0x7e0   : > { %v8797_v60 = vor.u32 %v8796_v54, %v8792_v36 }
 0x7e2   : > { %13732 = vmatmul.mubr.msk.bf16.vlgmr.msra.gmra.mrb[20].mxu1 %vm20125_vm1, %v20124_v0  ;;  %vm20138_vm1 = vmmov %vm20043_vm0 }
 0x7e3   : > { %13764 = vmatpush3.bf16.msra.mxu1 %v14673_v10  ;;  %13735 = vmatprep.mubr.msk.bf16.mxu1 %vm20127_vm7, %v20126_v17  ;;  %v20137_v10 = vld [vmem:[#allocation17_spill] sm:$0xff]  ;;  %vm20140_vm7 = vmmov %vm20043_vm0 }
 0x7e4   : > { %13765 = vmatprep.subr.bf16.mxu1 %v14674_v19 }
 0x7e7   : > { %13766 = vmatpush3.bf16.msra.mxu1 %v14674_v19  ;;  %v20141_v19 = vld [vmem:[#allocation19_spill] sm:$0xff] }
 0x7e8   : > { %13767 = vmatprep.subr.bf16.mxu1 %v14675_v48 }
 0x7ea   : > { %13736 = vmatmul.mubr.msk.bf16.gmra.mrb[24].mxu1 %vm20129_vm5, %v20128_v44  ;;  %vm20142_vm5 = vmmov %vm20043_vm0 }
 0x7eb   : > { %13739 = vmatprep.mubr.msk.bf16.mxu1 %vm20131_vm11, %v20130_v50  ;;  %13768 = vmatpush3.bf16.msra.mxu1 %v14675_v48  ;;  %v8781_v48 = vshrl.u32 %v7045_v53, 16  ;;  %vm20144_vm11 = vmmov %vm20043_vm0 }
 0x7ec   : > { %13769 = vmatprep.subr.bf16.mxu1 %v14676_v62 }
 0x7ed   : > { %v8783_v40 = vrot.slane %v8781_v48, 4  ;;  %v564_v48 = vsel %vm15169_vm10, 0, %v563_v41  ;;  %vm20150_vm10 = vmmov %vm20043_vm0 }
 0x7ee   : > { %565 = vst [vmem:[#allocation3 + $0xcc] sm:$0x1] %v564_v48 }
 0x7ef   : > { %13770 = vmatpush3.bf16.msra.mxu1 %v14676_v62  ;;  %v8784_v62 = vshll.u32 %v7045_v53, 16  ;;  %v8798_v53 = vrot.slane %v8797_v60, 4  ;;  %v14681_v60 = vld [vmem:[%s19981_s5 + $0xe0] sm:$0xff]  }
 0x7f0   : > { %13803 = vmatprep.subr.bf16.mxu1 %v14677_v20 }
 0x7f1   : > { %v8786_v8 = vrot.slane %v8784_v62, 5  ;;  %v8803_v54 = vsel %vm15385_vm14, %v8798_v53, %v8802_v23 }
 0x7f2   : > { %13740 = vmatmul.mubr.msk.bf16.gmra.mrb[28].mxu1 %vm20133_vm8, %v20132_v2  ;;  %vm20145_vm8 = vmmov %vm20043_vm0 }
 0x7f3   : > { %13743 = vmatprep.mubr.msk.bf16.mxu1 %vm20043_vm0, %v20134_v27  ;;  %v8787_v9 = vor.u32 %v8786_v8, %v8783_v40  ;;  %v14682_v40 = vld [vmem:[%s19981_s5 + $0xe8] sm:$0xff]  }
 0x7f5   : > { %v8788_v57 = vrot.slane %v8787_v9, 4  ;;  %v618_v9 = vld [vmem:[#allocation3 + $0xd4] sm:$0x1] }
 0x7f6   : > { %v619_v8 = vsel %vm14882_vm4, 0, %v618_v9  ;;  %vm20167_vm4 = vmmov %vm20043_vm0 }
 0x7f7   : > { %v8793_v62 = vsel %vm15385_vm14, %v8788_v57, %v8792_v36  ;;  %v14679_v57 = vld [vmem:[%s19981_s5 + $0xd0] sm:$0xff]   ;;  %620 = vst [vmem:[#allocation3 + $0xd4] sm:$0x1] %v619_v8 }
 0x7f8   : > { %v18535_v31 = vcombine.low %v8793_v62, %v8803_v54 }
 0x7fa   : > { %13744 = vmatmul.mubr.msk.bf16.gmra.mrb[0].mxu1 %vm20136_vm2, %v20135_v29  ;;  %vm20146_vm2 = vmmov %vm20043_vm0 }
 0x7fb   : > { %13747 = vmatprep.mubr.msk.bf16.mxu1 %vm20138_vm1, %v20137_v10  ;;  %vm20148_vm1 = vmmov %vm20043_vm0 }
 0x802   : > { %13748 = vmatmul.mubr.msk.bf16.gmra.mrb[4].mxu1 %vm20140_vm7, %v20139_v12  ;;  %vm20149_vm7 = vmmov %vm20043_vm0 }
 0x803   : > { %13751 = vmatprep.mubr.msk.bf16.mxu1 %vm20142_vm5, %v20141_v19  ;;  %vm20151_vm5 = vmmov %vm20043_vm0 }
 0x80a   : > { %13752 = vmatmul.mubr.msk.bf16.gmra.mrb[8].mxu1 %vm20144_vm11, %v20143_v37  ;;  %vm20152_vm11 = vmmov %vm20043_vm0 }
 0x80b   : > { %13755 = vmatprep.mubr.msk.bf16.mxu1 %vm20145_vm8, %v18102_v39  ;;  %vm20153_vm8 = vmmov %vm20043_vm0 }
 0x812   : > { %13756 = vmatmul.mubr.msk.bf16.gmra.mrb[12].mxu1 %vm20043_vm0, %v18115_v16 }
 0x813   : > { %13759 = vmatprep.mubr.msk.bf16.mxu1 %vm20146_vm2, %v18142_v6  ;;  %vm20154_vm2 = vmmov %vm20043_vm0 }
 0x81a   : > { %13760 = vmatmul.mubr.msk.bf16.gmra.mrb[16].mxu1 %vm20148_vm1, %v18535_v31  ;;  %vm20155_vm1 = vmmov %vm20043_vm0 }
 0x81b   : > { %13771 = vmatprep.mubr.msk.bf16.mxu1 %vm20149_vm7, %v18344_v15  ;;  %v14680_v15 = vld [vmem:[%s19981_s5 + $0xd8] sm:$0xff]   ;;  %vm20156_vm7 = vmmov %vm20043_vm0 }
 0x822   : > { %13772 = vmatmul.mubr.msk.bf16.vlgmr.msra.gmra.mrb[20].mxu1 %vm20150_vm10, %v18166_v13  ;;  %vm20157_vm10 = vmmov %vm20043_vm0 }
 0x823   : > { %13804 = vmatpush3.bf16.msra.mxu1 %v14677_v20  ;;  %13775 = vmatprep.mubr.msk.bf16.mxu1 %vm20151_vm5, %v18184_v38  ;;  %vm20158_vm5 = vmmov %vm20043_vm0  ;;  %v14683_v20 = vld [vmem:[%s19981_s5 + $0xf0] sm:$0xff]  }
 0x824   : > { %13805 = vmatprep.subr.bf16.mxu1 %v14678_v11 }
 0x827   : > { %13806 = vmatpush3.bf16.msra.mxu1 %v14678_v11 }
 0x828   : > { %13807 = vmatprep.subr.bf16.mxu1 %v14679_v57 }
 0x82a   : > { %13776 = vmatmul.mubr.msk.bf16.gmra.mrb[24].mxu1 %vm20152_vm11, %v18193_v32  ;;  %vm20159_vm11 = vmmov %vm20043_vm0 }
 0x82b   : > { %13779 = vmatprep.mubr.msk.bf16.mxu1 %vm20153_vm8, %v18203_v14  ;;  %13808 = vmatpush3.bf16.msra.mxu1 %v14679_v57  ;;  %vm20160_vm8 = vmmov %vm20043_vm0 }
 0x82c   : > { %13809 = vmatprep.subr.bf16.mxu1 %v14680_v15 }
 0x82f   : > { %13810 = vmatpush3.bf16.msra.mxu1 %v14680_v15 }
 0x830   : > { %13843 = vmatprep.subr.bf16.mxu1 %v14681_v60 }
 0x832   : > { %13780 = vmatmul.mubr.msk.bf16.gmra.mrb[28].mxu1 %vm20043_vm0, %v18375_v42 }
 0x833   : > { %13783 = vmatprep.mubr.msk.bf16.mxu1 %vm20154_vm2, %v18389_v24  ;;  %vm20161_vm2 = vmmov %vm20043_vm0 }
 0x83a   : > { %13784 = vmatmul.mubr.msk.bf16.gmra.mrb[0].mxu1 %vm20155_vm1, %v18393_v56  ;;  %vm20163_vm1 = vmmov %vm20043_vm0 }
 0x83b   : > { %13787 = vmatprep.mubr.msk.bf16.mxu1 %vm20156_vm7, %v18244_v5  ;;  %vm20164_vm7 = vmmov %vm20043_vm0 }
 0x842   : > { %13788 = vmatmul.mubr.msk.bf16.gmra.mrb[4].mxu1 %vm20157_vm10, %v18252_v46  ;;  %vm20165_vm10 = vmmov %vm20043_vm0 }
 0x843   : > { %13791 = vmatprep.mubr.msk.bf16.mxu1 %vm20158_vm5, %v18257_v63  ;;  %vm20166_vm5 = vmmov %vm20043_vm0 }
 0x84a   : > { %13792 = vmatmul.mubr.msk.bf16.gmra.mrb[8].mxu1 %vm20159_vm11, %v18267_v58  ;;  %vm20168_vm11 = vmmov %vm20043_vm0 }
 0x84b   : > { %13795 = vmatprep.mubr.msk.bf16.mxu1 %vm20160_vm8, %v18280_v3  ;;  %vm20169_vm8 = vmmov %vm20043_vm0 }
 0x852   : > { %13796 = vmatmul.mubr.msk.bf16.gmra.mrb[12].mxu1 %vm20043_vm0, %v18288_v43 }
 0x853   : > { %13799 = vmatprep.mubr.msk.bf16.mxu1 %vm20161_vm2, %v18294_v45  ;;  %vm20170_vm2 = vmmov %vm20043_vm0 }
 0x85a   : > { %13800 = vmatmul.mubr.msk.bf16.gmra.mrb[16].mxu1 %vm20163_vm1, %v18316_v59  ;;  %vm20171_vm1 = vmmov %vm20043_vm0 }
 0x85b   : > { %13811 = vmatprep.mubr.msk.bf16.mxu1 %vm20164_vm7, %v18111_v1  ;;  %v14684_v1 = vld [vmem:[%s19981_s5 + $0xf8] sm:$0xff]   ;;  %vm20172_vm7 = vmmov %vm20043_vm0 }
 0x862   : > { %13812 = vmatmul.mubr.msk.bf16.vlgmr.msra.gmra.mrb[20].mxu1 %vm20165_vm10, %v18207_v52  ;;  %v14686_v52 = vld [vmem:[%s19981_s5 + $0x100] sm:$0xff]   ;;  %vm20173_vm10 = vmmov %vm20043_vm0 }
 0x863   : > { %13844 = vmatpush3.bf16.msra.mxu1 %v14681_v60  ;;  %13815 = vmatprep.mubr.msk.bf16.mxu1 %vm20166_vm5, %v18211_v21  ;;  %vm20174_vm5 = vmmov %vm20043_vm0  ;;  %v20215_v60 = vld [vmem:[#allocation25_spill] sm:$0xff] }
 0x864   : > { %13845 = vmatprep.subr.bf16.mxu1 %v14682_v40 }
 0x867   : > { %13846 = vmatpush3.bf16.msra.mxu1 %v14682_v40 }
 0x868   : > { %13847 = vmatprep.subr.bf16.mxu1 %v14683_v20 }
 0x86a   : > { %13816 = vmatmul.mubr.msk.bf16.gmra.mrb[24].mxu1 %vm20167_vm4, %v18219_v4  ;;  %vm20175_vm4 = vmmov %vm20043_vm0 }
 0x86b   : > { %13819 = vmatprep.mubr.msk.bf16.mxu1 %vm20168_vm11, %v18226_v55  ;;  %13848 = vmatpush3.bf16.msra.mxu1 %v14683_v20  ;;  %vm20176_vm11 = vmmov %vm20043_vm0  ;;  %v20218_v20 = vld [vmem:[#allocation30_spill] sm:$0xff] }
 0x86c   : > { %13849 = vmatprep.subr.bf16.mxu1 %v14684_v1 }
 0x86f   : > { %13850 = vmatpush3.bf16.msra.mxu1 %v14684_v1 }
 0x870   : > { %13883 = vmatprep.subr.bf16.mxu1 %v14686_v52 }
 0x872   : > { %13820 = vmatmul.mubr.msk.bf16.gmra.mrb[28].mxu1 %vm20169_vm8, %v18301_v61  ;;  %vm20177_vm8 = vmmov %vm20043_vm0 }
 0x873   : > { %13823 = vmatprep.mubr.msk.bf16.mxu1 %vm20043_vm0, %v18305_v49 }
 0x87a   : > { %13824 = vmatmul.mubr.msk.bf16.gmra.mrb[0].mxu1 %vm20170_vm2, %v18122_v25  ;;  %v7047_v25 = vld [vmem:[#allocation3 + $0xcc] sm:$0xf]  ;;  %vm20178_vm2 = vmmov %vm20043_vm0 }
 0x87b   : > { %13827 = vmatprep.mubr.msk.bf16.mxu1 %vm20171_vm1, %v18126_v22  ;;  %v18627_v22 = vld [vmem:[#allocation3 + $0xd0] sm:$0xf]  ;;  %vm20179_vm1 = vmmov %vm20043_vm0  ;;  %v9515_v21 = vshll.u32 %v7047_v25, 16 }
 0x87c   : > { %v9525_v4 = vshrl.u32 %v18627_v22, 16  ;;  %v9521_v55 = vshll.u32 %v18627_v22, 16  ;;  %v9771_v26 = vrot.slane %v18627_v22, 5 }
 0x87d   : > { %v9517_v49 = vrot.slane %v9515_v21, 5 }
 0x882   : > { %13828 = vmatmul.mubr.msk.bf16.gmra.mrb[4].mxu1 %vm20172_vm7, %v18136_v33  ;;  %v12577_v33 = vcombine.low %v7047_v25, %v18627_v22  ;;  %vm20180_vm7 = vmmov %vm20043_vm0 }
 0x883   : > { %13831 = vmatprep.mubr.msk.bf16.mxu1 %vm20173_vm10, %v18140_v18  ;;  %v14687_v18 = vld [vmem:[%s19981_s5 + $0x108] sm:$0xff]   ;;  %vm20181_vm10 = vmmov %vm20043_vm0 }
 0x88a   : > { %13832 = vmatmul.mubr.msk.bf16.gmra.mrb[8].mxu1 %vm20174_vm5, %v18146_v51  ;;  %v14688_v51 = vld [vmem:[%s19981_s5 + $0x110] sm:$0xff]   ;;  %vm20182_vm5 = vmmov %vm20043_vm0 }
 0x88b   : > { %13835 = vmatprep.mubr.msk.bf16.mxu1 %vm20175_vm4, %v18150_v28  ;;  %v14689_v28 = vld [vmem:[%s19981_s5 + $0x118] sm:$0xff]   ;;  %vm20183_vm4 = vmmov %vm20043_vm0  ;;  %s20289_s5 = smov 110  }
 0x892   : > { %13836 = vmatmul.mubr.msk.bf16.gmra.mrb[12].mxu1 %vm20176_vm11, %v18153_v35  ;;  %vm20184_vm11 = vmmov %vm20043_vm0  ;;  %v9512_v35 = vshrl.u32 %v7047_v25, 16 }
 0x893   : > { %13839 = vmatprep.mubr.msk.bf16.mxu1 %vm20177_vm8, %v18472_v34  ;;  %vm20185_vm8 = vmmov %vm20043_vm0  ;;  %v9523_v34 = vrot.slane %v9521_v55, 5 }
 0x894   : > { %v9514_v61 = vrot.slane %v9512_v35, 4  ;;  %v20221_v35 = vld [vmem:[#allocation26_spill] sm:$0xff] }
 0x89a   : > { %13840 = vmatmul.mubr.msk.bf16.gmra.mrb[16].mxu1 %vm20043_vm0, %v12577_v33 }
 0x89b   : > { %13851 = vmatprep.mubr.msk.bf16.mxu1 %vm20178_vm2, %v20124_v0  ;;  %vm20186_vm2 = vmmov %vm20043_vm0  ;;  %v9527_v0 = vrot.slane %v9525_v4, 4  ;;  %v20223_v4 = vld [vmem:[#allocation27_spill] sm:$0xff] }
 0x8a2   : > { %13852 = vmatmul.mubr.msk.bf16.vlgmr.msra.gmra.mrb[20].mxu1 %vm20179_vm1, %v20126_v17  ;;  %vm20187_vm1 = vmmov %vm20043_vm0  ;;  %v7066_v17 = vld [vmem:[#allocation3 + $0xd4] sm:$0x1] }
 0x8a3   : > { %13884 = vmatpush3.bf16.msra.mxu1 %v14686_v52  ;;  %13855 = vmatprep.mubr.msk.bf16.mxu1 %vm20180_vm7, %v20128_v44  ;;  %vm20188_vm7 = vmmov %vm20043_vm0  ;;  %v9518_v44 = vor.u32 %v9517_v49, %v9514_v61 }
 0x8a4   : > { %13885 = vmatprep.subr.bf16.mxu1 %v14687_v18 }
 0x8a7   : > { %13886 = vmatpush3.bf16.msra.mxu1 %v14687_v18 }
 0x8a8   : > { %13887 = vmatprep.subr.bf16.mxu1 %v14688_v51 }
 0x8aa   : > { %13856 = vmatmul.mubr.msk.bf16.gmra.mrb[24].mxu1 %vm20181_vm10, %v20130_v50  ;;  %vm20189_vm10 = vmmov %vm20043_vm0  ;;  %v9528_v50 = vor.u32 %v9527_v0, %v9523_v34 }
 0x8ab   : > { %13859 = vmatprep.mubr.msk.bf16.mxu1 %vm20182_vm5, %v20132_v2  ;;  %13888 = vmatpush3.bf16.msra.mxu1 %v14688_v51  ;;  %v9531_v2 = vshll.u32 %v7066_v17, 16  ;;  %vm20190_vm5 = vmmov %vm20043_vm0 }
 0x8ac   : > { %13889 = vmatprep.subr.bf16.mxu1 %v14689_v28 }
 0x8af   : > { %13890 = vmatpush3.bf16.msra.mxu1 %v14689_v28 }
 0x8b2   : > { %13860 = vmatmul.mubr.msk.bf16.gmra.mrb[28].mxu1 %vm20183_vm4, %v20134_v27  ;;  %v9519_v27 = vrot.slane %v9518_v44, 4  ;;  %vm20191_vm4 = vmmov %vm20043_vm0 }
 0x8b3   : > { %13863 = vmatprep.mubr.msk.bf16.mxu1 %vm20184_vm11, %v20135_v29  ;;  %v9529_v29 = vrot.slane %v9528_v50, 4  ;;  %vm20192_vm11 = vmmov %vm20043_vm0 }
 0x8ba   : > { %13864 = vmatmul.mubr.msk.bf16.gmra.mrb[0].mxu1 %vm20185_vm8, %v20137_v10  ;;  %v9533_v10 = vrot.slane %v9531_v2, 5  ;;  %vm20193_vm8 = vmmov %vm20043_vm0 }
 0x8bb   : > { %13867 = vmatprep.mubr.msk.bf16.mxu1 %vm20043_vm0, %v20139_v12 }
 0x8c2   : > { %13868 = vmatmul.mubr.msk.bf16.gmra.mrb[4].mxu1 %vm20186_vm2, %v20141_v19  ;;  %vm20194_vm2 = vmmov %vm20043_vm0 }
 0x8c3   : > { %13871 = vmatprep.mubr.msk.bf16.mxu1 %vm20187_vm1, %v20143_v37  ;;  %v9524_v37 = vsel %vm15385_vm14, %v9519_v27, %v9523_v34  ;;  %vm20195_vm1 = vmmov %vm20043_vm0 }
 0x8ca   : > { %13872 = vmatmul.mubr.msk.bf16.gmra.mrb[8].mxu1 %vm20188_vm7, %v18102_v39  ;;  %v9534_v39 = vsel %vm15385_vm14, %v9529_v29, %v9533_v10  ;;  %vm20196_vm7 = vmmov %vm20043_vm0 }
 0x8cb   : > { %13875 = vmatprep.mubr.msk.bf16.mxu1 %vm20189_vm10, %v18115_v16  ;;  %v12606_v12 = vcombine.low %v9524_v37, %v9534_v39  ;;  %vm20197_vm14 = vmmov %vm20043_vm0  ;;  %v7084_v16 = vld [vmem:[#allocation3 + $0xcc] sm:$0xe] }
 0x8cc   : > { %vm20198_vm10 = vmmov %vm20043_vm0 }
 0x8d2   : > { %13876 = vmatmul.mubr.msk.bf16.gmra.mrb[12].mxu1 %vm20190_vm5, %v18142_v6  ;;  %vm20199_vm5 = vmmov %vm20043_vm0  ;;  %v12627_v6 = vrot.slane %v7084_v16, 9 }
 0x8d3   : > { %13879 = vmatprep.mubr.msk.bf16.mxu1 %vm20191_vm4, %v18535_v31  ;;  %vm20200_vm4 = vmmov %vm20043_vm0 }
 0x8da   : > { %13880 = vmatmul.mubr.msk.bf16.gmra.mrb[16].mxu1 %vm20192_vm11, %v12606_v12  ;;  %vm20201_vm11 = vmmov %vm20043_vm0  ;;  %v20229_v12 = vld [vmem:[#allocation14_spill] sm:$0xff] }
 0x8db   : > { %13891 = vmatprep.mubr.msk.bf16.mxu1 %vm20193_vm8, %v18166_v13  ;;  %vm20202_vm8 = vmmov %vm20043_vm0  ;;  %v9773_v13 = vrot.slane %v9771_v26, 4 }
 0x8e2   : > { %13892 = vmatmul.mubr.msk.bf16.vlgmr.msra.gmra.mrb[20].mxu1 %vm20043_vm0, %v18184_v38  ;;  %v9774_v38 = vrot.slane %v7066_v17, 5 }
 0x8e3   : > { %13895 = vmatprep.mubr.msk.bf16.mxu1 %vm20194_vm2, %v18193_v32  ;;  %vm20203_vm2 = vmmov %vm20043_vm0  ;;  %v9772_v32 = vsel %vm15585_vm12, %v12627_v6, %v9771_v26 }
 0x8ea   : > { %13896 = vmatmul.mubr.msk.bf16.gmra.mrb[24].mxu1 %vm20195_vm1, %v18203_v14  ;;  %vm20204_vm1 = vmmov %vm20043_vm0  ;;  %v9775_v14 = vsel %vm15585_vm12, %v9773_v13, %v9774_v38  ;;  %v20232_v38 = vld [vmem:[#allocation13_spill] sm:$0xff] }
 0x8eb   : > { %13899 = vmatprep.mubr.msk.bf16.mxu1 %vm20196_vm7, %v18375_v42  ;;  %vm20205_vm7 = vmmov %vm20043_vm0  ;;  %v20208_v42 = vld [vmem:[#allocation9_spill] sm:$0xff] }
 0x8ec   : > { %vm20210_vm12 = vmmov %vm20043_vm0 }
 0x8f2   : > { %13900 = vmatmul.mubr.msk.bf16.gmra.mrb[28].mxu1 %vm20197_vm14, %v18389_v24  ;;  %vm20206_vm14 = vmmov %vm20043_vm0 }
 0x8f3   : > { %13903 = vmatprep.mubr.msk.bf16.mxu1 %vm20198_vm10, %v18393_v56  ;;  %v20209_v56 = vld [vmem:[#allocation12_spill] sm:$0xff]  ;;  %vm20211_vm10 = vmmov %vm20043_vm0 }
 0x8fa   : > { %13904 = vmatmul.mubr.msk.bf16.gmra.mrb[0].mxu1 %vm20199_vm5, %v18244_v5  ;;  %v12636_v5 = vcombine.low %v9772_v32, %v9775_v14  ;;  %vm20212_vm5 = vmmov %vm20043_vm0 }
 0x8fb   : > { %13907 = vmatprep.mubr.msk.bf16.mxu1 %vm20200_vm4, %v18252_v46  ;;  %vm20213_vm4 = vmmov %vm20043_vm0 }
 0x902   : > { %13908 = vmatmul.mubr.msk.bf16.gmra.mrb[4].mxu1 %vm20201_vm11, %v18257_v63  ;;  %vm20214_vm11 = vmmov %vm20043_vm0 }
 0x903   : > { %13911 = vmatprep.mubr.msk.bf16.mxu1 %vm20202_vm8, %v18267_v58  ;;  %vm20217_vm8 = vmmov %vm20043_vm0 }
 0x90a   : > { %13912 = vmatmul.mubr.msk.bf16.gmra.mrb[8].mxu1 %vm20043_vm0, %v18280_v3  ;;  %v20207_v3 = vld [vmem:[#allocation7_spill] sm:$0xff] }
 0x90b   : > { %13915 = vmatprep.mubr.msk.bf16.mxu1 %vm20203_vm2, %v18288_v43  ;;  %vm20219_vm2 = vmmov %vm20043_vm0 }
 0x912   : > { %13916 = vmatmul.mubr.msk.bf16.gmra.mrb[12].mxu1 %vm20204_vm1, %v18294_v45  ;;  %vm20220_vm1 = vmmov %vm20043_vm0 }
 0x913   : > { %13919 = vmatprep.mubr.msk.bf16.mxu1 %vm20205_vm7, %v18316_v59  ;;  %vm20225_vm7 = vmmov %vm20043_vm0 }
 0x91a   : > { %13920 = vmatmul.mubr.msk.bf16.gmra.mrb[16].mxu1 %vm20206_vm14, %v12636_v5  ;;  %vm20226_vm14 = vmmov %vm20043_vm0 }
 0x9b5   : > { %v13893_v46 = vpop.f32.mrb[20].mxu1 }
 0x9b6   : > { %v18714_v63 = vadd.f32 %v13893_v46, %v18439_v7  ;;  %v9849_v58 = vpop.f32.mrb[21].mxu1 }
 0x9b7   : > { %v18717_v43 = vadd.f32 %v9849_v58, %v20207_v3  ;;  %v13894_v45 = vpop.f32.mrb[22].mxu1  ;;  %v20235_v58 = vld [vmem:[#allocation32_spill] sm:$0xff] }
 0x9b8   : > { %v18720_v59 = vadd.f32 %v13894_v45, %v20208_v42  ;;  %v9852_v24 = vpop.f32.mrb[23].mxu1  ;;  %v10081_v53 = vmul.f32 %v18714_v63, %v18714_v63  ;;  %v10013_v62 = vsel %vm20212_vm5, %v18714_v63, 0.0  ;;  %vm20231_vm5 = vmmov %vm20043_vm0 }
 0x9b9   : > { %v10079_v30 = vmul.f32 %v18717_v43, %v18717_v43  ;;  %v18725_v19 = vadd.f32 %v9852_v24, %v20209_v56  ;;  %v10010_v7 = vsel %vm20210_vm12, %v18717_v43, 0.0  ;;  %vm20227_vm12 = vmmov %vm20043_vm0  ;;  %v20238_v56 = vld [vmem:[#allocation11_spill] sm:$0xff] }
 0x9ba   : > { %v10082_v47 = vmul.f32 %v18720_v59, %v18720_v59  ;;  %v10114_v8 = vsel %vm20217_vm8, %v10081_v53, 0.0  ;;  %v10015_v40 = vsel %vm20043_vm0, %v18720_v59, 0.0  ;;  %vm20240_vm8 = vmmov %vm20043_vm0 }
 0x9bb   : > { %v10011_v23 = vsel %vm20211_vm10, %v18725_v19, 0.0  ;;  %v10080_v41 = vmul.f32 %v18725_v19, %v18725_v19  ;;  %v10111_v54 = vsel %vm20213_vm4, %v10079_v30, 0.0  ;;  %vm20228_vm10 = vmmov %vm20043_vm0 }
 0x9bc   : > { %v10012_v48 = vadd.f32 %v10011_v23, %v10010_v7  ;;  %v10116_v25 = vsel %vm20219_vm2, %v10082_v47, 0.0  ;;  %vm20234_vm4 = vmmov %vm20043_vm0 }
 0x9bd   : > { %v10112_v31 = vsel %vm20214_vm11, %v10080_v41, 0.0  ;;  %v13897_v11 = vpop.f32.mrb[24].mxu1  ;;  %vm20237_vm11 = vmmov %vm20043_vm0 }
 0x9be   : > { %v10014_v57 = vadd.f32 %v10013_v62, %v10012_v48  ;;  %v10113_v15 = vadd.f32 %v10112_v31, %v10111_v54  ;;  %v18742_v9 = vadd.f32 %v13897_v11, %v20215_v60  ;;  %v9865_v36 = vpop.f32.mrb[25].mxu1  ;;  %vm20241_vm2 = vmmov %vm20043_vm0 }
 0x9bf   : > { %v18748_v1 = vadd.f32 %v9865_v36, %v20218_v20  ;;  %v13898_v52 = vpop.f32.mrb[26].mxu1 }
 0x9c0   : > { %20216 = vst [vmem:[#allocation21_spill] sm:$0xff] %v18742_v9  ;;  %v10115_v22 = vadd.f32 %v10114_v8, %v10113_v15  ;;  %v10016_v33 = vadd.f32 %v10015_v40, %v10014_v57  ;;  %v9868_v18 = vpop.f32.mrb[27].mxu1  ;;  %v18756_v21 = vadd.f32 %v13898_v52, %v20221_v35  ;;  %v10085_v17 = vmul.f32 %v18742_v9, %v18742_v9 }
 0x9c1   : > { %v10017_v51 = vsel %vm20220_vm1, %v18748_v1, 0.0  ;;  %v10083_v28 = vmul.f32 %v18748_v1, %v18748_v1  ;;  %v18759_v55 = vadd.f32 %v9868_v18, %v20223_v4  ;;  %v10021_v27 = vsel %vm20227_vm12, %v18742_v9, 0.0  ;;  %vm20242_vm1 = vmmov %vm20043_vm0 }
 0x9c2   : > { %20222 = vst [vmem:[#allocation18_spill] sm:$0xff] %v18756_v21  ;;  %v10018_v61 = vadd.f32 %v10017_v51, %v10016_v33  ;;  %v10117_v49 = vadd.f32 %v10116_v25, %v10115_v22  ;;  %v10086_v10 = vmul.f32 %v18756_v21, %v18756_v21  ;;  %v10023_v6 = vsel %vm20231_vm5, %v18756_v21, 0.0  ;;  %vm20245_vm12 = vmmov %vm20043_vm0 }
 0x9c3   : > { %20224 = vst [vmem:[#allocation15_spill] sm:$0xff] %v18759_v55  ;;  %v10118_v34 = vsel %vm20225_vm7, %v10083_v28, 0.0  ;;  %v10019_v0 = vsel %vm20226_vm14, %v18759_v55, 0.0  ;;  %v10084_v2 = vmul.f32 %v18759_v55, %v18759_v55  ;;  %v10122_v5 = vsel %vm20234_vm4, %v10085_v17, 0.0  ;;  %vm20243_vm7 = vmmov %vm20043_vm0 }
 0x9c4   : > { %v10119_v44 = vadd.f32 %v10118_v34, %v10117_v49  ;;  %v10020_v50 = vadd.f32 %v10019_v0, %v10018_v61  ;;  %v10124_v7 = vsel %vm20240_vm8, %v10086_v10, 0.0  ;;  %vm20244_vm14 = vmmov %vm20043_vm0 }
 0x9c5   : > { %v13901_v29 = vpop.f32.mrb[28].mxu1  ;;  %v10120_v39 = vsel %vm20228_vm10, %v10084_v2, 0.0  ;;  %vm20246_vm10 = vmmov %vm20043_vm0 }
 0x9c6   : > { %v10022_v37 = vadd.f32 %v10021_v27, %v10020_v50  ;;  %v18774_v26 = vadd.f32 %v13901_v29, %v20229_v12  ;;  %v9881_v16 = vpop.f32.mrb[29].mxu1  ;;  %v10121_v13 = vadd.f32 %v10120_v39, %v10119_v44  ;;  %vm20247_vm5 = vmmov %vm20043_vm0 }
 0x9c7   : > { %v18779_v32 = vadd.f32 %v9881_v16, %v20232_v38  ;;  %v13902_v14 = vpop.f32.mrb[30].mxu1  ;;  %vm20248_vm4 = vmmov %vm20043_vm0 }
 0x9c8   : > { %20230 = vst [vmem:[#allocation29_spill] sm:$0xff] %v18774_v26  ;;  %v10024_v46 = vadd.f32 %v10023_v6, %v10022_v37  ;;  %v18783_v3 = vadd.f32 %v13902_v14, %v20235_v58  ;;  %v9884_v45 = vpop.f32.mrb[31].mxu1  ;;  %v10123_v42 = vadd.f32 %v10122_v5, %v10121_v13  ;;  %v10089_v54 = vmul.f32 %v18774_v26, %v18774_v26  ;;  %vm20250_vm8 = vmmov %vm20043_vm0 }
 0x9c9   : > { %20233 = vst [vmem:[#allocation10_spill] sm:$0xff] %v18779_v32  ;;  %v10025_v24 = vsel %vm20237_vm11, %v18779_v32, 0.0  ;;  %v10087_v30 = vmul.f32 %v18779_v32, %v18779_v32  ;;  %v18790_v53 = vadd.f32 %v9884_v45, %v20238_v56  ;;  %v10029_v11 = vsel %vm20242_vm1, %v18774_v26, 0.0  ;;  %vm20249_vm11 = vmmov %vm20043_vm0 }
 0x9ca   : > { %20236 = vst [vmem:[#allocation28_spill] sm:$0xff] %v18783_v3  ;;  %v10026_v23 = vadd.f32 %v10025_v24, %v10024_v46  ;;  %v10125_v41 = vadd.f32 %v10124_v7, %v10123_v42  ;;  %v10090_v36 = vmul.f32 %v18783_v3, %v18783_v3  ;;  %v10031_v20 = vsel %vm20244_vm14, %v18783_v3, 0.0  ;;  %vm20252_vm1 = vmmov %vm20043_vm0 }
 0x9cb   : > { %20239 = vst [vmem:[#allocation16_spill] sm:$0xff] %v18790_v53  ;;  %v10126_v47 = vsel %vm20043_vm0, %v10087_v30, 0.0  ;;  %v10027_v48 = vsel %vm20241_vm2, %v18790_v53, 0.0  ;;  %v10088_v62 = vmul.f32 %v18790_v53, %v18790_v53  ;;  %v10130_v22 = vsel %vm20245_vm12, %v10089_v54, 0.0  ;;  %vm20251_vm2 = vmmov %vm20043_vm0 }
 0x9cc   : > { %v10028_v31 = vadd.f32 %v10027_v48, %v10026_v23  ;;  %v10127_v57 = vadd.f32 %v10126_v47, %v10125_v41  ;;  %v10132_v4 = vsel %vm20247_vm5, %v10090_v36, 0.0  ;;  %vm20254_vm14 = vmmov %vm20043_vm0 }
 0x9cd   : > { %v10128_v15 = vsel %vm20243_vm7, %v10088_v62, 0.0  ;;  %v18803_v60 = vpop.f32.mrb[0].mxu1  ;;  %vm20253_vm7 = vmmov %vm20043_vm0 }
 0x9ce   : > { %v10030_v8 = vadd.f32 %v10029_v11, %v10028_v31  ;;  %v18807_v40 = vpop.f32.mrb[1].mxu1  ;;  %v10129_v52 = vadd.f32 %v10128_v15, %v10127_v57  ;;  %v10093_v17 = vmul.f32 %v18803_v60, %v18803_v60  ;;  %v10037_v2 = vsel %vm20250_vm8, %v18803_v60, 0.0  ;;  %vm20255_vm12 = vmmov %vm20043_vm0 }
 0x9cf   : > { %v18811_v25 = vpop.f32.mrb[2].mxu1  ;;  %v10091_v18 = vmul.f32 %v18807_v40, %v18807_v40  ;;  %v10033_v35 = vsel %vm20246_vm10, %v18807_v40, 0.0  ;;  %vm20256_vm10 = vmmov %vm20043_vm0 }
 0x9d0   : > { %v10032_v33 = vadd.f32 %v10031_v20, %v10030_v8  ;;  %v18816_v51 = vpop.f32.mrb[3].mxu1  ;;  %v10131_v28 = vadd.f32 %v10130_v22, %v10129_v52  ;;  %v10094_v10 = vmul.f32 %v18811_v25, %v18811_v25  ;;  %v10039_v16 = vsel %vm20251_vm2, %v18811_v25, 0.0  ;;  %vm20257_vm5 = vmmov %vm20043_vm0 }
 0x9d1   : > { %v10092_v49 = vmul.f32 %v18816_v51, %v18816_v51  ;;  %v10035_v0 = vsel %vm20248_vm4, %v18816_v51, 0.0  ;;  %v10134_v44 = vsel %vm20249_vm11, %v10091_v18, 0.0  ;;  %v10138_v38 = vsel %vm20252_vm1, %v10093_v17, 0.0  ;;  %vm20258_vm4 = vmmov %vm20043_vm0 }
 0x9d2   : > { %v10034_v61 = vadd.f32 %v10033_v35, %v10032_v33  ;;  %v10133_v34 = vadd.f32 %v10132_v4, %v10131_v28  ;;  %v10140_v42 = vsel %vm20254_vm14, %v10094_v10, 0.0  ;;  %vm20259_vm11 = vmmov %vm20043_vm0 }
 0x9d3   : > { %v10136_v39 = vsel %vm20043_vm0, %v10092_v49, 0.0  ;;  %vm20260_vm8 = vmmov %vm20043_vm0 }
 0x9d4   : > { %v10036_v50 = vadd.f32 %v10035_v0, %v10034_v61  ;;  %v10135_v27 = vadd.f32 %v10134_v44, %v10133_v34  ;;  %vm20261_vm2 = vmmov %vm20043_vm0 }
 0x9d5   : > { %v18830_v29 = vpop.f32.mrb[4].mxu1  ;;  %vm20262_vm1 = vmmov %vm20043_vm0 }
 0x9d6   : > { %v10038_v37 = vadd.f32 %v10037_v2, %v10036_v50  ;;  %v18835_v12 = vpop.f32.mrb[5].mxu1  ;;  %v10137_v6 = vadd.f32 %v10136_v39, %v10135_v27  ;;  %v10097_v23 = vmul.f32 %v18830_v29, %v18830_v29  ;;  %v10045_v48 = vsel %vm20257_vm5, %v18830_v29, 0.0  ;;  %vm20264_vm14 = vmmov %vm20043_vm0 }
 0x9d7   : > { %v18839_v13 = vpop.f32.mrb[6].mxu1  ;;  %v10095_v5 = vmul.f32 %v18835_v12, %v18835_v12  ;;  %v10041_v45 = vsel %vm20253_vm7, %v18835_v12, 0.0  ;;  %vm20263_vm7 = vmmov %vm20043_vm0 }
 0x9d8   : > { %v10040_v14 = vadd.f32 %v10039_v16, %v10038_v37  ;;  %v18844_v46 = vpop.f32.mrb[7].mxu1  ;;  %v10139_v58 = vadd.f32 %v10138_v38, %v10137_v6  ;;  %v10098_v31 = vmul.f32 %v18839_v13, %v18839_v13  ;;  %v10047_v36 = vsel %vm20259_vm11, %v18839_v13, 0.0  ;;  %vm20267_vm5 = vmmov %vm20043_vm0 }
 0x9d9   : > { %v10096_v30 = vmul.f32 %v18844_v46, %v18844_v46  ;;  %v10043_v7 = vsel %vm20255_vm12, %v18844_v46, 0.0  ;;  %v10142_v41 = vsel %vm20256_vm10, %v10095_v5, 0.0  ;;  %v10146_v52 = vsel %vm20260_vm8, %v10097_v23, 0.0  ;;  %vm20265_vm12 = vmmov %vm20043_vm0 }
 0x9da   : > { %v10042_v24 = vadd.f32 %v10041_v45, %v10040_v14  ;;  %v10141_v56 = vadd.f32 %v10140_v42, %v10139_v58  ;;  %v10148_v4 = vsel %vm20261_vm2, %v10098_v31, 0.0  ;;  %vm20266_vm10 = vmmov %vm20043_vm0 }
 0x9db   : > { %v10144_v57 = vsel %vm20258_vm4, %v10096_v30, 0.0  ;;  %vm20268_vm4 = vmmov %vm20043_vm0 }
 0x9dc   : > { %v10044_v47 = vadd.f32 %v10043_v7, %v10042_v24  ;;  %v10143_v62 = vadd.f32 %v10142_v41, %v10141_v56  ;;  %vm20269_vm11 = vmmov %vm20043_vm0 }
 0x9dd   : > { %v18858_v54 = vpop.f32.mrb[8].mxu1  ;;  %vm20270_vm8 = vmmov %vm20043_vm0 }
 0x9de   : > { %v10046_v11 = vadd.f32 %v10045_v48, %v10044_v47  ;;  %v18863_v15 = vpop.f32.mrb[9].mxu1  ;;  %v10145_v8 = vadd.f32 %v10144_v57, %v10143_v62  ;;  %v10101_v17 = vmul.f32 %v18858_v54, %v18858_v54  ;;  %v10053_v2 = vsel %vm20264_vm14, %v18858_v54, 0.0  ;;  %vm20271_vm2 = vmmov %vm20043_vm0 }
 0x9df   : > { %v18867_v20 = vpop.f32.mrb[10].mxu1  ;;  %v10099_v33 = vmul.f32 %v18863_v15, %v18863_v15  ;;  %v10049_v35 = vsel %vm20043_vm0, %v18863_v15, 0.0  ;;  %vm20274_vm14 = vmmov %vm20043_vm0 }
 0x9e0   : > { %v10048_v22 = vadd.f32 %v10047_v36, %v10046_v11  ;;  %v18872_v18 = vpop.f32.mrb[11].mxu1  ;;  %v10147_v28 = vadd.f32 %v10146_v52, %v10145_v8  ;;  %v10102_v37 = vmul.f32 %v18867_v20, %v18867_v20  ;;  %v10055_v38 = vsel %vm20266_vm10, %v18867_v20, 0.0  ;;  %vm20276_vm10 = vmmov %vm20043_vm0 }
 0x9e1   : > { %v10100_v49 = vmul.f32 %v18872_v18, %v18872_v18  ;;  %v10051_v0 = vsel %vm20262_vm1, %v18872_v18, 0.0  ;;  %v10150_v44 = vsel %vm20263_vm7, %v10099_v33, 0.0  ;;  %v10154_v58 = vsel %vm20267_vm5, %v10101_v17, 0.0  ;;  %vm20272_vm1 = vmmov %vm20043_vm0 }
 0x9e2   : > { %v10050_v61 = vadd.f32 %v10049_v35, %v10048_v22  ;;  %v10149_v34 = vadd.f32 %v10148_v4, %v10147_v28  ;;  %v10156_v7 = vsel %vm20269_vm11, %v10102_v37, 0.0  ;;  %vm20273_vm7 = vmmov %vm20043_vm0 }
 0x9e3   : > { %v10152_v16 = vsel %vm20265_vm12, %v10100_v49, 0.0  ;;  %vm20275_vm12 = vmmov %vm20043_vm0 }
 0x9e4   : > { %v10052_v50 = vadd.f32 %v10051_v0, %v10050_v61  ;;  %v10151_v27 = vadd.f32 %v10150_v44, %v10149_v34  ;;  %vm20277_vm5 = vmmov %vm20043_vm0 }
 0x9e5   : > { %v18886_v10 = vpop.f32.mrb[12].mxu1  ;;  %vm20279_vm11 = vmmov %vm20043_vm0 }
 0x9e6   : > { %v10054_v39 = vadd.f32 %v10053_v2, %v10052_v50  ;;  %v18891_v6 = vpop.f32.mrb[13].mxu1  ;;  %v10153_v14 = vadd.f32 %v10152_v16, %v10151_v27  ;;  %v10105_v62 = vmul.f32 %v18886_v10, %v18886_v10  ;;  %v10061_v57 = vsel %vm20271_vm2, %v18886_v10, 0.0  ;;  %vm20281_vm2 = vmmov %vm20043_vm0 }
 0x9e7   : > { %v18895_v5 = vpop.f32.mrb[14].mxu1  ;;  %v10103_v42 = vmul.f32 %v18891_v6, %v18891_v6  ;;  %v10057_v56 = vsel %vm20268_vm4, %v18891_v6, 0.0  ;;  %vm20278_vm4 = vmmov %vm20043_vm0 }
 0x9e8   : > { %v10056_v45 = vadd.f32 %v10055_v38, %v10054_v39  ;;  %v18900_v24 = vpop.f32.mrb[15].mxu1  ;;  %v10155_v30 = vadd.f32 %v10154_v58, %v10153_v14  ;;  %v10106_v52 = vmul.f32 %v18895_v5, %v18895_v5  ;;  %v10063_v35 = vsel %vm20273_vm7, %v18895_v5, 0.0 }
 0x9e9   : > { %v10104_v41 = vmul.f32 %v18900_v24, %v18900_v24  ;;  %v10059_v48 = vsel %vm20270_vm8, %v18900_v24, 0.0  ;;  %v10158_v31 = vsel %vm20043_vm0, %v10103_v42, 0.0  ;;  %v10162_v49 = vsel %vm20274_vm14, %v10105_v62, 0.0  ;;  %vm20280_vm8 = vmmov %vm20043_vm0 }
 0x9ea   : > { %v10058_v23 = vadd.f32 %v10057_v56, %v10056_v45  ;;  %v10157_v47 = vadd.f32 %v10156_v7, %v10155_v30  ;;  %v10164_v2 = vsel %vm20276_vm10, %v10106_v52, 0.0  ;;  %vm20302_vm7 = vcmask 15360  }
 0x9eb   : > { %v10160_v33 = vsel %vm20272_vm1, %v10104_v41, 0.0  ;;  %vm20282_vm1 = vmmov %vm20043_vm0 }
 0x9ec   : > { %v10060_v11 = vadd.f32 %v10059_v48, %v10058_v23  ;;  %v10159_v36 = vadd.f32 %v10158_v31, %v10157_v47  ;;  %vm20303_vm14 = vmmov %vm20302_vm7 }
 0x9ed   : > { %v18914_v8 = vpop.f32.mrb[16].mxu1  ;;  %vm20305_vm10 = vmmov %vm20302_vm7 }
 0x9ee   : > { %v10062_v22 = vadd.f32 %v10061_v57, %v10060_v11  ;;  %v18919_v28 = vpop.f32.mrb[17].mxu1  ;;  %v10161_v4 = vadd.f32 %v10160_v33, %v10159_v36  ;;  %v10109_v38 = vmul.f32 %v18914_v8, %v18914_v8  ;;  %v10069_v45 = vsel %vm20279_vm11, %v18914_v8, 0.0 }
 0x9ef   : > { %v18923_v61 = vpop.f32.mrb[18].mxu1  ;;  %v10107_v0 = vmul.f32 %v18919_v28, %v18919_v28  ;;  %v10065_v50 = vsel %vm20275_vm12, %v18919_v28, 0.0  ;;  %vm20304_vm12 = vmmov %vm20302_vm7 }
 0x9f0   : > { %v10064_v34 = vadd.f32 %v10063_v35, %v10062_v22  ;;  %v18928_v17 = vpop.f32.mrb[19].mxu1  ;;  %v10163_v44 = vadd.f32 %v10162_v49, %v10161_v4  ;;  %v10110_v30 = vmul.f32 %v18923_v61, %v18923_v61  ;;  %v10071_v23 = vsel %vm20043_vm0, %v18923_v61, 0.0 }
 0x9f1   : > { %v10108_v37 = vmul.f32 %v18928_v17, %v18928_v17  ;;  %v10067_v16 = vsel %vm20277_vm5, %v18928_v17, 0.0  ;;  %v10166_v14 = vsel %vm20278_vm4, %v10107_v0, 0.0  ;;  %v10170_v47 = vsel %vm20281_vm2, %v10109_v38, 0.0  ;;  %vm20306_vm5 = vmmov %vm20302_vm7 }
 0x9f2   : > { %v10066_v27 = vadd.f32 %v10065_v50, %v10064_v34  ;;  %v10165_v39 = vadd.f32 %v10164_v2, %v10163_v44  ;;  %v10172_v31 = vsel %vm20282_vm1, %v10110_v30, 0.0  ;;  %vm20307_vm4 = vmmov %vm20306_vm5  ;;  %vm20343_vm2 = vcmask 31744  }
 0x9f3   : > { %v10168_v7 = vsel %vm20280_vm8, %v10108_v37, 0.0  ;;  %vm20308_vm11 = vmmov %vm20307_vm4  ;;  %vm20344_vm1 = vcmask 48128  }
 0x9f4   : > { %v10068_v58 = vadd.f32 %v10067_v16, %v10066_v27  ;;  %v10167_v42 = vadd.f32 %v10166_v14, %v10165_v39  ;;  %vm20309_vm8 = vmmov %vm20307_vm4 }
 0x9f5   : > { %vm20342_vm0 = vmmov %vm20307_vm4 }
 0x9f6   : > { %v10070_v56 = vadd.f32 %v10069_v45, %v10068_v58  ;;  %v10169_v41 = vadd.f32 %v10168_v7, %v10167_v42 }
 0x9f8   : > { %v10072_v48 = vadd.f32 %v10071_v23, %v10070_v56  ;;  %v10171_v62 = vadd.f32 %v10170_v47, %v10169_v41  ;;  %v20300_v41 = vld [vmem:[#allocation31_spill] sm:$0xff] }
 0x9fa   : > { %v10073_v11 = vrot.slane %v10072_v48, 4  ;;  %v10173_v57 = vadd.f32 %v10172_v31, %v10171_v62 }
 0x9fc   : > { %v10074_v36 = vadd.f32 %v10073_v11, %v10072_v48  ;;  %v10174_v4 = vrot.slane %v10173_v57, 4 }
 0x9fe   : > { %v10075_v52 = vrot.slane %v10074_v36, 2  ;;  %v10175_v49 = vadd.f32 %v10174_v4, %v10173_v57 }
 0xa00   : > { %v10076_v22 = vadd.f32 %v10075_v52, %v10074_v36  ;;  %v10176_v34 = vrot.slane %v10175_v49, 2 }
 0xa02   : > { %v10077_v33 = vrot.slane %v10076_v22, 1  ;;  %v10177_v0 = vadd.f32 %v10176_v34, %v10175_v49 }
 0xa04   : > { %v18949_v35 = vadd.f32 %v10077_v33, %v10076_v22  ;;  %v10178_v44 = vrot.slane %v10177_v0, 1 }
 0xa06   : > { %10184 = vrot.lane.b32.xlu1 %v18949_v35, %s20283_s4  ;;  %10181 = vrot.lane.b32.xlu0 %v18949_v35, %s20284_s1  ;;  %v19011_v50 = vadd.f32 %v10178_v44, %v10177_v0 }
 0xa0a   : > { %10190 = vrot.lane.b32.xlu1 %v18949_v35, %s20285_s6  ;;  %10187 = vrot.lane.b32.xlu0 %v18949_v35, %s20286_s7 }
 0xa0e   : > { %10196 = vrot.lane.b32.xlu1 %v18949_v35, %s20287_s3  ;;  %10193 = vrot.lane.b32.xlu0 %v18949_v35, %s20288_s9 }
 0xa12   : > { %10205 = vrot.lane.b32.xlu1 %v18949_v35, %s20289_s5  ;;  %10199 = vrot.lane.b32.xlu0 %v18949_v35, %s20290_s8 }
 0xa16   : > { %10211 = vrot.lane.b32.xlu1 %v18949_v35, %s20291_s25  ;;  %10202 = vrot.lane.b32.xlu0 %v18949_v35, %s20292_s14 }
 0xa1a   : > { %10217 = vrot.lane.b32.xlu1 %v18949_v35, %s20293_s10  ;;  %10208 = vrot.lane.b32.xlu0 %v18949_v35, %s20294_s13 }
 0xa1e   : > { %10223 = vrot.lane.b32.xlu1 %v18949_v35, %s19937_s24  ;;  %10214 = vrot.lane.b32.xlu0 %v18949_v35, %s19936_s15 }
 0xa22   : > { %10229 = vrot.lane.b32.xlu1 %v18949_v35, %s19939_s16  ;;  %10220 = vrot.lane.b32.xlu0 %v18949_v35, %s19938_s12 }
 0xa26   : > { %10235 = vrot.lane.b32.xlu1 %v18949_v35, %s19941_s17  ;;  %10226 = vrot.lane.b32.xlu0 %v18949_v35, %s19940_s18 }
 0xa2a   : > { %10241 = vrot.lane.b32.xlu1 %v18949_v35, %s19943_s20  ;;  %10232 = vrot.lane.b32.xlu0 %v18949_v35, %s19942_s19 }
 0xa2e   : > { %10247 = vrot.lane.b32.xlu1 %v18949_v35, %s19945_s30  ;;  %10238 = vrot.lane.b32.xlu0 %v18949_v35, %s19944_s11 }
 0xa32   : > { %10253 = vrot.lane.b32.xlu1 %v18949_v35, %s19947_s28  ;;  %10244 = vrot.lane.b32.xlu0 %v18949_v35, %s19946_s29 }
 0xa36   : > { %10259 = vrot.lane.b32.xlu1 %v18949_v35, %s19948_s22  ;;  %10250 = vrot.lane.b32.xlu0 %v18949_v35, %s20295_s0 }
 0xa3a   : > { %10265 = vrot.lane.b32.xlu1 %v18949_v35, %s20296_s26  ;;  %10256 = vrot.lane.b32.xlu0 %v18949_v35, %s20297_s21 }
 0xa3e   : > { %10271 = vrot.lane.b32.xlu1 %v18949_v35, %s20298_s27  ;;  %10262 = vrot.lane.b32.xlu0 %v18949_v35, %s20299_s2 }
 0xa42   : > { %10483 = vrot.lane.b32.xlu1 %v19011_v50, %s20284_s1  ;;  %10268 = vrot.lane.b32.xlu0 %v18949_v35, %s19949_s23  ;;  %s20337_s1 = smov 54  }
 0xa46   : > { %10489 = vrot.lane.b32.xlu1 %v19011_v50, %s20286_s7  ;;  %10486 = vrot.lane.b32.xlu0 %v19011_v50, %s20283_s4  ;;  %s20336_s4 = smov 52   ;;  %s20339_s7 = smov 58  }
 0xa4a   : > { %10495 = vrot.lane.b32.xlu1 %v19011_v50, %s20288_s9  ;;  %10492 = vrot.lane.b32.xlu0 %v19011_v50, %s20285_s6  ;;  %s20338_s6 = smov 56  }
 0xa4e   : > { %10501 = vrot.lane.b32.xlu1 %v19011_v50, %s20290_s8  ;;  %10498 = vrot.lane.b32.xlu0 %v19011_v50, %s20287_s3  ;;  %s20314_s8 = smov 4   ;;  %s20340_s3 = smov 60  }
 0xa52   : > { %10507 = vrot.lane.b32.xlu1 %v19011_v50, %s20289_s5  ;;  %10504 = vrot.lane.b32.xlu0 %v19011_v50, %s20292_s14  ;;  %s20313_s5 = smov 32   ;;  %s20317_s14 = smov 20  }
 0xa56   : > { %10513 = vrot.lane.b32.xlu1 %v19011_v50, %s20291_s25  ;;  %10510 = vrot.lane.b32.xlu0 %v19011_v50, %s20294_s13  ;;  %s20316_s13 = smov 18   ;;  %s20334_s25 = smov 48  }
 0xa5a   : > { %10519 = vrot.lane.b32.xlu1 %v19011_v50, %s20293_s10  ;;  %10516 = vrot.lane.b32.xlu0 %v19011_v50, %s19936_s15  ;;  %s20315_s10 = smov 8   ;;  %s20323_s15 = smov 10  }
 0xa5e   : > { %10525 = vrot.lane.b32.xlu1 %v19011_v50, %s19937_s24  ;;  %10522 = vrot.lane.b32.xlu0 %v19011_v50, %s19938_s12  ;;  %s20322_s12 = smov 6   ;;  %s20325_s24 = smov 22  }
 0xa62   : > { %10531 = vrot.lane.b32.xlu1 %v19011_v50, %s19939_s16  ;;  %10528 = vrot.lane.b32.xlu0 %v19011_v50, %s19940_s18  ;;  %s20324_s16 = smov 12   ;;  %s20327_s18 = smov 28  }
 0xa66   : > { %10537 = vrot.lane.b32.xlu1 %v19011_v50, %s19941_s17  ;;  %10534 = vrot.lane.b32.xlu0 %v19011_v50, %s19942_s19  ;;  %s20326_s17 = smov 26   ;;  %s20329_s19 = smov 42  }
 0xa6a   : > { %10543 = vrot.lane.b32.xlu1 %v19011_v50, %s19943_s20  ;;  %10540 = vrot.lane.b32.xlu0 %v19011_v50, %s19944_s11  ;;  %s20321_s11 = smov 40   ;;  %s20328_s20 = smov 38  }
 0xa6e   : > { %10549 = vrot.lane.b32.xlu1 %v19011_v50, %s19945_s30  ;;  %10546 = vrot.lane.b32.xlu0 %v19011_v50, %s19946_s29  ;;  %s20319_s29 = smov 34   ;;  %s20320_s30 = smov 36  }
 0xa72   : > { %10555 = vrot.lane.b32.xlu1 %v19011_v50, %s19947_s28  ;;  %10552 = vrot.lane.b32.xlu0 %v19011_v50, %s20295_s0  ;;  %s20311_s0 = smov 2   ;;  %s20318_s28 = smov 24  }
 0xa76   : > { %10561 = vrot.lane.b32.xlu1 %v19011_v50, %s19948_s22  ;;  %10558 = vrot.lane.b32.xlu0 %v19011_v50, %s20297_s21  ;;  %s20330_s22 = smov 44   ;;  %s20332_s21 = smov 30  }
 0xa78   : > { %v10185_v2 = vpop.permute.xlu1 %10184  ;;  %v10182_v27 = vpop.permute.xlu0 %10181 }
 0xa79   : > { %v10274_v23 = vcombine.low %v18949_v35, %v10185_v2  ;;  %v20301_v2 = vld [vmem:[#allocation23_spill] sm:$0xff] }
 0xa7a   : > { %10567 = vrot.lane.b32.xlu1 %v19011_v50, %s20296_s26  ;;  %10564 = vrot.lane.b32.xlu0 %v19011_v50, %s20299_s2  ;;  %s20312_s2 = smov 16   ;;  %s20333_s26 = smov 46  }
 0xa7b   : > { %v10281_v36 = vrot.slane %v10274_v23, %v20300_v41 }
 0xa7c   : > { %v10191_v37 = vpop.permute.xlu1 %10190  ;;  %v10188_v39 = vpop.permute.xlu0 %10187 }
 0xa7d   : > { %v10282_v56 = vcombine.low %v10182_v27, %v10188_v39 }
 0xa7e   : > { %10573 = vrot.lane.b32.xlu1 %v19011_v50, %s20298_s27  ;;  %10570 = vrot.lane.b32.xlu0 %v19011_v50, %s19949_s23  ;;  %s20331_s23 = smov 14   ;;  %s20335_s27 = smov 50  }
 0xa7f   : > { %v10289_v31 = vrot.slane %v10282_v56, %v20300_v41 }
 0xa80   : > { %v10197_v16 = vpop.permute.xlu1 %10196  ;;  %v10194_v38 = vpop.permute.xlu0 %10193 }
 0xa81   : > { %v10290_v7 = vcombine.low %v10191_v37, %v10197_v16  ;;  %v10306_v49 = vcombine.low %v10281_v36, %v10289_v31 }
 0xa83   : > { %v10297_v11 = vrot.slane %v10290_v7, %v20300_v41  ;;  %v10313_v16 = vrot.slane %v10306_v49, %v20301_v2 }
 0xa84   : > { %v10206_v14 = vpop.permute.xlu1 %10205  ;;  %v10200_v58 = vpop.permute.xlu0 %10199 }
 0xa85   : > { %v10298_v45 = vcombine.low %v10194_v38, %v10200_v58 }
 0xa87   : > { %v10305_v47 = vrot.slane %v10298_v45, %v20300_v41 }
 0xa88   : > { %v10212_v42 = vpop.permute.xlu1 %10211  ;;  %v10203_v30 = vpop.permute.xlu0 %10202 }
 0xa89   : > { %v10314_v52 = vcombine.low %v10297_v11, %v10305_v47  ;;  %v10331_v4 = vcombine.low %v10206_v14, %v10212_v42 }
 0xa8b   : > { %v10321_v27 = vrot.slane %v10314_v52, %v20301_v2  ;;  %v10338_v37 = vrot.slane %v10331_v4, %v20300_v41 }
 0xa8c   : > { %v10218_v48 = vpop.permute.xlu1 %10217  ;;  %v10209_v62 = vpop.permute.xlu0 %10208 }
 0xa8d   : > { %v10323_v57 = vcombine.low %v10203_v30, %v10209_v62  ;;  %v10322_v42 = vcombine.low %v10313_v16, %v10321_v27 }
 0xa8f   : > { %v10330_v34 = vrot.slane %v10323_v57, %v20300_v41  ;;  %v10470_v62 = vsel %vm20302_vm7, %v10322_v42, 0.0  ;;  %vm20345_vm7 = vcmask 64512  }
 0xa90   : > { %v10224_v22 = vpop.permute.xlu1 %10223  ;;  %v10215_v33 = vpop.permute.xlu0 %10214 }
 0xa91   : > { %v10347_v0 = vcombine.low %v10218_v48, %v10224_v22  ;;  %v10355_v38 = vcombine.low %v10330_v34, %v10338_v37 }
 0xa93   : > { %v10354_v58 = vrot.slane %v10347_v0, %v20300_v41  ;;  %v10362_v7 = vrot.slane %v10355_v38, %v20301_v2 }
 0xa94   : > { %v10230_v35 = vpop.permute.xlu1 %10229  ;;  %v10221_v44 = vpop.permute.xlu0 %10220 }
 0xa95   : > { %v10339_v39 = vcombine.low %v10215_v33, %v10221_v44 }
 0xa97   : > { %v10346_v45 = vrot.slane %v10339_v39, %v20300_v41 }
 0xa98   : > { %v10236_v30 = vpop.permute.xlu1 %10235  ;;  %v10227_v14 = vpop.permute.xlu0 %10226 }
 0xa99   : > { %v10363_v56 = vcombine.low %v10346_v45, %v10354_v58  ;;  %v10380_v22 = vcombine.low %v10230_v35, %v10236_v30 }
 0xa9b   : > { %v10370_v23 = vrot.slane %v10363_v56, %v20301_v2  ;;  %v10387_v0 = vrot.slane %v10380_v22, %v20300_v41 }
 0xa9c   : > { %v10242_v47 = vpop.permute.xlu1 %10241  ;;  %v10233_v48 = vpop.permute.xlu0 %10232 }
 0xa9d   : > { %10471 = vadd.xlane.f32.xlu0 %v10470_v62  ;;  %v10371_v31 = vcombine.low %v10362_v7, %v10370_v23  ;;  %v10372_v11 = vcombine.low %v10227_v14, %v10233_v48 }
 0xa9f   : > { %v10473_v57 = vsel %vm20303_vm14, %v10371_v31, 0.0  ;;  %v10379_v33 = vrot.slane %v10372_v11, %v20300_v41  ;;  %vm20346_vm14 = vcmask 80896  }
 0xaa0   : > { %v10248_v36 = vpop.permute.xlu1 %10247  ;;  %v10239_v52 = vpop.permute.xlu0 %10238 }
 0xaa1   : > { %10474 = vadd.xlane.f32.xlu0 %v10473_v57  ;;  %v10396_v4 = vcombine.low %v10242_v47, %v10248_v36  ;;  %v10404_v27 = vcombine.low %v10379_v33, %v10387_v0 }
 0xaa3   : > { %v10403_v37 = vrot.slane %v10396_v4, %v20300_v41  ;;  %v10411_v45 = vrot.slane %v10404_v27, %v20301_v2 }
 0xaa4   : > { %v10254_v49 = vpop.permute.xlu1 %10253  ;;  %v10245_v34 = vpop.permute.xlu0 %10244 }
 0xaa5   : > { %v10388_v44 = vcombine.low %v10239_v52, %v10245_v34 }
 0xaa7   : > { %v10395_v39 = vrot.slane %v10388_v44, %v20300_v41 }
 0xaa8   : > { %v10260_v16 = vpop.permute.xlu1 %10259  ;;  %v10251_v38 = vpop.permute.xlu0 %10250 }
 0xaa9   : > { %v10412_v58 = vcombine.low %v10395_v39, %v10403_v37  ;;  %v10429_v48 = vcombine.low %v10254_v49, %v10260_v16 }
 0xaab   : > { %v10419_v35 = vrot.slane %v10412_v58, %v20301_v2  ;;  %v10436_v36 = vrot.slane %v10429_v48, %v20300_v41 }
 0xaac   : > { %v10266_v30 = vpop.permute.xlu1 %10265  ;;  %v10257_v14 = vpop.permute.xlu0 %10256 }
 0xaad   : > { %v10420_v42 = vcombine.low %v10411_v45, %v10419_v35  ;;  %v10421_v56 = vcombine.low %v10251_v38, %v10257_v14 }
 0xaaf   : > { %v10476_v7 = vsel %vm20304_vm12, %v10420_v42, 0.0  ;;  %v10428_v62 = vrot.slane %v10421_v56, %v20300_v41  ;;  %vm20347_vm12 = vcmask 97280  }
 0xab0   : > { %v10272_v23 = vpop.permute.xlu1 %10271  ;;  %10477 = vadd.xlane.f32.xlu1 %v10476_v7  ;;  %v10263_v47 = vpop.permute.xlu0 %10262 }
 0xab1   : > { %v10445_v31 = vcombine.low %v10266_v30, %v10272_v23  ;;  %v10453_v22 = vcombine.low %v10428_v62, %v10436_v36 }
 0xab3   : > { %v10452_v33 = vrot.slane %v10445_v31, %v20300_v41  ;;  %v10460_v49 = vrot.slane %v10453_v22, %v20301_v2 }
 0xab4   : > { %v10484_v11 = vpop.permute.xlu1 %10483  ;;  %v10269_v57 = vpop.permute.xlu0 %10268 }
 0xab5   : > { %v10437_v52 = vcombine.low %v10263_v47, %v10269_v57 }
 0xab7   : > { %v10444_v4 = vrot.slane %v10437_v52, %v20300_v41 }
 0xab8   : > { %v10490_v34 = vpop.permute.xlu1 %10489  ;;  %v10487_v0 = vpop.permute.xlu0 %10486 }
 0xab9   : > { %v10461_v44 = vcombine.low %v10444_v4, %v10452_v33  ;;  %v10584_v27 = vcombine.low %v10484_v11, %v10490_v34  ;;  %v10576_v37 = vcombine.low %v19011_v50, %v10487_v0 }
 0xabb   : > { %v10468_v39 = vrot.slane %v10461_v44, %v20301_v2  ;;  %v10591_v45 = vrot.slane %v10584_v27, %v20300_v41  ;;  %v10583_v35 = vrot.slane %v10576_v37, %v20300_v41 }
 0xabc   : > { %v10496_v16 = vpop.permute.xlu1 %10495  ;;  %v10493_v38 = vpop.permute.xlu0 %10492 }
 0xabd   : > { %v10469_v58 = vcombine.low %v10460_v49, %v10468_v39  ;;  %v10608_v23 = vcombine.low %v10583_v35, %v10591_v45 }
 0xabf   : > { %v10479_v30 = vsel %vm20305_vm10, %v10469_v58, 0.0  ;;  %v10615_v11 = vrot.slane %v10608_v23, %v20301_v2  ;;  %vm20348_vm10 = vcmask 113664  }
 0xac0   : > { %v10502_v14 = vpop.permute.xlu1 %10501  ;;  %10480 = vadd.xlane.f32.xlu1 %v10479_v30  ;;  %v10499_v42 = vpop.permute.xlu0 %10498 }
 0xac1   : > { %v10600_v56 = vcombine.low %v10496_v16, %v10502_v14  ;;  %v10592_v7 = vcombine.low %v10493_v38, %v10499_v42 }
 0xac3   : > { %v10607_v50 = vrot.slane %v10600_v56, %v20300_v41  ;;  %v10599_v47 = vrot.slane %v10592_v7, %v20300_v41 }
 0xac4   : > { %v10508_v48 = vpop.permute.xlu1 %10507  ;;  %v10505_v62 = vpop.permute.xlu0 %10504 }
 0xac5   : > { %v10616_v31 = vcombine.low %v10599_v47, %v10607_v50 }
 0xac7   : > { %v10623_v57 = vrot.slane %v10616_v31, %v20301_v2 }
 0xac8   : > { %v10514_v36 = vpop.permute.xlu1 %10513  ;;  %v10511_v52 = vpop.permute.xlu0 %10510 }
 0xac9   : > { %v10624_v22 = vcombine.low %v10615_v11, %v10623_v57  ;;  %v10633_v33 = vcombine.low %v10508_v48, %v10514_v36  ;;  %v10625_v4 = vcombine.low %v10505_v62, %v10511_v52 }
 0xacb   : > { %v10772_v34 = vsel %vm20306_vm5, %v10624_v22, 0.0  ;;  %v10640_v27 = vrot.slane %v10633_v33, %v20300_v41  ;;  %v10632_v37 = vrot.slane %v10625_v4, %v20300_v41  ;;  %vm20349_vm5 = vcmask 130048  }
 0xacc   : > { %v10520_v0 = vpop.permute.xlu1 %10519  ;;  %10773 = vadd.xlane.f32.xlu1 %v10772_v34  ;;  %v10517_v44 = vpop.permute.xlu0 %10516 }
 0xacd   : > { %v10657_v58 = vcombine.low %v10632_v37, %v10640_v27 }
 0xacf   : > { %v10664_v56 = vrot.slane %v10657_v58, %v20301_v2 }
 0xad0   : > { %v10526_v49 = vpop.permute.xlu1 %10525  ;;  %v10523_v39 = vpop.permute.xlu0 %10522 }
 0xad1   : > { %v10649_v16 = vcombine.low %v10520_v0, %v10526_v49  ;;  %v10641_v38 = vcombine.low %v10517_v44, %v10523_v39 }
 0xad3   : > { %v10656_v45 = vrot.slane %v10649_v16, %v20300_v41  ;;  %v10648_v35 = vrot.slane %v10641_v38, %v20300_v41 }
 0xad4   : > { %v10532_v30 = vpop.permute.xlu1 %10531  ;;  %v10529_v14 = vpop.permute.xlu0 %10528 }
 0xad5   : > { %v10665_v42 = vcombine.low %v10648_v35, %v10656_v45 }
 0xad7   : > { %v10672_v7 = vrot.slane %v10665_v42, %v20301_v2 }
 0xad8   : > { %v10538_v23 = vpop.permute.xlu1 %10537  ;;  %v10535_v50 = vpop.permute.xlu0 %10534 }
 0xad9   : > { %v10673_v47 = vcombine.low %v10664_v56, %v10672_v7  ;;  %v10682_v48 = vcombine.low %v10532_v30, %v10538_v23  ;;  %v10674_v62 = vcombine.low %v10529_v14, %v10535_v50 }
 0xadb   : > { %v10775_v31 = vsel %vm20307_vm4, %v10673_v47, 0.0  ;;  %v10689_v36 = vrot.slane %v10682_v48, %v20300_v41  ;;  %v10681_v52 = vrot.slane %v10674_v62, %v20300_v41  ;;  %vm20350_vm4 = vcmask 146432  }
 0xadc   : > { %v10544_v11 = vpop.permute.xlu1 %10543  ;;  %10776 = vadd.xlane.f32.xlu0 %v10775_v31  ;;  %v10541_v57 = vpop.permute.xlu0 %10540 }
 0xadd   : > { %v10706_v0 = vcombine.low %v10681_v52, %v10689_v36 }
 0xadf   : > { %v10713_v16 = vrot.slane %v10706_v0, %v20301_v2 }
 0xae0   : > { %v10550_v22 = vpop.permute.xlu1 %10549  ;;  %v10547_v33 = vpop.permute.xlu0 %10546 }
 0xae1   : > { %v10698_v4 = vcombine.low %v10544_v11, %v10550_v22  ;;  %v10690_v34 = vcombine.low %v10541_v57, %v10547_v33 }
 0xae3   : > { %v10705_v44 = vrot.slane %v10698_v4, %v20300_v41  ;;  %v10697_v27 = vrot.slane %v10690_v34, %v20300_v41 }
 0xae4   : > { %v10556_v37 = vpop.permute.xlu1 %10555  ;;  %v10553_v49 = vpop.permute.xlu0 %10552 }
 0xae5   : > { %v10714_v39 = vcombine.low %v10697_v27, %v10705_v44 }
 0xae7   : > { %v10721_v38 = vrot.slane %v10714_v39, %v20301_v2 }
 0xae8   : > { %v10562_v58 = vpop.permute.xlu1 %10561  ;;  %v10559_v45 = vpop.permute.xlu0 %10558 }
 0xae9   : > { %v10722_v35 = vcombine.low %v10713_v16, %v10721_v38  ;;  %v10731_v30 = vcombine.low %v10556_v37, %v10562_v58  ;;  %v10723_v14 = vcombine.low %v10553_v49, %v10559_v45  ;;  %v20310_v38 = vmov 0.0  }
 0xaeb   : > { %v10778_v42 = vsel %vm20308_vm11, %v10722_v35, 0.0  ;;  %v10738_v23 = vrot.slane %v10731_v30, %v20300_v41  ;;  %v10730_v50 = vrot.slane %v10723_v14, %v20300_v41  ;;  %vm20351_vm11 = vcmask 162816  }
 0xaec   : > { %v10568_v56 = vpop.permute.xlu1 %10567  ;;  %10779 = vadd.xlane.f32.xlu0 %v10778_v42  ;;  %v10565_v7 = vpop.permute.xlu0 %10564 }
 0xaed   : > { %v10755_v11 = vcombine.low %v10730_v50, %v10738_v23 }
 0xaef   : > { %v10762_v22 = vrot.slane %v10755_v11, %v20301_v2 }
 0xaf0   : > { %v10574_v47 = vpop.permute.xlu1 %10573  ;;  %v10571_v48 = vpop.permute.xlu0 %10570 }
 0xaf1   : > { %v10747_v62 = vcombine.low %v10568_v56, %v10574_v47  ;;  %v10739_v31 = vcombine.low %v10565_v7, %v10571_v48 }
 0xaf3   : > { %v10754_v57 = vrot.slane %v10747_v62, %v20300_v41  ;;  %v10746_v36 = vrot.slane %v10739_v31, %v20300_v41 }
 0xaf5   : > { %v10763_v52 = vcombine.low %v10746_v36, %v10754_v57 }
 0xaf7   : > { %v10770_v33 = vrot.slane %v10763_v52, %v20301_v2 }
 0xaf9   : > { %v10771_v4 = vcombine.low %v10762_v22, %v10770_v33 }
 0xafb   : > { %v10781_v34 = vsel %vm20309_vm8, %v10771_v4, 0.0  ;;  %vm20352_vm8 = vcmask 179200  }
 0xafc   : > { %10782 = vadd.xlane.f32.xlu0 %v10781_v34 }
 0xb2a   : > { %v10472_v0 = vpop.xlane.xlu0 %10471 }
 0xb2b   : > { %v10784_v44 = vmul.f32 0.001953125, %v10472_v0 }
 0xb2d   : > { %v10819_v27 = vrot.slane %v10784_v44, %v20300_v41  ;;  %v10812_v42 = vcombine.high %v10784_v44, %v20310_v38 }
 0xb2e   : > { %v10475_v37 = vpop.xlane.xlu0 %10474 }
 0xb2f   : > { %v19137_v49 = vrot.slane %v10819_v27, %v20301_v2  ;;  %v10785_v39 = vmul.f32 0.001953125, %v10475_v37  ;;  %v10827_v56 = vcombine.high %v10819_v27, %v20310_v38  ;;  %v10826_v23 = vrot.slane %v10812_v42, %v20300_v41 }
 0xb31   : > { %v10868_v16 = vrot.slane %v10785_v39, %v20300_v41  ;;  %v10857_v58 = vcombine.high %v19137_v49, %v20310_v38  ;;  %v10841_v50 = vrot.slane %v10827_v56, %v20301_v2  ;;  %v10849_v47 = vrot.slane %v10826_v23, %v20301_v2 }
 0xb32   : > { %v10861_v48 = vcombine.high %v10785_v39, %v20310_v38 }
 0xb33   : > { %v10883_v45 = vrot.slane %v10868_v16, %v20301_v2  ;;  %11009 = vrot.lane.b32.xlu1 %v10857_v58, %s20311_s0  ;;  %v10876_v62 = vcombine.high %v10868_v16, %v20310_v38  ;;  %v10858_v37 = vcombine.high %v10841_v50, %v20310_v38  ;;  %v10842_v58 = vcombine.high %v10826_v23, %v20310_v38 }
 0xb34   : > { %v10875_v11 = vrot.slane %v10861_v48, %v20300_v41  ;;  %v10859_v42 = vcombine.high %v10849_v47, %v20310_v38 }
 0xb35   : > { %11037 = vrot.lane.b32.xlu0 %v10883_v45, %s20312_s2  ;;  %v10906_v31 = vcombine.high %v10883_v45, %v20310_v38  ;;  %v10890_v57 = vrot.slane %v10876_v62, %v20301_v2  ;;  %v10856_v62 = vrot.slane %v10842_v58, %v20301_v2 }
 0xb36   : > { %v10898_v36 = vrot.slane %v10875_v11, %v20301_v2 }
 0xb37   : > { %v10907_v23 = vcombine.high %v10890_v57, %v20310_v38 }
 0xb3d   : > { %v10478_v35 = vpop.xlane.xlu1 %10477 }
 0xb3e   : > { %v10786_v30 = vmul.f32 0.001953125, %v10478_v35  ;;  %v10793_v35 = vmul.f32 %v10785_v39, %v10785_v39 }
 0xb40   : > { %v10917_v14 = vrot.slane %v10786_v30, %v20300_v41  ;;  %v10910_v52 = vcombine.high %v10786_v30, %v20310_v38 }
 0xb42   : > { %v10932_v7 = vrot.slane %v10917_v14, %v20301_v2  ;;  %v10925_v22 = vcombine.high %v10917_v14, %v20310_v38  ;;  %v10924_v4 = vrot.slane %v10910_v52, %v20300_v41 }
 0xb44   : > { %11069 = vrot.lane.b32.xlu0 %v10932_v7, %s20313_s5  ;;  %v10955_v33 = vcombine.high %v10932_v7, %v20310_v38  ;;  %v10939_v34 = vrot.slane %v10925_v22, %v20301_v2  ;;  %v10947_v0 = vrot.slane %v10924_v4, %v20301_v2  ;;  %v10908_v22 = vcombine.high %v10898_v36, %v20310_v38 }
 0xb48   : > { %11013 = vrot.lane.b32.xlu0 %v10841_v50, %s20314_s8 }
 0xb4c   : > { %11021 = vrot.lane.b32.xlu0 %v10849_v47, %s20315_s10  ;;  %v10891_v47 = vcombine.high %v10875_v11, %v20310_v38 }
 0xb4d   : > { %v10481_v27 = vpop.xlane.xlu1 %10480 }
 0xb4e   : > { %v10905_v58 = vrot.slane %v10891_v47, %v20301_v2 }
 0xb50   : > { %11041 = vrot.lane.b32.xlu0 %v10906_v31, %s20316_s13  ;;  %v10792_v31 = vmul.f32 %v10784_v44, %v10784_v44 }
 0xb54   : > { %11045 = vrot.lane.b32.xlu0 %v10890_v57, %s20317_s14 }
 0xb58   : > { %11053 = vrot.lane.b32.xlu0 %v10898_v36, %s20318_s28  ;;  %v10956_v36 = vcombine.high %v10939_v34, %v20310_v38 }
 0xb59   : > { %v10774_v45 = vpop.xlane.xlu1 %10773 }
 0xb5a   : > { %v10788_v7 = vmul.f32 0.001953125, %v10774_v45 }
 0xb5c   : > { %11073 = vrot.lane.b32.xlu0 %v10955_v33, %s20319_s29  ;;  %v10796_v50 = vsub.f32 %v10788_v7, %v10792_v31  ;;  %v10787_v7 = vmul.f32 0.001953125, %v10481_v27  ;;  %v10909_v27 = vcombine.high %v10905_v58, %v20310_v38 }
 0xb5e   : > { %v10800_v39 = vmax.f32 %v10796_v50, 0.0 }
 0xb60   : > { %11077 = vrot.lane.b32.xlu0 %v10939_v34, %s20320_s30  ;;  %v10804_v33 = vadd.f32 1e-05, %v10800_v39 }
 0xb64   : > { %11085 = vrot.lane.b32.xlu0 %v10947_v0, %s20321_s11 }
 0xb68   : > { %11017 = vrot.lane.b32.xlu0 %v10858_v37, %s20322_s12 }
 0xb69   : > { %v10777_v16 = vpop.xlane.xlu0 %10776 }
 0xb6a   : > { %v10789_v14 = vmul.f32 0.001953125, %v10777_v16  ;;  %v10794_v16 = vmul.f32 %v10786_v30, %v10786_v30  ;;  %v10940_v30 = vcombine.high %v10924_v4, %v20310_v38 }
 0xb6c   : > { %v10797_v56 = vsub.f32 %v10789_v14, %v10793_v35  ;;  %11025 = vrot.lane.b32.xlu0 %v10859_v42, %s20323_s15 }
 0xb6e   : > { %v10801_v48 = vmax.f32 %v10797_v56, 0.0  ;;  %v10957_v56 = vcombine.high %v10947_v0, %v20310_v38 }
 0xb70   : > { %v10805_v52 = vadd.f32 1e-05, %v10801_v48  ;;  %11029 = vrot.lane.b32.xlu0 %v10856_v62, %s20324_s16  ;;  %v10954_v48 = vrot.slane %v10940_v30, %v20301_v2 }
 0xb72   : > { %14702 = vrsqrt.f32 %v10805_v52  ;;  %v10795_v52 = vmul.f32 %v10787_v7, %v10787_v7 }
 0xb73   : > { %14704 = vrsqrt.f32 %v10804_v33 }
 0xb74   : > { %11049 = vrot.lane.b32.xlu0 %v10907_v23, %s20325_s24  ;;  %v10860_v23 = vcombine.high %v10856_v62, %v20310_v38 }
 0xb78   : > { %11057 = vrot.lane.b32.xlu0 %v10908_v22, %s20326_s17 }
 0xb79   : > { %v10780_v37 = vpop.xlane.xlu0 %10779 }
 0xb7a   : > { %v10790_v44 = vmul.f32 0.001953125, %v10780_v37 }
 0xb7c   : > { %v19186_v45 = vpop.eup %14702  ;;  %v10798_v35 = vsub.f32 %v10790_v44, %v10794_v16  ;;  %11061 = vrot.lane.b32.xlu0 %v10905_v58, %s20327_s18  ;;  %v10966_v44 = vrot.slane %v10787_v7, %v20300_v41  ;;  %v10958_v58 = vcombine.high %v10954_v48, %v20310_v38 }
 0xb7d   : > { %v11219_v57 = vrot.slane %v19186_v45, %v20300_v41  ;;  %v14705_v31 = vpop.eup %14704 }
 0xb7e   : > { %v10802_v11 = vmax.f32 %v10798_v35, 0.0  ;;  %v11170_v39 = vrot.slane %v14705_v31, %v20300_v41  ;;  %v10981_v35 = vrot.slane %v10966_v44, %v20301_v2 }
 0xb7f   : > { %v11234_v14 = vrot.slane %v11219_v57, %v20301_v2 }
 0xb80   : > { %v10806_v42 = vadd.f32 1e-05, %v10802_v11  ;;  %11081 = vrot.lane.b32.xlu0 %v10956_v36, %s20328_s20  ;;  %v11178_v33 = vcombine.high %v11170_v39, %v20310_v38  ;;  %v11004_v30 = vcombine.high %v10981_v35, %v20310_v38 }
 0xb81   : > { %11388 = vrot.lane.b32.xlu1 %v11234_v14, %s20312_s2  ;;  %s20341_s2 = sld [smem:[#allocation41_spill]] }
 0xb82   : > { %14706 = vrsqrt.f32 %v10806_v42  ;;  %v19210_v62 = vrot.slane %v11178_v33, %v20301_v2  ;;  %v10974_v42 = vcombine.high %v10966_v44, %v20310_v38  ;;  %v11227_v33 = vcombine.high %v11219_v57, %v20310_v38 }
 0xb84   : > { %11089 = vrot.lane.b32.xlu0 %v10957_v56, %s20329_s19 }
 0xb88   : > { %11093 = vrot.lane.b32.xlu0 %v10954_v48, %s20330_s22  ;;  %v11163_v48 = vcombine.high %v14705_v31, %v20310_v38 }
 0xb89   : > { %v10783_v34 = vpop.xlane.xlu0 %10782 }
 0xb8a   : > { %v10791_v50 = vmul.f32 0.001953125, %v10783_v34  ;;  %v19227_v34 = vrot.slane %v11170_v39, %v20301_v2 }
 0xb8c   : > { %v14707_v47 = vpop.eup %14706  ;;  %v10799_v4 = vsub.f32 %v10791_v50, %v10795_v52  ;;  %11033 = vrot.lane.b32.xlu0 %v10860_v23, %s20331_s23  ;;  %v10959_v52 = vcombine.high %v10787_v7, %v20310_v38  ;;  %v10988_v50 = vrot.slane %v10974_v42, %v20301_v2  ;;  %v11208_v23 = vcombine.high %v19227_v34, %v20310_v38 }
 0xb8d   : > { %v11268_v0 = vrot.slane %v14707_v47, %v20300_v41 }
 0xb8e   : > { %v10803_v22 = vmax.f32 %v10799_v4, 0.0  ;;  %v11177_v4 = vrot.slane %v11163_v48, %v20300_v41  ;;  %v10973_v39 = vrot.slane %v10959_v52, %v20300_v41  ;;  %v11005_v31 = vcombine.high %v10988_v50, %v20310_v38 }
 0xb8f   : > { %v11283_v37 = vrot.slane %v11268_v0, %v20301_v2  ;;  %v11276_v52 = vcombine.high %v11268_v0, %v20310_v38 }
 0xb90   : > { %v10807_v16 = vadd.f32 1e-05, %v10803_v22  ;;  %11065 = vrot.lane.b32.xlu0 %v10909_v27, %s20332_s21  ;;  %v11200_v22 = vrot.slane %v11177_v4, %v20301_v2  ;;  %v10996_v7 = vrot.slane %v10973_v39, %v20301_v2  ;;  %v11257_v27 = vcombine.high %v11234_v14, %v20310_v38 }
 0xb91   : > { %11420 = vrot.lane.b32.xlu1 %v11283_v37, %s20313_s5  ;;  %v10989_v44 = vcombine.high %v10973_v39, %v20310_v38  ;;  %v11306_v48 = vcombine.high %v11283_v37, %v20310_v38  ;;  %v11290_v39 = vrot.slane %v11276_v52, %v20301_v2  ;;  %v14690_v52 = vld [vmem:[%s20341_s2] sm:$0xff]  }
 0xb92   : > { %14708 = vrsqrt.f32 %v10807_v16  ;;  %v11212_v16 = vcombine.high %v19186_v45, %v20310_v38  ;;  %13923 = vmatprep.subr.bf16.mxu1 %v14690_v52 }
 0xb93   : > { %v19260_v45 = vrot.slane %v10989_v44, %v20301_v2  ;;  %13924 = vmatpush3.bf16.msra.mxu1 %v14690_v52 }
 0xb94   : > { %11364 = vrot.lane.b32.xlu0 %v19210_v62, %s20314_s8  ;;  %v11226_v42 = vrot.slane %v11212_v16, %v20300_v41 }
 0xb96   : > { %v11249_v14 = vrot.slane %v11226_v42, %v20301_v2 }
 0xb98   : > { %11097 = vrot.lane.b32.xlu0 %v10958_v58, %s20333_s26  ;;  %v11006_v58 = vcombine.high %v10996_v7, %v20310_v38  ;;  %v11259_v52 = vcombine.high %v11249_v14, %v20310_v38 }
 0xb9c   : > { %v19218_v11 = vpop.eup %14708  ;;  %11101 = vrot.lane.b32.xlu0 %v10981_v35, %s20334_s25  ;;  %v11241_v35 = vrot.slane %v11227_v33, %v20301_v2 }
 0xb9d   : > { %v11317_v36 = vrot.slane %v19218_v11, %v20300_v41 }
 0xb9f   : > { %v11332_v56 = vrot.slane %v11317_v36, %v20301_v2 }
 0xba0   : > { %11105 = vrot.lane.b32.xlu0 %v11004_v30, %s20335_s27 }
 0xba1   : > { %11452 = vrot.lane.b32.xlu1 %v11332_v56, %s20334_s25  ;;  %v11355_v0 = vcombine.high %v11332_v56, %v20310_v38  ;;  %v11210_v56 = vcombine.high %v11200_v22, %v20310_v38 }
 0xba4   : > { %11109 = vrot.lane.b32.xlu0 %v10988_v50, %s20336_s4  ;;  %v11261_v50 = vcombine.high %v14707_v47, %v20310_v38  ;;  %v11325_v47 = vcombine.high %v11317_v36, %v20310_v38  ;;  %v11193_v36 = vcombine.high %v11177_v4, %v20310_v38 }
 0xba5   : > { %11360 = vrot.lane.b32.xlu1 %v11208_v23, %s20311_s0 }
 0xba6   : > { %v11339_v16 = vrot.slane %v11325_v47, %v20301_v2 }
 0xba7   : > { %v19257_v57 = vpop.permute.xlu0 %11037 }
 0xba8   : > { %11113 = vrot.lane.b32.xlu0 %v11005_v31, %s20337_s1  ;;  %v11275_v31 = vrot.slane %v11261_v50, %v20300_v41 }
 0xba9   : > { %11372 = vrot.lane.b32.xlu1 %v11200_v22, %s20315_s10  ;;  %v11258_v22 = vcombine.high %v11241_v35, %v20310_v38 }
 0xbac   : > { %11117 = vrot.lane.b32.xlu0 %v10996_v7, %s20338_s6 }
 0xbad   : > { %11392 = vrot.lane.b32.xlu1 %v11257_v27, %s20316_s13  ;;  %v11298_v27 = vrot.slane %v11275_v31, %v20301_v2 }
 0xbb0   : > { %11121 = vrot.lane.b32.xlu0 %v11006_v58, %s20339_s7  ;;  %v11209_v58 = vcombine.high %v19210_v62, %v20310_v38  ;;  %v11207_v62 = vrot.slane %v11193_v36, %v20301_v2  ;;  %v11242_v36 = vcombine.high %v11226_v42, %v20310_v38 }
 0xbb1   : > { %11396 = vrot.lane.b32.xlu1 %v11241_v35, %s20317_s14 }
 0xbb2   : > { %v11256_v35 = vrot.slane %v11242_v36, %v20301_v2 }
 0xbb4   : > { %11125 = vrot.lane.b32.xlu0 %v19260_v45, %s20340_s3 }
 0xbb5   : > { %11404 = vrot.lane.b32.xlu1 %v11249_v14, %s20318_s28  ;;  %v11307_v14 = vcombine.high %v11290_v39, %v20310_v38 }
 0xbb6   : > { %v19266_v30 = vpop.permute.xlu0 %11069 }
 0xbb9   : > { %11424 = vrot.lane.b32.xlu1 %v11306_v48, %s20319_s29  ;;  %s20362_s29 = smov 62  }
 0xbba   : > { %v11014_v23 = vpop.permute.xlu0 %11013 }
 0xbbd   : > { %11428 = vrot.lane.b32.xlu1 %v11290_v39, %s20320_s30  ;;  %v11310_v39 = vcombine.high %v19218_v11, %v20310_v38 }
 0xbbe   : > { %v11022_v7 = vpop.permute.xlu0 %11021 }
 0xbc1   : > { %11436 = vrot.lane.b32.xlu1 %v11298_v27, %s20321_s11 }
 0xbc2   : > { %v19277_v33 = vpop.permute.xlu0 %11041 }
 0xbc5   : > { %11456 = vrot.lane.b32.xlu1 %v11355_v0, %s20335_s27  ;;  %v11010_v0 = vpop.permute.xlu1 %11009 }
 0xbc6   : > { %v19282_v37 = vpop.permute.xlu0 %11045  ;;  %v11132_v4 = vsel %vm20342_vm0, %v19137_v49, %v11010_v0  ;;  %v14691_v49 = vld [vmem:[%s20341_s2 + $0x8] sm:$0xff]   ;;  %vm20353_vm0 = vcmask 195584  }
 0xbc7   : > { %13925 = vmatprep.subr.bf16.mxu1 %v14691_v49 }
 0xbc8   : > { %13926 = vmatpush3.bf16.msra.mxu1 %v14691_v49 }
 0xbc9   : > { %11460 = vrot.lane.b32.xlu1 %v11339_v16, %s20336_s4 }
 0xbca   : > { %v19286_v44 = vpop.permute.xlu0 %11053 }
 0xbcd   : > { %11368 = vrot.lane.b32.xlu1 %v11209_v58, %s20322_s12  ;;  %v11133_v58 = vsel %vm20343_vm2, %v11132_v4, %v11014_v23  ;;  %vm20354_vm2 = vcmask 211968   ;;  %s20388_s12 = sld [smem:[#allocation39_spill]] }
 0xbce   : > { %v19291_v48 = vpop.permute.xlu0 %11073 }
 0xbd1   : > { %11376 = vrot.lane.b32.xlu1 %v11210_v56, %s20323_s15 }
 0xbd2   : > { %v19299_v50 = vpop.permute.xlu0 %11077 }
 0xbd5   : > { %11380 = vrot.lane.b32.xlu1 %v11207_v62, %s20324_s16 }
 0xbd6   : > { %v19303_v47 = vpop.permute.xlu0 %11085 }
 0xbd9   : > { %11400 = vrot.lane.b32.xlu1 %v11258_v22, %s20325_s24  ;;  %s20397_s24 = sld [smem:[#allocation40_spill]] }
 0xbda   : > { %v11018_v56 = vpop.permute.xlu0 %11017 }
 0xbdb   : > { %v11134_v3 = vsel %vm20344_vm1, %v11133_v58, %v11018_v56  ;;  %v11356_v58 = vcombine.high %v11339_v16, %v20310_v38  ;;  %vm20355_vm1 = vcmask 228352  }
 0xbdc   : > { %v11135_v26 = vsel %vm20345_vm7, %v11134_v3, %v11022_v7  ;;  %v11308_v3 = vcombine.high %v11298_v27, %v20310_v38  ;;  %v11291_v7 = vcombine.high %v11275_v31, %v20310_v38  ;;  %v11211_v27 = vcombine.high %v11207_v62, %v20310_v38 }
 0xbdd   : > { %11408 = vrot.lane.b32.xlu1 %v11259_v52, %s20326_s17  ;;  %v11324_v31 = vrot.slane %v11310_v39, %v20300_v41  ;;  %v14692_v52 = vld [vmem:[%s20341_s2 + $0x10] sm:$0xff]   ;;  %v11260_v62 = vcombine.high %v11256_v35, %v20310_v38  ;;  %vm20356_vm7 = vcmask 244736  }
 0xbde   : > { %v11026_v53 = vpop.permute.xlu0 %11025  ;;  %v11305_v22 = vrot.slane %v11291_v7, %v20301_v2  ;;  %13927 = vmatprep.subr.bf16.mxu1 %v14692_v52 }
 0xbdf   : > { %13928 = vmatpush3.bf16.msra.mxu1 %v14692_v52  ;;  %v11347_v16 = vrot.slane %v11324_v31, %v20301_v2  ;;  %v11136_v41 = vsel %vm20346_vm14, %v11135_v26, %v11026_v53  ;;  %vm20357_vm14 = vcmask 261120  }
 0xbe1   : > { %11412 = vrot.lane.b32.xlu1 %v11256_v35, %s20327_s18  ;;  %v11357_v7 = vcombine.high %v11347_v16, %v20310_v38  ;;  %v11309_v35 = vcombine.high %v11305_v22, %v20310_v38 }
 0xbe2   : > { %v11030_v23 = vpop.permute.xlu0 %11029 }
 0xbe3   : > { %v11137_v49 = vsel %vm20347_vm12, %v11136_v41, %v11030_v23  ;;  %v11340_v23 = vcombine.high %v11324_v31, %v20310_v38  ;;  %vm20358_vm12 = vcmask 277504  }
 0xbe5   : > { %11432 = vrot.lane.b32.xlu1 %v11307_v14, %s20328_s20  ;;  %s20421_s20 = sld [smem:[#allocation42_spill]] }
 0xbe6   : > { %v11050_v42 = vpop.permute.xlu0 %11049 }
 0xbe9   : > { %11440 = vrot.lane.b32.xlu1 %v11308_v3, %s20329_s19  ;;  %s20422_s19 = sld [smem:[#allocation5_spill]] }
 0xbea   : > { %v11058_v0 = vpop.permute.xlu0 %11057 }
 0xbed   : > { %11444 = vrot.lane.b32.xlu1 %v11305_v22, %s20330_s22 }
 0xbee   : > { %v11062_v4 = vpop.permute.xlu0 %11061 }
 0xbef   : > { %s12682_s22 = sshll.u32 %s20422_s19, 6 }
 0xbf1   : > { %11464 = vrot.lane.b32.xlu1 %v11356_v58, %s20337_s1 }
 0xbf2   : > { %v11082_v56 = vpop.permute.xlu0 %11081 }
 0xbf5   : > { %11384 = vrot.lane.b32.xlu1 %v11211_v27, %s20331_s23 }
 0xbf6   : > { %v19337_v36 = vpop.permute.xlu0 %11089 }
 0xbf9   : > { %11468 = vrot.lane.b32.xlu1 %v11347_v16, %s20338_s6 }
 0xbfa   : > { %v19341_v11 = vpop.permute.xlu0 %11093 }
 0xbfd   : > { %11416 = vrot.lane.b32.xlu1 %v11260_v62, %s20332_s21 }
 0xbfe   : > { %v11034_v14 = vpop.permute.xlu0 %11033 }
 0xbff   : > { %v11138_v3 = vsel %vm20348_vm10, %v11137_v49, %v11034_v14  ;;  %vm20359_vm10 = vcmask 293888  }
 0xc00   : > { %v11139_v58 = vsel %vm20349_vm5, %v11138_v3, %v19257_v57  ;;  %vm20360_vm5 = vcmask 310272  }
 0xc01   : > { %v11140_v39 = vsel %vm20350_vm4, %v11139_v58, %v19277_v33  ;;  %11472 = vrot.lane.b32.xlu1 %v11357_v7, %s20339_s7  ;;  %vm20361_vm4 = vcmask 326656  }
 0xc02   : > { %v11141_v26 = vsel %vm20351_vm11, %v11140_v39, %v19282_v37  ;;  %v11066_v33 = vpop.permute.xlu0 %11065  ;;  %v11354_v37 = vrot.slane %v11340_v23, %v20301_v2  ;;  %v14693_v2 = vld [vmem:[%s20341_s2 + $0x18] sm:$0xff]   ;;  %vm20363_vm11 = vcmask 15360  }
 0xc03   : > { %v11142_v53 = vsel %vm20352_vm8, %v11141_v26, %v11050_v42  ;;  %13929 = vmatprep.subr.bf16.mxu1 %v14693_v2  ;;  %vm20364_vm8 = vcmask 31744  }
 0xc04   : > { %v11143_v27 = vsel %vm20353_vm0, %v11142_v53, %v19286_v44  ;;  %13930 = vmatpush3.bf16.msra.mxu1 %v14693_v2  ;;  %vm20365_vm0 = vcmask 48128  }
 0xc05   : > { %v11144_v52 = vsel %vm20354_vm2, %v11143_v27, %v11058_v0  ;;  %11448 = vrot.lane.b32.xlu1 %v11309_v35, %s20333_s26  ;;  %v11389_v0 = vpop.permute.xlu1 %11388  ;;  %vm20366_vm2 = vcmask 64512   ;;  %s20423_s26 = sld [smem:[#allocation43_spill]] }
 0xc06   : > { %v11145_v57 = vsel %vm20355_vm1, %v11144_v52, %v11062_v4  ;;  %v11358_v4 = vcombine.high %v11354_v37, %v20310_v38  ;;  %v11365_v35 = vpop.permute.xlu0 %11364  ;;  %vm20367_vm1 = vcmask 80896  }
 0xc07   : > { %v11146_v16 = vsel %vm20356_vm7, %v11145_v57, %v11066_v33  ;;  %vm20368_vm7 = vcmask 97280  }
 0xc08   : > { %v11147_v42 = vsel %vm20357_vm14, %v11146_v16, %v19266_v30  ;;  %vm20369_vm14 = vcmask 113664  }
 0xc09   : > { %v11148_v22 = vsel %vm20358_vm12, %v11147_v42, %v19291_v48  ;;  %11476 = vrot.lane.b32.xlu1 %v11354_v37, %s20340_s3  ;;  %v11421_v30 = vpop.permute.xlu1 %11420  ;;  %v11007_v48 = vcombine.high %v19260_v45, %v20310_v38  ;;  %vm20370_vm12 = vcmask 130048  }
 0xc0a   : > { %v11149_v44 = vsel %vm20359_vm10, %v11148_v22, %v19299_v50  ;;  %v11098_v22 = vpop.permute.xlu0 %11097  ;;  %vm20371_vm10 = vcmask 146432  }
 0xc0b   : > { %v11150_v31 = vsel %vm20360_vm5, %v11149_v44, %v11082_v56  ;;  %vm20372_vm5 = vcmask 162816   ;;  %s379_s25 = scalar_lea.vmem %s20423_s26, %s12682_s22 }
 0xc0c   : > { %v11151_v62 = vsel %vm20361_vm4, %v11150_v31, %v19303_v47  ;;  %vm20373_vm4 = vcmask 179200  }
 0xc0d   : > { %11480 = vrot.lane.b32.xlu1 %v11358_v4, %s20362_s29 }
 0xc0e   : > { %v11102_v31 = vpop.permute.xlu0 %11101 }
 0xc11   : > { %11129 = vrot.lane.b32.xlu1 %v11007_v48, %s20362_s29 }
 0xc13   : > { %v11453_v50 = vpop.permute.xlu1 %11452 }
 0xc17   : > { %v11361_v56 = vpop.permute.xlu1 %11360 }
 0xc18   : > { %v11483_v53 = vsel %vm20363_vm11, %v19227_v34, %v11361_v56  ;;  %v11106_v34 = vpop.permute.xlu0 %11105  ;;  %vm20374_vm11 = vcmask 195584  }
 0xc19   : > { %v11484_v38 = vsel %vm20364_vm8, %v11483_v53, %v11365_v35  ;;  %vm20375_vm8 = vcmask 211968  }
 0xc1b   : > { %v11373_v41 = vpop.permute.xlu1 %11372 }
 0xc1f   : > { %v11393_v49 = vpop.permute.xlu1 %11392 }
 0xc23   : > { %v11397_v14 = vpop.permute.xlu1 %11396 }
 0xc27   : > { %v11405_v47 = vpop.permute.xlu1 %11404 }
 0xc2b   : > { %v11425_v3 = vpop.permute.xlu1 %11424 }
 0xc2f   : > { %v11429_v7 = vpop.permute.xlu1 %11428 }
 0xc33   : > { %v11437_v58 = vpop.permute.xlu1 %11436 }
 0xc37   : > { %v11457_v39 = vpop.permute.xlu1 %11456 }
 0xc3b   : > { %v11461_v26 = vpop.permute.xlu1 %11460 }
 0xc3f   : > { %v11369_v23 = vpop.permute.xlu1 %11368 }
 0xc40   : > { %v11485_v45 = vsel %vm20365_vm0, %v11484_v38, %v11369_v23  ;;  %v11110_v38 = vpop.permute.xlu0 %11109  ;;  %vm20376_vm0 = vcmask 228352  }
 0xc41   : > { %v11486_v27 = vsel %vm20366_vm2, %v11485_v45, %v11373_v41  ;;  %vm20377_vm2 = vcmask 244736  }
 0xc43   : > { %v11377_v52 = vpop.permute.xlu1 %11376 }
 0xc44   : > { %v11487_v48 = vsel %vm20367_vm1, %v11486_v27, %v11377_v52  ;;  %vm20378_vm1 = vcmask 261120  }
 0xc47   : > { %v11381_v57 = vpop.permute.xlu1 %11380 }
 0xc48   : > { %v11488_v56 = vsel %vm20368_vm7, %v11487_v48, %v11381_v57  ;;  %v11114_v48 = vpop.permute.xlu0 %11113  ;;  %vm20379_vm7 = vcmask 277504  }
 0xc4b   : > { %v11401_v33 = vpop.permute.xlu1 %11400 }
 0xc4f   : > { %v11409_v16 = vpop.permute.xlu1 %11408 }
 0xc53   : > { %v11413_v37 = vpop.permute.xlu1 %11412 }
 0xc57   : > { %v11433_v42 = vpop.permute.xlu1 %11432 }
 0xc5b   : > { %v11441_v44 = vpop.permute.xlu1 %11440 }
 0xc5f   : > { %v11445_v4 = vpop.permute.xlu1 %11444 }
 0xc63   : > { %v11465_v2 = vpop.permute.xlu1 %11464 }
 0xc67   : > { %v11385_v53 = vpop.permute.xlu1 %11384 }
 0xc68   : > { %v11489_v35 = vsel %vm20369_vm14, %v11488_v56, %v11385_v53  ;;  %vm20380_vm14 = vcmask 293888  }
 0xc69   : > { %v11490_v41 = vsel %vm20370_vm12, %v11489_v35, %v11389_v0  ;;  %vm20381_vm12 = vcmask 310272  }
 0xc6a   : > { %v11491_v23 = vsel %vm20371_vm10, %v11490_v41, %v11393_v49  ;;  %vm20382_vm10 = vcmask 326656  }
 0xc6b   : > { %v11492_v45 = vsel %vm20372_vm5, %v11491_v23, %v11397_v14  ;;  %v11469_v32 = vpop.permute.xlu1 %11468  ;;  %vm20383_vm5 = vcmask 343040  }
 0xc6c   : > { %v11493_v21 = vsel %vm20373_vm4, %v11492_v45, %v11401_v33  ;;  %vm20384_vm4 = vmmov %vm20383_vm5 }
 0xc6d   : > { %v11494_v9 = vsel %vm20374_vm11, %v11493_v21, %v11405_v47  ;;  %vm20385_vm11 = vcmask 441344  }
 0xc6e   : > { %v11495_v55 = vsel %vm20375_vm8, %v11494_v9, %v11409_v16  ;;  %v11152_v9 = vsel %vm20384_vm4, %v11151_v62, %v19337_v36  ;;  %vm20386_vm8 = vcmask 457728  }
 0xc6f   : > { %v11417_v27 = vpop.permute.xlu1 %11416  ;;  %v11496_v52 = vsel %vm20376_vm0, %v11495_v55, %v11413_v37  ;;  %v11118_v55 = vpop.permute.xlu0 %11117  ;;  %vm20387_vm0 = vcmask 474112  }
 0xc70   : > { %v11497_v57 = vsel %vm20377_vm2, %v11496_v52, %v11417_v27  ;;  %vm20389_vm2 = vcmask 490496   ;;  %v20393_v52 = vld [vmem:[#allocation24_spill] sm:$0xff] }
 0xc71   : > { %v11498_v0 = vsel %vm20378_vm1, %v11497_v57, %v11421_v30  ;;  %vm20392_vm1 = vmmov %vm20386_vm8 }
 0xc72   : > { %v11499_v49 = vsel %vm20379_vm7, %v11498_v0, %v11425_v3  ;;  %vm20394_vm7 = vmmov %vm20387_vm0 }
 0xc73   : > { %v11500_v56 = vsel %vm20380_vm14, %v11499_v49, %v11429_v7  ;;  %v11473_v14 = vpop.permute.xlu1 %11472  ;;  %v11153_v7 = vsel %vm6004_vm6, %v11152_v9, %v19341_v11  ;;  %v11122_v62 = vpop.permute.xlu0 %11121  ;;  %vm20395_vm14 = vmmov %vm20389_vm2 }
 0xc74   : > { %v11501_v53 = vsel %vm20381_vm12, %v11500_v56, %v11433_v42  ;;  %v11154_v36 = vsel %vm6006_vm9, %v11153_v7, %v11098_v22 }
 0xc75   : > { %v11502_v33 = vsel %vm20382_vm10, %v11501_v53, %v11437_v58 }
 0xc76   : > { %v11503_v21 = vsel %vm20383_vm5, %v11502_v33, %v11441_v44 }
 0xc77   : > { %v11449_v47 = vpop.permute.xlu1 %11448  ;;  %v11504_v16 = vsel %vm6004_vm6, %v11503_v21, %v11445_v4  ;;  %vm20390_vm6 = vcmask 506880   ;;  %v11126_v45 = vpop.permute.xlu0 %11125 }
 0xc78   : > { %v11505_v30 = vsel %vm6006_vm9, %v11504_v16, %v11449_v47  ;;  %vm20391_vm9 = vmmov %vm20385_vm11  ;;  %v20398_v16 = vld [vmem:[#allocation15_spill] sm:$0xff] }
 0xc79   : > { %v11506_v3 = vsel %vm6008_vm3, %v11505_v30, %v11453_v50  ;;  %v10008_v50 = vld [vmem:[%s20388_s12] sm:$0x1]  ;;  %v20399_v30 = vld [vmem:[#allocation21_spill] sm:$0xff] }
 0xc7a   : > { %v11507_v37 = vsel %vm6010_vm15, %v11506_v3, %v11457_v39  ;;  %v11155_v39 = vsel %vm6008_vm3, %v11154_v36, %v11102_v31  ;;  %vm20396_vm3 = vmmov %vm20390_vm6  ;;  %v20400_v3 = vld [vmem:[#allocation18_spill] sm:$0xff]  ;;  %v20403_v36 = vld [vmem:[#allocation29_spill] sm:$0xff] }
 0xc7b   : > { %v11508_v58 = vsel %vm6012_vm13, %v11507_v37, %v11461_v26  ;;  %v11477_v42 = vpop.permute.xlu1 %11476 }
 0xc7c   : > { %v11509_v44 = vsel %vm20385_vm11, %v11508_v58, %v11465_v2  ;;  %v11156_v2 = vsel %vm6010_vm15, %v11155_v39, %v11106_v34  ;;  %v20401_v58 = vld [vmem:[#allocation10_spill] sm:$0xff] }
 0xc7d   : > { %v11510_v35 = vsel %vm20386_vm8, %v11509_v44, %v11469_v32  ;;  %v11157_v22 = vsel %vm6012_vm13, %v11156_v2, %v11110_v38  ;;  %vm20405_vm13 = vcmask 523264  }
 0xc7e   : > { %v11511_v4 = vsel %vm20387_vm0, %v11510_v35, %v11473_v14  ;;  %v11158_v32 = vsel %vm20391_vm9, %v11157_v22, %v11114_v48  ;;  %vm20406_vm15 = vmmov %vm20405_vm13 }
 0xc7f   : > { %v11512_v11 = vsel %vm20389_vm2, %v11511_v4, %v11477_v42  ;;  %v11481_v41 = vpop.permute.xlu1 %11480  ;;  %v11159_v27 = vsel %vm20392_vm1, %v11158_v32, %v11118_v55  ;;  %vm20407_vm12 = vmmov %vm20405_vm13 }
 0xc80   : > { %v11513_v26 = vsel %vm20390_vm6, %v11512_v11, %v11481_v41  ;;  %v11160_v49 = vsel %vm20394_vm7, %v11159_v27, %v11122_v62  ;;  %v20404_v62 = vld [vmem:[#allocation28_spill] sm:$0xff]  ;;  %vm20408_vm10 = vmmov %vm20407_vm12 }
 0xc81   : > { %v11514_v23 = vmul.f32 %v11513_v26, %v10008_v50  ;;  %v11161_v56 = vsel %vm20395_vm14, %v11160_v49, %v11126_v45  ;;  %vm20409_vm5 = vmmov %vm20408_vm10 }
 0xc82   : > { %vm20410_vm4 = vmmov %vm20409_vm5 }
 0xc83   : > { %v11520_v57 = vrot.slane %v11514_v23, %v20393_v52  ;;  %v11130_v0 = vpop.permute.xlu1 %11129  ;;  %vm20411_vm11 = vmmov %vm20410_vm4 }
 0xc84   : > { %v11162_v31 = vsel %vm20396_vm3, %v11161_v56, %v11130_v0  ;;  %vm20412_vm8 = vmmov %vm20410_vm4 }
 0xc85   : > { %v11533_v14 = vmul.f32 %v11520_v57, %v18807_v40  ;;  %v11534_v34 = vmul.f32 %v11520_v57, %v18816_v51  ;;  %v11535_v38 = vmul.f32 %v18803_v60, %v11520_v57  ;;  %v11536_v48 = vmul.f32 %v18811_v25, %v11520_v57  ;;  %vm20413_vm0 = vmmov %vm20410_vm4 }
 0xc86   : > { %v11537_v53 = vmul.f32 %v11520_v57, %v18835_v12  ;;  %v11538_v33 = vmul.f32 %v11520_v57, %v18844_v46  ;;  %v11539_v21 = vmul.f32 %v18830_v29, %v11520_v57  ;;  %v11540_v9 = vmul.f32 %v18839_v13, %v11520_v57  ;;  %vm20414_vm2 = vmmov %vm20413_vm0 }
 0xc87   : > { %v11541_v55 = vmul.f32 %v11520_v57, %v18863_v15  ;;  %v11542_v47 = vmul.f32 %v11520_v57, %v18872_v18  ;;  %v11543_v40 = vmul.f32 %v18858_v54, %v11520_v57  ;;  %v11544_v51 = vmul.f32 %v18867_v20, %v11520_v57  ;;  %v10009_v54 = vld [vmem:[%s20397_s24] sm:$0x1]  ;;  %vm20415_vm6 = vmmov %vm20413_vm0 }
 0xc88   : > { %v11545_v60 = vmul.f32 %v11520_v57, %v18891_v6  ;;  %v11546_v25 = vmul.f32 %v11520_v57, %v18900_v24  ;;  %v11547_v12 = vmul.f32 %v18886_v10, %v11520_v57  ;;  %v11548_v46 = vmul.f32 %v18895_v5, %v11520_v57  ;;  %vm20416_vm9 = vmmov %vm20413_vm0 }
 0xc89   : > { %v11549_v29 = vmul.f32 %v11520_v57, %v18919_v28  ;;  %v11550_v13 = vmul.f32 %v11520_v57, %v18928_v17  ;;  %v11551_v15 = vmul.f32 %v18914_v8, %v11520_v57  ;;  %v11552_v18 = vmul.f32 %v18923_v61, %v11520_v57  ;;  %vm20417_vm1 = vmmov %vm20413_vm0 }
 0xc8a   : > { %v11515_v20 = vmul.f32 %v11514_v23, %v11162_v31  ;;  %v11521_v6 = vmul.f32 %v18717_v43, %v11520_v57  ;;  %v11522_v10 = vmul.f32 %v18725_v19, %v11520_v57  ;;  %v11523_v5 = vmul.f32 %v18714_v63, %v11520_v57  ;;  %v20402_v43 = vld [vmem:[#allocation16_spill] sm:$0xff]  ;;  %vm20418_vm7 = vmmov %vm20413_vm0 }
 0xc8b   : > { %v11524_v28 = vmul.f32 %v18720_v59, %v11520_v57  ;;  %v11525_v17 = vmul.f32 %v18748_v1, %v11520_v57  ;;  %v11526_v8 = vmul.f32 %v20398_v16, %v11520_v57  ;;  %v11527_v61 = vmul.f32 %v20399_v30, %v11520_v57  ;;  %vm20419_vm14 = vmmov %vm20413_vm0 }
 0xc8c   : > { %v11516_v24 = vsub.f32 %v10009_v54, %v11515_v20  ;;  %v11528_v7 = vmul.f32 %v20400_v3, %v11520_v57  ;;  %v11529_v42 = vmul.f32 %v20401_v58, %v11520_v57  ;;  %v11530_v44 = vmul.f32 %v20402_v43, %v11520_v57  ;;  %vm20420_vm3 = vmmov %vm20413_vm0 }
 0xc8d   : > { %v11531_v19 = vmul.f32 %v20403_v36, %v11520_v57  ;;  %v11532_v63 = vmul.f32 %v20404_v62, %v11520_v57 }
 0xc8e   : > { %v11557_v37 = vrot.slane %v11516_v24, %v20393_v52 }
 0xc90   : > { %v19469_v35 = vadd.f32 %v11557_v37, %v11521_v6  ;;  %v19471_v59 = vadd.f32 %v11557_v37, %v11522_v10  ;;  %v19473_v1 = vadd.f32 %v11557_v37, %v11523_v5  ;;  %v19475_v4 = vadd.f32 %v11557_v37, %v11524_v28 }
 0xc91   : > { %v19477_v50 = vadd.f32 %v11557_v37, %v11525_v17  ;;  %v11564_v11 = vadd.f32 %v11557_v37, %v11526_v8  ;;  %v11565_v41 = vadd.f32 %v11557_v37, %v11527_v61  ;;  %v11566_v39 = vadd.f32 %v11557_v37, %v11528_v7 }
 0xc92   : > { %v11567_v26 = vadd.f32 %v11557_v37, %v11529_v42  ;;  %v11568_v2 = vadd.f32 %v11557_v37, %v11530_v44  ;;  %v11569_v23 = vadd.f32 %v11557_v37, %v11531_v19  ;;  %v11570_v22 = vadd.f32 %v11557_v37, %v11532_v63 }
 0xc93   : > { %v11571_v32 = vadd.f32 %v11557_v37, %v11533_v14  ;;  %v11572_v45 = vadd.f32 %v11557_v37, %v11534_v34  ;;  %v11573_v27 = vadd.f32 %v11557_v37, %v11535_v38  ;;  %v11574_v52 = vadd.f32 %v11557_v37, %v11536_v48 }
 0xc94   : > { %v11575_v57 = vadd.f32 %v11557_v37, %v11537_v53  ;;  %v11576_v0 = vadd.f32 %v11557_v37, %v11538_v33  ;;  %v11577_v49 = vadd.f32 %v11557_v37, %v11539_v21  ;;  %v11578_v56 = vadd.f32 %v11557_v37, %v11540_v9 }
 0xc95   : > { %v11579_v31 = vadd.f32 %v11557_v37, %v11541_v55  ;;  %v11580_v54 = vadd.f32 %v11557_v37, %v11542_v47  ;;  %v11581_v20 = vadd.f32 %v11557_v37, %v11543_v40  ;;  %v11582_v6 = vadd.f32 %v11557_v37, %v11544_v51 }
 0xc96   : > { %v11583_v24 = vadd.f32 %v11557_v37, %v11545_v60  ;;  %v11584_v10 = vadd.f32 %v11557_v37, %v11546_v25  ;;  %v11585_v5 = vadd.f32 %v11557_v37, %v11547_v12  ;;  %v11586_v28 = vadd.f32 %v11557_v37, %v11548_v46 }
 0xc97   : > { %v11587_v17 = vadd.f32 %v11557_v37, %v11549_v29  ;;  %v11588_v16 = vadd.f32 %v11557_v37, %v11550_v13  ;;  %v11589_v8 = vadd.f32 %v11557_v37, %v11551_v15  ;;  %v11590_v30 = vadd.f32 %v11557_v37, %v11552_v18 }
 0xc98   : > { %v11591_v14 = vmax.f32 %v19469_v35, 0.0  ;;  %v11592_v34 = vmax.f32 %v19471_v59, 0.0  ;;  %v11593_v38 = vmax.f32 %v19473_v1, 0.0  ;;  %v11594_v48 = vmax.f32 %v19475_v4, 0.0 }
 0xc99   : > { %v11595_v53 = vmax.f32 %v19477_v50, 0.0  ;;  %v11596_v33 = vmax.f32 %v11564_v11, 0.0  ;;  %v11597_v21 = vmax.f32 %v11565_v41, 0.0  ;;  %v11598_v9 = vmax.f32 %v11566_v39, 0.0 }
 0xc9a   : > { %v11599_v55 = vmax.f32 %v11567_v26, 0.0  ;;  %v11600_v47 = vmax.f32 %v11568_v2, 0.0  ;;  %v11601_v40 = vmax.f32 %v11569_v23, 0.0  ;;  %v11602_v51 = vmax.f32 %v11570_v22, 0.0 }
 0xc9b   : > { %v11603_v60 = vmax.f32 %v11571_v32, 0.0  ;;  %v11604_v25 = vmax.f32 %v11572_v45, 0.0  ;;  %v11605_v12 = vmax.f32 %v11573_v27, 0.0  ;;  %v11606_v46 = vmax.f32 %v11574_v52, 0.0 }
 0xc9c   : > { %v11607_v29 = vmax.f32 %v11575_v57, 0.0  ;;  %v11608_v13 = vmax.f32 %v11576_v0, 0.0  ;;  %v11609_v15 = vmax.f32 %v11577_v49, 0.0  ;;  %v11610_v18 = vmax.f32 %v11578_v56, 0.0  ;;  %v19503_v57 = vld [vmem:[%s20421_s20] ss:$0 sm:$0xff] }
 0xc9d   : > { %v11611_v61 = vmax.f32 %v11579_v31, 0.0  ;;  %v11612_v3 = vmax.f32 %v11580_v54, 0.0  ;;  %v11613_v7 = vmax.f32 %v11581_v20, 0.0  ;;  %v11614_v37 = vmax.f32 %v11582_v6, 0.0 }
 0xc9e   : > { %v11615_v58 = vmax.f32 %v11583_v24, 0.0  ;;  %v11616_v42 = vmax.f32 %v11584_v10, 0.0  ;;  %v11617_v43 = vmax.f32 %v11585_v5, 0.0  ;;  %v11618_v44 = vmax.f32 %v11586_v28, 0.0 }
 0xc9f   : > { %v11619_v36 = vmax.f32 %v11587_v17, 0.0  ;;  %v11620_v19 = vmax.f32 %v11588_v16, 0.0  ;;  %v11621_v62 = vmax.f32 %v11589_v8, 0.0  ;;  %v11622_v63 = vmax.f32 %v11590_v30, 0.0 }
 0xca0   : > { %v11623_v35 = vpack.c.bf16 %v11592_v34, %v11591_v14  ;;  %v11624_v59 = vpack.c.bf16 %v11594_v48, %v11593_v38  ;;  %v11625_v1 = vpack.c.bf16 %v11596_v33, %v11595_v53  ;;  %v11626_v4 = vpack.c.bf16 %v11598_v9, %v11597_v21 }
 0xca1   : > { %v11627_v50 = vpack.c.bf16 %v11600_v47, %v11599_v55  ;;  %v11628_v11 = vpack.c.bf16 %v11602_v51, %v11601_v40  ;;  %v11629_v41 = vpack.c.bf16 %v11604_v25, %v11603_v60  ;;  %v11630_v39 = vpack.c.bf16 %v11606_v46, %v11605_v12 }
 0xca2   : > { %13931 = vmatprep.mubr.msk.bf16.mxu1 %vm20405_vm13, %v11623_v35  ;;  %v11631_v26 = vpack.c.bf16 %v11608_v13, %v11607_v29  ;;  %v11632_v2 = vpack.c.bf16 %v11610_v18, %v11609_v15  ;;  %v11633_v23 = vpack.c.bf16 %v11612_v3, %v11611_v61  ;;  %v11634_v22 = vpack.c.bf16 %v11614_v37, %v11613_v7 }
 0xca3   : > { %13932 = vmatmul.mubr.msk.bf16.vlgmr.msra.gmra.mrb[32].mxu1 %vm20406_vm15, %v11624_v59  ;;  %v11635_v32 = vpack.c.bf16 %v11616_v42, %v11615_v58  ;;  %v11636_v45 = vpack.c.bf16 %v11618_v44, %v11617_v43  ;;  %v11637_v27 = vpack.c.bf16 %v11620_v19, %v11619_v36  ;;  %v11638_v52 = vpack.c.bf16 %v11622_v63, %v11621_v62 }
 0xca4   : > { %13935 = vmatprep.mubr.msk.bf16.mxu1 %vm20407_vm12, %v11625_v1 }
 0xcab   : > { %13936 = vmatmul.mubr.msk.bf16.gmra.mrb[36].mxu1 %vm20408_vm10, %v11626_v4 }
 0xcac   : > { %13939 = vmatprep.mubr.msk.bf16.mxu1 %vm20409_vm5, %v11627_v50 }
 0xcb3   : > { %13940 = vmatmul.mubr.msk.bf16.gmra.mrb[40].mxu1 %vm20410_vm4, %v11628_v11 }
 0xcb4   : > { %13943 = vmatprep.mubr.msk.bf16.mxu1 %vm20411_vm11, %v11629_v41 }
 0xcbb   : > { %13944 = vmatmul.mubr.msk.bf16.gmra.mrb[44].mxu1 %vm20412_vm8, %v11630_v39 }
 0xcbc   : > { %13947 = vmatprep.mubr.msk.bf16.mxu1 %vm20413_vm0, %v11631_v26 }
 0xcc3   : > { %13948 = vmatmul.mubr.msk.bf16.gmra.mrb[48].mxu1 %vm20414_vm2, %v11632_v2 }
 0xcc4   : > { %13951 = vmatprep.mubr.msk.bf16.mxu1 %vm20415_vm6, %v11633_v23 }
 0xccb   : > { %13952 = vmatmul.mubr.msk.bf16.gmra.mrb[52].mxu1 %vm20416_vm9, %v11634_v22 }
 0xccc   : > { %13955 = vmatprep.mubr.msk.bf16.mxu1 %vm20417_vm1, %v11635_v32 }
 0xcd3   : > { %13956 = vmatmul.mubr.msk.bf16.gmra.mrb[56].mxu1 %vm20418_vm7, %v11636_v45 }
 0xcd4   : > { %13959 = vmatprep.mubr.msk.bf16.mxu1 %vm20419_vm14, %v11637_v27 }
 0xcdb   : > { %13960 = vmatmul.mubr.msk.bf16.gmra.mrb[60].mxu1 %vm20420_vm3, %v11638_v52 }
 0xd76   : > { %v13933_v0 = vpop.f32.mrb[32].mxu1 }
 0xd77   : > { %v11760_v49 = vpop.f32.mrb[33].mxu1  ;;  %v11769_v10 = vadd.f32 %v13933_v0, %v19503_v57 }
 0xd78   : > { %v11761_v56 = vadd.f32 %v19503_v57, %v11760_v49  ;;  %v13934_v31 = vpop.f32.mrb[34].mxu1 }
 0xd79   : > { %v11763_v54 = vpop.f32.mrb[35].mxu1  ;;  %v11772_v17 = vadd.f32 %v13934_v31, %v19503_v57 }
 0xd7a   : > { %11887 = vxpose.xlu0.b32.start [1/16] (narrow) %v11761_v56, 32  ;;  %v11764_v20 = vadd.f32 %v19503_v57, %v11763_v54 }
 0xd7e   : > { %v13937_v6 = vpop.f32.mrb[36].mxu1  ;;  %11888 = vxpose.xlu0.b32.cont [2/16] (narrow) %v11764_v20, 32 }
 0xd7f   : > { %v11776_v24 = vpop.f32.mrb[37].mxu1  ;;  %v11785_v33 = vadd.f32 %v13937_v6, %v19503_v57 }
 0xd80   : > { %v13938_v5 = vpop.f32.mrb[38].mxu1  ;;  %v11777_v30 = vadd.f32 %v19503_v57, %v11776_v24 }
 0xd81   : > { %v11779_v28 = vpop.f32.mrb[39].mxu1  ;;  %v11788_v55 = vadd.f32 %v13938_v5, %v19503_v57 }
 0xd82   : > { %11889 = vxpose.xlu0.b32.cont [3/16] (narrow) %v11769_v10, 32  ;;  %v11780_v38 = vadd.f32 %v19503_v57, %v11779_v28 }
 0xd86   : > { %v13941_v16 = vpop.f32.mrb[40].mxu1  ;;  %11890 = vxpose.xlu0.b32.cont [4/16] (narrow) %v11772_v17, 32 }
 0xd87   : > { %v11792_v8 = vpop.f32.mrb[41].mxu1  ;;  %v11801_v18 = vadd.f32 %v13941_v16, %v19503_v57 }
 0xd88   : > { %v13942_v14 = vpop.f32.mrb[42].mxu1  ;;  %v11793_v51 = vadd.f32 %v19503_v57, %v11792_v8 }
 0xd89   : > { %v11795_v34 = vpop.f32.mrb[43].mxu1  ;;  %v11804_v37 = vadd.f32 %v13942_v14, %v19503_v57 }
 0xd8a   : > { %11891 = vxpose.xlu0.b32.cont [5/16] (narrow) %v11777_v30, 32  ;;  %v11796_v46 = vadd.f32 %v19503_v57, %v11795_v34 }
 0xd8e   : > { %v13945_v48 = vpop.f32.mrb[44].mxu1  ;;  %11892 = vxpose.xlu0.b32.cont [6/16] (narrow) %v11780_v38, 32 }
 0xd8f   : > { %v11808_v53 = vpop.f32.mrb[45].mxu1  ;;  %v11817_v26 = vadd.f32 %v13945_v48, %v19503_v57 }
 0xd90   : > { %v13946_v21 = vpop.f32.mrb[46].mxu1  ;;  %v11809_v36 = vadd.f32 %v19503_v57, %v11808_v53 }
 0xd91   : > { %v11811_v9 = vpop.f32.mrb[47].mxu1  ;;  %v11820_v52 = vadd.f32 %v13946_v21, %v19503_v57 }
 0xd92   : > { %11893 = vxpose.xlu0.b32.cont [7/16] (narrow) %v11785_v33, 32  ;;  %v11812_v4 = vadd.f32 %v19503_v57, %v11811_v9 }
 0xd96   : > { %v13949_v47 = vpop.f32.mrb[48].mxu1  ;;  %11894 = vxpose.xlu0.b32.cont [8/16] (narrow) %v11788_v55, 32 }
 0xd97   : > { %v11824_v40 = vpop.f32.mrb[49].mxu1  ;;  %v11833_v61 = vadd.f32 %v13949_v47, %v19503_v57 }
 0xd98   : > { %v11825_v60 = vadd.f32 %v19503_v57, %v11824_v40  ;;  %v13950_v25 = vpop.f32.mrb[50].mxu1 }
 0xd99   : > { %v11827_v12 = vpop.f32.mrb[51].mxu1  ;;  %v11836_v58 = vadd.f32 %v13950_v25, %v19503_v57 }
 0xd9a   : > { %11919 = vxpose.xlu1.b32.start [1/16] (narrow) %v11825_v60, 32  ;;  %11895 = vxpose.xlu0.b32.cont [9/16] (narrow) %v11793_v51, 32  ;;  %v11828_v29 = vadd.f32 %v19503_v57, %v11827_v12 }
 0xd9e   : > { %v13953_v13 = vpop.f32.mrb[52].mxu1  ;;  %11920 = vxpose.xlu1.b32.cont [2/16] (narrow) %v11828_v29, 32  ;;  %11896 = vxpose.xlu0.b32.cont [10/16] (narrow) %v11796_v46, 32 }
 0xd9f   : > { %v11840_v15 = vpop.f32.mrb[53].mxu1  ;;  %v11849_v2 = vadd.f32 %v13953_v13, %v19503_v57 }
 0xda0   : > { %v13954_v3 = vpop.f32.mrb[54].mxu1  ;;  %v11841_v19 = vadd.f32 %v19503_v57, %v11840_v15 }
 0xda1   : > { %v11843_v7 = vpop.f32.mrb[55].mxu1  ;;  %v11852_v0 = vadd.f32 %v13954_v3, %v19503_v57 }
 0xda2   : > { %11921 = vxpose.xlu1.b32.cont [3/16] (narrow) %v11833_v61, 32  ;;  %11897 = vxpose.xlu0.b32.cont [11/16] (narrow) %v11801_v18, 32  ;;  %v11844_v50 = vadd.f32 %v19503_v57, %v11843_v7 }
 0xda6   : > { %v13957_v42 = vpop.f32.mrb[56].mxu1  ;;  %11922 = vxpose.xlu1.b32.cont [4/16] (narrow) %v11836_v58, 32  ;;  %11898 = vxpose.xlu0.b32.cont [12/16] (narrow) %v11804_v37, 32 }
 0xda7   : > { %v11865_v43 = vadd.f32 %v13957_v42, %v19503_v57  ;;  %v11856_v44 = vpop.f32.mrb[57].mxu1 }
 0xda8   : > { %v11857_v62 = vadd.f32 %v19503_v57, %v11856_v44  ;;  %v13958_v63 = vpop.f32.mrb[58].mxu1 }
 0xda9   : > { %v11868_v35 = vadd.f32 %v13958_v63, %v19503_v57  ;;  %v11859_v59 = vpop.f32.mrb[59].mxu1 }
 0xdaa   : > { %v11860_v1 = vadd.f32 %v19503_v57, %v11859_v59  ;;  %11923 = vxpose.xlu1.b32.cont [5/16] (narrow) %v11841_v19, 32  ;;  %11899 = vxpose.xlu0.b32.cont [13/16] (narrow) %v11809_v36, 32 }
 0xdae   : > { %v13961_v11 = vpop.f32.mrb[60].mxu1  ;;  %11924 = vxpose.xlu1.b32.cont [6/16] (narrow) %v11844_v50, 32  ;;  %11900 = vxpose.xlu0.b32.cont [14/16] (narrow) %v11812_v4, 32 }
 0xdaf   : > { %v11881_v41 = vadd.f32 %v13961_v11, %v19503_v57  ;;  %v11872_v39 = vpop.f32.mrb[61].mxu1 }
 0xdb0   : > { %v11873_v23 = vadd.f32 %v19503_v57, %v11872_v39  ;;  %v13962_v22 = vpop.f32.mrb[62].mxu1 }
 0xdb1   : > { %v11884_v32 = vadd.f32 %v13962_v22, %v19503_v57  ;;  %v11875_v45 = vpop.f32.mrb[63].mxu1 }
 0xdb2   : > { %v11876_v27 = vadd.f32 %v19503_v57, %v11875_v45  ;;  %11925 = vxpose.xlu1.b32.cont [7/16] (narrow) %v11849_v2, 32  ;;  %11901 = vxpose.xlu0.b32.cont [15/16] (narrow) %v11817_v26, 32 }
 0xdb6   : > { %11926 = vxpose.xlu1.b32.cont [8/16] (narrow) %v11852_v0, 32  ;;  %11902 = vxpose.xlu0.b32.end [16/16] (narrow) %v11820_v52, 32 }
 0xdba   : > { %11927 = vxpose.xlu1.b32.cont [9/16] (narrow) %v11857_v62, 32 }
 0xdbe   : > { %11928 = vxpose.xlu1.b32.cont [10/16] (narrow) %v11860_v1, 32 }
 0xdc2   : > { %11929 = vxpose.xlu1.b32.cont [11/16] (narrow) %v11865_v43, 32 }
 0xdc6   : > { %11930 = vxpose.xlu1.b32.cont [12/16] (narrow) %v11868_v35, 32 }
 0xdca   : > { %11931 = vxpose.xlu1.b32.cont [13/16] (narrow) %v11873_v23, 32 }
 0xdce   : > { %11932 = vxpose.xlu1.b32.cont [14/16] (narrow) %v11876_v27, 32 }
 0xdd2   : > { %11933 = vxpose.xlu1.b32.cont [15/16] (narrow) %v11881_v41, 32 }
 0xdd6   : > { %11934 = vxpose.xlu1.b32.end [16/16] (narrow) %v11884_v32, 32 }
 0xdfa   : > { %v11903_v49 = vpop.trf.xlu0 }
 0xdfb   : > { %11951 = vst [vmem:[%s379_s25] sm:$0xff] %v11903_v49 }
 0xdfe   : > { %v11904_v56 = vpop.trf.xlu0 }
 0xdff   : > { %11953 = vst [vmem:[%s379_s25 + $0x10] sm:$0xff] %v11904_v56 }
 0xe02   : > { %v11905_v57 = vpop.trf.xlu0 }
 0xe03   : > { %11955 = vst [vmem:[%s379_s25 + $0x20] sm:$0xff] %v11905_v57 }
 0xe06   : > { %v11906_v31 = vpop.trf.xlu0 }
 0xe07   : > { %11957 = vst [vmem:[%s379_s25 + $0x30] sm:$0xff] %v11906_v31 }
 0xe1a   : > { %v11935_v54 = vpop.trf.xlu1 }
 0xe1b   : > { %11952 = vst [vmem:[%s379_s25 + $0x8] sm:$0xff] %v11935_v54 }
 0xe1e   : > { %v11936_v20 = vpop.trf.xlu1 }
 0xe1f   : > { %11954 = vst [vmem:[%s379_s25 + $0x18] sm:$0xff] %v11936_v20 }
 0xe22   : > { %v11937_v6 = vpop.trf.xlu1 }
 0xe23   : > { %11956 = vst [vmem:[%s379_s25 + $0x28] sm:$0xff] %v11937_v6 }
 0xe26   : > { %v11938_v24 = vpop.trf.xlu1 }
 0xe27   : > { %11958 = vst [vmem:[%s379_s25 + $0x38] sm:$0xff] %v11938_v24 }
 0xe28 PF: > { %s20424_s27 = sld [smem:[#allocation4_spill]] }
 0xe2e   : > { %s20_s13 = sadd.s32 1, %s20424_s27  }
 0xe2f   : > { %p17_p4 = scmp.ge.s32.totalorder %s20_s13, 4  }
 0xe31   :  { %19 = sbr.rel (!%p17_p4) target bundleno = 12 (0xc), region = 113 }

</bundles_post_ra>
